<compile_context>
chip_gen: v5e
topology: v5e:2x2
jax: 0.10.0
libtpu: 0.0.40
codegen_flags: <defaults>
</compile_context>

<pallas_src>
import functools
import math

import jax
import jax.numpy as jnp
from jax.experimental import pallas as pl
from jax.experimental.pallas import tpu as pltpu

_LANES = 128
_ATTN_NAMES = ("wq", "wk", "wv", "wo", "w1", "w2", "g1", "g2")
_N_ATTN_LAYERS = 5  # attn_L_VL, attn_VL_VL, attn_VC_L, attn_C_L, attn_C_self


# ----------------------------------------------------------------------------
# In-kernel helpers (operate on values / refs, all f32, tokens on sublanes)
# ----------------------------------------------------------------------------
def _layer_norm(x, g, eps=1e-5):
    mu = jnp.mean(x, axis=-1, keepdims=True)
    var = jnp.mean(jnp.square(x - mu), axis=-1, keepdims=True)
    return (x - mu) * jax.lax.rsqrt(var + eps) * g


def _xattn_block(q, kv, w, ns):
    """Post-norm cross-attention block; nhead == d_model => head_dim == 1, scale == 1.

    q:  (ns*tq, D)  batch-stacked along sublanes
    kv: (ns*tk, D)
    returns (ns*tq, D)
    """
    wq, wk, wv, wo, w1, w2, g1, g2 = w
    tq = q.shape[0] // ns
    tk = kv.shape[0] // ns

    # Shared projections: one dot over the whole stacked batch, no KV lane split.
    Q = jnp.dot(q, wq, preferred_element_type=jnp.float32)
    K = jnp.dot(kv, wk, preferred_element_type=jnp.float32)
    V = jnp.dot(kv, wv, preferred_element_type=jnp.float32)

    # head_dim == 1: s[b,i,j,d] = Q[b,i,d] * K[b,j,d]; softmax over j per (i, d).
    outs = []
    for b in range(ns):
        Qb = Q[b * tq:(b + 1) * tq]                       # (tq, D)
        Kb = K[b * tk:(b + 1) * tk]                       # (tk, D)
        Vb = V[b * tk:(b + 1) * tk]                       # (tk, D)
        kmax = jnp.max(Kb, axis=0, keepdims=True)         # (1, D)
        kmin = jnp.min(Kb, axis=0, keepdims=True)
        m = jnp.where(Qb > 0, Qb * kmax, Qb * kmin)       # analytic max_j(Qb*Kb)
        p = jnp.exp(Qb[:, None, :] * Kb[None, :, :] - m[:, None, :])   # (tq, tk, D)
        num = jnp.sum(p * Vb[None, :, :], axis=1)         # (tq, D)
        den = jnp.sum(p, axis=1)
        outs.append(num * pl.reciprocal(den, approx=True))
    attn = outs[0] if ns == 1 else jnp.concatenate(outs, axis=0)       # (ns*tq, D)
    attn = jnp.dot(attn, wo, preferred_element_type=jnp.float32)

    # Post-norm residual blocks (dropout == identity in eval mode).
    x1 = _layer_norm(q + attn, g1)
    h = jnp.maximum(jnp.dot(x1, w1, preferred_element_type=jnp.float32), 0.0)
    ff = jnp.dot(h, w2, preferred_element_type=jnp.float32)
    return _layer_norm(x1 + ff, g2)


def _stack(ref):
    """(NS, A, B) ref -> (NS*A, B) value (batch stacked along sublanes)."""
    ns = ref.shape[0]
    parts = [ref[b] for b in range(ns)]
    return parts[0] if ns == 1 else jnp.concatenate(parts, axis=0)


def _stack_t(ref):
    """(NS, A, B) ref -> (NS*B, A) value (per-batch transpose, then stack)."""
    ns = ref.shape[0]
    parts = [ref[b].T for b in range(ns)]
    return parts[0] if ns == 1 else jnp.concatenate(parts, axis=0)


def _unstack_t(v, ns, rows):
    """(ns*rows, cols) -> per-batch transpose -> (ns*cols, rows)."""
    parts = [v[b * rows:(b + 1) * rows].T for b in range(ns)]
    return parts[0] if ns == 1 else jnp.concatenate(parts, axis=0)


# ----------------------------------------------------------------------------
# Fused Decoder kernel: single invocation, batch stacked along sublanes,
# all weights unpacked from one packed VMEM buffer via static slices.
# ----------------------------------------------------------------------------
def _decoder_kernel(x_ref, mem_ref, xvcvl_ref, xvc_ref, w_ref, out_ref, *, meta):
    ns, c, l = x_ref.shape

    def getw(i):
        off, r, cols = meta[i]
        return w_ref[off:off + r, :cols]

    def layer_w(layer):
        base = layer * len(_ATTN_NAMES)
        return [getw(base + j) for j in range(len(_ATTN_NAMES))]

    # ---- LocationDecoder ----
    # attn_L_VL(x_VC_VL^T, mem^T): tokens = VL / M, d_model = VC
    a = _xattn_block(_stack_t(xvcvl_ref), _stack_t(mem_ref), layer_w(0), ns)   # (ns*VL, VC)
    # attn_VL_VL(x_VC^T, a): tokens = L / VL, d_model = VC
    b = _xattn_block(_stack_t(xvc_ref), a, layer_w(1), ns)                     # (ns*L, VC)
    # softmax(dim=1) on the transposed (VC, L) tensor == lane softmax over VC here.
    e = jnp.exp(b - jnp.max(b, axis=-1, keepdims=True))
    sm = e * pl.reciprocal(jnp.sum(e, axis=-1, keepdims=True), approx=True)    # (ns*L, VC)
    x_vc_mem = _unstack_t(sm, ns, l)                                           # (ns*VC, L)

    # ---- ColorDecoder ----
    m1 = _xattn_block(_stack(xvc_ref), x_vc_mem, layer_w(2), ns)               # (ns*VC, L)
    y = _xattn_block(_stack(x_ref), m1, layer_w(3), ns)                        # (ns*C, L)
    # emerge_color: self-attention over the channel axis (d_model = C).
    yt = _unstack_t(y, ns, c)                                                  # (ns*L, C)
    z = _xattn_block(yt, yt, layer_w(4), ns)                                   # (ns*L, C)
    y = _unstack_t(z, ns, l)                                                   # (ns*C, L)

    # ---- ff_L: bias-free Linear stack, ReLU between (not after the last) ----
    base = _N_ATTN_LAYERS * len(_ATTN_NAMES)
    n_ff = len(meta) - base
    for i in range(n_ff):
        y = jnp.dot(y, getw(base + i), preferred_element_type=jnp.float32)
        if i != n_ff - 1:
            y = jnp.maximum(y, 0.0)

    out_ref[...] = y.astype(out_ref.dtype)


# ----------------------------------------------------------------------------
# Host-side weight packing: one sublane-padded (R, 128) f32 buffer + static meta.
# ----------------------------------------------------------------------------
def _pad_block(w):
    w = jnp.asarray(w, jnp.float32)
    r, c = w.shape
    rp = -(-r // 8) * 8
    return jnp.zeros((rp, _LANES), jnp.float32).at[:r, :c].set(w)


def pack_decoder_weights(params):
    layers = [params["attn_L_VL"], params["attn_VL_VL"], params["attn_VC_L"],
              params["attn_C_L"], params["attn_C_self"]]
    tensors = []
    for p in layers:
        tensors += [p[n] for n in _ATTN_NAMES]
    tensors += list(params["ff_L"])

    blocks, meta, off = [], [], 0
    for t in tensors:
        r, c = t.shape
        blocks.append(_pad_block(t))
        meta.append((off, r, c))
        off += blocks[-1].shape[0]
    return jnp.concatenate(blocks, axis=0), tuple(meta)


def _full_spec(shape):
    nd = len(shape)
    return pl.BlockSpec(tuple(shape), lambda i, _nd=nd: (0,) * _nd)


def decoder_forward(packed_w, meta, x, mem, x_VC_VL, x_VC):
    NS, C, L = x.shape
    Lout = meta[-1][2]  # columns of the last ff_L weight

    kern = functools.partial(_decoder_kernel, meta=meta)
    out2d = pl.pallas_call(
        kern,
        out_shape=jax.ShapeDtypeStruct((NS * C, Lout), x.dtype),
        grid=(1,),
        in_specs=[_full_spec(x.shape), _full_spec(mem.shape),
                  _full_spec(x_VC_VL.shape), _full_spec(x_VC.shape),
                  _full_spec(packed_w.shape)],
        out_specs=_full_spec((NS * C, Lout)),
        compiler_params=pltpu.CompilerParams(
            dimension_semantics=("arbitrary",)),
    )(x, mem, x_VC_VL, x_VC, packed_w)
    # Free contiguous metadata reshape back to the module's output shape.
    return out2d.reshape(NS, C, Lout)


# ----------------------------------------------------------------------------
# Deterministic synthetic parameter init (weights stored as (in, out)).
# ----------------------------------------------------------------------------
def init_xattn_params(key, D, Fd):
    ks = jax.random.split(key, 6)
    s_d = 1.0 / math.sqrt(D)
    s_f = 1.0 / math.sqrt(Fd)
    return dict(
        wq=jax.random.normal(ks[0], (D, D), jnp.float32) * s_d,
        wk=jax.random.normal(ks[1], (D, D), jnp.float32) * s_d,
        wv=jax.random.normal(ks[2], (D, D), jnp.float32) * s_d,
        wo=jax.random.normal(ks[3], (D, D), jnp.float32) * s_d,
        w1=jax.random.normal(ks[4], (D, Fd), jnp.float32) * s_d,
        w2=jax.random.normal(ks[5], (Fd, D), jnp.float32) * s_f,
        g1=jnp.ones((1, D), jnp.float32),
        g2=jnp.ones((1, D), jnp.float32),
    )


if __name__ == "__main__":
    # Module hyper-parameters (small, consistent with the forward pass)
    NS, C_dim, L_dim = 2, 4, 8
    VC_dim, VL_dim, M_mem = 8, 16, 16
    L_dims_decoded = [L_dim, 16, L_dim]
    L_dim_feedforward = 1
    C_dim_feedforward = 1

    key = jax.random.PRNGKey(0)
    k_in, k_p = jax.random.split(key)
    kx, kmem, kvl, kvc = jax.random.split(k_in, 4)

    x = jax.random.normal(kx, (NS, C_dim, L_dim), jnp.float32)
    mem = jax.random.normal(kmem, (NS, VC_dim, M_mem), jnp.float32)
    x_VC_VL = jax.random.normal(kvl, (NS, VC_dim, VL_dim), jnp.float32)
    x_VC = jax.random.normal(kvc, (NS, VC_dim, L_dim), jnp.float32)

    kp = jax.random.split(k_p, 6)
    kff = jax.random.split(kp[5], len(L_dims_decoded) - 1)
    params = dict(
        attn_L_VL=init_xattn_params(kp[0], VC_dim, L_dim_feedforward),
        attn_VL_VL=init_xattn_params(kp[1], VC_dim, L_dim_feedforward),
        attn_VC_L=init_xattn_params(kp[2], L_dim, L_dim_feedforward),
        attn_C_L=init_xattn_params(kp[3], L_dim, L_dim_feedforward),
        attn_C_self=init_xattn_params(kp[4], C_dim, C_dim_feedforward),
        ff_L=[
            jax.random.normal(kff[i],
                              (L_dims_decoded[i], L_dims_decoded[i + 1]),
                              jnp.float32) * (1.0 / math.sqrt(L_dims_decoded[i]))
            for i in range(len(L_dims_decoded) - 1)
        ],
    )

    packed_w, meta = pack_decoder_weights(params)   # once, outside jit (single DMA input)
    fwd = jax.jit(decoder_forward, static_argnums=(1,))
    y = fwd(packed_w, meta, x, mem, x_VC_VL, x_VC)
    y = jax.block_until_ready(y)
    assert y.shape == (NS, C_dim, L_dims_decoded[-1]), y.shape
    assert bool(jnp.all(jnp.isfinite(y)))
    print("KERNEL_OK")
</pallas_src>

<mosaic_0001>
module attributes {stable_mosaic.version = 11 : i64} {
  func.func @_decoder_kernel(%arg0: i32, %arg1: memref<2x4x8xf32, #tpu.memory_space<vmem>>, %arg2: memref<2x8x16xf32, #tpu.memory_space<vmem>>, %arg3: memref<2x8x16xf32, #tpu.memory_space<vmem>>, %arg4: memref<2x8x8xf32, #tpu.memory_space<vmem>>, %arg5: memref<344x128xf32, #tpu.memory_space<vmem>>, %arg6: memref<8x8xf32, #tpu.memory_space<vmem>>) attributes {dimension_semantics = [#tpu.dimension_semantics<arbitrary>], iteration_bounds = array<i64: 1>, scalar_prefetch = 0 : i64, scratch_operands = 0 : i64, tpu.core_type = #tpu.core_type<tc>, window_params = [{pipeline_mode = #tpu.pipeline_mode<synchronous>, transform_indices = @transform_0, window_bounds = array<i64: 2, 4, 8>}, {pipeline_mode = #tpu.pipeline_mode<synchronous>, transform_indices = @transform_1, window_bounds = array<i64: 2, 8, 16>}, {pipeline_mode = #tpu.pipeline_mode<synchronous>, transform_indices = @transform_2, window_bounds = array<i64: 2, 8, 16>}, {pipeline_mode = #tpu.pipeline_mode<synchronous>, transform_indices = @transform_3, window_bounds = array<i64: 2, 8, 8>}, {pipeline_mode = #tpu.pipeline_mode<synchronous>, transform_indices = @transform_4, window_bounds = array<i64: 344, 128>}, {pipeline_mode = #tpu.pipeline_mode<synchronous>, transform_indices = @transform_5, window_bounds = array<i64: 8, 8>}]} {
    %c0 = arith.constant 0 : index
    %c0_0 = arith.constant 0 : index
    %c0_1 = arith.constant 0 : index
    %0 = vector.load %arg3[%c0, %c0_0, %c0_1] : memref<2x8x16xf32, #tpu.memory_space<vmem>>, vector<1x8x16xf32>
    %1 = vector.shape_cast %0 : vector<1x8x16xf32> to vector<8x16xf32>
    %2 = tpu.transpose %1, [1, 0] : vector<8x16xf32> -> vector<16x8xf32>
    %c1 = arith.constant 1 : index
    %c0_2 = arith.constant 0 : index
    %c0_3 = arith.constant 0 : index
    %3 = vector.load %arg3[%c1, %c0_2, %c0_3] : memref<2x8x16xf32, #tpu.memory_space<vmem>>, vector<1x8x16xf32>
    %4 = vector.shape_cast %3 : vector<1x8x16xf32> to vector<8x16xf32>
    %5 = tpu.transpose %4, [1, 0] : vector<8x16xf32> -> vector<16x8xf32>
    %6 = tpu.concatenate %2, %5 in 0 : vector<16x8xf32>, vector<16x8xf32> -> vector<32x8xf32>
    %c0_4 = arith.constant 0 : index
    %c0_5 = arith.constant 0 : index
    %c0_6 = arith.constant 0 : index
    %7 = vector.load %arg2[%c0_4, %c0_5, %c0_6] : memref<2x8x16xf32, #tpu.memory_space<vmem>>, vector<1x8x16xf32>
    %8 = vector.shape_cast %7 : vector<1x8x16xf32> to vector<8x16xf32>
    %9 = tpu.transpose %8, [1, 0] : vector<8x16xf32> -> vector<16x8xf32>
    %c1_7 = arith.constant 1 : index
    %c0_8 = arith.constant 0 : index
    %c0_9 = arith.constant 0 : index
    %10 = vector.load %arg2[%c1_7, %c0_8, %c0_9] : memref<2x8x16xf32, #tpu.memory_space<vmem>>, vector<1x8x16xf32>
    %11 = vector.shape_cast %10 : vector<1x8x16xf32> to vector<8x16xf32>
    %12 = tpu.transpose %11, [1, 0] : vector<8x16xf32> -> vector<16x8xf32>
    %13 = tpu.concatenate %9, %12 in 0 : vector<16x8xf32>, vector<16x8xf32> -> vector<32x8xf32>
    %c0_10 = arith.constant 0 : index
    %c0_11 = arith.constant 0 : index
    %14 = vector.load %arg5[%c0_10, %c0_11] : memref<344x128xf32, #tpu.memory_space<vmem>>, vector<8x8xf32>
    %c8 = arith.constant 8 : index
    %c0_12 = arith.constant 0 : index
    %15 = vector.load %arg5[%c8, %c0_12] : memref<344x128xf32, #tpu.memory_space<vmem>>, vector<8x8xf32>
    %c16 = arith.constant 16 : index
    %c0_13 = arith.constant 0 : index
    %16 = vector.load %arg5[%c16, %c0_13] : memref<344x128xf32, #tpu.memory_space<vmem>>, vector<8x8xf32>
    %c24 = arith.constant 24 : index
    %c0_14 = arith.constant 0 : index
    %17 = vector.load %arg5[%c24, %c0_14] : memref<344x128xf32, #tpu.memory_space<vmem>>, vector<8x8xf32>
    %c32 = arith.constant 32 : index
    %c0_15 = arith.constant 0 : index
    %18 = vector.load %arg5[%c32, %c0_15] : memref<344x128xf32, #tpu.memory_space<vmem>>, vector<8x1xf32>
    %c40 = arith.constant 40 : index
    %c0_16 = arith.constant 0 : index
    %19 = vector.load %arg5[%c40, %c0_16] : memref<344x128xf32, #tpu.memory_space<vmem>>, vector<1x8xf32>
    %c48 = arith.constant 48 : index
    %c0_17 = arith.constant 0 : index
    %20 = vector.load %arg5[%c48, %c0_17] : memref<344x128xf32, #tpu.memory_space<vmem>>, vector<1x8xf32>
    %c56 = arith.constant 56 : index
    %c0_18 = arith.constant 0 : index
    %21 = vector.load %arg5[%c56, %c0_18] : memref<344x128xf32, #tpu.memory_space<vmem>>, vector<1x8xf32>
    %cst = arith.constant dense<0.000000e+00> : vector<32x8xf32>
    %22 = tpu.matmul %6, %14, %cst {dimension_numbers = #tpu.dot_dimension_numbers<[1], [0], [0], [1], [0, 0, 1, 1], [], []>} : vector<32x8xf32>, vector<8x8xf32>, vector<32x8xf32> -> vector<32x8xf32>
    %cst_19 = arith.constant dense<0.000000e+00> : vector<32x8xf32>
    %23 = tpu.matmul %13, %15, %cst_19 {dimension_numbers = #tpu.dot_dimension_numbers<[1], [0], [0], [1], [0, 0, 1, 1], [], []>} : vector<32x8xf32>, vector<8x8xf32>, vector<32x8xf32> -> vector<32x8xf32>
    %cst_20 = arith.constant dense<0.000000e+00> : vector<32x8xf32>
    %24 = tpu.matmul %13, %16, %cst_20 {dimension_numbers = #tpu.dot_dimension_numbers<[1], [0], [0], [1], [0, 0, 1, 1], [], []>} : vector<32x8xf32>, vector<8x8xf32>, vector<32x8xf32> -> vector<32x8xf32>
    %25 = vector.extract_strided_slice %22 {offsets = [0, 0], sizes = [16, 8], strides = [1, 1]} : vector<32x8xf32> to vector<16x8xf32>
    %26 = vector.extract_strided_slice %23 {offsets = [0, 0], sizes = [16, 8], strides = [1, 1]} : vector<32x8xf32> to vector<16x8xf32>
    %27 = vector.extract_strided_slice %24 {offsets = [0, 0], sizes = [16, 8], strides = [1, 1]} : vector<32x8xf32> to vector<16x8xf32>
    %cst_21 = arith.constant dense<0xFF800000> : vector<8xf32>
    %28 = vector.multi_reduction <maximumf>, %26, %cst_21 [0] : vector<16x8xf32> to vector<8xf32>
    %29 = vector.shape_cast %28 : vector<8xf32> to vector<1x8xf32>
    %cst_22 = arith.constant dense<0x7F800000> : vector<8xf32>
    %30 = vector.multi_reduction <minimumf>, %26, %cst_22 [0] : vector<16x8xf32> to vector<8xf32>
    %31 = vector.shape_cast %30 : vector<8xf32> to vector<1x8xf32>
    %cst_23 = arith.constant 0.000000e+00 : f32
    %32 = vector.broadcast %cst_23 : f32 to vector<16x8xf32>
    %33 = arith.cmpf ogt, %25, %32 : vector<16x8xf32>
    %34 = vector.broadcast %29 : vector<1x8xf32> to vector<16x8xf32>
    %35 = arith.mulf %25, %34 : vector<16x8xf32>
    %36 = vector.broadcast %31 : vector<1x8xf32> to vector<16x8xf32>
    %37 = arith.mulf %25, %36 : vector<16x8xf32>
    %38 = arith.select %33, %35, %37 : vector<16x8xi1>, vector<16x8xf32>
    %39 = vector.shape_cast %25 : vector<16x8xf32> to vector<16x1x8xf32>
    %40 = vector.shape_cast %26 : vector<16x8xf32> to vector<1x16x8xf32>
    %41 = vector.broadcast %39 : vector<16x1x8xf32> to vector<16x16x8xf32>
    %42 = vector.broadcast %40 : vector<1x16x8xf32> to vector<16x16x8xf32>
    %43 = arith.mulf %41, %42 : vector<16x16x8xf32>
    %44 = vector.shape_cast %38 : vector<16x8xf32> to vector<16x1x8xf32>
    %45 = vector.broadcast %44 : vector<16x1x8xf32> to vector<16x16x8xf32>
    %46 = arith.subf %43, %45 : vector<16x16x8xf32>
    %47 = math.exp %46 : vector<16x16x8xf32>
    %48 = vector.shape_cast %27 : vector<16x8xf32> to vector<1x16x8xf32>
    %49 = vector.broadcast %48 : vector<1x16x8xf32> to vector<16x16x8xf32>
    %50 = arith.mulf %47, %49 : vector<16x16x8xf32>
    %cst_24 = arith.constant dense<0.000000e+00> : vector<16x8xf32>
    %51 = vector.multi_reduction <add>, %50, %cst_24 [1] : vector<16x16x8xf32> to vector<16x8xf32>
    %cst_25 = arith.constant dense<0.000000e+00> : vector<16x8xf32>
    %52 = vector.multi_reduction <add>, %47, %cst_25 [1] : vector<16x16x8xf32> to vector<16x8xf32>
    %53 = tpu.reciprocal %52 {approx = true} : vector<16x8xf32> -> vector<16x8xf32>
    %54 = arith.mulf %51, %53 : vector<16x8xf32>
    %55 = vector.extract_strided_slice %22 {offsets = [16, 0], sizes = [16, 8], strides = [1, 1]} : vector<32x8xf32> to vector<16x8xf32>
    %56 = vector.extract_strided_slice %23 {offsets = [16, 0], sizes = [16, 8], strides = [1, 1]} : vector<32x8xf32> to vector<16x8xf32>
    %57 = vector.extract_strided_slice %24 {offsets = [16, 0], sizes = [16, 8], strides = [1, 1]} : vector<32x8xf32> to vector<16x8xf32>
    %cst_26 = arith.constant dense<0xFF800000> : vector<8xf32>
    %58 = vector.multi_reduction <maximumf>, %56, %cst_26 [0] : vector<16x8xf32> to vector<8xf32>
    %59 = vector.shape_cast %58 : vector<8xf32> to vector<1x8xf32>
    %cst_27 = arith.constant dense<0x7F800000> : vector<8xf32>
    %60 = vector.multi_reduction <minimumf>, %56, %cst_27 [0] : vector<16x8xf32> to vector<8xf32>
    %61 = vector.shape_cast %60 : vector<8xf32> to vector<1x8xf32>
    %cst_28 = arith.constant 0.000000e+00 : f32
    %62 = vector.broadcast %cst_28 : f32 to vector<16x8xf32>
    %63 = arith.cmpf ogt, %55, %62 : vector<16x8xf32>
    %64 = vector.broadcast %59 : vector<1x8xf32> to vector<16x8xf32>
    %65 = arith.mulf %55, %64 : vector<16x8xf32>
    %66 = vector.broadcast %61 : vector<1x8xf32> to vector<16x8xf32>
    %67 = arith.mulf %55, %66 : vector<16x8xf32>
    %68 = arith.select %63, %65, %67 : vector<16x8xi1>, vector<16x8xf32>
    %69 = vector.shape_cast %55 : vector<16x8xf32> to vector<16x1x8xf32>
    %70 = vector.shape_cast %56 : vector<16x8xf32> to vector<1x16x8xf32>
    %71 = vector.broadcast %69 : vector<16x1x8xf32> to vector<16x16x8xf32>
    %72 = vector.broadcast %70 : vector<1x16x8xf32> to vector<16x16x8xf32>
    %73 = arith.mulf %71, %72 : vector<16x16x8xf32>
    %74 = vector.shape_cast %68 : vector<16x8xf32> to vector<16x1x8xf32>
    %75 = vector.broadcast %74 : vector<16x1x8xf32> to vector<16x16x8xf32>
    %76 = arith.subf %73, %75 : vector<16x16x8xf32>
    %77 = math.exp %76 : vector<16x16x8xf32>
    %78 = vector.shape_cast %57 : vector<16x8xf32> to vector<1x16x8xf32>
    %79 = vector.broadcast %78 : vector<1x16x8xf32> to vector<16x16x8xf32>
    %80 = arith.mulf %77, %79 : vector<16x16x8xf32>
    %cst_29 = arith.constant dense<0.000000e+00> : vector<16x8xf32>
    %81 = vector.multi_reduction <add>, %80, %cst_29 [1] : vector<16x16x8xf32> to vector<16x8xf32>
    %cst_30 = arith.constant dense<0.000000e+00> : vector<16x8xf32>
    %82 = vector.multi_reduction <add>, %77, %cst_30 [1] : vector<16x16x8xf32> to vector<16x8xf32>
    %83 = tpu.reciprocal %82 {approx = true} : vector<16x8xf32> -> vector<16x8xf32>
    %84 = arith.mulf %81, %83 : vector<16x8xf32>
    %85 = tpu.concatenate %54, %84 in 0 : vector<16x8xf32>, vector<16x8xf32> -> vector<32x8xf32>
    %cst_31 = arith.constant dense<0.000000e+00> : vector<32x8xf32>
    %86 = tpu.matmul %85, %17, %cst_31 {dimension_numbers = #tpu.dot_dimension_numbers<[1], [0], [0], [1], [0, 0, 1, 1], [], []>} : vector<32x8xf32>, vector<8x8xf32>, vector<32x8xf32> -> vector<32x8xf32>
    %87 = arith.addf %6, %86 : vector<32x8xf32>
    %cst_32 = arith.constant dense<0.000000e+00> : vector<32xf32>
    %88 = vector.multi_reduction <add>, %87, %cst_32 [1] : vector<32x8xf32> to vector<32xf32>
    %89 = vector.shape_cast %88 : vector<32xf32> to vector<32x1xf32>
    %cst_33 = arith.constant 8.000000e+00 : f32
    %90 = vector.broadcast %cst_33 : f32 to vector<32x1xf32>
    %91 = arith.divf %89, %90 : vector<32x1xf32>
    %92 = vector.broadcast %91 : vector<32x1xf32> to vector<32x8xf32>
    %93 = arith.subf %87, %92 : vector<32x8xf32>
    %94 = arith.mulf %93, %93 : vector<32x8xf32>
    %cst_34 = arith.constant dense<0.000000e+00> : vector<32xf32>
    %95 = vector.multi_reduction <add>, %94, %cst_34 [1] : vector<32x8xf32> to vector<32xf32>
    %96 = vector.shape_cast %95 : vector<32xf32> to vector<32x1xf32>
    %cst_35 = arith.constant 8.000000e+00 : f32
    %97 = vector.broadcast %cst_35 : f32 to vector<32x1xf32>
    %98 = arith.divf %96, %97 : vector<32x1xf32>
    %99 = vector.broadcast %91 : vector<32x1xf32> to vector<32x8xf32>
    %100 = arith.subf %87, %99 : vector<32x8xf32>
    %cst_36 = arith.constant 9.99999974E-6 : f32
    %101 = vector.broadcast %cst_36 : f32 to vector<32x1xf32>
    %102 = arith.addf %98, %101 : vector<32x1xf32>
    %103 = math.rsqrt %102 : vector<32x1xf32>
    %104 = vector.broadcast %103 : vector<32x1xf32> to vector<32x8xf32>
    %105 = arith.mulf %100, %104 : vector<32x8xf32>
    %106 = vector.broadcast %20 : vector<1x8xf32> to vector<32x8xf32>
    %107 = arith.mulf %105, %106 : vector<32x8xf32>
    %cst_37 = arith.constant dense<0.000000e+00> : vector<32x1xf32>
    %108 = tpu.matmul %107, %18, %cst_37 {dimension_numbers = #tpu.dot_dimension_numbers<[1], [0], [0], [1], [0, 0, 1, 1], [], []>} : vector<32x8xf32>, vector<8x1xf32>, vector<32x1xf32> -> vector<32x1xf32>
    %cst_38 = arith.constant 0.000000e+00 : f32
    %109 = vector.broadcast %cst_38 : f32 to vector<32x1xf32>
    %110 = arith.maximumf %108, %109 : vector<32x1xf32>
    %cst_39 = arith.constant dense<0.000000e+00> : vector<32x8xf32>
    %111 = tpu.matmul %110, %19, %cst_39 {dimension_numbers = #tpu.dot_dimension_numbers<[1], [0], [0], [1], [0, 0, 1, 1], [], []>} : vector<32x1xf32>, vector<1x8xf32>, vector<32x8xf32> -> vector<32x8xf32>
    %112 = arith.addf %107, %111 : vector<32x8xf32>
    %cst_40 = arith.constant dense<0.000000e+00> : vector<32xf32>
    %113 = vector.multi_reduction <add>, %112, %cst_40 [1] : vector<32x8xf32> to vector<32xf32>
    %114 = vector.shape_cast %113 : vector<32xf32> to vector<32x1xf32>
    %cst_41 = arith.constant 8.000000e+00 : f32
    %115 = vector.broadcast %cst_41 : f32 to vector<32x1xf32>
    %116 = arith.divf %114, %115 : vector<32x1xf32>
    %117 = vector.broadcast %116 : vector<32x1xf32> to vector<32x8xf32>
    %118 = arith.subf %112, %117 : vector<32x8xf32>
    %119 = arith.mulf %118, %118 : vector<32x8xf32>
    %cst_42 = arith.constant dense<0.000000e+00> : vector<32xf32>
    %120 = vector.multi_reduction <add>, %119, %cst_42 [1] : vector<32x8xf32> to vector<32xf32>
    %121 = vector.shape_cast %120 : vector<32xf32> to vector<32x1xf32>
    %cst_43 = arith.constant 8.000000e+00 : f32
    %122 = vector.broadcast %cst_43 : f32 to vector<32x1xf32>
    %123 = arith.divf %121, %122 : vector<32x1xf32>
    %124 = vector.broadcast %116 : vector<32x1xf32> to vector<32x8xf32>
    %125 = arith.subf %112, %124 : vector<32x8xf32>
    %cst_44 = arith.constant 9.99999974E-6 : f32
    %126 = vector.broadcast %cst_44 : f32 to vector<32x1xf32>
    %127 = arith.addf %123, %126 : vector<32x1xf32>
    %128 = math.rsqrt %127 : vector<32x1xf32>
    %129 = vector.broadcast %128 : vector<32x1xf32> to vector<32x8xf32>
    %130 = arith.mulf %125, %129 : vector<32x8xf32>
    %131 = vector.broadcast %21 : vector<1x8xf32> to vector<32x8xf32>
    %132 = arith.mulf %130, %131 : vector<32x8xf32>
    %c0_45 = arith.constant 0 : index
    %c0_46 = arith.constant 0 : index
    %c0_47 = arith.constant 0 : index
    %133 = vector.load %arg4[%c0_45, %c0_46, %c0_47] : memref<2x8x8xf32, #tpu.memory_space<vmem>>, vector<1x8x8xf32>
    %134 = vector.shape_cast %133 : vector<1x8x8xf32> to vector<8x8xf32>
    %135 = tpu.transpose %134, [1, 0] : vector<8x8xf32> -> vector<8x8xf32>
    %c1_48 = arith.constant 1 : index
    %c0_49 = arith.constant 0 : index
    %c0_50 = arith.constant 0 : index
    %136 = vector.load %arg4[%c1_48, %c0_49, %c0_50] : memref<2x8x8xf32, #tpu.memory_space<vmem>>, vector<1x8x8xf32>
    %137 = vector.shape_cast %136 : vector<1x8x8xf32> to vector<8x8xf32>
    %138 = tpu.transpose %137, [1, 0] : vector<8x8xf32> -> vector<8x8xf32>
    %139 = tpu.concatenate %135, %138 in 0 : vector<8x8xf32>, vector<8x8xf32> -> vector<16x8xf32>
    %c64 = arith.constant 64 : index
    %c0_51 = arith.constant 0 : index
    %140 = vector.load %arg5[%c64, %c0_51] : memref<344x128xf32, #tpu.memory_space<vmem>>, vector<8x8xf32>
    %c72 = arith.constant 72 : index
    %c0_52 = arith.constant 0 : index
    %141 = vector.load %arg5[%c72, %c0_52] : memref<344x128xf32, #tpu.memory_space<vmem>>, vector<8x8xf32>
    %c80 = arith.constant 80 : index
    %c0_53 = arith.constant 0 : index
    %142 = vector.load %arg5[%c80, %c0_53] : memref<344x128xf32, #tpu.memory_space<vmem>>, vector<8x8xf32>
    %c88 = arith.constant 88 : index
    %c0_54 = arith.constant 0 : index
    %143 = vector.load %arg5[%c88, %c0_54] : memref<344x128xf32, #tpu.memory_space<vmem>>, vector<8x8xf32>
    %c96 = arith.constant 96 : index
    %c0_55 = arith.constant 0 : index
    %144 = vector.load %arg5[%c96, %c0_55] : memref<344x128xf32, #tpu.memory_space<vmem>>, vector<8x1xf32>
    %c104 = arith.constant 104 : index
    %c0_56 = arith.constant 0 : index
    %145 = vector.load %arg5[%c104, %c0_56] : memref<344x128xf32, #tpu.memory_space<vmem>>, vector<1x8xf32>
    %c112 = arith.constant 112 : index
    %c0_57 = arith.constant 0 : index
    %146 = vector.load %arg5[%c112, %c0_57] : memref<344x128xf32, #tpu.memory_space<vmem>>, vector<1x8xf32>
    %c120 = arith.constant 120 : index
    %c0_58 = arith.constant 0 : index
    %147 = vector.load %arg5[%c120, %c0_58] : memref<344x128xf32, #tpu.memory_space<vmem>>, vector<1x8xf32>
    %cst_59 = arith.constant dense<0.000000e+00> : vector<16x8xf32>
    %148 = tpu.matmul %139, %140, %cst_59 {dimension_numbers = #tpu.dot_dimension_numbers<[1], [0], [0], [1], [0, 0, 1, 1], [], []>} : vector<16x8xf32>, vector<8x8xf32>, vector<16x8xf32> -> vector<16x8xf32>
    %cst_60 = arith.constant dense<0.000000e+00> : vector<32x8xf32>
    %149 = tpu.matmul %132, %141, %cst_60 {dimension_numbers = #tpu.dot_dimension_numbers<[1], [0], [0], [1], [0, 0, 1, 1], [], []>} : vector<32x8xf32>, vector<8x8xf32>, vector<32x8xf32> -> vector<32x8xf32>
    %cst_61 = arith.constant dense<0.000000e+00> : vector<32x8xf32>
    %150 = tpu.matmul %132, %142, %cst_61 {dimension_numbers = #tpu.dot_dimension_numbers<[1], [0], [0], [1], [0, 0, 1, 1], [], []>} : vector<32x8xf32>, vector<8x8xf32>, vector<32x8xf32> -> vector<32x8xf32>
    %151 = vector.extract_strided_slice %148 {offsets = [0, 0], sizes = [8, 8], strides = [1, 1]} : vector<16x8xf32> to vector<8x8xf32>
    %152 = vector.extract_strided_slice %149 {offsets = [0, 0], sizes = [16, 8], strides = [1, 1]} : vector<32x8xf32> to vector<16x8xf32>
    %153 = vector.extract_strided_slice %150 {offsets = [0, 0], sizes = [16, 8], strides = [1, 1]} : vector<32x8xf32> to vector<16x8xf32>
    %cst_62 = arith.constant dense<0xFF800000> : vector<8xf32>
    %154 = vector.multi_reduction <maximumf>, %152, %cst_62 [0] : vector<16x8xf32> to vector<8xf32>
    %155 = vector.shape_cast %154 : vector<8xf32> to vector<1x8xf32>
    %cst_63 = arith.constant dense<0x7F800000> : vector<8xf32>
    %156 = vector.multi_reduction <minimumf>, %152, %cst_63 [0] : vector<16x8xf32> to vector<8xf32>
    %157 = vector.shape_cast %156 : vector<8xf32> to vector<1x8xf32>
    %cst_64 = arith.constant 0.000000e+00 : f32
    %158 = vector.broadcast %cst_64 : f32 to vector<8x8xf32>
    %159 = arith.cmpf ogt, %151, %158 : vector<8x8xf32>
    %160 = vector.broadcast %155 : vector<1x8xf32> to vector<8x8xf32>
    %161 = arith.mulf %151, %160 : vector<8x8xf32>
    %162 = vector.broadcast %157 : vector<1x8xf32> to vector<8x8xf32>
    %163 = arith.mulf %151, %162 : vector<8x8xf32>
    %164 = arith.select %159, %161, %163 : vector<8x8xi1>, vector<8x8xf32>
    %165 = vector.shape_cast %151 : vector<8x8xf32> to vector<8x1x8xf32>
    %166 = vector.shape_cast %152 : vector<16x8xf32> to vector<1x16x8xf32>
    %167 = vector.broadcast %165 : vector<8x1x8xf32> to vector<8x16x8xf32>
    %168 = vector.broadcast %166 : vector<1x16x8xf32> to vector<8x16x8xf32>
    %169 = arith.mulf %167, %168 : vector<8x16x8xf32>
    %170 = vector.shape_cast %164 : vector<8x8xf32> to vector<8x1x8xf32>
    %171 = vector.broadcast %170 : vector<8x1x8xf32> to vector<8x16x8xf32>
    %172 = arith.subf %169, %171 : vector<8x16x8xf32>
    %173 = math.exp %172 : vector<8x16x8xf32>
    %174 = vector.shape_cast %153 : vector<16x8xf32> to vector<1x16x8xf32>
    %175 = vector.broadcast %174 : vector<1x16x8xf32> to vector<8x16x8xf32>
    %176 = arith.mulf %173, %175 : vector<8x16x8xf32>
    %cst_65 = arith.constant dense<0.000000e+00> : vector<8x8xf32>
    %177 = vector.multi_reduction <add>, %176, %cst_65 [1] : vector<8x16x8xf32> to vector<8x8xf32>
    %cst_66 = arith.constant dense<0.000000e+00> : vector<8x8xf32>
    %178 = vector.multi_reduction <add>, %173, %cst_66 [1] : vector<8x16x8xf32> to vector<8x8xf32>
    %179 = tpu.reciprocal %178 {approx = true} : vector<8x8xf32> -> vector<8x8xf32>
    %180 = arith.mulf %177, %179 : vector<8x8xf32>
    %181 = vector.extract_strided_slice %148 {offsets = [8, 0], sizes = [8, 8], strides = [1, 1]} : vector<16x8xf32> to vector<8x8xf32>
    %182 = vector.extract_strided_slice %149 {offsets = [16, 0], sizes = [16, 8], strides = [1, 1]} : vector<32x8xf32> to vector<16x8xf32>
    %183 = vector.extract_strided_slice %150 {offsets = [16, 0], sizes = [16, 8], strides = [1, 1]} : vector<32x8xf32> to vector<16x8xf32>
    %cst_67 = arith.constant dense<0xFF800000> : vector<8xf32>
    %184 = vector.multi_reduction <maximumf>, %182, %cst_67 [0] : vector<16x8xf32> to vector<8xf32>
    %185 = vector.shape_cast %184 : vector<8xf32> to vector<1x8xf32>
    %cst_68 = arith.constant dense<0x7F800000> : vector<8xf32>
    %186 = vector.multi_reduction <minimumf>, %182, %cst_68 [0] : vector<16x8xf32> to vector<8xf32>
    %187 = vector.shape_cast %186 : vector<8xf32> to vector<1x8xf32>
    %cst_69 = arith.constant 0.000000e+00 : f32
    %188 = vector.broadcast %cst_69 : f32 to vector<8x8xf32>
    %189 = arith.cmpf ogt, %181, %188 : vector<8x8xf32>
    %190 = vector.broadcast %185 : vector<1x8xf32> to vector<8x8xf32>
    %191 = arith.mulf %181, %190 : vector<8x8xf32>
    %192 = vector.broadcast %187 : vector<1x8xf32> to vector<8x8xf32>
    %193 = arith.mulf %181, %192 : vector<8x8xf32>
    %194 = arith.select %189, %191, %193 : vector<8x8xi1>, vector<8x8xf32>
    %195 = vector.shape_cast %181 : vector<8x8xf32> to vector<8x1x8xf32>
    %196 = vector.shape_cast %182 : vector<16x8xf32> to vector<1x16x8xf32>
    %197 = vector.broadcast %195 : vector<8x1x8xf32> to vector<8x16x8xf32>
    %198 = vector.broadcast %196 : vector<1x16x8xf32> to vector<8x16x8xf32>
    %199 = arith.mulf %197, %198 : vector<8x16x8xf32>
    %200 = vector.shape_cast %194 : vector<8x8xf32> to vector<8x1x8xf32>
    %201 = vector.broadcast %200 : vector<8x1x8xf32> to vector<8x16x8xf32>
    %202 = arith.subf %199, %201 : vector<8x16x8xf32>
    %203 = math.exp %202 : vector<8x16x8xf32>
    %204 = vector.shape_cast %183 : vector<16x8xf32> to vector<1x16x8xf32>
    %205 = vector.broadcast %204 : vector<1x16x8xf32> to vector<8x16x8xf32>
    %206 = arith.mulf %203, %205 : vector<8x16x8xf32>
    %cst_70 = arith.constant dense<0.000000e+00> : vector<8x8xf32>
    %207 = vector.multi_reduction <add>, %206, %cst_70 [1] : vector<8x16x8xf32> to vector<8x8xf32>
    %cst_71 = arith.constant dense<0.000000e+00> : vector<8x8xf32>
    %208 = vector.multi_reduction <add>, %203, %cst_71 [1] : vector<8x16x8xf32> to vector<8x8xf32>
    %209 = tpu.reciprocal %208 {approx = true} : vector<8x8xf32> -> vector<8x8xf32>
    %210 = arith.mulf %207, %209 : vector<8x8xf32>
    %211 = tpu.concatenate %180, %210 in 0 : vector<8x8xf32>, vector<8x8xf32> -> vector<16x8xf32>
    %cst_72 = arith.constant dense<0.000000e+00> : vector<16x8xf32>
    %212 = tpu.matmul %211, %143, %cst_72 {dimension_numbers = #tpu.dot_dimension_numbers<[1], [0], [0], [1], [0, 0, 1, 1], [], []>} : vector<16x8xf32>, vector<8x8xf32>, vector<16x8xf32> -> vector<16x8xf32>
    %213 = arith.addf %139, %212 : vector<16x8xf32>
    %cst_73 = arith.constant dense<0.000000e+00> : vector<16xf32>
    %214 = vector.multi_reduction <add>, %213, %cst_73 [1] : vector<16x8xf32> to vector<16xf32>
    %215 = vector.shape_cast %214 : vector<16xf32> to vector<16x1xf32>
    %cst_74 = arith.constant 8.000000e+00 : f32
    %216 = vector.broadcast %cst_74 : f32 to vector<16x1xf32>
    %217 = arith.divf %215, %216 : vector<16x1xf32>
    %218 = vector.broadcast %217 : vector<16x1xf32> to vector<16x8xf32>
    %219 = arith.subf %213, %218 : vector<16x8xf32>
    %220 = arith.mulf %219, %219 : vector<16x8xf32>
    %cst_75 = arith.constant dense<0.000000e+00> : vector<16xf32>
    %221 = vector.multi_reduction <add>, %220, %cst_75 [1] : vector<16x8xf32> to vector<16xf32>
    %222 = vector.shape_cast %221 : vector<16xf32> to vector<16x1xf32>
    %cst_76 = arith.constant 8.000000e+00 : f32
    %223 = vector.broadcast %cst_76 : f32 to vector<16x1xf32>
    %224 = arith.divf %222, %223 : vector<16x1xf32>
    %225 = vector.broadcast %217 : vector<16x1xf32> to vector<16x8xf32>
    %226 = arith.subf %213, %225 : vector<16x8xf32>
    %cst_77 = arith.constant 9.99999974E-6 : f32
    %227 = vector.broadcast %cst_77 : f32 to vector<16x1xf32>
    %228 = arith.addf %224, %227 : vector<16x1xf32>
    %229 = math.rsqrt %228 : vector<16x1xf32>
    %230 = vector.broadcast %229 : vector<16x1xf32> to vector<16x8xf32>
    %231 = arith.mulf %226, %230 : vector<16x8xf32>
    %232 = vector.broadcast %146 : vector<1x8xf32> to vector<16x8xf32>
    %233 = arith.mulf %231, %232 : vector<16x8xf32>
    %cst_78 = arith.constant dense<0.000000e+00> : vector<16x1xf32>
    %234 = tpu.matmul %233, %144, %cst_78 {dimension_numbers = #tpu.dot_dimension_numbers<[1], [0], [0], [1], [0, 0, 1, 1], [], []>} : vector<16x8xf32>, vector<8x1xf32>, vector<16x1xf32> -> vector<16x1xf32>
    %cst_79 = arith.constant 0.000000e+00 : f32
    %235 = vector.broadcast %cst_79 : f32 to vector<16x1xf32>
    %236 = arith.maximumf %234, %235 : vector<16x1xf32>
    %cst_80 = arith.constant dense<0.000000e+00> : vector<16x8xf32>
    %237 = tpu.matmul %236, %145, %cst_80 {dimension_numbers = #tpu.dot_dimension_numbers<[1], [0], [0], [1], [0, 0, 1, 1], [], []>} : vector<16x1xf32>, vector<1x8xf32>, vector<16x8xf32> -> vector<16x8xf32>
    %238 = arith.addf %233, %237 : vector<16x8xf32>
    %cst_81 = arith.constant dense<0.000000e+00> : vector<16xf32>
    %239 = vector.multi_reduction <add>, %238, %cst_81 [1] : vector<16x8xf32> to vector<16xf32>
    %240 = vector.shape_cast %239 : vector<16xf32> to vector<16x1xf32>
    %cst_82 = arith.constant 8.000000e+00 : f32
    %241 = vector.broadcast %cst_82 : f32 to vector<16x1xf32>
    %242 = arith.divf %240, %241 : vector<16x1xf32>
    %243 = vector.broadcast %242 : vector<16x1xf32> to vector<16x8xf32>
    %244 = arith.subf %238, %243 : vector<16x8xf32>
    %245 = arith.mulf %244, %244 : vector<16x8xf32>
    %cst_83 = arith.constant dense<0.000000e+00> : vector<16xf32>
    %246 = vector.multi_reduction <add>, %245, %cst_83 [1] : vector<16x8xf32> to vector<16xf32>
    %247 = vector.shape_cast %246 : vector<16xf32> to vector<16x1xf32>
    %cst_84 = arith.constant 8.000000e+00 : f32
    %248 = vector.broadcast %cst_84 : f32 to vector<16x1xf32>
    %249 = arith.divf %247, %248 : vector<16x1xf32>
    %250 = vector.broadcast %242 : vector<16x1xf32> to vector<16x8xf32>
    %251 = arith.subf %238, %250 : vector<16x8xf32>
    %cst_85 = arith.constant 9.99999974E-6 : f32
    %252 = vector.broadcast %cst_85 : f32 to vector<16x1xf32>
    %253 = arith.addf %249, %252 : vector<16x1xf32>
    %254 = math.rsqrt %253 : vector<16x1xf32>
    %255 = vector.broadcast %254 : vector<16x1xf32> to vector<16x8xf32>
    %256 = arith.mulf %251, %255 : vector<16x8xf32>
    %257 = vector.broadcast %147 : vector<1x8xf32> to vector<16x8xf32>
    %258 = arith.mulf %256, %257 : vector<16x8xf32>
    %cst_86 = arith.constant dense<0xFF800000> : vector<16xf32>
    %259 = vector.multi_reduction <maximumf>, %258, %cst_86 [1] : vector<16x8xf32> to vector<16xf32>
    %260 = vector.shape_cast %259 : vector<16xf32> to vector<16x1xf32>
    %261 = vector.broadcast %260 : vector<16x1xf32> to vector<16x8xf32>
    %262 = arith.subf %258, %261 : vector<16x8xf32>
    %263 = math.exp %262 : vector<16x8xf32>
    %cst_87 = arith.constant dense<0.000000e+00> : vector<16xf32>
    %264 = vector.multi_reduction <add>, %263, %cst_87 [1] : vector<16x8xf32> to vector<16xf32>
    %265 = vector.shape_cast %264 : vector<16xf32> to vector<16x1xf32>
    %266 = tpu.reciprocal %265 {approx = true} : vector<16x1xf32> -> vector<16x1xf32>
    %267 = vector.broadcast %266 : vector<16x1xf32> to vector<16x8xf32>
    %268 = arith.mulf %263, %267 : vector<16x8xf32>
    %269 = vector.extract_strided_slice %268 {offsets = [0, 0], sizes = [8, 8], strides = [1, 1]} : vector<16x8xf32> to vector<8x8xf32>
    %270 = tpu.transpose %269, [1, 0] : vector<8x8xf32> -> vector<8x8xf32>
    %271 = vector.extract_strided_slice %268 {offsets = [8, 0], sizes = [8, 8], strides = [1, 1]} : vector<16x8xf32> to vector<8x8xf32>
    %272 = tpu.transpose %271, [1, 0] : vector<8x8xf32> -> vector<8x8xf32>
    %273 = tpu.concatenate %270, %272 in 0 : vector<8x8xf32>, vector<8x8xf32> -> vector<16x8xf32>
    %c0_88 = arith.constant 0 : index
    %c0_89 = arith.constant 0 : index
    %c0_90 = arith.constant 0 : index
    %274 = vector.load %arg4[%c0_88, %c0_89, %c0_90] : memref<2x8x8xf32, #tpu.memory_space<vmem>>, vector<1x8x8xf32>
    %275 = vector.shape_cast %274 : vector<1x8x8xf32> to vector<8x8xf32>
    %c1_91 = arith.constant 1 : index
    %c0_92 = arith.constant 0 : index
    %c0_93 = arith.constant 0 : index
    %276 = vector.load %arg4[%c1_91, %c0_92, %c0_93] : memref<2x8x8xf32, #tpu.memory_space<vmem>>, vector<1x8x8xf32>
    %277 = vector.shape_cast %276 : vector<1x8x8xf32> to vector<8x8xf32>
    %278 = tpu.concatenate %275, %277 in 0 : vector<8x8xf32>, vector<8x8xf32> -> vector<16x8xf32>
    %c128 = arith.constant 128 : index
    %c0_94 = arith.constant 0 : index
    %279 = vector.load %arg5[%c128, %c0_94] : memref<344x128xf32, #tpu.memory_space<vmem>>, vector<8x8xf32>
    %c136 = arith.constant 136 : index
    %c0_95 = arith.constant 0 : index
    %280 = vector.load %arg5[%c136, %c0_95] : memref<344x128xf32, #tpu.memory_space<vmem>>, vector<8x8xf32>
    %c144 = arith.constant 144 : index
    %c0_96 = arith.constant 0 : index
    %281 = vector.load %arg5[%c144, %c0_96] : memref<344x128xf32, #tpu.memory_space<vmem>>, vector<8x8xf32>
    %c152 = arith.constant 152 : index
    %c0_97 = arith.constant 0 : index
    %282 = vector.load %arg5[%c152, %c0_97] : memref<344x128xf32, #tpu.memory_space<vmem>>, vector<8x8xf32>
    %c160 = arith.constant 160 : index
    %c0_98 = arith.constant 0 : index
    %283 = vector.load %arg5[%c160, %c0_98] : memref<344x128xf32, #tpu.memory_space<vmem>>, vector<8x1xf32>
    %c168 = arith.constant 168 : index
    %c0_99 = arith.constant 0 : index
    %284 = vector.load %arg5[%c168, %c0_99] : memref<344x128xf32, #tpu.memory_space<vmem>>, vector<1x8xf32>
    %c176 = arith.constant 176 : index
    %c0_100 = arith.constant 0 : index
    %285 = vector.load %arg5[%c176, %c0_100] : memref<344x128xf32, #tpu.memory_space<vmem>>, vector<1x8xf32>
    %c184 = arith.constant 184 : index
    %c0_101 = arith.constant 0 : index
    %286 = vector.load %arg5[%c184, %c0_101] : memref<344x128xf32, #tpu.memory_space<vmem>>, vector<1x8xf32>
    %cst_102 = arith.constant dense<0.000000e+00> : vector<16x8xf32>
    %287 = tpu.matmul %278, %279, %cst_102 {dimension_numbers = #tpu.dot_dimension_numbers<[1], [0], [0], [1], [0, 0, 1, 1], [], []>} : vector<16x8xf32>, vector<8x8xf32>, vector<16x8xf32> -> vector<16x8xf32>
    %cst_103 = arith.constant dense<0.000000e+00> : vector<16x8xf32>
    %288 = tpu.matmul %273, %280, %cst_103 {dimension_numbers = #tpu.dot_dimension_numbers<[1], [0], [0], [1], [0, 0, 1, 1], [], []>} : vector<16x8xf32>, vector<8x8xf32>, vector<16x8xf32> -> vector<16x8xf32>
    %cst_104 = arith.constant dense<0.000000e+00> : vector<16x8xf32>
    %289 = tpu.matmul %273, %281, %cst_104 {dimension_numbers = #tpu.dot_dimension_numbers<[1], [0], [0], [1], [0, 0, 1, 1], [], []>} : vector<16x8xf32>, vector<8x8xf32>, vector<16x8xf32> -> vector<16x8xf32>
    %290 = vector.extract_strided_slice %287 {offsets = [0, 0], sizes = [8, 8], strides = [1, 1]} : vector<16x8xf32> to vector<8x8xf32>
    %291 = vector.extract_strided_slice %288 {offsets = [0, 0], sizes = [8, 8], strides = [1, 1]} : vector<16x8xf32> to vector<8x8xf32>
    %292 = vector.extract_strided_slice %289 {offsets = [0, 0], sizes = [8, 8], strides = [1, 1]} : vector<16x8xf32> to vector<8x8xf32>
    %cst_105 = arith.constant dense<0xFF800000> : vector<8xf32>
    %293 = vector.multi_reduction <maximumf>, %291, %cst_105 [0] : vector<8x8xf32> to vector<8xf32>
    %294 = vector.shape_cast %293 : vector<8xf32> to vector<1x8xf32>
    %cst_106 = arith.constant dense<0x7F800000> : vector<8xf32>
    %295 = vector.multi_reduction <minimumf>, %291, %cst_106 [0] : vector<8x8xf32> to vector<8xf32>
    %296 = vector.shape_cast %295 : vector<8xf32> to vector<1x8xf32>
    %cst_107 = arith.constant 0.000000e+00 : f32
    %297 = vector.broadcast %cst_107 : f32 to vector<8x8xf32>
    %298 = arith.cmpf ogt, %290, %297 : vector<8x8xf32>
    %299 = vector.broadcast %294 : vector<1x8xf32> to vector<8x8xf32>
    %300 = arith.mulf %290, %299 : vector<8x8xf32>
    %301 = vector.broadcast %296 : vector<1x8xf32> to vector<8x8xf32>
    %302 = arith.mulf %290, %301 : vector<8x8xf32>
    %303 = arith.select %298, %300, %302 : vector<8x8xi1>, vector<8x8xf32>
    %304 = vector.shape_cast %290 : vector<8x8xf32> to vector<8x1x8xf32>
    %305 = vector.shape_cast %291 : vector<8x8xf32> to vector<1x8x8xf32>
    %306 = vector.broadcast %304 : vector<8x1x8xf32> to vector<8x8x8xf32>
    %307 = vector.broadcast %305 : vector<1x8x8xf32> to vector<8x8x8xf32>
    %308 = arith.mulf %306, %307 : vector<8x8x8xf32>
    %309 = vector.shape_cast %303 : vector<8x8xf32> to vector<8x1x8xf32>
    %310 = vector.broadcast %309 : vector<8x1x8xf32> to vector<8x8x8xf32>
    %311 = arith.subf %308, %310 : vector<8x8x8xf32>
    %312 = math.exp %311 : vector<8x8x8xf32>
    %313 = vector.shape_cast %292 : vector<8x8xf32> to vector<1x8x8xf32>
    %314 = vector.broadcast %313 : vector<1x8x8xf32> to vector<8x8x8xf32>
    %315 = arith.mulf %312, %314 : vector<8x8x8xf32>
    %cst_108 = arith.constant dense<0.000000e+00> : vector<8x8xf32>
    %316 = vector.multi_reduction <add>, %315, %cst_108 [1] : vector<8x8x8xf32> to vector<8x8xf32>
    %cst_109 = arith.constant dense<0.000000e+00> : vector<8x8xf32>
    %317 = vector.multi_reduction <add>, %312, %cst_109 [1] : vector<8x8x8xf32> to vector<8x8xf32>
    %318 = tpu.reciprocal %317 {approx = true} : vector<8x8xf32> -> vector<8x8xf32>
    %319 = arith.mulf %316, %318 : vector<8x8xf32>
    %320 = vector.extract_strided_slice %287 {offsets = [8, 0], sizes = [8, 8], strides = [1, 1]} : vector<16x8xf32> to vector<8x8xf32>
    %321 = vector.extract_strided_slice %288 {offsets = [8, 0], sizes = [8, 8], strides = [1, 1]} : vector<16x8xf32> to vector<8x8xf32>
    %322 = vector.extract_strided_slice %289 {offsets = [8, 0], sizes = [8, 8], strides = [1, 1]} : vector<16x8xf32> to vector<8x8xf32>
    %cst_110 = arith.constant dense<0xFF800000> : vector<8xf32>
    %323 = vector.multi_reduction <maximumf>, %321, %cst_110 [0] : vector<8x8xf32> to vector<8xf32>
    %324 = vector.shape_cast %323 : vector<8xf32> to vector<1x8xf32>
    %cst_111 = arith.constant dense<0x7F800000> : vector<8xf32>
    %325 = vector.multi_reduction <minimumf>, %321, %cst_111 [0] : vector<8x8xf32> to vector<8xf32>
    %326 = vector.shape_cast %325 : vector<8xf32> to vector<1x8xf32>
    %cst_112 = arith.constant 0.000000e+00 : f32
    %327 = vector.broadcast %cst_112 : f32 to vector<8x8xf32>
    %328 = arith.cmpf ogt, %320, %327 : vector<8x8xf32>
    %329 = vector.broadcast %324 : vector<1x8xf32> to vector<8x8xf32>
    %330 = arith.mulf %320, %329 : vector<8x8xf32>
    %331 = vector.broadcast %326 : vector<1x8xf32> to vector<8x8xf32>
    %332 = arith.mulf %320, %331 : vector<8x8xf32>
    %333 = arith.select %328, %330, %332 : vector<8x8xi1>, vector<8x8xf32>
    %334 = vector.shape_cast %320 : vector<8x8xf32> to vector<8x1x8xf32>
    %335 = vector.shape_cast %321 : vector<8x8xf32> to vector<1x8x8xf32>
    %336 = vector.broadcast %334 : vector<8x1x8xf32> to vector<8x8x8xf32>
    %337 = vector.broadcast %335 : vector<1x8x8xf32> to vector<8x8x8xf32>
    %338 = arith.mulf %336, %337 : vector<8x8x8xf32>
    %339 = vector.shape_cast %333 : vector<8x8xf32> to vector<8x1x8xf32>
    %340 = vector.broadcast %339 : vector<8x1x8xf32> to vector<8x8x8xf32>
    %341 = arith.subf %338, %340 : vector<8x8x8xf32>
    %342 = math.exp %341 : vector<8x8x8xf32>
    %343 = vector.shape_cast %322 : vector<8x8xf32> to vector<1x8x8xf32>
    %344 = vector.broadcast %343 : vector<1x8x8xf32> to vector<8x8x8xf32>
    %345 = arith.mulf %342, %344 : vector<8x8x8xf32>
    %cst_113 = arith.constant dense<0.000000e+00> : vector<8x8xf32>
    %346 = vector.multi_reduction <add>, %345, %cst_113 [1] : vector<8x8x8xf32> to vector<8x8xf32>
    %cst_114 = arith.constant dense<0.000000e+00> : vector<8x8xf32>
    %347 = vector.multi_reduction <add>, %342, %cst_114 [1] : vector<8x8x8xf32> to vector<8x8xf32>
    %348 = tpu.reciprocal %347 {approx = true} : vector<8x8xf32> -> vector<8x8xf32>
    %349 = arith.mulf %346, %348 : vector<8x8xf32>
    %350 = tpu.concatenate %319, %349 in 0 : vector<8x8xf32>, vector<8x8xf32> -> vector<16x8xf32>
    %cst_115 = arith.constant dense<0.000000e+00> : vector<16x8xf32>
    %351 = tpu.matmul %350, %282, %cst_115 {dimension_numbers = #tpu.dot_dimension_numbers<[1], [0], [0], [1], [0, 0, 1, 1], [], []>} : vector<16x8xf32>, vector<8x8xf32>, vector<16x8xf32> -> vector<16x8xf32>
    %352 = arith.addf %278, %351 : vector<16x8xf32>
    %cst_116 = arith.constant dense<0.000000e+00> : vector<16xf32>
    %353 = vector.multi_reduction <add>, %352, %cst_116 [1] : vector<16x8xf32> to vector<16xf32>
    %354 = vector.shape_cast %353 : vector<16xf32> to vector<16x1xf32>
    %cst_117 = arith.constant 8.000000e+00 : f32
    %355 = vector.broadcast %cst_117 : f32 to vector<16x1xf32>
    %356 = arith.divf %354, %355 : vector<16x1xf32>
    %357 = vector.broadcast %356 : vector<16x1xf32> to vector<16x8xf32>
    %358 = arith.subf %352, %357 : vector<16x8xf32>
    %359 = arith.mulf %358, %358 : vector<16x8xf32>
    %cst_118 = arith.constant dense<0.000000e+00> : vector<16xf32>
    %360 = vector.multi_reduction <add>, %359, %cst_118 [1] : vector<16x8xf32> to vector<16xf32>
    %361 = vector.shape_cast %360 : vector<16xf32> to vector<16x1xf32>
    %cst_119 = arith.constant 8.000000e+00 : f32
    %362 = vector.broadcast %cst_119 : f32 to vector<16x1xf32>
    %363 = arith.divf %361, %362 : vector<16x1xf32>
    %364 = vector.broadcast %356 : vector<16x1xf32> to vector<16x8xf32>
    %365 = arith.subf %352, %364 : vector<16x8xf32>
    %cst_120 = arith.constant 9.99999974E-6 : f32
    %366 = vector.broadcast %cst_120 : f32 to vector<16x1xf32>
    %367 = arith.addf %363, %366 : vector<16x1xf32>
    %368 = math.rsqrt %367 : vector<16x1xf32>
    %369 = vector.broadcast %368 : vector<16x1xf32> to vector<16x8xf32>
    %370 = arith.mulf %365, %369 : vector<16x8xf32>
    %371 = vector.broadcast %285 : vector<1x8xf32> to vector<16x8xf32>
    %372 = arith.mulf %370, %371 : vector<16x8xf32>
    %cst_121 = arith.constant dense<0.000000e+00> : vector<16x1xf32>
    %373 = tpu.matmul %372, %283, %cst_121 {dimension_numbers = #tpu.dot_dimension_numbers<[1], [0], [0], [1], [0, 0, 1, 1], [], []>} : vector<16x8xf32>, vector<8x1xf32>, vector<16x1xf32> -> vector<16x1xf32>
    %cst_122 = arith.constant 0.000000e+00 : f32
    %374 = vector.broadcast %cst_122 : f32 to vector<16x1xf32>
    %375 = arith.maximumf %373, %374 : vector<16x1xf32>
    %cst_123 = arith.constant dense<0.000000e+00> : vector<16x8xf32>
    %376 = tpu.matmul %375, %284, %cst_123 {dimension_numbers = #tpu.dot_dimension_numbers<[1], [0], [0], [1], [0, 0, 1, 1], [], []>} : vector<16x1xf32>, vector<1x8xf32>, vector<16x8xf32> -> vector<16x8xf32>
    %377 = arith.addf %372, %376 : vector<16x8xf32>
    %cst_124 = arith.constant dense<0.000000e+00> : vector<16xf32>
    %378 = vector.multi_reduction <add>, %377, %cst_124 [1] : vector<16x8xf32> to vector<16xf32>
    %379 = vector.shape_cast %378 : vector<16xf32> to vector<16x1xf32>
    %cst_125 = arith.constant 8.000000e+00 : f32
    %380 = vector.broadcast %cst_125 : f32 to vector<16x1xf32>
    %381 = arith.divf %379, %380 : vector<16x1xf32>
    %382 = vector.broadcast %381 : vector<16x1xf32> to vector<16x8xf32>
    %383 = arith.subf %377, %382 : vector<16x8xf32>
    %384 = arith.mulf %383, %383 : vector<16x8xf32>
    %cst_126 = arith.constant dense<0.000000e+00> : vector<16xf32>
    %385 = vector.multi_reduction <add>, %384, %cst_126 [1] : vector<16x8xf32> to vector<16xf32>
    %386 = vector.shape_cast %385 : vector<16xf32> to vector<16x1xf32>
    %cst_127 = arith.constant 8.000000e+00 : f32
    %387 = vector.broadcast %cst_127 : f32 to vector<16x1xf32>
    %388 = arith.divf %386, %387 : vector<16x1xf32>
    %389 = vector.broadcast %381 : vector<16x1xf32> to vector<16x8xf32>
    %390 = arith.subf %377, %389 : vector<16x8xf32>
    %cst_128 = arith.constant 9.99999974E-6 : f32
    %391 = vector.broadcast %cst_128 : f32 to vector<16x1xf32>
    %392 = arith.addf %388, %391 : vector<16x1xf32>
    %393 = math.rsqrt %392 : vector<16x1xf32>
    %394 = vector.broadcast %393 : vector<16x1xf32> to vector<16x8xf32>
    %395 = arith.mulf %390, %394 : vector<16x8xf32>
    %396 = vector.broadcast %286 : vector<1x8xf32> to vector<16x8xf32>
    %397 = arith.mulf %395, %396 : vector<16x8xf32>
    %c0_129 = arith.constant 0 : index
    %c0_130 = arith.constant 0 : index
    %c0_131 = arith.constant 0 : index
    %398 = vector.load %arg1[%c0_129, %c0_130, %c0_131] : memref<2x4x8xf32, #tpu.memory_space<vmem>>, vector<1x4x8xf32>
    %399 = vector.shape_cast %398 : vector<1x4x8xf32> to vector<4x8xf32>
    %c1_132 = arith.constant 1 : index
    %c0_133 = arith.constant 0 : index
    %c0_134 = arith.constant 0 : index
    %400 = vector.load %arg1[%c1_132, %c0_133, %c0_134] : memref<2x4x8xf32, #tpu.memory_space<vmem>>, vector<1x4x8xf32>
    %401 = vector.shape_cast %400 : vector<1x4x8xf32> to vector<4x8xf32>
    %402 = tpu.concatenate %399, %401 in 0 : vector<4x8xf32>, vector<4x8xf32> -> vector<8x8xf32>
    %c192 = arith.constant 192 : index
    %c0_135 = arith.constant 0 : index
    %403 = vector.load %arg5[%c192, %c0_135] : memref<344x128xf32, #tpu.memory_space<vmem>>, vector<8x8xf32>
    %c200 = arith.constant 200 : index
    %c0_136 = arith.constant 0 : index
    %404 = vector.load %arg5[%c200, %c0_136] : memref<344x128xf32, #tpu.memory_space<vmem>>, vector<8x8xf32>
    %c208 = arith.constant 208 : index
    %c0_137 = arith.constant 0 : index
    %405 = vector.load %arg5[%c208, %c0_137] : memref<344x128xf32, #tpu.memory_space<vmem>>, vector<8x8xf32>
    %c216 = arith.constant 216 : index
    %c0_138 = arith.constant 0 : index
    %406 = vector.load %arg5[%c216, %c0_138] : memref<344x128xf32, #tpu.memory_space<vmem>>, vector<8x8xf32>
    %c224 = arith.constant 224 : index
    %c0_139 = arith.constant 0 : index
    %407 = vector.load %arg5[%c224, %c0_139] : memref<344x128xf32, #tpu.memory_space<vmem>>, vector<8x1xf32>
    %c232 = arith.constant 232 : index
    %c0_140 = arith.constant 0 : index
    %408 = vector.load %arg5[%c232, %c0_140] : memref<344x128xf32, #tpu.memory_space<vmem>>, vector<1x8xf32>
    %c240 = arith.constant 240 : index
    %c0_141 = arith.constant 0 : index
    %409 = vector.load %arg5[%c240, %c0_141] : memref<344x128xf32, #tpu.memory_space<vmem>>, vector<1x8xf32>
    %c248 = arith.constant 248 : index
    %c0_142 = arith.constant 0 : index
    %410 = vector.load %arg5[%c248, %c0_142] : memref<344x128xf32, #tpu.memory_space<vmem>>, vector<1x8xf32>
    %cst_143 = arith.constant dense<0.000000e+00> : vector<8x8xf32>
    %411 = tpu.matmul %402, %403, %cst_143 {dimension_numbers = #tpu.dot_dimension_numbers<[1], [0], [0], [1], [0, 0, 1, 1], [], []>} : vector<8x8xf32>, vector<8x8xf32>, vector<8x8xf32> -> vector<8x8xf32>
    %cst_144 = arith.constant dense<0.000000e+00> : vector<16x8xf32>
    %412 = tpu.matmul %397, %404, %cst_144 {dimension_numbers = #tpu.dot_dimension_numbers<[1], [0], [0], [1], [0, 0, 1, 1], [], []>} : vector<16x8xf32>, vector<8x8xf32>, vector<16x8xf32> -> vector<16x8xf32>
    %cst_145 = arith.constant dense<0.000000e+00> : vector<16x8xf32>
    %413 = tpu.matmul %397, %405, %cst_145 {dimension_numbers = #tpu.dot_dimension_numbers<[1], [0], [0], [1], [0, 0, 1, 1], [], []>} : vector<16x8xf32>, vector<8x8xf32>, vector<16x8xf32> -> vector<16x8xf32>
    %414 = vector.extract_strided_slice %411 {offsets = [0, 0], sizes = [4, 8], strides = [1, 1]} : vector<8x8xf32> to vector<4x8xf32>
    %415 = vector.extract_strided_slice %412 {offsets = [0, 0], sizes = [8, 8], strides = [1, 1]} : vector<16x8xf32> to vector<8x8xf32>
    %416 = vector.extract_strided_slice %413 {offsets = [0, 0], sizes = [8, 8], strides = [1, 1]} : vector<16x8xf32> to vector<8x8xf32>
    %cst_146 = arith.constant dense<0xFF800000> : vector<8xf32>
    %417 = vector.multi_reduction <maximumf>, %415, %cst_146 [0] : vector<8x8xf32> to vector<8xf32>
    %418 = vector.shape_cast %417 : vector<8xf32> to vector<1x8xf32>
    %cst_147 = arith.constant dense<0x7F800000> : vector<8xf32>
    %419 = vector.multi_reduction <minimumf>, %415, %cst_147 [0] : vector<8x8xf32> to vector<8xf32>
    %420 = vector.shape_cast %419 : vector<8xf32> to vector<1x8xf32>
    %cst_148 = arith.constant 0.000000e+00 : f32
    %421 = vector.broadcast %cst_148 : f32 to vector<4x8xf32>
    %422 = arith.cmpf ogt, %414, %421 : vector<4x8xf32>
    %423 = vector.broadcast %418 : vector<1x8xf32> to vector<4x8xf32>
    %424 = arith.mulf %414, %423 : vector<4x8xf32>
    %425 = vector.broadcast %420 : vector<1x8xf32> to vector<4x8xf32>
    %426 = arith.mulf %414, %425 : vector<4x8xf32>
    %427 = arith.select %422, %424, %426 : vector<4x8xi1>, vector<4x8xf32>
    %428 = vector.shape_cast %414 : vector<4x8xf32> to vector<4x1x8xf32>
    %429 = vector.shape_cast %415 : vector<8x8xf32> to vector<1x8x8xf32>
    %430 = vector.broadcast %428 : vector<4x1x8xf32> to vector<4x8x8xf32>
    %431 = vector.broadcast %429 : vector<1x8x8xf32> to vector<4x8x8xf32>
    %432 = arith.mulf %430, %431 : vector<4x8x8xf32>
    %433 = vector.shape_cast %427 : vector<4x8xf32> to vector<4x1x8xf32>
    %434 = vector.broadcast %433 : vector<4x1x8xf32> to vector<4x8x8xf32>
    %435 = arith.subf %432, %434 : vector<4x8x8xf32>
    %436 = math.exp %435 : vector<4x8x8xf32>
    %437 = vector.shape_cast %416 : vector<8x8xf32> to vector<1x8x8xf32>
    %438 = vector.broadcast %437 : vector<1x8x8xf32> to vector<4x8x8xf32>
    %439 = arith.mulf %436, %438 : vector<4x8x8xf32>
    %cst_149 = arith.constant dense<0.000000e+00> : vector<4x8xf32>
    %440 = vector.multi_reduction <add>, %439, %cst_149 [1] : vector<4x8x8xf32> to vector<4x8xf32>
    %cst_150 = arith.constant dense<0.000000e+00> : vector<4x8xf32>
    %441 = vector.multi_reduction <add>, %436, %cst_150 [1] : vector<4x8x8xf32> to vector<4x8xf32>
    %442 = tpu.reciprocal %441 {approx = true} : vector<4x8xf32> -> vector<4x8xf32>
    %443 = arith.mulf %440, %442 : vector<4x8xf32>
    %444 = vector.extract_strided_slice %411 {offsets = [4, 0], sizes = [4, 8], strides = [1, 1]} : vector<8x8xf32> to vector<4x8xf32>
    %445 = vector.extract_strided_slice %412 {offsets = [8, 0], sizes = [8, 8], strides = [1, 1]} : vector<16x8xf32> to vector<8x8xf32>
    %446 = vector.extract_strided_slice %413 {offsets = [8, 0], sizes = [8, 8], strides = [1, 1]} : vector<16x8xf32> to vector<8x8xf32>
    %cst_151 = arith.constant dense<0xFF800000> : vector<8xf32>
    %447 = vector.multi_reduction <maximumf>, %445, %cst_151 [0] : vector<8x8xf32> to vector<8xf32>
    %448 = vector.shape_cast %447 : vector<8xf32> to vector<1x8xf32>
    %cst_152 = arith.constant dense<0x7F800000> : vector<8xf32>
    %449 = vector.multi_reduction <minimumf>, %445, %cst_152 [0] : vector<8x8xf32> to vector<8xf32>
    %450 = vector.shape_cast %449 : vector<8xf32> to vector<1x8xf32>
    %cst_153 = arith.constant 0.000000e+00 : f32
    %451 = vector.broadcast %cst_153 : f32 to vector<4x8xf32>
    %452 = arith.cmpf ogt, %444, %451 : vector<4x8xf32>
    %453 = vector.broadcast %448 : vector<1x8xf32> to vector<4x8xf32>
    %454 = arith.mulf %444, %453 : vector<4x8xf32>
    %455 = vector.broadcast %450 : vector<1x8xf32> to vector<4x8xf32>
    %456 = arith.mulf %444, %455 : vector<4x8xf32>
    %457 = arith.select %452, %454, %456 : vector<4x8xi1>, vector<4x8xf32>
    %458 = vector.shape_cast %444 : vector<4x8xf32> to vector<4x1x8xf32>
    %459 = vector.shape_cast %445 : vector<8x8xf32> to vector<1x8x8xf32>
    %460 = vector.broadcast %458 : vector<4x1x8xf32> to vector<4x8x8xf32>
    %461 = vector.broadcast %459 : vector<1x8x8xf32> to vector<4x8x8xf32>
    %462 = arith.mulf %460, %461 : vector<4x8x8xf32>
    %463 = vector.shape_cast %457 : vector<4x8xf32> to vector<4x1x8xf32>
    %464 = vector.broadcast %463 : vector<4x1x8xf32> to vector<4x8x8xf32>
    %465 = arith.subf %462, %464 : vector<4x8x8xf32>
    %466 = math.exp %465 : vector<4x8x8xf32>
    %467 = vector.shape_cast %446 : vector<8x8xf32> to vector<1x8x8xf32>
    %468 = vector.broadcast %467 : vector<1x8x8xf32> to vector<4x8x8xf32>
    %469 = arith.mulf %466, %468 : vector<4x8x8xf32>
    %cst_154 = arith.constant dense<0.000000e+00> : vector<4x8xf32>
    %470 = vector.multi_reduction <add>, %469, %cst_154 [1] : vector<4x8x8xf32> to vector<4x8xf32>
    %cst_155 = arith.constant dense<0.000000e+00> : vector<4x8xf32>
    %471 = vector.multi_reduction <add>, %466, %cst_155 [1] : vector<4x8x8xf32> to vector<4x8xf32>
    %472 = tpu.reciprocal %471 {approx = true} : vector<4x8xf32> -> vector<4x8xf32>
    %473 = arith.mulf %470, %472 : vector<4x8xf32>
    %474 = tpu.concatenate %443, %473 in 0 : vector<4x8xf32>, vector<4x8xf32> -> vector<8x8xf32>
    %cst_156 = arith.constant dense<0.000000e+00> : vector<8x8xf32>
    %475 = tpu.matmul %474, %406, %cst_156 {dimension_numbers = #tpu.dot_dimension_numbers<[1], [0], [0], [1], [0, 0, 1, 1], [], []>} : vector<8x8xf32>, vector<8x8xf32>, vector<8x8xf32> -> vector<8x8xf32>
    %476 = arith.addf %402, %475 : vector<8x8xf32>
    %cst_157 = arith.constant dense<0.000000e+00> : vector<8xf32>
    %477 = vector.multi_reduction <add>, %476, %cst_157 [1] : vector<8x8xf32> to vector<8xf32>
    %478 = vector.shape_cast %477 : vector<8xf32> to vector<8x1xf32>
    %cst_158 = arith.constant 8.000000e+00 : f32
    %479 = vector.broadcast %cst_158 : f32 to vector<8x1xf32>
    %480 = arith.divf %478, %479 : vector<8x1xf32>
    %481 = vector.broadcast %480 : vector<8x1xf32> to vector<8x8xf32>
    %482 = arith.subf %476, %481 : vector<8x8xf32>
    %483 = arith.mulf %482, %482 : vector<8x8xf32>
    %cst_159 = arith.constant dense<0.000000e+00> : vector<8xf32>
    %484 = vector.multi_reduction <add>, %483, %cst_159 [1] : vector<8x8xf32> to vector<8xf32>
    %485 = vector.shape_cast %484 : vector<8xf32> to vector<8x1xf32>
    %cst_160 = arith.constant 8.000000e+00 : f32
    %486 = vector.broadcast %cst_160 : f32 to vector<8x1xf32>
    %487 = arith.divf %485, %486 : vector<8x1xf32>
    %488 = vector.broadcast %480 : vector<8x1xf32> to vector<8x8xf32>
    %489 = arith.subf %476, %488 : vector<8x8xf32>
    %cst_161 = arith.constant 9.99999974E-6 : f32
    %490 = vector.broadcast %cst_161 : f32 to vector<8x1xf32>
    %491 = arith.addf %487, %490 : vector<8x1xf32>
    %492 = math.rsqrt %491 : vector<8x1xf32>
    %493 = vector.broadcast %492 : vector<8x1xf32> to vector<8x8xf32>
    %494 = arith.mulf %489, %493 : vector<8x8xf32>
    %495 = vector.broadcast %409 : vector<1x8xf32> to vector<8x8xf32>
    %496 = arith.mulf %494, %495 : vector<8x8xf32>
    %cst_162 = arith.constant dense<0.000000e+00> : vector<8x1xf32>
    %497 = tpu.matmul %496, %407, %cst_162 {dimension_numbers = #tpu.dot_dimension_numbers<[1], [0], [0], [1], [0, 0, 1, 1], [], []>} : vector<8x8xf32>, vector<8x1xf32>, vector<8x1xf32> -> vector<8x1xf32>
    %cst_163 = arith.constant 0.000000e+00 : f32
    %498 = vector.broadcast %cst_163 : f32 to vector<8x1xf32>
    %499 = arith.maximumf %497, %498 : vector<8x1xf32>
    %cst_164 = arith.constant dense<0.000000e+00> : vector<8x8xf32>
    %500 = tpu.matmul %499, %408, %cst_164 {dimension_numbers = #tpu.dot_dimension_numbers<[1], [0], [0], [1], [0, 0, 1, 1], [], []>} : vector<8x1xf32>, vector<1x8xf32>, vector<8x8xf32> -> vector<8x8xf32>
    %501 = arith.addf %496, %500 : vector<8x8xf32>
    %cst_165 = arith.constant dense<0.000000e+00> : vector<8xf32>
    %502 = vector.multi_reduction <add>, %501, %cst_165 [1] : vector<8x8xf32> to vector<8xf32>
    %503 = vector.shape_cast %502 : vector<8xf32> to vector<8x1xf32>
    %cst_166 = arith.constant 8.000000e+00 : f32
    %504 = vector.broadcast %cst_166 : f32 to vector<8x1xf32>
    %505 = arith.divf %503, %504 : vector<8x1xf32>
    %506 = vector.broadcast %505 : vector<8x1xf32> to vector<8x8xf32>
    %507 = arith.subf %501, %506 : vector<8x8xf32>
    %508 = arith.mulf %507, %507 : vector<8x8xf32>
    %cst_167 = arith.constant dense<0.000000e+00> : vector<8xf32>
    %509 = vector.multi_reduction <add>, %508, %cst_167 [1] : vector<8x8xf32> to vector<8xf32>
    %510 = vector.shape_cast %509 : vector<8xf32> to vector<8x1xf32>
    %cst_168 = arith.constant 8.000000e+00 : f32
    %511 = vector.broadcast %cst_168 : f32 to vector<8x1xf32>
    %512 = arith.divf %510, %511 : vector<8x1xf32>
    %513 = vector.broadcast %505 : vector<8x1xf32> to vector<8x8xf32>
    %514 = arith.subf %501, %513 : vector<8x8xf32>
    %cst_169 = arith.constant 9.99999974E-6 : f32
    %515 = vector.broadcast %cst_169 : f32 to vector<8x1xf32>
    %516 = arith.addf %512, %515 : vector<8x1xf32>
    %517 = math.rsqrt %516 : vector<8x1xf32>
    %518 = vector.broadcast %517 : vector<8x1xf32> to vector<8x8xf32>
    %519 = arith.mulf %514, %518 : vector<8x8xf32>
    %520 = vector.broadcast %410 : vector<1x8xf32> to vector<8x8xf32>
    %521 = arith.mulf %519, %520 : vector<8x8xf32>
    %522 = vector.extract_strided_slice %521 {offsets = [0, 0], sizes = [4, 8], strides = [1, 1]} : vector<8x8xf32> to vector<4x8xf32>
    %523 = tpu.transpose %522, [1, 0] : vector<4x8xf32> -> vector<8x4xf32>
    %524 = vector.extract_strided_slice %521 {offsets = [4, 0], sizes = [4, 8], strides = [1, 1]} : vector<8x8xf32> to vector<4x8xf32>
    %525 = tpu.transpose %524, [1, 0] : vector<4x8xf32> -> vector<8x4xf32>
    %526 = tpu.concatenate %523, %525 in 0 : vector<8x4xf32>, vector<8x4xf32> -> vector<16x4xf32>
    %c256 = arith.constant 256 : index
    %c0_170 = arith.constant 0 : index
    %527 = vector.load %arg5[%c256, %c0_170] : memref<344x128xf32, #tpu.memory_space<vmem>>, vector<4x4xf32>
    %c264 = arith.constant 264 : index
    %c0_171 = arith.constant 0 : index
    %528 = vector.load %arg5[%c264, %c0_171] : memref<344x128xf32, #tpu.memory_space<vmem>>, vector<4x4xf32>
    %c272 = arith.constant 272 : index
    %c0_172 = arith.constant 0 : index
    %529 = vector.load %arg5[%c272, %c0_172] : memref<344x128xf32, #tpu.memory_space<vmem>>, vector<4x4xf32>
    %c280 = arith.constant 280 : index
    %c0_173 = arith.constant 0 : index
    %530 = vector.load %arg5[%c280, %c0_173] : memref<344x128xf32, #tpu.memory_space<vmem>>, vector<4x4xf32>
    %c288 = arith.constant 288 : index
    %c0_174 = arith.constant 0 : index
    %531 = vector.load %arg5[%c288, %c0_174] : memref<344x128xf32, #tpu.memory_space<vmem>>, vector<4x1xf32>
    %c296 = arith.constant 296 : index
    %c0_175 = arith.constant 0 : index
    %532 = vector.load %arg5[%c296, %c0_175] : memref<344x128xf32, #tpu.memory_space<vmem>>, vector<1x4xf32>
    %c304 = arith.constant 304 : index
    %c0_176 = arith.constant 0 : index
    %533 = vector.load %arg5[%c304, %c0_176] : memref<344x128xf32, #tpu.memory_space<vmem>>, vector<1x4xf32>
    %c312 = arith.constant 312 : index
    %c0_177 = arith.constant 0 : index
    %534 = vector.load %arg5[%c312, %c0_177] : memref<344x128xf32, #tpu.memory_space<vmem>>, vector<1x4xf32>
    %cst_178 = arith.constant dense<0.000000e+00> : vector<16x4xf32>
    %535 = tpu.matmul %526, %527, %cst_178 {dimension_numbers = #tpu.dot_dimension_numbers<[1], [0], [0], [1], [0, 0, 1, 1], [], []>} : vector<16x4xf32>, vector<4x4xf32>, vector<16x4xf32> -> vector<16x4xf32>
    %cst_179 = arith.constant dense<0.000000e+00> : vector<16x4xf32>
    %536 = tpu.matmul %526, %528, %cst_179 {dimension_numbers = #tpu.dot_dimension_numbers<[1], [0], [0], [1], [0, 0, 1, 1], [], []>} : vector<16x4xf32>, vector<4x4xf32>, vector<16x4xf32> -> vector<16x4xf32>
    %cst_180 = arith.constant dense<0.000000e+00> : vector<16x4xf32>
    %537 = tpu.matmul %526, %529, %cst_180 {dimension_numbers = #tpu.dot_dimension_numbers<[1], [0], [0], [1], [0, 0, 1, 1], [], []>} : vector<16x4xf32>, vector<4x4xf32>, vector<16x4xf32> -> vector<16x4xf32>
    %538 = vector.extract_strided_slice %535 {offsets = [0, 0], sizes = [8, 4], strides = [1, 1]} : vector<16x4xf32> to vector<8x4xf32>
    %539 = vector.extract_strided_slice %536 {offsets = [0, 0], sizes = [8, 4], strides = [1, 1]} : vector<16x4xf32> to vector<8x4xf32>
    %540 = vector.extract_strided_slice %537 {offsets = [0, 0], sizes = [8, 4], strides = [1, 1]} : vector<16x4xf32> to vector<8x4xf32>
    %cst_181 = arith.constant dense<0xFF800000> : vector<4xf32>
    %541 = vector.multi_reduction <maximumf>, %539, %cst_181 [0] : vector<8x4xf32> to vector<4xf32>
    %542 = vector.shape_cast %541 : vector<4xf32> to vector<1x4xf32>
    %cst_182 = arith.constant dense<0x7F800000> : vector<4xf32>
    %543 = vector.multi_reduction <minimumf>, %539, %cst_182 [0] : vector<8x4xf32> to vector<4xf32>
    %544 = vector.shape_cast %543 : vector<4xf32> to vector<1x4xf32>
    %cst_183 = arith.constant 0.000000e+00 : f32
    %545 = vector.broadcast %cst_183 : f32 to vector<8x4xf32>
    %546 = arith.cmpf ogt, %538, %545 : vector<8x4xf32>
    %547 = vector.broadcast %542 : vector<1x4xf32> to vector<8x4xf32>
    %548 = arith.mulf %538, %547 : vector<8x4xf32>
    %549 = vector.broadcast %544 : vector<1x4xf32> to vector<8x4xf32>
    %550 = arith.mulf %538, %549 : vector<8x4xf32>
    %551 = arith.select %546, %548, %550 : vector<8x4xi1>, vector<8x4xf32>
    %552 = vector.shape_cast %538 : vector<8x4xf32> to vector<8x1x4xf32>
    %553 = vector.shape_cast %539 : vector<8x4xf32> to vector<1x8x4xf32>
    %554 = vector.broadcast %552 : vector<8x1x4xf32> to vector<8x8x4xf32>
    %555 = vector.broadcast %553 : vector<1x8x4xf32> to vector<8x8x4xf32>
    %556 = arith.mulf %554, %555 : vector<8x8x4xf32>
    %557 = vector.shape_cast %551 : vector<8x4xf32> to vector<8x1x4xf32>
    %558 = vector.broadcast %557 : vector<8x1x4xf32> to vector<8x8x4xf32>
    %559 = arith.subf %556, %558 : vector<8x8x4xf32>
    %560 = math.exp %559 : vector<8x8x4xf32>
    %561 = vector.shape_cast %540 : vector<8x4xf32> to vector<1x8x4xf32>
    %562 = vector.broadcast %561 : vector<1x8x4xf32> to vector<8x8x4xf32>
    %563 = arith.mulf %560, %562 : vector<8x8x4xf32>
    %cst_184 = arith.constant dense<0.000000e+00> : vector<8x4xf32>
    %564 = vector.multi_reduction <add>, %563, %cst_184 [1] : vector<8x8x4xf32> to vector<8x4xf32>
    %cst_185 = arith.constant dense<0.000000e+00> : vector<8x4xf32>
    %565 = vector.multi_reduction <add>, %560, %cst_185 [1] : vector<8x8x4xf32> to vector<8x4xf32>
    %566 = tpu.reciprocal %565 {approx = true} : vector<8x4xf32> -> vector<8x4xf32>
    %567 = arith.mulf %564, %566 : vector<8x4xf32>
    %568 = vector.extract_strided_slice %535 {offsets = [8, 0], sizes = [8, 4], strides = [1, 1]} : vector<16x4xf32> to vector<8x4xf32>
    %569 = vector.extract_strided_slice %536 {offsets = [8, 0], sizes = [8, 4], strides = [1, 1]} : vector<16x4xf32> to vector<8x4xf32>
    %570 = vector.extract_strided_slice %537 {offsets = [8, 0], sizes = [8, 4], strides = [1, 1]} : vector<16x4xf32> to vector<8x4xf32>
    %cst_186 = arith.constant dense<0xFF800000> : vector<4xf32>
    %571 = vector.multi_reduction <maximumf>, %569, %cst_186 [0] : vector<8x4xf32> to vector<4xf32>
    %572 = vector.shape_cast %571 : vector<4xf32> to vector<1x4xf32>
    %cst_187 = arith.constant dense<0x7F800000> : vector<4xf32>
    %573 = vector.multi_reduction <minimumf>, %569, %cst_187 [0] : vector<8x4xf32> to vector<4xf32>
    %574 = vector.shape_cast %573 : vector<4xf32> to vector<1x4xf32>
    %cst_188 = arith.constant 0.000000e+00 : f32
    %575 = vector.broadcast %cst_188 : f32 to vector<8x4xf32>
    %576 = arith.cmpf ogt, %568, %575 : vector<8x4xf32>
    %577 = vector.broadcast %572 : vector<1x4xf32> to vector<8x4xf32>
    %578 = arith.mulf %568, %577 : vector<8x4xf32>
    %579 = vector.broadcast %574 : vector<1x4xf32> to vector<8x4xf32>
    %580 = arith.mulf %568, %579 : vector<8x4xf32>
    %581 = arith.select %576, %578, %580 : vector<8x4xi1>, vector<8x4xf32>
    %582 = vector.shape_cast %568 : vector<8x4xf32> to vector<8x1x4xf32>
    %583 = vector.shape_cast %569 : vector<8x4xf32> to vector<1x8x4xf32>
    %584 = vector.broadcast %582 : vector<8x1x4xf32> to vector<8x8x4xf32>
    %585 = vector.broadcast %583 : vector<1x8x4xf32> to vector<8x8x4xf32>
    %586 = arith.mulf %584, %585 : vector<8x8x4xf32>
    %587 = vector.shape_cast %581 : vector<8x4xf32> to vector<8x1x4xf32>
    %588 = vector.broadcast %587 : vector<8x1x4xf32> to vector<8x8x4xf32>
    %589 = arith.subf %586, %588 : vector<8x8x4xf32>
    %590 = math.exp %589 : vector<8x8x4xf32>
    %591 = vector.shape_cast %570 : vector<8x4xf32> to vector<1x8x4xf32>
    %592 = vector.broadcast %591 : vector<1x8x4xf32> to vector<8x8x4xf32>
    %593 = arith.mulf %590, %592 : vector<8x8x4xf32>
    %cst_189 = arith.constant dense<0.000000e+00> : vector<8x4xf32>
    %594 = vector.multi_reduction <add>, %593, %cst_189 [1] : vector<8x8x4xf32> to vector<8x4xf32>
    %cst_190 = arith.constant dense<0.000000e+00> : vector<8x4xf32>
    %595 = vector.multi_reduction <add>, %590, %cst_190 [1] : vector<8x8x4xf32> to vector<8x4xf32>
    %596 = tpu.reciprocal %595 {approx = true} : vector<8x4xf32> -> vector<8x4xf32>
    %597 = arith.mulf %594, %596 : vector<8x4xf32>
    %598 = tpu.concatenate %567, %597 in 0 : vector<8x4xf32>, vector<8x4xf32> -> vector<16x4xf32>
    %cst_191 = arith.constant dense<0.000000e+00> : vector<16x4xf32>
    %599 = tpu.matmul %598, %530, %cst_191 {dimension_numbers = #tpu.dot_dimension_numbers<[1], [0], [0], [1], [0, 0, 1, 1], [], []>} : vector<16x4xf32>, vector<4x4xf32>, vector<16x4xf32> -> vector<16x4xf32>
    %600 = arith.addf %526, %599 : vector<16x4xf32>
    %cst_192 = arith.constant dense<0.000000e+00> : vector<16xf32>
    %601 = vector.multi_reduction <add>, %600, %cst_192 [1] : vector<16x4xf32> to vector<16xf32>
    %602 = vector.shape_cast %601 : vector<16xf32> to vector<16x1xf32>
    %cst_193 = arith.constant 4.000000e+00 : f32
    %603 = vector.broadcast %cst_193 : f32 to vector<16x1xf32>
    %604 = arith.divf %602, %603 : vector<16x1xf32>
    %605 = vector.broadcast %604 : vector<16x1xf32> to vector<16x4xf32>
    %606 = arith.subf %600, %605 : vector<16x4xf32>
    %607 = arith.mulf %606, %606 : vector<16x4xf32>
    %cst_194 = arith.constant dense<0.000000e+00> : vector<16xf32>
    %608 = vector.multi_reduction <add>, %607, %cst_194 [1] : vector<16x4xf32> to vector<16xf32>
    %609 = vector.shape_cast %608 : vector<16xf32> to vector<16x1xf32>
    %cst_195 = arith.constant 4.000000e+00 : f32
    %610 = vector.broadcast %cst_195 : f32 to vector<16x1xf32>
    %611 = arith.divf %609, %610 : vector<16x1xf32>
    %612 = vector.broadcast %604 : vector<16x1xf32> to vector<16x4xf32>
    %613 = arith.subf %600, %612 : vector<16x4xf32>
    %cst_196 = arith.constant 9.99999974E-6 : f32
    %614 = vector.broadcast %cst_196 : f32 to vector<16x1xf32>
    %615 = arith.addf %611, %614 : vector<16x1xf32>
    %616 = math.rsqrt %615 : vector<16x1xf32>
    %617 = vector.broadcast %616 : vector<16x1xf32> to vector<16x4xf32>
    %618 = arith.mulf %613, %617 : vector<16x4xf32>
    %619 = vector.broadcast %533 : vector<1x4xf32> to vector<16x4xf32>
    %620 = arith.mulf %618, %619 : vector<16x4xf32>
    %cst_197 = arith.constant dense<0.000000e+00> : vector<16x1xf32>
    %621 = tpu.matmul %620, %531, %cst_197 {dimension_numbers = #tpu.dot_dimension_numbers<[1], [0], [0], [1], [0, 0, 1, 1], [], []>} : vector<16x4xf32>, vector<4x1xf32>, vector<16x1xf32> -> vector<16x1xf32>
    %cst_198 = arith.constant 0.000000e+00 : f32
    %622 = vector.broadcast %cst_198 : f32 to vector<16x1xf32>
    %623 = arith.maximumf %621, %622 : vector<16x1xf32>
    %cst_199 = arith.constant dense<0.000000e+00> : vector<16x4xf32>
    %624 = tpu.matmul %623, %532, %cst_199 {dimension_numbers = #tpu.dot_dimension_numbers<[1], [0], [0], [1], [0, 0, 1, 1], [], []>} : vector<16x1xf32>, vector<1x4xf32>, vector<16x4xf32> -> vector<16x4xf32>
    %625 = arith.addf %620, %624 : vector<16x4xf32>
    %cst_200 = arith.constant dense<0.000000e+00> : vector<16xf32>
    %626 = vector.multi_reduction <add>, %625, %cst_200 [1] : vector<16x4xf32> to vector<16xf32>
    %627 = vector.shape_cast %626 : vector<16xf32> to vector<16x1xf32>
    %cst_201 = arith.constant 4.000000e+00 : f32
    %628 = vector.broadcast %cst_201 : f32 to vector<16x1xf32>
    %629 = arith.divf %627, %628 : vector<16x1xf32>
    %630 = vector.broadcast %629 : vector<16x1xf32> to vector<16x4xf32>
    %631 = arith.subf %625, %630 : vector<16x4xf32>
    %632 = arith.mulf %631, %631 : vector<16x4xf32>
    %cst_202 = arith.constant dense<0.000000e+00> : vector<16xf32>
    %633 = vector.multi_reduction <add>, %632, %cst_202 [1] : vector<16x4xf32> to vector<16xf32>
    %634 = vector.shape_cast %633 : vector<16xf32> to vector<16x1xf32>
    %cst_203 = arith.constant 4.000000e+00 : f32
    %635 = vector.broadcast %cst_203 : f32 to vector<16x1xf32>
    %636 = arith.divf %634, %635 : vector<16x1xf32>
    %637 = vector.broadcast %629 : vector<16x1xf32> to vector<16x4xf32>
    %638 = arith.subf %625, %637 : vector<16x4xf32>
    %cst_204 = arith.constant 9.99999974E-6 : f32
    %639 = vector.broadcast %cst_204 : f32 to vector<16x1xf32>
    %640 = arith.addf %636, %639 : vector<16x1xf32>
    %641 = math.rsqrt %640 : vector<16x1xf32>
    %642 = vector.broadcast %641 : vector<16x1xf32> to vector<16x4xf32>
    %643 = arith.mulf %638, %642 : vector<16x4xf32>
    %644 = vector.broadcast %534 : vector<1x4xf32> to vector<16x4xf32>
    %645 = arith.mulf %643, %644 : vector<16x4xf32>
    %646 = vector.extract_strided_slice %645 {offsets = [0, 0], sizes = [8, 4], strides = [1, 1]} : vector<16x4xf32> to vector<8x4xf32>
    %647 = tpu.transpose %646, [1, 0] : vector<8x4xf32> -> vector<4x8xf32>
    %648 = vector.extract_strided_slice %645 {offsets = [8, 0], sizes = [8, 4], strides = [1, 1]} : vector<16x4xf32> to vector<8x4xf32>
    %649 = tpu.transpose %648, [1, 0] : vector<8x4xf32> -> vector<4x8xf32>
    %650 = tpu.concatenate %647, %649 in 0 : vector<4x8xf32>, vector<4x8xf32> -> vector<8x8xf32>
    %c320 = arith.constant 320 : index
    %c0_205 = arith.constant 0 : index
    %651 = vector.load %arg5[%c320, %c0_205] : memref<344x128xf32, #tpu.memory_space<vmem>>, vector<8x16xf32>
    %cst_206 = arith.constant dense<0.000000e+00> : vector<8x16xf32>
    %652 = tpu.matmul %650, %651, %cst_206 {dimension_numbers = #tpu.dot_dimension_numbers<[1], [0], [0], [1], [0, 0, 1, 1], [], []>} : vector<8x8xf32>, vector<8x16xf32>, vector<8x16xf32> -> vector<8x16xf32>
    %cst_207 = arith.constant 0.000000e+00 : f32
    %653 = vector.broadcast %cst_207 : f32 to vector<8x16xf32>
    %654 = arith.maximumf %652, %653 : vector<8x16xf32>
    %c328 = arith.constant 328 : index
    %c0_208 = arith.constant 0 : index
    %655 = vector.load %arg5[%c328, %c0_208] : memref<344x128xf32, #tpu.memory_space<vmem>>, vector<16x8xf32>
    %cst_209 = arith.constant dense<0.000000e+00> : vector<8x8xf32>
    %656 = tpu.matmul %654, %655, %cst_209 {dimension_numbers = #tpu.dot_dimension_numbers<[1], [0], [0], [1], [0, 0, 1, 1], [], []>} : vector<8x16xf32>, vector<16x8xf32>, vector<8x8xf32> -> vector<8x8xf32>
    %c0_210 = arith.constant 0 : index
    %c0_211 = arith.constant 0 : index
    %657 = vector.load %arg6[%c0_210, %c0_211] : memref<8x8xf32, #tpu.memory_space<vmem>>, vector<8x8xf32>
    tpu.vector_store %arg6[%c0_210, %c0_211], %656 {strides = array<i32>} : memref<8x8xf32, #tpu.memory_space<vmem>>, vector<8x8xf32>,
    return
  }
  func.func @transform_0(%arg0: i32) -> (i32, i32, i32) {
    %c0_i32 = arith.constant 0 : i32
    %c0_i32_0 = arith.constant 0 : i32
    %c0_i32_1 = arith.constant 0 : i32
    %c0_i32_2 = arith.constant 0 : i32
    return %c0_i32, %c0_i32_0, %c0_i32_1 : i32, i32, i32
  }
  func.func @transform_1(%arg0: i32) -> (i32, i32, i32) {
    %c0_i32 = arith.constant 0 : i32
    %c0_i32_0 = arith.constant 0 : i32
    %c0_i32_1 = arith.constant 0 : i32
    %c0_i32_2 = arith.constant 0 : i32
    return %c0_i32, %c0_i32_0, %c0_i32_1 : i32, i32, i32
  }
  func.func @transform_2(%arg0: i32) -> (i32, i32, i32) {
    %c0_i32 = arith.constant 0 : i32
    %c0_i32_0 = arith.constant 0 : i32
    %c0_i32_1 = arith.constant 0 : i32
    %c0_i32_2 = arith.constant 0 : i32
    return %c0_i32, %c0_i32_0, %c0_i32_1 : i32, i32, i32
  }
  func.func @transform_3(%arg0: i32) -> (i32, i32, i32) {
    %c0_i32 = arith.constant 0 : i32
    %c0_i32_0 = arith.constant 0 : i32
    %c0_i32_1 = arith.constant 0 : i32
    %c0_i32_2 = arith.constant 0 : i32
    return %c0_i32, %c0_i32_0, %c0_i32_1 : i32, i32, i32
  }
  func.func @transform_4(%arg0: i32) -> (i32, i32) {
    %c0_i32 = arith.constant 0 : i32
    %c0_i32_0 = arith.constant 0 : i32
    %c0_i32_1 = arith.constant 0 : i32
    return %c0_i32, %c0_i32_0 : i32, i32
  }
  func.func @transform_5(%arg0: i32) -> (i32, i32) {
    %c0_i32 = arith.constant 0 : i32
    %c0_i32_0 = arith.constant 0 : i32
    %c0_i32_1 = arith.constant 0 : i32
    return %c0_i32, %c0_i32_0 : i32, i32
  }
}

</mosaic_0001>

<bundles_post_ra>
// kernel: decoder_forward.1
= control target key start
LH: loop header
LB: loop body
LE: loop exit
PB: predicated region body
PF: predicated region fallthrough
CT: control target
= control target key end

     0   :  { %10 = vsyncpa [#allocation3], 0  ;;  %s8377_s0 = inlined_call_operand.hbm [shape: f32[2,4,8], index: 0, kind: input, shape index: {}]   ;;  %s8378_s1 = inlined_call_operand.hbm [shape: f32[2,8,16], index: 1, kind: input, shape index: {}]   ;;  %s8379_s2 = inlined_call_operand.hbm [shape: f32[2,8,16], index: 2, kind: input, shape index: {}]   ;;  %s8380_s3 = inlined_call_operand.hbm [shape: f32[2,8,8], index: 3, kind: input, shape index: {}]   ;;  %s8381_s4 = inlined_call_operand.hbm [shape: f32[344,128], index: 4, kind: input, shape index: {}]   ;;  %s8382_s5 = inlined_call_operand.hbm [shape: f32[8,8], index: 5, kind: output, shape index: {}]  }
   0x1   :  { %11 = vsyncpa [#allocation6], 0 }
   0x2   :  { %12 = vsyncpa [#allocation9], 0  ;;  %s31_s20 = sshll.u32 %s8378_s1, 4  ;;  %s32_s20 = int_to_ptr.hbm [resolvable:$true] %s31_s20 }
   0x3   :  { %13 = vsyncpa [#allocation4], 0  ;;  %s6082_s21 = smov [#allocation5]   ;;  %s57_s25 = sshll.u32 %s8380_s3, 4  ;;  %s58_s25 = int_to_ptr.hbm [resolvable:$true] %s57_s25 }
   0x4   :  { %s33_s22 = sshll.u32 %s6082_s21, 4  ;;  %s6083_s26 = smov 128   ;;  %s34_s22 = int_to_ptr.vmem [resolvable:$true] %s33_s22 }
   0x5   :  { %s6084_s27 = smov 8   ;;  %s6085_s28 = smov [#allocation8]  }
   0x6   :  { %39 = dma.hbm_to_vmem [thread:$0]  %s32_s20, 256, %s34_s22, [#allocation6], %s6083_s26, %s6083_s26, %s6084_s27  }
   0x7   :  { %s59_s29 = sshll.u32 %s6085_s28, 4  ;;  %s18_s6 = sshll.u32 %s8377_s0, 4  ;;  %s60_s29 = int_to_ptr.vmem [resolvable:$true] %s59_s29  ;;  %s19_s6 = int_to_ptr.hbm [resolvable:$true] %s18_s6 }
   0x8   :  { %65 = dma.hbm_to_vmem [thread:$0]  %s58_s25, 256, %s60_s29, [#allocation9], %s6083_s26, %s6083_s26, %s6084_s27  }
   0x9   :  { %s6086_s3 = smov [#allocation2]   ;;  %s44_s10 = sshll.u32 %s8379_s2, 4  ;;  %s45_s10 = int_to_ptr.hbm [resolvable:$true] %s44_s10 }
   0xa   :  { %s20_s7 = sshll.u32 %s6086_s3, 4  ;;  %s6087_s11 = smov 64   ;;  %s21_s7 = int_to_ptr.vmem [resolvable:$true] %s20_s7 }
   0xb   :  { %s6088_s12 = smov 4   ;;  %s6089_s13 = smov [#allocation7]  }
   0xc   :  { %26 = dma.hbm_to_vmem [thread:$0]  %s19_s6, 128, %s21_s7, [#allocation3], %s6087_s11, %s6087_s11, %s6088_s12  }
   0xd   :  { %s46_s14 = sshll.u32 %s6089_s13, 4  ;;  %s70_s16 = sshll.u32 %s8381_s4, 4  ;;  %s47_s14 = int_to_ptr.vmem [resolvable:$true] %s46_s14  ;;  %s71_s16 = int_to_ptr.hbm [resolvable:$true] %s70_s16 }
   0xe   :  { %52 = dma.hbm_to_vmem [thread:$0]  %s45_s10, 256, %s47_s14, [#allocation6], %s6083_s26, %s6083_s26, %s6084_s27  }
   0xf   :  { %s6090_s17 = smov [#allocation10]  }
  0x10   :  { %s72_s18 = sshll.u32 %s6090_s17, 4  ;;  %s73_s18 = int_to_ptr.vmem [resolvable:$true] %s72_s18 }
  0x11   :  { %78 = dma.hbm_to_vmem [thread:$0]  %s71_s16, 5504, %s73_s18, [#allocation9], %s6083_s26, %s6083_s26, %s6084_s27  }
  0x12   :  { %6074 = dma.done.wait [#allocation3], 128  }
  0x13   :  { %6075 = vsyncadd [#allocation3], 4294967168 }
  0x14   :  { %6076 = dma.done.wait [#allocation6], 512  }
  0x15   :  { %6077 = vsyncadd [#allocation6], 4294966784 }
  0x16   :  { %6078 = dma.done.wait [#allocation9], 5760  }
  0x17   :  { %6079 = vsyncadd [#allocation9], 4294961536  ;;  %v166_v0 = vld [vmem:[#allocation5] sm:$0xff]  ;;  %v99_v1 = vld [vmem:[#allocation7] sm:$0xff]  ;;  %vm241_vm0 = vcmask 64512   ;;  %vm1573_vm3 = vcmask 1041409  }
  0x18   :  { %167 = vxpose.xlu0.b32.start.end [1/1] (short) (narrow) %v166_v0, 16  ;;  %100 = vxpose.xlu1.b32.start.end [1/1] (short) (narrow) %v99_v1, 16  ;;  %v233_v2 = vld [vmem:[#allocation10] sm:$0xff]  ;;  %v234_v3 = vld [vmem:[#allocation10 + $0x8] sm:$0xff]  ;;  %v235_v4 = vld [vmem:[#allocation10 + $0x10] sm:$0xff]  ;;  %vm1575_vm4 = vcmask 1042434  }
  0x19   :  { %269 = vmatpush.msra.mxu0 %v233_v2  ;;  %310 = vmatpush.msra.mxu1 %v234_v3  ;;  %v200_v5 = vld [vmem:[#allocation5 + $0x8] sm:$0xff]  ;;  %v133_v6 = vld [vmem:[#allocation7 + $0x8] sm:$0xff]  ;;  %vm1577_vm5 = vcmask 1043459   ;;  %vm1579_vm6 = vcmask 1044484   ;;  %vm1581_vm7 = vcmask 1045509   ;;  %vm1583_vm8 = vcmask 1046534  }
  0x1a   :  { %339 = vmatpush.msra.mxu2 %v235_v4  ;;  %v236_v15 = vld [vmem:[#allocation10 + $0x18] sm:$0xff]  ;;  %vm8389_vm9 = vcmask 1047559   ;;  %s6093_s2 = smov [#allocation11]   ;;  %s5305_s21 = sshll.u32 %s8382_s5, 4  ;;  %s5306_s21 = int_to_ptr.hbm [resolvable:$true] %s5305_s21 }
  0x1b   :  { %1647 = vmatpush.msra.mxu3 %v236_v15  ;;  %s5303_s4 = sshll.u32 %s6093_s2, 4  ;;  %s5304_s4 = int_to_ptr.vmem [resolvable:$true] %s5303_s4 }
  0x28   :  { %201 = vxpose.xlu0.b32.start.end [1/1] (short) (narrow) %v200_v5, 16  ;;  %134 = vxpose.xlu1.b32.start.end [1/1] (short) (narrow) %v133_v6, 16 }
  0xbc   :  { %v183_v7 = vpop.trf.xlu0  ;;  %v6151_v8 = vpop.trf.xlu1 }
  0xbd   :  { %8400 = vst [vmem:[#allocation16_spill] sm:$0xff] %v6151_v8  ;;  %5317 = vmatmul.msk.f32.vlgmr.msra.gmra.mxu0 %vm241_vm0, %v6151_v8  ;;  %5321 = vmatmul.msk.f32.vlgmr.msra.gmra.mxu1 %vm241_vm0, %v183_v7 }
  0xbe   :  { %5325 = vmatmul.msk.f32.vlgmr.msra.gmra.mxu2 %vm241_vm0, %v183_v7 }
  0xc4   :  { %v184_v9 = vpop.trf.xlu0  ;;  %v6157_v10 = vpop.trf.xlu1 }
  0xc5   :  { %8401 = vst [vmem:[#allocation17_spill] sm:$0xff] %v6157_v10  ;;  %5318 = vmatmul.msk.f32.gmra.mxu0 %vm241_vm0, %v6157_v10  ;;  %5322 = vmatmul.msk.f32.gmra.mxu1 %vm241_vm0, %v184_v9 }
  0xc6   :  { %5326 = vmatmul.msk.f32.gmra.mxu2 %vm241_vm0, %v184_v9 }
  0xcc   :  { %v217_v11 = vpop.trf.xlu0  ;;  %v6163_v12 = vpop.trf.xlu1 }
  0xcd   :  { %8402 = vst [vmem:[#allocation18_spill] sm:$0xff] %v6163_v12  ;;  %5319 = vmatmul.msk.f32.gmra.mxu0 %vm241_vm0, %v6163_v12  ;;  %5323 = vmatmul.msk.f32.gmra.mxu1 %vm241_vm0, %v217_v11 }
  0xce   :  { %5327 = vmatmul.msk.f32.gmra.mxu2 %vm241_vm0, %v217_v11 }
  0xd4   :  { %v218_v13 = vpop.trf.xlu0  ;;  %v6169_v14 = vpop.trf.xlu1 }
  0xd5   :  { %8403 = vst [vmem:[#allocation19_spill] sm:$0xff] %v6169_v14  ;;  %5320 = vmatmul.msk.f32.gmra.mxu0 %vm241_vm0, %v6169_v14  ;;  %5324 = vmatmul.msk.f32.gmra.mxu1 %vm241_vm0, %v218_v13 }
  0xd6   :  { %5328 = vmatmul.msk.f32.gmra.mxu2 %vm241_vm0, %v218_v13 }
 0x13a   :  { %v6175_v16 = vpop.f32.mrf.mxu0  ;;  %v6177_v17 = vpop.f32.mrf.mxu1 }
 0x13b   :  { %v381_v18 = vrot.slane %v6175_v16, 1  ;;  %v382_v19 = vrot.slane %v6175_v16, 2  ;;  %v383_v21 = vrot.slane %v6175_v16, 3  ;;  %v384_v22 = vrot.slane %v6175_v16, 4 }
 0x13c   :  { %v353_v24 = vsel %vm241_vm0, %v6177_v17, -inf  ;;  %v385_v27 = vrot.slane %v6175_v16, 5  ;;  %v362_v29 = vsel %vm241_vm0, %v6177_v17, inf  ;;  %v386_v30 = vrot.slane %v6175_v16, 6 }
 0x13d   :  { %v387_v31 = vrot.slane %v6175_v16, 7  ;;  %v395_v32 = vperm.slane %v6175_v16, 0  ;;  %v396_v33 = vperm.slane %v381_v18, 0  ;;  %v397_v34 = vperm.slane %v382_v19, 0 }
 0x13e   :  { %v398_v36 = vperm.slane %v383_v21, 0  ;;  %v399_v41 = vperm.slane %v384_v22, 0  ;;  %v400_v42 = vperm.slane %v385_v27, 0  ;;  %v401_v45 = vperm.slane %v386_v30, 0 }
 0x13f   :  { %v402_v46 = vperm.slane %v387_v31, 0  ;;  %v6204_v49 = vmul.f32 %v395_v32, %v6177_v17  ;;  %v6207_v50 = vmul.f32 %v396_v33, %v6177_v17  ;;  %vm371_vm1 = vcmp.gt.f32.partialorder %v6175_v16, 0.0 }
 0x140   :  { %v6211_v53 = vmul.f32 %v397_v34, %v6177_v17  ;;  %v6214_v54 = vmul.f32 %v398_v36, %v6177_v17  ;;  %v6217_v57 = vmul.f32 %v399_v41, %v6177_v17  ;;  %v6220_v58 = vmul.f32 %v400_v42, %v6177_v17 }
 0x141   :  { %v6226_v62 = vmul.f32 %v401_v45, %v6177_v17  ;;  %v6229_v63 = vmul.f32 %v402_v46, %v6177_v17 }
 0x142   :  { %v6181_v20 = vpop.f32.mrf.mxu1  ;;  %v6185_v23 = vpop.f32.mrf.mxu0 }
 0x143   :  { %v354_v25 = vsel %vm241_vm0, %v6181_v20, -inf  ;;  %v363_v26 = vsel %vm241_vm0, %v6181_v20, inf  ;;  %v388_v37 = vrot.slane %v6185_v23, 1  ;;  %v389_v38 = vrot.slane %v6185_v23, 2 }
 0x144   :  { %v355_v28 = vmax.f32 %v353_v24, %v354_v25  ;;  %v364_v35 = vmin.f32 %v362_v29, %v363_v26  ;;  %v390_v43 = vrot.slane %v6185_v23, 3  ;;  %v403_v47 = vperm.slane %v6185_v23, 0 }
 0x145   :  { %v404_v51 = vperm.slane %v388_v37, 0  ;;  %v405_v52 = vperm.slane %v389_v38, 0  ;;  %v391_v59 = vrot.slane %v6185_v23, 4  ;;  %v428_v3 = vmul.f32 %v395_v32, %v6181_v20 }
 0x146   :  { %v356_v39 = vrot.slane %v355_v28, 4  ;;  %v365_v40 = vrot.slane %v364_v35, 4  ;;  %v406_v60 = vperm.slane %v390_v43, 0  ;;  %v6232_v0 = vmul.f32 %v403_v47, %v6177_v17 }
 0x147   :  { %v6236_v4 = vmul.f32 %v404_v51, %v6177_v17  ;;  %v6239_v5 = vmul.f32 %v405_v52, %v6177_v17  ;;  %v6242_v6 = vmul.f32 %v396_v33, %v6181_v20  ;;  %v6245_v7 = vmul.f32 %v397_v34, %v6181_v20 }
 0x148   :  { %v357_v44 = vmax.f32 %v355_v28, %v356_v39  ;;  %v366_v48 = vmin.f32 %v364_v35, %v365_v40  ;;  %v6249_v15 = vmul.f32 %v398_v36, %v6181_v20  ;;  %v6253_v19 = vmul.f32 %v399_v41, %v6181_v20 }
 0x149   :  { %v6256_v21 = vmul.f32 %v400_v42, %v6181_v20  ;;  %v392_v22 = vrot.slane %v6185_v23, 5  ;;  %v393_v26 = vrot.slane %v6185_v23, 6  ;;  %v394_v27 = vrot.slane %v6185_v23, 7 }
 0x14a   :  { %v358_v55 = vrot.slane %v357_v44, 2  ;;  %v367_v56 = vrot.slane %v366_v48, 2  ;;  %v6223_v61 = vpop.f32.mrf.mxu0  ;;  %v6268_v30 = vmul.f32 %v401_v45, %v6181_v20  ;;  %v6271_v31 = vmul.f32 %v402_v46, %v6181_v20 }
 0x14b   :  { %v983_v9 = vrot.slane %v6223_v61, 1  ;;  %v984_v18 = vrot.slane %v6223_v61, 2  ;;  %v407_v37 = vperm.slane %v391_v59, 0  ;;  %v408_v38 = vperm.slane %v392_v22, 0 }
 0x14c   :  { %v359_v1 = vmax.f32 %v357_v44, %v358_v55  ;;  %v368_v2 = vmin.f32 %v366_v48, %v367_v56  ;;  %v6283_v39 = vmul.f32 %v403_v47, %v6181_v20  ;;  %v409_v41 = vperm.slane %v393_v26, 0 }
 0x14d   :  { %v6274_v33 = vperm.slane %v983_v9, 0  ;;  %v6280_v36 = vperm.slane %v984_v18, 0  ;;  %v6287_v42 = vperm.slane %v394_v27, 0  ;;  %v6290_v43 = vmul.f32 %v404_v51, %v6181_v20 }
 0x14e   :  { %v360_v11 = vrot.slane %v359_v1, 1  ;;  %v369_v13 = vrot.slane %v368_v2, 1  ;;  %v6293_v46 = vmul.f32 %v405_v52, %v6181_v20  ;;  %v6296_v48 = vmul.f32 %v406_v60, %v6177_v17 }
 0x14f   :  { %8404 = vst [vmem:[#allocation20_spill] sm:$0xff] %v6274_v33  ;;  %v6305_v52 = vmul.f32 %v407_v37, %v6181_v20  ;;  %vm372_vm2 = vcmp.gt.f32.partialorder %v6185_v23, 0.0  ;;  %vm973_vm10 = vcmp.gt.f32.partialorder %v6223_v61, 0.0 }
 0x150   :  { %v6259_v24 = vmax.f32 %v359_v1, %v360_v11  ;;  %v6261_v25 = vmin.f32 %v368_v2, %v369_v13  ;;  %8405 = vst [vmem:[#allocation21_spill] sm:$0xff] %v6280_v36  ;;  %v6302_v13 = vmul.f32 %v407_v37, %v6177_v17 }
 0x152   :  { %v373_v34 = vmul.f32 %v6259_v24, %v6175_v16  ;;  %v375_v35 = vmul.f32 %v6261_v25, %v6175_v16  ;;  %v6299_v16 = vmul.f32 %v406_v60, %v6181_v20 }
 0x154   :  { %v377_v40 = vsel %vm371_vm1, %v373_v34, %v375_v35  ;;  %v6312_v35 = vmul.f32 %v408_v38, %v6177_v17 }
 0x155   :  { %v461_v44 = vrot.slane %v377_v40, 1  ;;  %v462_v45 = vrot.slane %v377_v40, 2  ;;  %v463_v55 = vrot.slane %v377_v40, 3  ;;  %v464_v47 = vrot.slane %v377_v40, 4 }
 0x156   :  { %v465_v56 = vrot.slane %v377_v40, 5  ;;  %v466_v59 = vrot.slane %v377_v40, 6  ;;  %v475_v1 = vperm.slane %v377_v40, 0  ;;  %v467_v51 = vrot.slane %v377_v40, 7 }
 0x157   :  { %v476_v2 = vperm.slane %v461_v44, 0  ;;  %v477_v9 = vperm.slane %v462_v45, 0  ;;  %v478_v11 = vperm.slane %v463_v55, 0  ;;  %v479_v18 = vperm.slane %v464_v47, 0 }
 0x158   :  { %v507_v22 = vsub.f32 %v6204_v49, %v475_v1  ;;  %v508_v26 = vsub.f32 %v428_v3, %v475_v1  ;;  %v480_v27 = vperm.slane %v465_v56, 0  ;;  %v6315_v40 = vmul.f32 %v408_v38, %v6181_v20  ;;  %v6324_v3 = vpop.f32.mrf.mxu2 }
 0x159   :  { %v509_v60 = vsub.f32 %v6207_v50, %v476_v2  ;;  %v510_v34 = vsub.f32 %v6242_v6, %v476_v2  ;;  %v481_v44 = vperm.slane %v466_v59, 0  ;;  %v511_v37 = vsub.f32 %v6211_v53, %v477_v9 }
 0x15a   :  { %v6319_v45 = vmul.f32 %v409_v41, %v6177_v17  ;;  %v6322_v49 = vmul.f32 %v409_v41, %v6181_v20  ;;  %v482_v50 = vperm.slane %v467_v51, 0  ;;  %v512_v6 = vsub.f32 %v6245_v7, %v477_v9 }
 0x15b   :  { %v513_v55 = vsub.f32 %v6214_v54, %v478_v11  ;;  %v514_v47 = vsub.f32 %v6249_v15, %v478_v11  ;;  %v515_v38 = vsub.f32 %v6217_v57, %v479_v18  ;;  %v539_v56 = vmul.f32 1.442695, %v507_v22 }
 0x15c   :  { %v541_v59 = vmul.f32 1.442695, %v508_v26  ;;  %v543_v53 = vmul.f32 1.442695, %v509_v60  ;;  %v516_v1 = vsub.f32 %v6253_v19, %v479_v18  ;;  %v517_v2 = vsub.f32 %v6220_v58, %v480_v27 }
 0x15d   :  { %v518_v41 = vsub.f32 %v6256_v21, %v480_v27  ;;  %v545_v32 = vmul.f32 1.442695, %v510_v34  ;;  %v519_v51 = vsub.f32 %v6226_v62, %v481_v44  ;;  %v520_v7 = vsub.f32 %v6268_v30, %v481_v44 }
 0x15e   :  { %5424 = vpow2.f32 %v539_v56  ;;  %v547_v54 = vmul.f32 1.442695, %v511_v37  ;;  %v521_v15 = vsub.f32 %v6229_v63, %v482_v50  ;;  %v549_v57 = vmul.f32 1.442695, %v512_v6 }
 0x15f   :  { %5426 = vpow2.f32 %v541_v59  ;;  %v374_v9 = vmul.f32 %v6259_v24, %v6185_v23  ;;  %v522_v19 = vsub.f32 %v6271_v31, %v482_v50  ;;  %v551_v58 = vmul.f32 1.442695, %v513_v55 }
 0x160   :  { %5428 = vpow2.f32 %v543_v53  ;;  %v553_v11 = vmul.f32 1.442695, %v514_v47  ;;  %v555_v21 = vmul.f32 1.442695, %v515_v38  ;;  %v557_v18 = vmul.f32 1.442695, %v516_v1  ;;  %v6353_v44 = vpop.f32.mrf.mxu2 }
 0x161   :  { %5430 = vpow2.f32 %v545_v32  ;;  %v376_v62 = vmul.f32 %v6261_v25, %v6185_v23  ;;  %v559_v30 = vmul.f32 1.442695, %v517_v2  ;;  %v561_v22 = vmul.f32 1.442695, %v518_v41 }
 0x162   :  { %5432 = vpow2.f32 %v547_v54  ;;  %v563_v63 = vmul.f32 1.442695, %v519_v51  ;;  %v565_v26 = vmul.f32 1.442695, %v520_v7  ;;  %v567_v60 = vmul.f32 1.442695, %v521_v15 }
 0x163   :  { %5434 = vpow2.f32 %v549_v57  ;;  %v6343_v24 = vsel %vm372_vm2, %v374_v9, %v376_v62  ;;  %v569_v27 = vmul.f32 1.442695, %v522_v19  ;;  %v6347_v32 = vmul.f32 %v6287_v42, %v6177_v17 }
 0x164   :  { %v5425_v31 = vpop.eup %5424  ;;  %5436 = vpow2.f32 %v551_v58  ;;  %v6351_v25 = vmul.f32 %v6287_v42, %v6181_v20 }
 0x165   :  { %v5427_v34 = vpop.eup %5426  ;;  %5438 = vpow2.f32 %v553_v11  ;;  %v603_v37 = vmul.f32 %v5425_v31, %v6324_v3  ;;  %v779_v55 = vsel %vm241_vm0, %v5425_v31, 0.0 }
 0x166   :  { %v6358_v6 = vpop.eup %5428  ;;  %5440 = vpow2.f32 %v555_v21  ;;  %v604_v17 = vmul.f32 %v5427_v34, %v6353_v44  ;;  %v780_v56 = vsel %vm241_vm0, %v5427_v34, 0.0 }
 0x167   :  { %v6363_v42 = vpop.eup %5430  ;;  %5442 = vpow2.f32 %v557_v18  ;;  %v605_v47 = vmul.f32 %v6358_v6, %v6324_v3  ;;  %v635_v38 = vsel %vm241_vm0, %v603_v37, 0.0  ;;  %v6385_v19 = vadd.f32 %v780_v56, %v779_v55 }
 0x168   :  { %v6369_v59 = vpop.eup %5432  ;;  %5444 = vpow2.f32 %v559_v30  ;;  %v606_v53 = vmul.f32 %v6363_v42, %v6353_v44  ;;  %v636_v1 = vsel %vm241_vm0, %v604_v17, 0.0 }
 0x169   :  { %v6375_v41 = vpop.eup %5434  ;;  %5446 = vpow2.f32 %v561_v22  ;;  %v607_v51 = vmul.f32 %v6369_v59, %v6324_v3  ;;  %v637_v7 = vadd.f32 %v636_v1, %v635_v38  ;;  %v644_v54 = vsel %vm241_vm0, %v605_v47, 0.0 }
 0x16a   :  { %v6380_v15 = vpop.eup %5436  ;;  %5448 = vpow2.f32 %v563_v63  ;;  %v608_v57 = vmul.f32 %v6375_v41, %v6353_v44  ;;  %v645_v9 = vsel %vm241_vm0, %v606_v53, 0.0 }
 0x16b   :  { %v6387_v58 = vpop.eup %5438  ;;  %5450 = vpow2.f32 %v565_v26  ;;  %v609_v11 = vmul.f32 %v6380_v15, %v6324_v3  ;;  %v638_v21 = vrot.slane %v637_v7, 4  ;;  %v646_v18 = vadd.f32 %v645_v9, %v644_v54 }
 0x16c   :  { %v6391_v62 = vpop.eup %5440  ;;  %5452 = vpow2.f32 %v567_v60  ;;  %v610_v30 = vmul.f32 %v6387_v58, %v6353_v44  ;;  %v653_v22 = vsel %vm241_vm0, %v607_v51, 0.0  ;;  %v654_v63 = vsel %vm241_vm0, %v608_v57, 0.0 }
 0x16d   :  { %v6397_v31 = vpop.eup %5442  ;;  %5454 = vpow2.f32 %v569_v27  ;;  %v611_v26 = vmul.f32 %v6391_v62, %v6324_v3  ;;  %v639_v34 = vadd.f32 %v638_v21, %v637_v7  ;;  %v647_v37 = vrot.slane %v646_v18, 4 }
 0x16e   :  { %v6401_v17 = vpop.eup %5444  ;;  %v612_v60 = vmul.f32 %v6397_v31, %v6353_v44  ;;  %v655_v55 = vadd.f32 %v654_v63, %v653_v22  ;;  %v662_v47 = vsel %vm241_vm0, %v609_v11, 0.0  ;;  %v663_v38 = vsel %vm241_vm0, %v610_v30, 0.0 }
 0x16f   :  { %v6407_v56 = vpop.eup %5446  ;;  %v613_v27 = vmul.f32 %v6401_v17, %v6324_v3  ;;  %v640_v53 = vrot.slane %v639_v34, 2  ;;  %v648_v1 = vadd.f32 %v647_v37, %v646_v18  ;;  %v664_v51 = vadd.f32 %v663_v38, %v662_v47 }
 0x170   :  { %v6411_v7 = vpop.eup %5448  ;;  %v614_v54 = vmul.f32 %v6407_v56, %v6353_v44  ;;  %v656_v57 = vrot.slane %v655_v55, 4  ;;  %v671_v9 = vsel %vm241_vm0, %v611_v26, 0.0  ;;  %v672_v11 = vsel %vm241_vm0, %v612_v60, 0.0 }
 0x171   :  { %v6417_v21 = vpop.eup %5450  ;;  %v615_v30 = vmul.f32 %v6411_v7, %v6324_v3  ;;  %v641_v22 = vadd.f32 %v640_v53, %v639_v34  ;;  %v649_v63 = vrot.slane %v648_v1, 2  ;;  %v665_v29 = vrot.slane %v664_v51, 4 }
 0x172   :  { %v6421_v18 = vpop.eup %5452  ;;  %v616_v37 = vmul.f32 %v6417_v21, %v6353_v44  ;;  %v657_v47 = vadd.f32 %v656_v57, %v655_v55  ;;  %v673_v38 = vadd.f32 %v672_v11, %v671_v9  ;;  %v680_v28 = vsel %vm241_vm0, %v613_v27, 0.0 }
 0x173   :  { %v6426_v26 = vpop.eup %5454  ;;  %v617_v60 = vmul.f32 %v6421_v18, %v6324_v3  ;;  %v650_v2 = vadd.f32 %v649_v63, %v648_v1  ;;  %v666_v20 = vadd.f32 %v665_v29, %v664_v51  ;;  %v681_v14 = vsel %vm241_vm0, %v614_v54, 0.0 }
 0x174   :  { %v618_v53 = vmul.f32 %v6426_v26, %v6353_v44  ;;  %v658_v50 = vrot.slane %v657_v47, 2  ;;  %v674_v23 = vrot.slane %v673_v38, 4  ;;  %v642_v55 = vrot.slane %v641_v22, 1 }
 0x175   :  { %v667_v57 = vrot.slane %v666_v20, 2  ;;  %v682_v9 = vadd.f32 %v681_v14, %v680_v28  ;;  %v782_v27 = vrot.slane %v6385_v19, 4  ;;  %v651_v11 = vrot.slane %v650_v2, 1 }
 0x176   :  { %v675_v12 = vadd.f32 %v674_v23, %v673_v38  ;;  %v689_v10 = vsel %vm241_vm0, %v615_v30, 0.0  ;;  %v690_v29 = vsel %vm241_vm0, %v616_v37, 0.0  ;;  %v659_v1 = vadd.f32 %v658_v50, %v657_v47 }
 0x177   :  { %v683_v51 = vrot.slane %v682_v9, 4  ;;  %v691_v63 = vadd.f32 %v690_v29, %v689_v10  ;;  %v788_v34 = vsel %vm241_vm0, %v6358_v6, 0.0  ;;  %v668_v8 = vadd.f32 %v667_v57, %v666_v20 }
 0x178   :  { %v676_v36 = vrot.slane %v675_v12, 2  ;;  %v698_v54 = vsel %vm241_vm0, %v617_v60, 0.0  ;;  %v699_v14 = vsel %vm241_vm0, %v618_v53, 0.0  ;;  %v6441_v28 = vadd.f32 %v642_v55, %v641_v22 }
 0x179   :  { %v684_v33 = vadd.f32 %v683_v51, %v682_v9  ;;  %v692_v23 = vrot.slane %v691_v63, 4  ;;  %v700_v38 = vadd.f32 %v699_v14, %v698_v54  ;;  %v6443_v30 = vadd.f32 %v651_v11, %v650_v2 }
 0x17a   :  { %v677_v37 = vadd.f32 %v676_v36, %v675_v12  ;;  %v783_v50 = vadd.f32 %v782_v27, %v6385_v19  ;;  %v789_v10 = vsel %vm241_vm0, %v6363_v42, 0.0  ;;  %v660_v6 = vrot.slane %v659_v1, 1 }
 0x17b   :  { %v685_v20 = vrot.slane %v684_v33, 2  ;;  %v693_v47 = vadd.f32 %v692_v23, %v691_v63  ;;  %v701_v57 = vrot.slane %v700_v38, 4  ;;  %v669_v60 = vrot.slane %v668_v8, 1 }
 0x17c   :  { %v784_v29 = vrot.slane %v783_v50, 2  ;;  %v790_v53 = vadd.f32 %v789_v10, %v788_v34  ;;  %v797_v22 = vsel %vm241_vm0, %v6369_v59, 0.0  ;;  %v678_v55 = vrot.slane %v677_v37, 1 }
 0x17d   :  { %v694_v9 = vrot.slane %v693_v47, 2  ;;  %v702_v2 = vadd.f32 %v701_v57, %v700_v38  ;;  %v798_v12 = vsel %vm241_vm0, %v6375_v41, 0.0  ;;  %v686_v36 = vadd.f32 %v685_v20, %v684_v33 }
 0x17e   :  { %v785_v19 = vadd.f32 %v784_v29, %v783_v50  ;;  %v791_v27 = vrot.slane %v790_v53, 4  ;;  %v799_v42 = vadd.f32 %v798_v12, %v797_v22  ;;  %v6452_v11 = vadd.f32 %v660_v6, %v659_v1 }
 0x17f   :  { %v695_v51 = vadd.f32 %v694_v9, %v693_v47  ;;  %v703_v63 = vrot.slane %v702_v2, 2  ;;  %v806_v34 = vsel %vm241_vm0, %v6380_v15, 0.0  ;;  %v807_v23 = vsel %vm241_vm0, %v6387_v58, 0.0 }
 0x180   :  { %v786_v54 = vrot.slane %v785_v19, 1  ;;  %v792_v14 = vadd.f32 %v791_v27, %v790_v53  ;;  %v800_v59 = vrot.slane %v799_v42, 4  ;;  %v6458_v38 = vadd.f32 %v669_v60, %v668_v8 }
 0x181   :  { %v6460_v41 = vadd.f32 %v678_v55, %v677_v37  ;;  %v704_v33 = vadd.f32 %v703_v63, %v702_v2  ;;  %v808_v50 = vadd.f32 %v807_v23, %v806_v34  ;;  %v687_v10 = vrot.slane %v686_v36, 1 }
 0x182   :  { %v793_v1 = vrot.slane %v792_v14, 2  ;;  %v801_v6 = vadd.f32 %v800_v59, %v799_v42  ;;  %v815_v20 = vsel %vm241_vm0, %v6391_v62, 0.0  ;;  %v696_v47 = vrot.slane %v695_v51, 1 }
 0x183   :  { %v787_v15 = vadd.f32 %v786_v54, %v785_v19  ;;  %v809_v57 = vrot.slane %v808_v50, 4  ;;  %v816_v29 = vsel %vm241_vm0, %v6397_v31, 0.0  ;;  %v824_v37 = vsel %vm241_vm0, %v6401_v17, 0.0 }
 0x184   :  { %v794_v53 = vadd.f32 %v793_v1, %v792_v14  ;;  %v802_v58 = vrot.slane %v801_v6, 2  ;;  %v817_v8 = vadd.f32 %v816_v29, %v815_v20  ;;  %v705_v60 = vrot.slane %v704_v33, 1 }
 0x185   :  { %v810_v22 = vadd.f32 %v809_v57, %v808_v50  ;;  %v825_v55 = vsel %vm241_vm0, %v6407_v56, 0.0  ;;  %v833_v62 = vsel %vm241_vm0, %v6411_v7, 0.0  ;;  %v834_v31 = vsel %vm241_vm0, %v6417_v21, 0.0 }
 0x186   :  { %v795_v9 = vrot.slane %v794_v53, 1  ;;  %v803_v2 = vadd.f32 %v802_v58, %v801_v6  ;;  %v818_v12 = vrot.slane %v817_v8, 4  ;;  %v826_v19 = vadd.f32 %v825_v55, %v824_v37 }
 0x187   :  { %v811_v27 = vrot.slane %v810_v22, 2  ;;  %v842_v42 = vsel %vm241_vm0, %v6421_v18, 0.0  ;;  %v843_v17 = vsel %vm241_vm0, %v6426_v26, 0.0  ;;  %v835_v7 = vadd.f32 %v834_v31, %v833_v62 }
 0x188   :  { %v796_v63 = vadd.f32 %v795_v9, %v794_v53  ;;  %v804_v34 = vrot.slane %v803_v2, 1  ;;  %v819_v56 = vadd.f32 %v818_v12, %v817_v8  ;;  %v827_v54 = vrot.slane %v826_v19, 4 }
 0x189   :  { %v812_v14 = vadd.f32 %v811_v27, %v810_v22  ;;  %v844_v59 = vadd.f32 %v843_v17, %v842_v42  ;;  %5456 = vrcp.f32 %v787_v15  ;;  %v6478_v6 = vadd.f32 %v687_v10, %v686_v36 }
 0x18a   :  { %v805_v23 = vadd.f32 %v804_v34, %v803_v2  ;;  %v820_v50 = vrot.slane %v819_v56, 2  ;;  %v828_v1 = vadd.f32 %v827_v54, %v826_v19  ;;  %5458 = vrcp.f32 %v796_v63 }
 0x18b   :  { %v813_v21 = vrot.slane %v812_v14, 1  ;;  %v836_v20 = vrot.slane %v835_v7, 4  ;;  %v845_v18 = vrot.slane %v844_v59, 4  ;;  %v6480_v57 = vadd.f32 %v696_v47, %v695_v51 }
 0x18c   :  { %v821_v26 = vadd.f32 %v820_v50, %v819_v56  ;;  %v829_v29 = vrot.slane %v828_v1, 2  ;;  %5460 = vrcp.f32 %v805_v23  ;;  %v6482_v53 = vadd.f32 %v705_v60, %v704_v33 }
 0x18d   :  { %v814_v58 = vadd.f32 %v813_v21, %v812_v14  ;;  %v837_v8 = vadd.f32 %v836_v20, %v835_v7  ;;  %v846_v37 = vadd.f32 %v845_v18, %v844_v59  ;;  %v473_v12 = vrot.slane %v6343_v24, 6 }
 0x18e   :  { %v822_v15 = vrot.slane %v821_v26, 1  ;;  %v830_v22 = vadd.f32 %v829_v29, %v828_v1  ;;  %v474_v31 = vrot.slane %v6343_v24, 7  ;;  %v483_v42 = vperm.slane %v6343_v24, 0 }
 0x18f   :  { %v5457_v55 = vpop.eup %5456  ;;  %v838_v36 = vrot.slane %v837_v8, 2  ;;  %v847_v10 = vrot.slane %v846_v37, 2  ;;  %5462 = vrcp.f32 %v814_v58  ;;  %v8406_v56 = vrot.slane %v6343_v24, 1 }
 0x190   :  { %v5459_v62 = vpop.eup %5458  ;;  %v823_v51 = vadd.f32 %v822_v15, %v821_v26  ;;  %v831_v47 = vrot.slane %v830_v22, 1  ;;  %v939_v9 = vmul.f32 %v5457_v55, %v6441_v28  ;;  %v8407_v54 = vrot.slane %v6343_v24, 2 }
 0x191   :  { %v839_v33 = vadd.f32 %v838_v36, %v837_v8  ;;  %v848_v60 = vadd.f32 %v847_v10, %v846_v37  ;;  %v940_v2 = vmul.f32 %v5459_v62, %v6443_v30  ;;  %v484_v30 = vperm.slane %v8406_v56, 0 }
 0x192   :  { %v5461_v19 = vpop.eup %5460  ;;  %v832_v27 = vadd.f32 %v831_v47, %v830_v22  ;;  %5464 = vrcp.f32 %v823_v51  ;;  %v485_v14 = vperm.slane %v8407_v54, 0  ;;  %v8408_v7 = vrot.slane %v6343_v24, 3 }
 0x193   :  { %v840_v17 = vrot.slane %v839_v33, 1  ;;  %v849_v63 = vrot.slane %v848_v60, 1  ;;  %v941_v34 = vmul.f32 %v5461_v19, %v6452_v11  ;;  %v1574_v28 = vsel %vm1573_vm3, %v940_v2, %v939_v9 }
 0x194   :  { %5466 = vrcp.f32 %v832_v27  ;;  %v486_v59 = vperm.slane %v8408_v7, 0  ;;  %v8409_v20 = vrot.slane %v6343_v24, 4  ;;  %v8410_v26 = vrot.slane %v6343_v24, 5 }
 0x195   :  { %v5463_v23 = vpop.eup %5462  ;;  %v841_v50 = vadd.f32 %v840_v17, %v839_v33  ;;  %v850_v1 = vadd.f32 %v849_v63, %v848_v60  ;;  %v1576_v21 = vsel %vm1575_vm4, %v941_v34, %v1574_v28  ;;  %v6505_v58 = vperm.slane %v473_v12, 0 }
 0x196   :  { %v487_v11 = vperm.slane %v8409_v20, 0  ;;  %v942_v18 = vmul.f32 %v5463_v23, %v6458_v38  ;;  %v6503_v29 = vperm.slane %v8410_v26, 0  ;;  %v6507_v8 = vperm.slane %v474_v31, 0  ;;  %v6558_v26 = vpop.f32.mrf.mxu1 }
 0x197   :  { %5468 = vrcp.f32 %v841_v50  ;;  %v523_v37 = vsub.f32 %v6232_v0, %v483_v42  ;;  %v524_v15 = vsub.f32 %v6283_v39, %v483_v42  ;;  %v525_v22 = vsub.f32 %v6236_v4, %v484_v30 }
 0x198   :  { %v5465_v55 = vpop.eup %5464  ;;  %5470 = vrcp.f32 %v850_v1  ;;  %v1578_v36 = vsel %vm1577_vm5, %v942_v18, %v1576_v21  ;;  %v526_v38 = vsub.f32 %v6290_v43, %v484_v30  ;;  %v527_v24 = vsub.f32 %v6239_v5, %v485_v14 }
 0x199   :  { %v943_v10 = vmul.f32 %v5465_v55, %v6460_v41  ;;  %v528_v62 = vsub.f32 %v6293_v46, %v485_v14  ;;  %v529_v51 = vsub.f32 %v6296_v48, %v486_v59  ;;  %v530_v0 = vsub.f32 %v6299_v16, %v486_v59  ;;  %v6531_v16 = vpop.f32.mrf.mxu0 }
 0x19a   :  { %v5467_v47 = vpop.eup %5466  ;;  %v531_v39 = vsub.f32 %v6302_v13, %v487_v11  ;;  %v532_v4 = vsub.f32 %v6305_v52, %v487_v11  ;;  %v533_v9 = vsub.f32 %v6312_v35, %v6503_v29  ;;  %v534_v43 = vsub.f32 %v6315_v40, %v6503_v29 }
 0x19b   :  { %v944_v5 = vmul.f32 %v5467_v47, %v6478_v6  ;;  %v1580_v41 = vsel %vm1579_vm6, %v943_v10, %v1578_v36  ;;  %v535_v46 = vsub.f32 %v6319_v45, %v6505_v58  ;;  %v536_v48 = vsub.f32 %v6322_v49, %v6505_v58 }
 0x19c   :  { %v537_v13 = vsub.f32 %v6347_v32, %v6507_v8  ;;  %v538_v52 = vsub.f32 %v6351_v25, %v6507_v8  ;;  %v571_v35 = vmul.f32 1.442695, %v523_v37  ;;  %v573_v40 = vmul.f32 1.442695, %v524_v15 }
 0x19d   :  { %v5469_v33 = vpop.eup %5468  ;;  %v1582_v6 = vsel %vm1581_vm7, %v944_v5, %v1580_v41  ;;  %v575_v60 = vmul.f32 1.442695, %v525_v22  ;;  %v577_v2 = vmul.f32 1.442695, %v526_v38  ;;  %v579_v49 = vmul.f32 1.442695, %v527_v24 }
 0x19e   :  { %v5471_v45 = vpop.eup %5470  ;;  %v945_v12 = vmul.f32 %v5469_v33, %v6480_v57  ;;  %5472 = vpow2.f32 %v571_v35  ;;  %v990_v19 = vrot.slane %v6531_v16, 1  ;;  %v581_v25 = vmul.f32 1.442695, %v528_v62 }
 0x19f   :  { %v946_v32 = vmul.f32 %v5471_v45, %v6482_v53  ;;  %5474 = vpow2.f32 %v573_v40  ;;  %v8411_v27 = vrot.slane %v6223_v61, 3  ;;  %v583_v17 = vmul.f32 1.442695, %v529_v51 }
 0x1a0   :  { %v1584_v42 = vsel %vm1583_vm8, %v945_v12, %v1582_v6  ;;  %5476 = vpow2.f32 %v575_v60  ;;  %v991_v63 = vrot.slane %v6531_v16, 2  ;;  %v585_v34 = vmul.f32 1.442695, %v530_v0 }
 0x1a1   :  { %v6543_v31 = vperm.slane %v8411_v27, 0  ;;  %v1586_v57 = vsel %vm8389_vm9, %v946_v32, %v1584_v42  ;;  %5478 = vpow2.f32 %v577_v2  ;;  %v992_v28 = vrot.slane %v6531_v16, 3 }
 0x1a2   :  { %v993_v53 = vrot.slane %v6531_v16, 4  ;;  %5329 = vmatmul.msk.f32.vlgmr.msra.gmra.mxu3 %vm241_vm0, %v1586_v57  ;;  %5480 = vpow2.f32 %v579_v49  ;;  %v587_v56 = vmul.f32 1.442695, %v531_v39  ;;  %v1005_v30 = vperm.slane %v6531_v16, 0 }
 0x1a3   :  { %v6552_v54 = vperm.slane %v990_v19, 0  ;;  %5482 = vpow2.f32 %v581_v25  ;;  %v589_v14 = vmul.f32 1.442695, %v532_v4  ;;  %v591_v59 = vmul.f32 1.442695, %v533_v9 }
 0x1a4   :  { %v5473_v7 = vpop.eup %5472  ;;  %5484 = vpow2.f32 %v583_v17  ;;  %v593_v23 = vmul.f32 1.442695, %v534_v43  ;;  %v595_v50 = vmul.f32 1.442695, %v535_v46  ;;  %v597_v21 = vmul.f32 1.442695, %v536_v48 }
 0x1a5   :  { %v5475_v1 = vpop.eup %5474  ;;  %5486 = vpow2.f32 %v585_v34  ;;  %v619_v20 = vmul.f32 %v5473_v7, %v6324_v3  ;;  %v851_v11 = vsel %vm241_vm0, %v5473_v7, 0.0  ;;  %v599_v29 = vmul.f32 1.442695, %v537_v13  ;;  %v6616_v34 = vpop.f32.mrf.mxu1 }
 0x1a6   :  { %v6556_v18 = vpop.eup %5476  ;;  %5488 = vpow2.f32 %v587_v56  ;;  %v620_v58 = vmul.f32 %v5475_v1, %v6353_v44  ;;  %v852_v8 = vsel %vm241_vm0, %v5475_v1, 0.0  ;;  %v601_v38 = vmul.f32 1.442695, %v538_v52 }
 0x1a7   :  { %v6562_v37 = vpop.eup %5478  ;;  %5490 = vpow2.f32 %v589_v14  ;;  %v621_v15 = vmul.f32 %v6556_v18, %v6324_v3  ;;  %v707_v22 = vsel %vm241_vm0, %v619_v20, 0.0  ;;  %v6567_v55 = vadd.f32 %v852_v8, %v851_v11 }
 0x1a8   :  { %v6569_v36 = vpop.eup %5480  ;;  %5492 = vpow2.f32 %v591_v59  ;;  %v622_v24 = vmul.f32 %v6562_v37, %v6353_v44  ;;  %v708_v10 = vsel %vm241_vm0, %v620_v58, 0.0  ;;  %v6581_v4 = vperm.slane %v991_v63, 0 }
 0x1a9   :  { %v6574_v62 = vpop.eup %5482  ;;  %5494 = vpow2.f32 %v593_v23  ;;  %v623_v51 = vmul.f32 %v6569_v36, %v6324_v3  ;;  %v709_v0 = vadd.f32 %v708_v10, %v707_v22  ;;  %v716_v47 = vsel %vm241_vm0, %v621_v15, 0.0 }
 0x1aa   :  { %v6579_v39 = vpop.eup %5484  ;;  %5496 = vpow2.f32 %v595_v50  ;;  %v624_v9 = vmul.f32 %v6574_v62, %v6353_v44  ;;  %v717_v43 = vsel %vm241_vm0, %v622_v24, 0.0  ;;  %v6610_v27 = vperm.slane %v992_v28, 0 }
 0x1ab   :  { %v6586_v5 = vpop.eup %5486  ;;  %5498 = vpow2.f32 %v597_v21  ;;  %v625_v41 = vmul.f32 %v6579_v39, %v6324_v3  ;;  %v710_v46 = vrot.slane %v709_v0, 4  ;;  %v718_v48 = vadd.f32 %v717_v43, %v716_v47 }
 0x1ac   :  { %v6590_v13 = vpop.eup %5488  ;;  %5500 = vpow2.f32 %v599_v29  ;;  %v626_v52 = vmul.f32 %v6586_v5, %v6353_v44  ;;  %v725_v35 = vsel %vm241_vm0, %v623_v51, 0.0  ;;  %v726_v40 = vsel %vm241_vm0, %v624_v9, 0.0 }
 0x1ad   :  { %v6596_v33 = vpop.eup %5490  ;;  %5502 = vpow2.f32 %v601_v38  ;;  %v627_v6 = vmul.f32 %v6590_v13, %v6324_v3  ;;  %v711_v60 = vadd.f32 %v710_v46, %v709_v0  ;;  %v719_v2 = vrot.slane %v718_v48, 4 }
 0x1ae   :  { %v6600_v45 = vpop.eup %5492  ;;  %v628_v12 = vmul.f32 %v6596_v33, %v6353_v44  ;;  %v727_v49 = vadd.f32 %v726_v40, %v725_v35  ;;  %v734_v19 = vsel %vm241_vm0, %v625_v41, 0.0  ;;  %v735_v32 = vsel %vm241_vm0, %v626_v52, 0.0 }
 0x1af   :  { %v6606_v25 = vpop.eup %5494  ;;  %v629_v42 = vmul.f32 %v6600_v45, %v6324_v3  ;;  %v720_v17 = vadd.f32 %v719_v2, %v718_v48  ;;  %v736_v63 = vadd.f32 %v735_v32, %v734_v19  ;;  %v743_v7 = vsel %vm241_vm0, %v627_v6, 0.0 }
 0x1b0   :  { %v6614_v57 = vpop.eup %5496  ;;  %v630_v56 = vmul.f32 %v6606_v25, %v6353_v44  ;;  %v728_v14 = vrot.slane %v727_v49, 4  ;;  %v744_v59 = vsel %vm241_vm0, %v628_v12, 0.0  ;;  %v6627_v28 = vmul.f32 %v1005_v30, %v6558_v26 }
 0x1b1   :  { %v6622_v23 = vpop.eup %5498  ;;  %v631_v50 = vmul.f32 %v6614_v57, %v6324_v3  ;;  %v712_v1 = vrot.slane %v711_v60, 2  ;;  %v737_v21 = vrot.slane %v736_v63, 4  ;;  %v745_v58 = vadd.f32 %v744_v59, %v743_v7 }
 0x1b2   :  { %v6631_v20 = vpop.eup %5500  ;;  %v632_v11 = vmul.f32 %v6622_v23, %v6353_v44  ;;  %v729_v29 = vadd.f32 %v728_v14, %v727_v49  ;;  %v752_v8 = vsel %vm241_vm0, %v629_v42, 0.0  ;;  %v6640_v22 = vmul.f32 %v6552_v54, %v6558_v26 }
 0x1b3   :  { %v6636_v15 = vpop.eup %5502  ;;  %v633_v38 = vmul.f32 %v6631_v20, %v6324_v3  ;;  %v721_v24 = vrot.slane %v720_v17, 2  ;;  %v956_v10 = vsel %vm241_vm0, %v6616_v34, -inf  ;;  %v738_v0 = vadd.f32 %v737_v21, %v736_v63 }
 0x1b4   :  { %v634_v51 = vmul.f32 %v6636_v15, %v6353_v44  ;;  %v746_v47 = vrot.slane %v745_v58, 4  ;;  %v753_v9 = vsel %vm241_vm0, %v630_v56, 0.0  ;;  %v713_v43 = vadd.f32 %v712_v1, %v711_v60 }
 0x1b5   :  { %v730_v41 = vrot.slane %v729_v29, 2  ;;  %v754_v46 = vadd.f32 %v753_v9, %v752_v8  ;;  %v955_v48 = vsel %vm241_vm0, %v6558_v26, -inf  ;;  %v761_v3 = vsel %vm241_vm0, %v631_v50, 0.0 }
 0x1b6   :  { %v747_v52 = vadd.f32 %v746_v47, %v745_v58  ;;  %v762_v35 = vsel %vm241_vm0, %v632_v11, 0.0  ;;  %v854_v40 = vrot.slane %v6567_v55, 4  ;;  %v722_v6 = vadd.f32 %v721_v24, %v720_v17 }
 0x1b7   :  { %v755_v2 = vrot.slane %v754_v46, 4  ;;  %v763_v44 = vadd.f32 %v762_v35, %v761_v3  ;;  %v6654_v12 = vmax.f32 %v955_v48, %v956_v10  ;;  %v739_v49 = vrot.slane %v738_v0, 2 }
 0x1b8   :  { %v770_v60 = vsel %vm241_vm0, %v633_v38, 0.0  ;;  %v771_v19 = vsel %vm241_vm0, %v634_v51, 0.0  ;;  %v860_v32 = vsel %vm241_vm0, %v6556_v18, 0.0  ;;  %v714_v42 = vrot.slane %v713_v43, 1 }
 0x1b9   :  { %v731_v63 = vadd.f32 %v730_v41, %v729_v29  ;;  %v748_v56 = vrot.slane %v747_v52, 2  ;;  %v772_v14 = vadd.f32 %v771_v19, %v770_v60  ;;  %v756_v7 = vadd.f32 %v755_v2, %v754_v46 }
 0x1ba   :  { %v855_v59 = vadd.f32 %v854_v40, %v6567_v55  ;;  %v861_v17 = vsel %vm241_vm0, %v6562_v37, 0.0  ;;  %v6665_v50 = vsel %vm241_vm0, %v6558_v26, inf  ;;  %v723_v1 = vrot.slane %v722_v6, 1 }
 0x1bb   :  { %v764_v21 = vrot.slane %v763_v44, 4  ;;  %v773_v11 = vrot.slane %v772_v14, 4  ;;  %v958_v58 = vrot.slane %v6654_v12, 4  ;;  %v6668_v18 = vadd.f32 %v739_v49, %v738_v0 }
 0x1bc   :  { %v856_v29 = vrot.slane %v855_v59, 2  ;;  %v862_v8 = vadd.f32 %v861_v17, %v860_v32  ;;  %v869_v38 = vsel %vm241_vm0, %v6569_v36, 0.0  ;;  %v6672_v55 = vadd.f32 %v714_v42, %v713_v43 }
 0x1bd   :  { %v732_v24 = vrot.slane %v731_v63, 1  ;;  %v6674_v37 = vadd.f32 %v748_v56, %v747_v52  ;;  %v870_v10 = vsel %vm241_vm0, %v6574_v62, 0.0  ;;  %v757_v51 = vrot.slane %v756_v7, 2 }
 0x1be   :  { %v857_v47 = vadd.f32 %v856_v29, %v855_v59  ;;  %v863_v9 = vrot.slane %v862_v8, 4  ;;  %v871_v41 = vadd.f32 %v870_v10, %v869_v38  ;;  %v6678_v46 = vadd.f32 %v723_v1, %v722_v6 }
 0x1bf   :  { %v765_v0 = vadd.f32 %v764_v21, %v763_v44  ;;  %v6680_v48 = vadd.f32 %v773_v11, %v772_v14  ;;  %v878_v36 = vsel %vm241_vm0, %v6579_v39, 0.0  ;;  %v741_v43 = vrot.slane %v6668_v18, 1 }
 0x1c0   :  { %v864_v3 = vadd.f32 %v863_v9, %v862_v8  ;;  %v872_v52 = vrot.slane %v871_v41, 4  ;;  %v879_v35 = vsel %vm241_vm0, %v6586_v5, 0.0  ;;  %v6687_v62 = vadd.f32 %v732_v24, %v731_v63 }
 0x1c1   :  { %v750_v40 = vrot.slane %v6674_v37, 1  ;;  %v858_v2 = vrot.slane %v857_v47, 1  ;;  %v880_v6 = vadd.f32 %v879_v35, %v878_v36  ;;  %v6690_v49 = vadd.f32 %v757_v51, %v756_v7 }
 0x1c2   :  { %v865_v44 = vrot.slane %v864_v3, 2  ;;  %v873_v60 = vadd.f32 %v872_v52, %v871_v41  ;;  %v887_v39 = vsel %vm241_vm0, %v6590_v13, 0.0  ;;  %v766_v19 = vrot.slane %v765_v0, 2 }
 0x1c3   :  { %v775_v32 = vrot.slane %v6680_v48, 2  ;;  %v881_v42 = vrot.slane %v880_v6, 4  ;;  %v888_v5 = vsel %vm241_vm0, %v6596_v33, 0.0  ;;  %v896_v59 = vsel %vm241_vm0, %v6600_v45, 0.0 }
 0x1c4   :  { %v866_v63 = vadd.f32 %v865_v44, %v864_v3  ;;  %v874_v56 = vrot.slane %v873_v60, 2  ;;  %v889_v14 = vadd.f32 %v888_v5, %v887_v39  ;;  %v859_v7 = vadd.f32 %v858_v2, %v857_v47 }
 0x1c5   :  { %v882_v17 = vadd.f32 %v881_v42, %v880_v6  ;;  %v897_v1 = vsel %vm241_vm0, %v6606_v25, 0.0  ;;  %v905_v13 = vsel %vm241_vm0, %v6614_v57, 0.0  ;;  %v906_v33 = vsel %vm241_vm0, %v6622_v23, 0.0 }
 0x1c6   :  { %v867_v21 = vrot.slane %v866_v63, 1  ;;  %v875_v11 = vadd.f32 %v874_v56, %v873_v60  ;;  %v890_v29 = vrot.slane %v889_v14, 4  ;;  %v898_v8 = vadd.f32 %v897_v1, %v896_v59 }
 0x1c7   :  { %v883_v38 = vrot.slane %v882_v17, 2  ;;  %v914_v24 = vsel %vm241_vm0, %v6631_v20, 0.0  ;;  %v915_v45 = vsel %vm241_vm0, %v6636_v15, 0.0  ;;  %v907_v57 = vadd.f32 %v906_v33, %v905_v13 }
 0x1c8   :  { %v868_v10 = vadd.f32 %v867_v21, %v866_v63  ;;  %v876_v51 = vrot.slane %v875_v11, 1  ;;  %v891_v25 = vadd.f32 %v890_v29, %v889_v14  ;;  %v899_v47 = vrot.slane %v898_v8, 4 }
 0x1c9   :  { %v884_v9 = vadd.f32 %v883_v38, %v882_v17  ;;  %v916_v41 = vadd.f32 %v915_v45, %v914_v24  ;;  %5504 = vrcp.f32 %v859_v7  ;;  %v908_v23 = vrot.slane %v907_v57, 4 }
 0x1ca   :  { %v877_v36 = vadd.f32 %v876_v51, %v875_v11  ;;  %v892_v3 = vrot.slane %v891_v25, 2  ;;  %v900_v52 = vadd.f32 %v899_v47, %v898_v8  ;;  %5506 = vrcp.f32 %v868_v10 }
 0x1cb   :  { %v885_v35 = vrot.slane %v884_v9, 1  ;;  %v917_v2 = vrot.slane %v916_v41, 4  ;;  %v959_v20 = vmax.f32 %v6654_v12, %v958_v58  ;;  %v965_v44 = vsel %vm241_vm0, %v6616_v34, inf }
 0x1cc   :  { %v893_v15 = vadd.f32 %v892_v3, %v891_v25  ;;  %v901_v6 = vrot.slane %v900_v52, 2  ;;  %5508 = vrcp.f32 %v877_v36  ;;  %v909_v39 = vadd.f32 %v908_v23, %v907_v57 }
 0x1cd   :  { %v886_v60 = vadd.f32 %v885_v35, %v884_v9  ;;  %v918_v42 = vadd.f32 %v917_v2, %v916_v41  ;;  %v960_v5 = vrot.slane %v959_v20, 2  ;;  %v767_v63 = vadd.f32 %v766_v19, %v765_v0 }
 0x1ce   :  { %v894_v56 = vrot.slane %v893_v15, 1  ;;  %v902_v14 = vadd.f32 %v901_v6, %v900_v52  ;;  %v966_v59 = vmin.f32 %v6665_v50, %v965_v44  ;;  %v910_v17 = vrot.slane %v909_v39, 2 }
 0x1cf   :  { %v5505_v7 = vpop.eup %5504  ;;  %v919_v1 = vrot.slane %v918_v42, 2  ;;  %5510 = vrcp.f32 %v886_v60  ;;  %v961_v12 = vmax.f32 %v959_v20, %v960_v5  ;;  %v776_v8 = vadd.f32 %v775_v32, %v6680_v48 }
 0x1d0   :  { %v5507_v58 = vpop.eup %5506  ;;  %v895_v13 = vadd.f32 %v894_v56, %v893_v15  ;;  %v903_v21 = vrot.slane %v902_v14, 1  ;;  %v947_v11 = vmul.f32 %v5505_v7, %v6672_v55  ;;  %v967_v29 = vrot.slane %v966_v59, 4 }
 0x1d1   :  { %v911_v38 = vadd.f32 %v910_v17, %v909_v39  ;;  %v920_v33 = vadd.f32 %v919_v1, %v918_v42  ;;  %v948_v0 = vmul.f32 %v5507_v58, %v6678_v46  ;;  %v962_v50 = vrot.slane %v961_v12, 1 }
 0x1d2   :  { %v5509_v19 = vpop.eup %5508  ;;  %v904_v24 = vadd.f32 %v903_v21, %v902_v14  ;;  %5512 = vrcp.f32 %v895_v13  ;;  %v968_v45 = vmin.f32 %v966_v59, %v967_v29  ;;  %v742_v48 = vadd.f32 %v741_v43, %v6668_v18 }
 0x1d3   :  { %v912_v10 = vrot.slane %v911_v38, 1  ;;  %v921_v51 = vrot.slane %v920_v33, 1  ;;  %v949_v25 = vmul.f32 %v5509_v19, %v6687_v62  ;;  %v1587_v55 = vsel %vm1573_vm3, %v948_v0, %v947_v11  ;;  %v8416_v19 = vld [vmem:[#allocation21_spill] sm:$0xff] }
 0x1d4   :  { %v759_v32 = vrot.slane %v6690_v49, 1  ;;  %5514 = vrcp.f32 %v904_v24  ;;  %v969_v46 = vrot.slane %v968_v45, 2  ;;  %v768_v9 = vrot.slane %v767_v63, 1 }
 0x1d5   :  { %v5511_v47 = vpop.eup %5510  ;;  %v913_v57 = vadd.f32 %v912_v10, %v911_v38  ;;  %v922_v41 = vadd.f32 %v921_v51, %v920_v33  ;;  %v1588_v36 = vsel %vm1575_vm4, %v949_v25, %v1587_v55  ;;  %v777_v3 = vrot.slane %v776_v8, 1  ;;  %v8415_v38 = vld [vmem:[#allocation20_spill] sm:$0xff] }
 0x1d6   :  { %v950_v52 = vmul.f32 %v5511_v47, %v742_v48  ;;  %v6726_v35 = vmax.f32 %v961_v12, %v962_v50  ;;  %v970_v62 = vmin.f32 %v968_v45, %v969_v46  ;;  %v751_v23 = vadd.f32 %v750_v40, %v6674_v37 }
 0x1d7   :  { %5516 = vrcp.f32 %v913_v57  ;;  %v987_v18 = vrot.slane %v6223_v61, 5  ;;  %v988_v43 = vrot.slane %v6223_v61, 6  ;;  %v989_v6 = vrot.slane %v6223_v61, 7 }
 0x1d8   :  { %v5513_v2 = vpop.eup %5512  ;;  %5518 = vrcp.f32 %v922_v41  ;;  %v1589_v20 = vsel %vm1577_vm5, %v950_v52, %v1588_v36  ;;  %v971_v15 = vrot.slane %v970_v62, 1  ;;  %v6737_v44 = vmul.f32 %v6581_v4, %v6558_v26 }
 0x1d9   :  { %v760_v60 = vadd.f32 %v759_v32, %v6690_v49  ;;  %v769_v39 = vadd.f32 %v768_v9, %v767_v63  ;;  %v951_v37 = vmul.f32 %v5513_v2, %v751_v23  ;;  %v778_v42 = vadd.f32 %v777_v3, %v776_v8 }
 0x1da   :  { %v5515_v40 = vpop.eup %5514  ;;  %v6740_v5 = vmin.f32 %v970_v62, %v971_v15  ;;  %v975_v56 = vmul.f32 %v6726_v35, %v6223_v61  ;;  %v8412_v14 = vrot.slane %v6223_v61, 4  ;;  %v1002_v1 = vperm.slane %v987_v18, 0 }
 0x1db   :  { %v952_v7 = vmul.f32 %v5515_v40, %v760_v60  ;;  %v1590_v17 = vsel %vm1579_vm6, %v951_v37, %v1589_v20  ;;  %v1003_v12 = vperm.slane %v988_v43, 0  ;;  %v1004_v63 = vperm.slane %v989_v6, 0 }
 0x1dc   :  { %v1001_v59 = vperm.slane %v8412_v14, 0  ;;  %v977_v49 = vmul.f32 %v6740_v5, %v6223_v61  ;;  %v8413_v58 = vperm.slane %v6223_v61, 0  ;;  %v1031_v33 = vmul.f32 %v8415_v38, %v6558_v26 }
 0x1dd   :  { %v5517_v29 = vpop.eup %5516  ;;  %v1591_v8 = vsel %vm1581_vm7, %v952_v7, %v1590_v17  ;;  %v1032_v0 = vmul.f32 %v8415_v38, %v6616_v34  ;;  %v1033_v24 = vmul.f32 %v8416_v19, %v6558_v26  ;;  %v1034_v51 = vmul.f32 %v8416_v19, %v6616_v34 }
 0x1de   :  { %v1029_v13 = vmul.f32 %v8413_v58, %v6558_v26  ;;  %v8414_v21 = vmov %v8413_v58  ;;  %v5519_v50 = vpop.eup %5518  ;;  %v953_v45 = vmul.f32 %v5517_v29, %v769_v39  ;;  %v979_v10 = vsel %vm973_vm10, %v975_v56, %v977_v49 }
 0x1df   :  { %v1030_v11 = vmul.f32 %v8414_v21, %v6616_v34  ;;  %v1035_v25 = vmul.f32 %v6543_v31, %v6558_v26  ;;  %v954_v55 = vmul.f32 %v5519_v50, %v778_v42  ;;  %v1063_v48 = vrot.slane %v979_v10, 1 }
 0x1e0   :  { %v1064_v32 = vrot.slane %v979_v10, 2  ;;  %v1065_v46 = vrot.slane %v979_v10, 3  ;;  %v1592_v47 = vsel %vm1583_vm8, %v953_v45, %v1591_v8  ;;  %v1036_v9 = vmul.f32 %v6543_v31, %v6616_v34 }
 0x1e1   :  { %v1037_v57 = vmul.f32 %v1001_v59, %v6558_v26  ;;  %v1038_v61 = vmul.f32 %v1001_v59, %v6616_v34  ;;  %v1593_v41 = vsel %vm8389_vm9, %v954_v55, %v1592_v47  ;;  %v1066_v36 = vrot.slane %v979_v10, 4  ;;  %v6781_v59 = vpop.f32.mrf.mxu2 }
 0x1e2   :  { %v1077_v3 = vperm.slane %v979_v10, 0  ;;  %v1078_v52 = vperm.slane %v1063_v48, 0  ;;  %5330 = vmatmul.msk.f32.gmra.mxu3 %vm241_vm0, %v1593_v41  ;;  %v1039_v62 = vmul.f32 %v1002_v1, %v6558_v26  ;;  %v1040_v23 = vmul.f32 %v1002_v1, %v6616_v34 }
 0x1e3   :  { %v1067_v18 = vrot.slane %v979_v10, 5  ;;  %v1079_v43 = vperm.slane %v1064_v32, 0  ;;  %vm974_vm11 = vcmp.gt.f32.partialorder %v6531_v16, 0.0  ;;  %v1068_v31 = vrot.slane %v979_v10, 6 }
 0x1e4   :  { %v1080_v2 = vperm.slane %v1065_v46, 0  ;;  %v1109_v20 = vsub.f32 %v1029_v13, %v1077_v3  ;;  %v1110_v15 = vsub.f32 %v1030_v11, %v1077_v3  ;;  %v1041_v6 = vmul.f32 %v1003_v12, %v6558_v26 }
 0x1e5   :  { %v1069_v60 = vrot.slane %v979_v10, 7  ;;  %v1111_v39 = vsub.f32 %v1031_v33, %v1078_v52  ;;  %v1112_v37 = vsub.f32 %v1032_v0, %v1078_v52  ;;  %v1042_v40 = vmul.f32 %v1003_v12, %v6616_v34 }
 0x1e6   :  { %v1043_v42 = vmul.f32 %v1004_v63, %v6558_v26  ;;  %v1081_v56 = vperm.slane %v1066_v36, 0  ;;  %v1113_v14 = vsub.f32 %v1033_v24, %v1079_v43  ;;  %v1044_v7 = vmul.f32 %v1004_v63, %v6616_v34 }
 0x1e7   :  { %v1082_v17 = vperm.slane %v1067_v18, 0  ;;  %v1114_v1 = vsub.f32 %v1034_v51, %v1079_v43  ;;  %v994_v49 = vrot.slane %v6531_v16, 5  ;;  %v1083_v58 = vperm.slane %v1068_v31, 0 }
 0x1e8   :  { %v1115_v13 = vsub.f32 %v1035_v25, %v1080_v2  ;;  %v1141_v21 = vmul.f32 1.442695, %v1109_v20  ;;  %v1143_v11 = vmul.f32 1.442695, %v1110_v15  ;;  %v1084_v29 = vperm.slane %v1069_v60, 0 }
 0x1e9   :  { %v1116_v8 = vsub.f32 %v1036_v9, %v1080_v2  ;;  %v1145_v38 = vmul.f32 1.442695, %v1111_v39  ;;  %v1147_v12 = vmul.f32 1.442695, %v1112_v37  ;;  %v1117_v33 = vsub.f32 %v1037_v57, %v1081_v56 }
 0x1ea   :  { %v1118_v0 = vsub.f32 %v1038_v61, %v1081_v56  ;;  %5520 = vpow2.f32 %v1141_v21  ;;  %v1149_v19 = vmul.f32 1.442695, %v1113_v14  ;;  %v1119_v24 = vsub.f32 %v1039_v62, %v1082_v17 }
 0x1eb   :  { %5522 = vpow2.f32 %v1143_v11  ;;  %v1151_v50 = vmul.f32 1.442695, %v1114_v1  ;;  %v976_v63 = vmul.f32 %v6726_v35, %v6531_v16  ;;  %v1120_v45 = vsub.f32 %v1040_v23, %v1082_v17 }
 0x1ec   :  { %v1121_v10 = vsub.f32 %v1041_v6, %v1083_v58  ;;  %5524 = vpow2.f32 %v1145_v38  ;;  %v1153_v51 = vmul.f32 1.442695, %v1115_v13  ;;  %v1122_v25 = vsub.f32 %v1042_v40, %v1083_v58 }
 0x1ed   :  { %5526 = vpow2.f32 %v1147_v12  ;;  %v1155_v55 = vmul.f32 1.442695, %v1116_v8  ;;  %v978_v48 = vmul.f32 %v6740_v5, %v6531_v16  ;;  %v1123_v32 = vsub.f32 %v1043_v42, %v1084_v29  ;;  %v6795_v5 = vpop.f32.mrf.mxu2 }
 0x1ee   :  { %v1124_v46 = vsub.f32 %v1044_v7, %v1084_v29  ;;  %5528 = vpow2.f32 %v1149_v19  ;;  %v1157_v47 = vmul.f32 1.442695, %v1117_v33  ;;  %v1159_v9 = vmul.f32 1.442695, %v1118_v0 }
 0x1ef   :  { %5530 = vpow2.f32 %v1151_v50  ;;  %v6791_v57 = vsel %vm974_vm11, %v976_v63, %v978_v48  ;;  %v995_v35 = vrot.slane %v6531_v16, 6  ;;  %v1161_v41 = vmul.f32 1.442695, %v1119_v24 }
 0x1f0   :  { %v5521_v61 = vpop.eup %5520  ;;  %5532 = vpow2.f32 %v1153_v51  ;;  %v1163_v36 = vmul.f32 1.442695, %v1120_v45  ;;  %v996_v3 = vrot.slane %v6531_v16, 7  ;;  %v1165_v62 = vmul.f32 1.442695, %v1121_v10 }
 0x1f1   :  { %v5523_v52 = vpop.eup %5522  ;;  %5534 = vpow2.f32 %v1155_v55  ;;  %v1167_v23 = vmul.f32 1.442695, %v1122_v25  ;;  %v1205_v18 = vmul.f32 %v5521_v61, %v6781_v59  ;;  %v1169_v31 = vmul.f32 1.442695, %v1123_v32 }
 0x1f2   :  { %v6798_v43 = vpop.eup %5524  ;;  %5536 = vpow2.f32 %v1157_v47  ;;  %v1171_v2 = vmul.f32 1.442695, %v1124_v46  ;;  %v1206_v20 = vmul.f32 %v5523_v52, %v6795_v5  ;;  %v6808_v39 = vperm.slane %v993_v53, 0 }
 0x1f3   :  { %v6801_v15 = vpop.eup %5526  ;;  %5538 = vpow2.f32 %v1159_v9  ;;  %v1207_v6 = vmul.f32 %v6798_v43, %v6781_v59  ;;  %v1237_v60 = vsel %vm241_vm0, %v1205_v18, 0.0  ;;  %v1381_v56 = vsel %vm241_vm0, %v5521_v61, 0.0 }
 0x1f4   :  { %v6810_v37 = vpop.eup %5528  ;;  %5540 = vpow2.f32 %v1161_v41  ;;  %v1208_v40 = vmul.f32 %v6801_v15, %v6795_v5  ;;  %v1238_v42 = vsel %vm241_vm0, %v1206_v20, 0.0  ;;  %v1382_v21 = vsel %vm241_vm0, %v5523_v52, 0.0 }
 0x1f5   :  { %v6816_v14 = vpop.eup %5530  ;;  %5542 = vpow2.f32 %v1163_v36  ;;  %v1209_v7 = vmul.f32 %v6810_v37, %v6781_v59  ;;  %v1239_v17 = vadd.f32 %v1238_v42, %v1237_v60  ;;  %v1246_v53 = vsel %vm241_vm0, %v1207_v6, 0.0 }
 0x1f6   :  { %v6821_v1 = vpop.eup %5532  ;;  %5544 = vpow2.f32 %v1165_v62  ;;  %v1210_v58 = vmul.f32 %v6816_v14, %v6795_v5  ;;  %v1247_v13 = vsel %vm241_vm0, %v1208_v40, 0.0  ;;  %v6853_v61 = vperm.slane %v994_v49, 0 }
 0x1f7   :  { %v6827_v11 = vpop.eup %5534  ;;  %5546 = vpow2.f32 %v1167_v23  ;;  %v1211_v29 = vmul.f32 %v6821_v1, %v6781_v59  ;;  %v1240_v8 = vrot.slane %v1239_v17, 4  ;;  %v1248_v38 = vadd.f32 %v1247_v13, %v1246_v53 }
 0x1f8   :  { %v6831_v12 = vpop.eup %5536  ;;  %5548 = vpow2.f32 %v1169_v31  ;;  %v1212_v33 = vmul.f32 %v6827_v11, %v6795_v5  ;;  %v1255_v0 = vsel %vm241_vm0, %v1209_v7, 0.0  ;;  %v1256_v19 = vsel %vm241_vm0, %v1210_v58, 0.0 }
 0x1f9   :  { %v6837_v24 = vpop.eup %5538  ;;  %5550 = vpow2.f32 %v1171_v2  ;;  %v1213_v50 = vmul.f32 %v6831_v12, %v6781_v59  ;;  %v1241_v63 = vadd.f32 %v1240_v8, %v1239_v17  ;;  %v1249_v45 = vrot.slane %v1248_v38, 4 }
 0x1fa   :  { %v6841_v10 = vpop.eup %5540  ;;  %v1214_v51 = vmul.f32 %v6837_v24, %v6795_v5  ;;  %v1257_v25 = vadd.f32 %v1256_v19, %v1255_v0  ;;  %v1264_v55 = vsel %vm241_vm0, %v1211_v29, 0.0  ;;  %v1265_v48 = vsel %vm241_vm0, %v1212_v33, 0.0 }
 0x1fb   :  { %v6847_v32 = vpop.eup %5542  ;;  %v1215_v46 = vmul.f32 %v6841_v10, %v6781_v59  ;;  %v1250_v47 = vadd.f32 %v1249_v45, %v1248_v38  ;;  %v1266_v9 = vadd.f32 %v1265_v48, %v1264_v55  ;;  %v1273_v62 = vsel %vm241_vm0, %v1213_v50, 0.0 }
 0x1fc   :  { %v6855_v41 = vpop.eup %5544  ;;  %v1216_v36 = vmul.f32 %v6847_v32, %v6795_v5  ;;  %v1258_v52 = vrot.slane %v1257_v25, 4  ;;  %v1274_v23 = vsel %vm241_vm0, %v1214_v51, 0.0  ;;  %v1242_v31 = vrot.slane %v1241_v63, 2 }
 0x1fd   :  { %v6861_v18 = vpop.eup %5546  ;;  %v1267_v2 = vrot.slane %v1266_v9, 4  ;;  %v1383_v20 = vadd.f32 %v1382_v21, %v1381_v56  ;;  %v6865_v6 = vperm.slane %v995_v35, 0  ;;  %v1217_v60 = vmul.f32 %v6855_v41, %v6781_v59 }
 0x1fe   :  { %v6867_v49 = vpop.eup %5548  ;;  %v1218_v40 = vmul.f32 %v6861_v18, %v6795_v5  ;;  %v1275_v42 = vadd.f32 %v1274_v23, %v1273_v62  ;;  %v1282_v7 = vsel %vm241_vm0, %v1215_v46, 0.0  ;;  %v1251_v53 = vrot.slane %v1250_v47, 2 }
 0x1ff   :  { %v6874_v17 = vpop.eup %5550  ;;  %v1259_v58 = vadd.f32 %v1258_v52, %v1257_v25  ;;  %v6878_v56 = vperm.slane %v996_v3, 0  ;;  %v6883_v35 = vmul.f32 %v1005_v30, %v6616_v34  ;;  %v1219_v13 = vmul.f32 %v6867_v49, %v6781_v59 }
 0x200   :  { %v1220_v21 = vmul.f32 %v6874_v17, %v6795_v5  ;;  %v1276_v29 = vrot.slane %v1275_v42, 4  ;;  %v1283_v8 = vsel %vm241_vm0, %v1216_v36, 0.0  ;;  %v1243_v38 = vadd.f32 %v1242_v31, %v1241_v63 }
 0x201   :  { %v1268_v33 = vadd.f32 %v1267_v2, %v1266_v9  ;;  %v1284_v0 = vadd.f32 %v1283_v8, %v1282_v7  ;;  %v6892_v3 = vmul.f32 %v6552_v54, %v6616_v34  ;;  %v1291_v16 = vsel %vm241_vm0, %v1217_v60, 0.0 }
 0x202   :  { %v1277_v19 = vadd.f32 %v1276_v29, %v1275_v42  ;;  %v1292_v30 = vsel %vm241_vm0, %v1218_v40, 0.0  ;;  %v1384_v50 = vrot.slane %v1383_v20, 4  ;;  %v1252_v45 = vadd.f32 %v1251_v53, %v1250_v47 }
 0x203   :  { %v1293_v51 = vadd.f32 %v1292_v30, %v1291_v16  ;;  %v6898_v25 = vmul.f32 %v6581_v4, %v6616_v34  ;;  %v6902_v63 = vmul.f32 %v6610_v27, %v6558_v26  ;;  %v1260_v55 = vrot.slane %v1259_v58, 2 }
 0x204   :  { %v1300_v54 = vsel %vm241_vm0, %v1219_v13, 0.0  ;;  %v1301_v48 = vsel %vm241_vm0, %v1220_v21, 0.0  ;;  %v1390_v46 = vsel %vm241_vm0, %v6798_v43, 0.0  ;;  %v1244_v9 = vrot.slane %v1243_v38, 1 }
 0x205   :  { %v1269_v36 = vrot.slane %v1268_v33, 2  ;;  %v1285_v47 = vrot.slane %v1284_v0, 4  ;;  %v1302_v52 = vadd.f32 %v1301_v48, %v1300_v54  ;;  %v1278_v62 = vrot.slane %v1277_v19, 2 }
 0x206   :  { %v1385_v23 = vadd.f32 %v1384_v50, %v1383_v20  ;;  %v1391_v4 = vsel %vm241_vm0, %v6801_v15, 0.0  ;;  %v6912_v31 = vmul.f32 %v6610_v27, %v6616_v34  ;;  %v1253_v2 = vrot.slane %v1252_v45, 1 }
 0x207   :  { %v1294_v60 = vrot.slane %v1293_v51, 4  ;;  %v1303_v40 = vrot.slane %v1302_v52, 4  ;;  %v6916_v42 = vmul.f32 %v6808_v39, %v6558_v26  ;;  %v6918_v43 = vadd.f32 %v1260_v55, %v1259_v58 }
 0x208   :  { %v1386_v7 = vrot.slane %v1385_v23, 2  ;;  %v1392_v53 = vadd.f32 %v1391_v4, %v1390_v46  ;;  %v1399_v20 = vsel %vm241_vm0, %v6810_v37, 0.0  ;;  %v6922_v13 = vadd.f32 %v1244_v9, %v1243_v38 }
 0x209   :  { %v6924_v15 = vadd.f32 %v1269_v36, %v1268_v33  ;;  %v1286_v27 = vadd.f32 %v1285_v47, %v1284_v0  ;;  %v1400_v21 = vsel %vm241_vm0, %v6816_v14, 0.0  ;;  %v6928_v29 = vadd.f32 %v1278_v62, %v1277_v19 }
 0x20a   :  { %v1387_v8 = vadd.f32 %v1386_v7, %v1385_v23  ;;  %v1393_v16 = vrot.slane %v1392_v53, 4  ;;  %v1401_v30 = vadd.f32 %v1400_v21, %v1399_v20  ;;  %v6930_v58 = vadd.f32 %v1253_v2, %v1252_v45 }
 0x20b   :  { %v1295_v50 = vadd.f32 %v1294_v60, %v1293_v51  ;;  %v1304_v55 = vadd.f32 %v1303_v40, %v1302_v52  ;;  %v1408_v37 = vsel %vm241_vm0, %v6821_v1, 0.0  ;;  %v1262_v38 = vrot.slane %v6918_v43, 1 }
 0x20c   :  { %v1394_v33 = vadd.f32 %v1393_v16, %v1392_v53  ;;  %v1402_v54 = vrot.slane %v1401_v30, 4  ;;  %v1409_v0 = vsel %vm241_vm0, %v6827_v11, 0.0  ;;  %v1271_v14 = vrot.slane %v6924_v15, 1 }
 0x20d   :  { %v1287_v19 = vrot.slane %v1286_v27, 2  ;;  %v1388_v48 = vrot.slane %v1387_v8, 1  ;;  %v1410_v46 = vadd.f32 %v1409_v0, %v1408_v37  ;;  %v1280_v45 = vrot.slane %v6928_v29, 1 }
 0x20e   :  { %v1395_v9 = vrot.slane %v1394_v33, 2  ;;  %v1403_v51 = vadd.f32 %v1402_v54, %v1401_v30  ;;  %v1417_v36 = vsel %vm241_vm0, %v6831_v12, 0.0  ;;  %v1296_v1 = vrot.slane %v1295_v50, 2 }
 0x20f   :  { %v1305_v47 = vrot.slane %v1304_v55, 2  ;;  %v1411_v52 = vrot.slane %v1410_v46, 4  ;;  %v1418_v62 = vsel %vm241_vm0, %v6837_v24, 0.0  ;;  %v1426_v2 = vsel %vm241_vm0, %v6841_v10, 0.0 }
 0x210   :  { %v1396_v23 = vadd.f32 %v1395_v9, %v1394_v33  ;;  %v1404_v11 = vrot.slane %v1403_v51, 2  ;;  %v1419_v4 = vadd.f32 %v1418_v62, %v1417_v36  ;;  %v1389_v60 = vadd.f32 %v1388_v48, %v1387_v8 }
 0x211   :  { %v1412_v40 = vadd.f32 %v1411_v52, %v1410_v46  ;;  %v1427_v7 = vsel %vm241_vm0, %v6847_v32, 0.0  ;;  %v1435_v12 = vsel %vm241_vm0, %v6855_v41, 0.0  ;;  %v1436_v24 = vsel %vm241_vm0, %v6861_v18, 0.0 }
 0x212   :  { %v1397_v53 = vrot.slane %v1396_v23, 1  ;;  %v1405_v20 = vadd.f32 %v1404_v11, %v1403_v51  ;;  %v1420_v21 = vrot.slane %v1419_v4, 4  ;;  %v1428_v16 = vadd.f32 %v1427_v7, %v1426_v2 }
 0x213   :  { %v1413_v30 = vrot.slane %v1412_v40, 2  ;;  %v1444_v37 = vsel %vm241_vm0, %v6867_v49, 0.0  ;;  %v1445_v10 = vsel %vm241_vm0, %v6874_v17, 0.0  ;;  %v1437_v41 = vadd.f32 %v1436_v24, %v1435_v12 }
 0x214   :  { %v1398_v8 = vadd.f32 %v1397_v53, %v1396_v23  ;;  %v1406_v33 = vrot.slane %v1405_v20, 1  ;;  %v1421_v32 = vadd.f32 %v1420_v21, %v1419_v4  ;;  %v1429_v54 = vrot.slane %v1428_v16, 4 }
 0x215   :  { %v1414_v0 = vadd.f32 %v1413_v30, %v1412_v40  ;;  %v1446_v48 = vadd.f32 %v1445_v10, %v1444_v37  ;;  %5552 = vrcp.f32 %v1389_v60  ;;  %v1288_v36 = vadd.f32 %v1287_v19, %v1286_v27 }
 0x216   :  { %v1407_v46 = vadd.f32 %v1406_v33, %v1405_v20  ;;  %v1422_v9 = vrot.slane %v1421_v32, 2  ;;  %v1430_v51 = vadd.f32 %v1429_v54, %v1428_v16  ;;  %5554 = vrcp.f32 %v1398_v8 }
 0x217   :  { %v1415_v18 = vrot.slane %v1414_v0, 1  ;;  %v1438_v52 = vrot.slane %v1437_v41, 4  ;;  %v1447_v62 = vrot.slane %v1446_v48, 4  ;;  %v1297_v49 = vadd.f32 %v1296_v1, %v1295_v50 }
 0x218   :  { %v1423_v11 = vadd.f32 %v1422_v9, %v1421_v32  ;;  %v1431_v2 = vrot.slane %v1430_v51, 2  ;;  %5556 = vrcp.f32 %v1407_v46  ;;  %v1263_v17 = vadd.f32 %v1262_v38, %v6918_v43 }
 0x219   :  { %v1416_v23 = vadd.f32 %v1415_v18, %v1414_v0  ;;  %v1439_v4 = vadd.f32 %v1438_v52, %v1437_v41  ;;  %v1448_v40 = vadd.f32 %v1447_v62, %v1446_v48  ;;  %v1272_v7 = vadd.f32 %v1271_v14, %v6924_v15 }
 0x21a   :  { %v1306_v60 = vadd.f32 %v1305_v47, %v1304_v55  ;;  %v1424_v12 = vrot.slane %v1423_v11, 1  ;;  %v1432_v53 = vadd.f32 %v1431_v2, %v1430_v51  ;;  %v1281_v27 = vadd.f32 %v1280_v45, %v6928_v29 }
 0x21b   :  { %v5553_v20 = vpop.eup %5552  ;;  %v1440_v19 = vrot.slane %v1439_v4, 2  ;;  %v1449_v21 = vrot.slane %v1448_v40, 2  ;;  %5558 = vrcp.f32 %v1416_v23  ;;  %v1289_v1 = vrot.slane %v1288_v36, 1 }
 0x21c   :  { %v5555_v50 = vpop.eup %5554  ;;  %v1298_v16 = vrot.slane %v1297_v49, 1  ;;  %v1425_v30 = vadd.f32 %v1424_v12, %v1423_v11  ;;  %v1433_v24 = vrot.slane %v1432_v53, 1  ;;  %v1541_v37 = vmul.f32 %v5553_v20, %v6922_v13 }
 0x21d   :  { %v1441_v43 = vadd.f32 %v1440_v19, %v1439_v4  ;;  %v1450_v38 = vadd.f32 %v1449_v21, %v1448_v40  ;;  %v1542_v15 = vmul.f32 %v5555_v50, %v6930_v58  ;;  %v1307_v14 = vrot.slane %v1306_v60, 1 }
 0x21e   :  { %v5557_v55 = vpop.eup %5556  ;;  %v1434_v47 = vadd.f32 %v1433_v24, %v1432_v53  ;;  %5560 = vrcp.f32 %v1425_v30  ;;  %v1070_v29 = vrot.slane %v6791_v57, 1  ;;  %v1290_v32 = vadd.f32 %v1289_v1, %v1288_v36 }
 0x21f   :  { %v1442_v45 = vrot.slane %v1441_v43, 1  ;;  %v1451_v10 = vrot.slane %v1450_v38, 1  ;;  %v1543_v8 = vmul.f32 %v5557_v55, %v1263_v17  ;;  %v1610_v33 = vsel %vm1573_vm3, %v1542_v15, %v1541_v37 }
 0x220   :  { %v1299_v54 = vadd.f32 %v1298_v16, %v1297_v49  ;;  %5562 = vrcp.f32 %v1434_v47  ;;  %v1071_v0 = vrot.slane %v6791_v57, 2  ;;  %v1072_v46 = vrot.slane %v6791_v57, 3 }
 0x221   :  { %v5559_v41 = vpop.eup %5558  ;;  %v1443_v13 = vadd.f32 %v1442_v45, %v1441_v43  ;;  %v1452_v48 = vadd.f32 %v1451_v10, %v1450_v38  ;;  %v1611_v58 = vsel %vm1575_vm4, %v1543_v8, %v1610_v33  ;;  %v1308_v9 = vadd.f32 %v1307_v14, %v1306_v60 }
 0x222   :  { %v1544_v51 = vmul.f32 %v5559_v41, %v1272_v7  ;;  %v1085_v18 = vperm.slane %v6791_v57, 0  ;;  %v1086_v52 = vperm.slane %v1070_v29, 0  ;;  %v1054_v36 = vmul.f32 %v6808_v39, %v6616_v34 }
 0x223   :  { %5564 = vrcp.f32 %v1443_v13  ;;  %v6970_v62 = vmul.f32 %v6853_v61, %v6558_v26  ;;  %v1073_v49 = vrot.slane %v6791_v57, 4  ;;  %v1074_v17 = vrot.slane %v6791_v57, 5 }
 0x224   :  { %v5561_v11 = vpop.eup %5560  ;;  %5566 = vrcp.f32 %v1452_v48  ;;  %v1612_v2 = vsel %vm1577_vm5, %v1544_v51, %v1611_v58  ;;  %v1087_v23 = vperm.slane %v1071_v0, 0  ;;  %v1056_v40 = vmul.f32 %v6853_v61, %v6616_v34 }
 0x225   :  { %v1545_v4 = vmul.f32 %v5561_v11, %v1281_v27  ;;  %v1075_v7 = vrot.slane %v6791_v57, 6  ;;  %v1088_v39 = vperm.slane %v1072_v46, 0  ;;  %v1057_v12 = vmul.f32 %v6865_v6, %v6558_v26 }
 0x226   :  { %v5563_v60 = vpop.eup %5562  ;;  %v1125_v53 = vsub.f32 %v6627_v28, %v1085_v18  ;;  %v1126_v20 = vsub.f32 %v6883_v35, %v1085_v18  ;;  %v1127_v19 = vsub.f32 %v6640_v22, %v1086_v52  ;;  %v1076_v27 = vrot.slane %v6791_v57, 7 }
 0x227   :  { %v1546_v21 = vmul.f32 %v5563_v60, %v1290_v32  ;;  %v1613_v50 = vsel %vm1579_vm6, %v1545_v4, %v1612_v2  ;;  %v1128_v61 = vsub.f32 %v6892_v3, %v1086_v52  ;;  %v1058_v1 = vmul.f32 %v6865_v6, %v6616_v34 }
 0x228   :  { %v1089_v16 = vperm.slane %v1073_v49, 0  ;;  %v1090_v30 = vperm.slane %v1074_v17, 0  ;;  %v1129_v24 = vsub.f32 %v6737_v44, %v1087_v23  ;;  %v1091_v35 = vperm.slane %v1075_v7, 0 }
 0x229   :  { %v5565_v43 = vpop.eup %5564  ;;  %v1614_v28 = vsel %vm1581_vm7, %v1546_v21, %v1613_v50  ;;  %v1130_v22 = vsub.f32 %v6898_v25, %v1087_v23  ;;  %v1131_v38 = vsub.f32 %v6902_v63, %v1088_v39  ;;  %v1173_v57 = vmul.f32 1.442695, %v1125_v53 }
 0x22a   :  { %v5567_v37 = vpop.eup %5566  ;;  %v1547_v15 = vmul.f32 %v5565_v43, %v1299_v54  ;;  %v1175_v55 = vmul.f32 1.442695, %v1126_v20  ;;  %v1177_v3 = vmul.f32 1.442695, %v1127_v19  ;;  %v1092_v47 = vperm.slane %v1076_v27, 0 }
 0x22b   :  { %v1548_v14 = vmul.f32 %v5567_v37, %v1308_v9  ;;  %v1132_v6 = vsub.f32 %v6912_v31, %v1088_v39  ;;  %v1179_v29 = vmul.f32 1.442695, %v1128_v61  ;;  %v1133_v45 = vsub.f32 %v6916_v42, %v1089_v16 }
 0x22c   :  { %v1615_v44 = vsel %vm1583_vm8, %v1547_v15, %v1614_v28  ;;  %5568 = vpow2.f32 %v1173_v57  ;;  %v1181_v10 = vmul.f32 1.442695, %v1129_v24  ;;  %v1134_v8 = vsub.f32 %v1054_v36, %v1089_v16 }
 0x22d   :  { %v1616_v25 = vsel %vm8389_vm9, %v1548_v14, %v1615_v44  ;;  %5570 = vpow2.f32 %v1175_v55  ;;  %v1183_v63 = vmul.f32 1.442695, %v1130_v22  ;;  %v1059_v33 = vmul.f32 %v6878_v56, %v6558_v26 }
 0x22e   :  { %5331 = vmatmul.msk.f32.gmra.mxu3 %vm241_vm0, %v1616_v25  ;;  %v1135_v32 = vsub.f32 %v6970_v62, %v1090_v30  ;;  %5572 = vpow2.f32 %v1177_v3  ;;  %v1185_v31 = vmul.f32 1.442695, %v1131_v38  ;;  %v1060_v54 = vmul.f32 %v6878_v56, %v6616_v34 }
 0x22f   :  { %v1136_v42 = vsub.f32 %v1056_v40, %v1090_v30  ;;  %5574 = vpow2.f32 %v1179_v29  ;;  %v1187_v0 = vmul.f32 1.442695, %v1132_v6  ;;  %v1137_v41 = vsub.f32 %v1057_v12, %v1091_v35 }
 0x230   :  { %v1138_v13 = vsub.f32 %v1058_v1, %v1091_v35  ;;  %5576 = vpow2.f32 %v1181_v10  ;;  %v1189_v48 = vmul.f32 1.442695, %v1133_v45  ;;  %v1139_v58 = vsub.f32 %v1059_v33, %v1092_v47 }
 0x231   :  { %5578 = vpow2.f32 %v1183_v63  ;;  %v1191_v46 = vmul.f32 1.442695, %v1134_v8  ;;  %v1140_v51 = vsub.f32 %v1060_v54, %v1092_v47  ;;  %v1193_v26 = vmul.f32 1.442695, %v1135_v32 }
 0x232   :  { %v5569_v9 = vpop.eup %5568  ;;  %5580 = vpow2.f32 %v1185_v31  ;;  %v1195_v52 = vmul.f32 1.442695, %v1136_v42  ;;  %v1197_v56 = vmul.f32 1.442695, %v1137_v41  ;;  %v1199_v62 = vmul.f32 1.442695, %v1138_v13 }
 0x233   :  { %v5571_v18 = vpop.eup %5570  ;;  %5582 = vpow2.f32 %v1187_v0  ;;  %v1221_v36 = vmul.f32 %v5569_v9, %v6781_v59  ;;  %v1201_v2 = vmul.f32 1.442695, %v1139_v58  ;;  %v1203_v40 = vmul.f32 1.442695, %v1140_v51 }
 0x234   :  { %v7003_v34 = vpop.eup %5572  ;;  %5584 = vpow2.f32 %v1189_v48  ;;  %v1222_v49 = vmul.f32 %v5571_v18, %v6795_v5  ;;  %v1453_v27 = vsel %vm241_vm0, %v5569_v9, 0.0  ;;  %v1454_v22 = vsel %vm241_vm0, %v5571_v18, 0.0 }
 0x235   :  { %v7006_v11 = vpop.eup %5574  ;;  %5586 = vpow2.f32 %v1191_v46  ;;  %v1223_v17 = vmul.f32 %v7003_v34, %v6781_v59  ;;  %v1309_v23 = vsel %vm241_vm0, %v1221_v36, 0.0  ;;  %v1455_v0 = vadd.f32 %v1454_v22, %v1453_v27 }
 0x236   :  { %v7011_v4 = vpop.eup %5576  ;;  %5588 = vpow2.f32 %v1193_v26  ;;  %v1224_v7 = vmul.f32 %v7006_v11, %v6795_v5  ;;  %v1310_v39 = vsel %vm241_vm0, %v1222_v49, 0.0 }
 0x237   :  { %v7016_v60 = vpop.eup %5578  ;;  %5590 = vpow2.f32 %v1195_v52  ;;  %v1225_v12 = vmul.f32 %v7011_v4, %v6781_v59  ;;  %v1311_v53 = vadd.f32 %v1310_v39, %v1309_v23  ;;  %v1318_v20 = vsel %vm241_vm0, %v1223_v17, 0.0 }
 0x238   :  { %v7021_v19 = vpop.eup %5580  ;;  %5592 = vpow2.f32 %v1197_v56  ;;  %v1226_v21 = vmul.f32 %v7016_v60, %v6795_v5  ;;  %v1319_v50 = vsel %vm241_vm0, %v1224_v7, 0.0 }
 0x239   :  { %v7027_v61 = vpop.eup %5582  ;;  %5594 = vpow2.f32 %v1199_v62  ;;  %v1227_v1 = vmul.f32 %v7021_v19, %v6781_v59  ;;  %v1312_v16 = vrot.slane %v1311_v53, 4  ;;  %v1320_v30 = vadd.f32 %v1319_v50, %v1318_v20 }
 0x23a   :  { %v7031_v24 = vpop.eup %5584  ;;  %v1228_v43 = vmul.f32 %v7027_v61, %v6795_v5  ;;  %v1327_v28 = vsel %vm241_vm0, %v1225_v12, 0.0  ;;  %v1328_v35 = vsel %vm241_vm0, %v1226_v21, 0.0  ;;  %5596 = vpow2.f32 %v1201_v2 }
 0x23b   :  { %v7038_v38 = vpop.eup %5586  ;;  %v1229_v37 = vmul.f32 %v7031_v24, %v6781_v59  ;;  %v1313_v15 = vadd.f32 %v1312_v16, %v1311_v53  ;;  %v1321_v57 = vrot.slane %v1320_v30, 4  ;;  %v1329_v14 = vadd.f32 %v1328_v35, %v1327_v28 }
 0x23c   :  { %v7042_v55 = vpop.eup %5588  ;;  %v1230_v3 = vmul.f32 %v7038_v38, %v6795_v5  ;;  %v1336_v47 = vsel %vm241_vm0, %v1227_v1, 0.0  ;;  %v1337_v6 = vsel %vm241_vm0, %v1228_v43, 0.0  ;;  %5598 = vpow2.f32 %v1203_v40 }
 0x23d   :  { %v7048_v29 = vpop.eup %5590  ;;  %v1231_v44 = vmul.f32 %v7042_v55, %v6781_v59  ;;  %v1322_v45 = vadd.f32 %v1321_v57, %v1320_v30  ;;  %v1338_v10 = vadd.f32 %v1337_v6, %v1336_v47  ;;  %v1330_v63 = vrot.slane %v1329_v14, 4 }
 0x23e   :  { %v7052_v25 = vpop.eup %5592  ;;  %v1232_v8 = vmul.f32 %v7048_v29, %v6795_v5  ;;  %v1314_v32 = vrot.slane %v1313_v15, 2  ;;  %v1345_v54 = vsel %vm241_vm0, %v1229_v37, 0.0  ;;  %v1346_v42 = vsel %vm241_vm0, %v1230_v3, 0.0 }
 0x23f   :  { %v7056_v33 = vpop.eup %5594  ;;  %v1339_v31 = vrot.slane %v1338_v10, 4  ;;  %v1323_v13 = vrot.slane %v1322_v45, 2  ;;  %v1331_v48 = vadd.f32 %v1330_v63, %v1329_v14  ;;  %v1354_v58 = vsel %vm241_vm0, %v1231_v44, 0.0 }
 0x240   :  { %v7060_v41 = vpop.eup %5596  ;;  %v1233_v46 = vmul.f32 %v7052_v25, %v6781_v59  ;;  %v1234_v9 = vmul.f32 %v7056_v33, %v6795_v5  ;;  %v1355_v51 = vsel %vm241_vm0, %v1232_v8, 0.0  ;;  %v1315_v18 = vadd.f32 %v1314_v32, %v1313_v15 }
 0x241   :  { %v1340_v52 = vadd.f32 %v1339_v31, %v1338_v10  ;;  %v1347_v36 = vadd.f32 %v1346_v42, %v1345_v54  ;;  %v1356_v56 = vadd.f32 %v1355_v51, %v1354_v58  ;;  %v1456_v62 = vrot.slane %v1455_v0, 4 }
 0x242   :  { %v7068_v26 = vpop.eup %5598  ;;  %v1235_v49 = vmul.f32 %v7060_v41, %v6781_v59  ;;  %v1324_v2 = vadd.f32 %v1323_v13, %v1322_v45  ;;  %v1332_v17 = vrot.slane %v1331_v48, 2  ;;  %v1363_v40 = vsel %vm241_vm0, %v1233_v46, 0.0 }
 0x243   :  { %v1236_v23 = vmul.f32 %v7068_v26, %v6795_v5  ;;  %v1364_v7 = vsel %vm241_vm0, %v1234_v9, 0.0  ;;  %v1316_v39 = vrot.slane %v1315_v18, 1  ;;  %v1341_v12 = vrot.slane %v1340_v52, 2 }
 0x244   :  { %v1348_v53 = vrot.slane %v1347_v36, 4  ;;  %v1462_v20 = vsel %vm241_vm0, %v7003_v34, 0.0  ;;  %v1357_v21 = vrot.slane %v1356_v56, 4  ;;  %v1457_v50 = vadd.f32 %v1456_v62, %v1455_v0 }
 0x245   :  { %v1463_v59 = vsel %vm241_vm0, %v7006_v11, 0.0  ;;  %v1325_v27 = vrot.slane %v1324_v2, 1  ;;  %v7080_v1 = vadd.f32 %v1332_v17, %v1331_v48  ;;  %v1365_v16 = vadd.f32 %v1364_v7, %v1363_v40 }
 0x246   :  { %v1372_v5 = vsel %vm241_vm0, %v1235_v49, 0.0  ;;  %v1373_v30 = vsel %vm241_vm0, %v1236_v23, 0.0  ;;  %v1458_v43 = vrot.slane %v1457_v50, 2  ;;  %v1464_v28 = vadd.f32 %v1463_v59, %v1462_v20  ;;  %v1649_v20 = vpop.f32.mrf.mxu3 }
 0x247   :  { %v1471_v35 = vsel %vm241_vm0, %v7011_v4, 0.0  ;;  %v7086_v22 = vadd.f32 %v1316_v39, %v1315_v18  ;;  %v7088_v34 = vadd.f32 %v1341_v12, %v1340_v52  ;;  %v7090_v37 = vadd.f32 %v1348_v53, %v1347_v36 }
 0x248   :  { %v1472_v11 = vsel %vm241_vm0, %v7016_v60, 0.0  ;;  %v7094_v15 = vadd.f32 %v1357_v21, %v1356_v56  ;;  %v1459_v57 = vadd.f32 %v1458_v43, %v1457_v50  ;;  %v1465_v3 = vrot.slane %v1464_v28, 4 }
 0x249   :  { %v1473_v14 = vadd.f32 %v1472_v11, %v1471_v35  ;;  %v7096_v47 = vadd.f32 %v1325_v27, %v1324_v2  ;;  %v1366_v6 = vrot.slane %v1365_v16, 4  ;;  %v1374_v44 = vadd.f32 %v1373_v30, %v1372_v5 }
 0x24a   :  { %v1480_v4 = vsel %vm241_vm0, %v7021_v19, 0.0  ;;  %v1334_v45 = vrot.slane %v7080_v1, 1  ;;  %v1466_v10 = vadd.f32 %v1465_v3, %v1464_v28  ;;  %v1481_v63 = vsel %vm241_vm0, %v7027_v61, 0.0 }
 0x24b   :  { %v1474_v8 = vrot.slane %v1473_v14, 4  ;;  %v1343_v60 = vrot.slane %v7088_v34, 1  ;;  %v1350_v32 = vrot.slane %v7090_v37, 2  ;;  %v1460_v31 = vrot.slane %v1459_v57, 1 }
 0x24c   :  { %v1482_v54 = vadd.f32 %v1481_v63, %v1480_v4  ;;  %v1359_v42 = vrot.slane %v7094_v15, 2  ;;  %v1467_v0 = vrot.slane %v1466_v10, 2  ;;  %v1489_v19 = vsel %vm241_vm0, %v7031_v24, 0.0 }
 0x24d   :  { %v1475_v13 = vadd.f32 %v1474_v8, %v1473_v14  ;;  %v7108_v48 = vadd.f32 %v1366_v6, %v1365_v16  ;;  %v1375_v58 = vrot.slane %v1374_v44, 4  ;;  %v1490_v61 = vsel %vm241_vm0, %v7038_v38, 0.0 }
 0x24e   :  { %v1483_v46 = vrot.slane %v1482_v54, 4  ;;  %v1468_v9 = vadd.f32 %v1467_v0, %v1466_v10  ;;  %v1491_v18 = vadd.f32 %v1490_v61, %v1489_v19  ;;  %v1498_v52 = vsel %vm241_vm0, %v7042_v55, 0.0 }
 0x24f   :  { %v1476_v51 = vrot.slane %v1475_v13, 2  ;;  %v1461_v36 = vadd.f32 %v1460_v31, %v1459_v57  ;;  %v1499_v62 = vsel %vm241_vm0, %v7048_v29, 0.0  ;;  %v1507_v24 = vsel %vm241_vm0, %v7052_v25, 0.0 }
 0x250   :  { %v1484_v56 = vadd.f32 %v1483_v46, %v1482_v54  ;;  %v1469_v49 = vrot.slane %v1468_v9, 1  ;;  %v1492_v17 = vrot.slane %v1491_v18, 4  ;;  %v1500_v23 = vadd.f32 %v1499_v62, %v1498_v52 }
 0x251   :  { %v1477_v2 = vadd.f32 %v1476_v51, %v1475_v13  ;;  %v1508_v38 = vsel %vm241_vm0, %v7056_v33, 0.0  ;;  %v1516_v7 = vsel %vm241_vm0, %v7060_v41, 0.0  ;;  %v1517_v55 = vsel %vm241_vm0, %v7068_v26, 0.0  ;;  %v8417_v41 = vld [vmem:[#allocation16_spill] sm:$0xff] }
 0x252   :  { %v1485_v40 = vrot.slane %v1484_v56, 2  ;;  %v1470_v39 = vadd.f32 %v1469_v49, %v1468_v9  ;;  %v1493_v29 = vadd.f32 %v1492_v17, %v1491_v18  ;;  %v1501_v53 = vrot.slane %v1500_v23, 4 }
 0x253   :  { %v1478_v12 = vrot.slane %v1477_v2, 1  ;;  %v1509_v21 = vadd.f32 %v1508_v38, %v1507_v24  ;;  %v1518_v50 = vadd.f32 %v1517_v55, %v1516_v7  ;;  %5600 = vrcp.f32 %v1461_v36 }
 0x254   :  { %v1486_v25 = vadd.f32 %v1485_v40, %v1484_v56  ;;  %v1494_v27 = vrot.slane %v1493_v29, 2  ;;  %v1502_v16 = vadd.f32 %v1501_v53, %v1500_v23  ;;  %5602 = vrcp.f32 %v1470_v39 }
 0x255   :  { %v1479_v59 = vadd.f32 %v1478_v12, %v1477_v2  ;;  %v1510_v5 = vrot.slane %v1509_v21, 4  ;;  %v1519_v30 = vrot.slane %v1518_v50, 4  ;;  %v7125_v43 = vadd.f32 %v1649_v20, %v8417_v41 }
 0x256   :  { %v1487_v33 = vrot.slane %v1486_v25, 1  ;;  %v1376_v26 = vadd.f32 %v1375_v58, %v1374_v44  ;;  %v1495_v28 = vadd.f32 %v1494_v27, %v1493_v29  ;;  %v1503_v35 = vrot.slane %v1502_v16, 2 }
 0x257   :  { %5604 = vrcp.f32 %v1479_v59  ;;  %v1511_v57 = vadd.f32 %v1510_v5, %v1509_v21  ;;  %v1520_v3 = vadd.f32 %v1519_v30, %v1518_v50  ;;  %v1665_v14 = vsel %vm241_vm0, %v7125_v43, 0.0 }
 0x258   :  { %v1488_v11 = vadd.f32 %v1487_v33, %v1486_v25  ;;  %v1335_v6 = vadd.f32 %v1334_v45, %v7080_v1  ;;  %v1351_v4 = vadd.f32 %v1350_v32, %v7090_v37  ;;  %v1496_v10 = vrot.slane %v1495_v28, 1  ;;  %1666 = vadd.xlane.f32.xlu2 %v1665_v14 }
 0x259   :  { %v1504_v8 = vadd.f32 %v1503_v35, %v1502_v16  ;;  %v5601_v63 = vpop.eup %5600  ;;  %v1360_v31 = vadd.f32 %v1359_v42, %v7094_v15  ;;  %v1512_v44 = vrot.slane %v1511_v57, 2  ;;  %v1521_v54 = vrot.slane %v1520_v3, 2 }
 0x25a   :  { %5606 = vrcp.f32 %v1488_v11  ;;  %v5603_v0 = vpop.eup %5602  ;;  %v1368_v13 = vrot.slane %v7108_v48, 2  ;;  %v1377_v19 = vrot.slane %v1376_v26, 2  ;;  %v1497_v58 = vadd.f32 %v1496_v10, %v1495_v28  ;;  %v8419_v28 = vld [vmem:[#allocation18_spill] sm:$0xff] }
 0x25b   :  { %v1505_v46 = vrot.slane %v1504_v8, 1  ;;  %v1513_v61 = vadd.f32 %v1512_v44, %v1511_v57  ;;  %v1522_v9 = vadd.f32 %v1521_v54, %v1520_v3  ;;  %v1549_v1 = vmul.f32 %v5601_v63, %v7086_v22 }
 0x25c   :  { %v1550_v37 = vmul.f32 %v5603_v0, %v7096_v47  ;;  %v1352_v32 = vrot.slane %v1351_v4, 1  ;;  %5608 = vrcp.f32 %v1497_v58  ;;  %v1344_v36 = vadd.f32 %v1343_v60, %v7088_v34 }
 0x25d   :  { %v5605_v45 = vpop.eup %5604  ;;  %v1506_v51 = vadd.f32 %v1505_v46, %v1504_v8  ;;  %v1514_v15 = vrot.slane %v1513_v61, 1  ;;  %v1523_v42 = vrot.slane %v1522_v9, 1  ;;  %v1361_v56 = vrot.slane %v1360_v31, 1 }
 0x25e   :  { %v1551_v18 = vmul.f32 %v5605_v45, %v1335_v6  ;;  %v1617_v52 = vsel %vm1573_vm3, %v1550_v37, %v1549_v1  ;;  %v1369_v62 = vadd.f32 %v1368_v13, %v7108_v48  ;;  %v1378_v24 = vadd.f32 %v1377_v19, %v1376_v26  ;;  %v8418_v48 = vld [vmem:[#allocation17_spill] sm:$0xff]  ;;  %v8421_v1 = vld [vmem:[#allocation19_spill] sm:$0xff] }
 0x25f   :  { %5610 = vrcp.f32 %v1506_v51  ;;  %v1515_v47 = vadd.f32 %v1514_v15, %v1513_v61  ;;  %v1524_v49 = vadd.f32 %v1523_v42, %v1522_v9  ;;  %v1353_v23 = vadd.f32 %v1352_v32, %v1351_v4 }
 0x260   :  { %v5607_v22 = vpop.eup %5606  ;;  %v1618_v2 = vsel %vm1575_vm4, %v1551_v18, %v1617_v52  ;;  %v1370_v38 = vrot.slane %v1369_v62, 1  ;;  %v1362_v34 = vadd.f32 %v1361_v56, %v1360_v31  ;;  %v1379_v60 = vrot.slane %v1378_v24, 1  ;;  %v237_v18 = vld [vmem:[#allocation10 + $0x20] sm:$0xff] }
 0x261   :  { %v1552_v17 = vmul.f32 %v5607_v22, %v1344_v36  ;;  %5612 = vrcp.f32 %v1515_v47  ;;  %v6091_v57 = vmov 8.0   ;;  %1792 = vmatpush.msrb.mxu0 %v237_v18 }
 0x262   :  { %v5609_v40 = vpop.eup %5608  ;;  %5614 = vrcp.f32 %v1524_v49  ;;  %v1371_v21 = vadd.f32 %v1370_v38, %v1369_v62  ;;  %v1380_v59 = vadd.f32 %v1379_v60, %v1378_v24 }
 0x263   :  { %v1619_v7 = vsel %vm1577_vm5, %v1552_v17, %v1618_v2  ;;  %v1553_v39 = vmul.f32 %v5609_v40, %v1353_v23  ;;  %5616 = vrcp.f32 %v6091_v57 }
 0x265   :  { %v1652_v55 = vpop.f32.mrf.mxu3  ;;  %v5611_v29 = vpop.eup %5610  ;;  %v1620_v20 = vsel %vm1579_vm6, %v1553_v39, %v1619_v7 }
 0x266   :  { %v1662_v12 = vadd.f32 %v1652_v55, %v8418_v48  ;;  %v1554_v53 = vmul.f32 %v5611_v29, %v1362_v34 }
 0x267   :  { %v5613_v50 = vpop.eup %5612 }
 0x268   :  { %v1668_v25 = vsel %vm241_vm0, %v1662_v12, 0.0  ;;  %v1621_v27 = vsel %vm1581_vm7, %v1554_v53, %v1620_v20  ;;  %v5615_v16 = vpop.eup %5614  ;;  %v1555_v33 = vmul.f32 %v5613_v50, %v1371_v21 }
 0x269   :  { %1669 = vadd.xlane.f32.xlu2 %v1668_v25  ;;  %v1556_v5 = vmul.f32 %v5615_v16, %v1380_v59  ;;  %v5617_v14 = vpop.eup %5616 }
 0x26a   :  { %v1622_v30 = vsel %vm1583_vm8, %v1555_v33, %v1621_v27  ;;  %v1678_v6 = vmul.f32 8.0, %v5617_v14  ;;  %vm1682_vm12 = vweird.f32 %v5617_v14 }
 0x26b   :  { %v1623_v41 = vsel %vm8389_vm9, %v1556_v5, %v1622_v30  ;;  %v5414_v30 = vld [vmem:[#allocation10 + $0x30] ss:$0 sm:$0xff] }
 0x26c   :  { %5332 = vmatmul.msk.f32.gmra.mxu3 %vm241_vm0, %v1623_v41  ;;  %v1679_v4 = vsub.f32 1.0, %v1678_v6 }
 0x26e   :  { %v1680_v10 = vmul.f32 %v5617_v14, %v1679_v4  ;;  %v238_v4 = vld [vmem:[#allocation10 + $0x28] sm:$0x1] }
 0x270   :  { %v1681_v8 = vadd.f32 %v5617_v14, %v1680_v10 }
 0x272   :  { %v7151_v31 = vsel %vm1682_vm12, %v5617_v14, %v1681_v8 }
 0x273   :  { %8420 = vst [vmem:[#allocation20_spill] sm:$0xff] %v7151_v31 }
 0x2b1   :  { %v1655_v26 = vpop.f32.mrf.mxu3 }
 0x2b2   :  { %v1663_v35 = vadd.f32 %v1655_v26, %v8419_v28 }
 0x2b4   :  { %v1671_v11 = vsel %vm241_vm0, %v1663_v35, 0.0 }
 0x2b5   :  { %1672 = vadd.xlane.f32.xlu2 %v1671_v11 }
 0x2cb   :  { %v1667_v3 = vpop.xlane.xlu2 %1666 }
 0x2cc   :  { %v1684_v44 = vmul.f32 %v7151_v31, %v1667_v3 }
 0x2ce   :  { %v1688_v0 = vsub.f32 %v7125_v43, %v1684_v44 }
 0x2d0   :  { %v1692_v19 = vmul.f32 %v1688_v0, %v1688_v0 }
 0x2d2   :  { %v1696_v46 = vsel %vm241_vm0, %v1692_v19, 0.0 }
 0x2d3   :  { %1697 = vadd.xlane.f32.xlu1 %v1696_v46 }
 0x2dc   :  { %v1670_v63 = vpop.xlane.xlu2 %1669 }
 0x2dd   :  { %v1685_v54 = vmul.f32 %v7151_v31, %v1670_v63 }
 0x2df   :  { %v7156_v13 = vsub.f32 %v1662_v12, %v1685_v54 }
 0x2e1   :  { %v1693_v58 = vmul.f32 %v7156_v13, %v7156_v13 }
 0x2e3   :  { %v1699_v61 = vsel %vm241_vm0, %v1693_v58, 0.0 }
 0x2e4   :  { %1700 = vadd.xlane.f32.xlu2 %v1699_v61 }
 0x2ef   :  { %v1658_v9 = vpop.f32.mrf.mxu3 }
 0x2f0   :  { %v1664_v37 = vadd.f32 %v1658_v9, %v8421_v1 }
 0x2f2   :  { %v1674_v45 = vsel %vm241_vm0, %v1664_v37, 0.0 }
 0x2f3   :  { %1675 = vadd.xlane.f32.xlu0 %v1674_v45 }
 0x328   :  { %v1673_v32 = vpop.xlane.xlu2 %1672 }
 0x329   :  { %v1686_v43 = vmul.f32 %v7151_v31, %v1673_v32 }
 0x32b   :  { %v1690_v51 = vsub.f32 %v1663_v35, %v1686_v43 }
 0x32d   :  { %v1694_v15 = vmul.f32 %v1690_v51, %v1690_v51 }
 0x32f   :  { %v1702_v42 = vsel %vm241_vm0, %v1694_v15, 0.0 }
 0x330   :  { %1703 = vadd.xlane.f32.xlu2 %v1702_v42 }
 0x346   :  { %v1698_v24 = vpop.xlane.xlu1 %1697 }
 0x347   :  { %v1708_v49 = vmul.f32 %v1698_v24, %v7151_v31 }
 0x349   :  { %v1712_v2 = vadd.f32 1e-05, %v1708_v49 }
 0x34b   :  { %5618 = vrsqrt.f32 %v1712_v2  ;;  %vm1722_vm14 = vweird.f32 %v1712_v2 }
 0x351   :  { %v5619_v38 = vpop.eup %5618 }
 0x352   :  { %v1717_v34 = vmul.f32 %v5619_v38, %v1712_v2  ;;  %vm1723_vm13 = vweird.f32 %v5619_v38 }
 0x353   :  { %vm1724_vm15 = vmor %vm1722_vm14, %vm1723_vm13  ;;  %vm1823_vm13 = vcmask 1040384  }
 0x354   :  { %v1718_v60 = vmul.f32 %v5619_v38, %v1717_v34  ;;  %5337 = vmatpush.msk.msrb.mxu1 %vm1823_vm13, %v238_v4 }
 0x356   :  { %v1719_v48 = vmul.f32 0.5, %v1718_v60 }
 0x357   :  { %v1701_v47 = vpop.xlane.xlu2 %1700 }
 0x358   :  { %v1709_v23 = vmul.f32 %v1701_v47, %v7151_v31  ;;  %v1720_v53 = vsub.f32 1.5, %v1719_v48 }
 0x35a   :  { %v1713_v7 = vadd.f32 1e-05, %v1709_v23  ;;  %v1721_v21 = vmul.f32 %v5619_v38, %v1720_v53 }
 0x35c   :  { %5620 = vrsqrt.f32 %v1713_v7  ;;  %v1725_v27 = vsel %vm1724_vm15, %v5619_v38, %v1721_v21  ;;  %vm1732_vm2 = vweird.f32 %v1713_v7  ;;  %v1987_v21 = vld [vmem:[#allocation8 + $0x8] sm:$0xff] }
 0x35d   :  { %v1756_v5 = vmul.f32 %v1725_v27, %v1688_v0  ;;  %1988 = vxpose.xlu1.b32.start.end [1/1] (short) (narrow) %v1987_v21, 8 }
 0x35f   :  { %v1761_v26 = vmul.f32 %v5414_v30, %v1756_v5 }
 0x361   :  { %5333 = vmatmul.msk.f32.vlgmr.msrb.gmra.mxu0 %vm241_vm0, %v1761_v26 }
 0x362   :  { %v5621_v39 = vpop.eup %5620 }
 0x363   :  { %v1727_v29 = vmul.f32 %v5621_v39, %v1713_v7  ;;  %vm1733_vm1 = vweird.f32 %v5621_v39 }
 0x364   :  { %vm1734_vm11 = vmor %vm1732_vm2, %vm1733_vm1  ;;  %vm1810_vm1 = vcmask 7168  }
 0x365   :  { %v1728_v25 = vmul.f32 %v5621_v39, %v1727_v29 }
 0x366   :  { %v1676_v52 = vpop.xlane.xlu0 %1675 }
 0x367   :  { %v1687_v36 = vmul.f32 %v7151_v31, %v1676_v52  ;;  %v1729_v59 = vmul.f32 0.5, %v1728_v25 }
 0x369   :  { %v7167_v56 = vsub.f32 %v1664_v37, %v1687_v36  ;;  %v1730_v33 = vsub.f32 1.5, %v1729_v59 }
 0x36b   :  { %v1695_v62 = vmul.f32 %v7167_v56, %v7167_v56  ;;  %v1731_v28 = vmul.f32 %v5621_v39, %v1730_v33 }
 0x36d   :  { %v1705_v22 = vsel %vm241_vm0, %v1695_v62, 0.0  ;;  %v1735_v11 = vsel %vm1734_vm11, %v5621_v39, %v1731_v28 }
 0x36e   :  { %1706 = vadd.xlane.f32.xlu2 %v1705_v22  ;;  %v1757_v57 = vmul.f32 %v1735_v11, %v7156_v13 }
 0x370   :  { %v1762_v14 = vmul.f32 %v5414_v30, %v1757_v57 }
 0x372   :  { %5334 = vmatmul.msk.f32.gmra.mxu0 %vm241_vm0, %v1762_v14 }
 0x3a3   :  { %v1704_v17 = vpop.xlane.xlu2 %1703 }
 0x3a4   :  { %v1710_v40 = vmul.f32 %v1704_v17, %v7151_v31 }
 0x3a6   :  { %v1714_v55 = vadd.f32 1e-05, %v1710_v40 }
 0x3a8   :  { %5622 = vrsqrt.f32 %v1714_v55  ;;  %vm1742_vm12 = vweird.f32 %v1714_v55 }
 0x3ae   :  { %v5623_v12 = vpop.eup %5622 }
 0x3af   :  { %v1737_v20 = vmul.f32 %v5623_v12, %v1714_v55  ;;  %vm1743_vm10 = vweird.f32 %v5623_v12 }
 0x3b0   :  { %vm1744_vm9 = vmor %vm1742_vm12, %vm1743_vm10 }
 0x3b1   :  { %v1738_v50 = vmul.f32 %v5623_v12, %v1737_v20 }
 0x3b3   :  { %v1739_v16 = vmul.f32 0.5, %v1738_v50 }
 0x3b5   :  { %v1740_v41 = vsub.f32 1.5, %v1739_v16 }
 0x3b7   :  { %v1741_v35 = vmul.f32 %v5623_v12, %v1740_v41 }
 0x3b9   :  { %v1745_v3 = vsel %vm1744_vm9, %v5623_v12, %v1741_v35 }
 0x3ba   :  { %v1758_v6 = vmul.f32 %v1745_v3, %v1690_v51 }
 0x3bc   :  { %v1763_v10 = vmul.f32 %v5414_v30, %v1758_v6 }
 0x3be   :  { %5335 = vmatmul.msk.f32.gmra.mxu0 %vm241_vm0, %v1763_v10 }
 0x3de   :  { %v1794_v37 = vpop.f32.mrf.mxu0 }
 0x3df   :  { %v1806_v45 = vmax.f32 %v1794_v37, 0.0 }
 0x3e1   :  { %v1707_v8 = vpop.xlane.xlu2 %1706  ;;  %5338 = vmatmul.msk.f32.vlgmr.msrb.gmra.mxu1 %vm1810_vm1, %v1806_v45  ;;  %v2021_v45 = vld [vmem:[#allocation10 + $0x48] sm:$0xff] }
 0x3e2   :  { %v1711_v63 = vmul.f32 %v1707_v8, %v7151_v31  ;;  %2084 = vmatpush.msrb.mxu3 %v2021_v45 }
 0x3e4   :  { %v1715_v44 = vadd.f32 1e-05, %v1711_v63 }
 0x3e6   :  { %5624 = vrsqrt.f32 %v1715_v44  ;;  %vm1752_vm14 = vweird.f32 %v1715_v44 }
 0x3ec   :  { %v5625_v54 = vpop.eup %5624 }
 0x3ed   :  { %v1747_v0 = vmul.f32 %v5625_v54, %v1715_v44  ;;  %vm1753_vm9 = vweird.f32 %v5625_v54 }
 0x3ee   :  { %vm1754_vm15 = vmor %vm1752_vm14, %vm1753_vm9 }
 0x3ef   :  { %v1748_v13 = vmul.f32 %v5625_v54, %v1747_v0  ;;  %v1797_v32 = vpop.f32.mrf.mxu0 }
 0x3f0   :  { %v1807_v43 = vmax.f32 %v1797_v32, 0.0 }
 0x3f1   :  { %v1749_v19 = vmul.f32 0.5, %v1748_v13 }
 0x3f2   :  { %5339 = vmatmul.msk.f32.gmra.mxu1 %vm1810_vm1, %v1807_v43 }
 0x3f3   :  { %v1750_v58 = vsub.f32 1.5, %v1749_v19 }
 0x3f5   :  { %v1751_v46 = vmul.f32 %v5625_v54, %v1750_v58 }
 0x3f7   :  { %v1755_v61 = vsel %vm1754_vm15, %v5625_v54, %v1751_v46 }
 0x3f8   :  { %v1759_v9 = vmul.f32 %v1755_v61, %v7167_v56 }
 0x3fa   :  { %v1764_v1 = vmul.f32 %v5414_v30, %v1759_v9 }
 0x3fc   :  { %5336 = vmatmul.msk.f32.gmra.mxu0 %vm241_vm0, %v1764_v1 }
 0x401   :  { %v7221_v21 = vpop.trf.xlu1 }
 0x402   :  { %8423 = vst [vmem:[#allocation16_spill] sm:$0xff] %v7221_v21 }
 0x43b   :  { %v1800_v51 = vpop.f32.mrf.mxu0 }
 0x43c   :  { %v1808_v15 = vmax.f32 %v1800_v51, 0.0 }
 0x43e   :  { %5340 = vmatmul.msk.f32.gmra.mxu1 %vm1810_vm1, %v1808_v15 }
 0x45e   :  { %v1844_v52 = vpop.f32.mrf.mxu1 }
 0x45f   :  { %v1856_v36 = vadd.f32 %v1844_v52, %v1761_v26  ;;  %v1953_v26 = vld [vmem:[#allocation8] sm:$0xff] }
 0x461   :  { %v1860_v56 = vsel %vm241_vm0, %v1856_v36, 0.0 }
 0x462   :  { %1861 = vadd.xlane.f32.xlu2 %v1860_v56 }
 0x46f   :  { %v1847_v62 = vpop.f32.mrf.mxu1 }
 0x470   :  { %v1857_v22 = vadd.f32 %v1847_v62, %v1762_v14 }
 0x472   :  { %v1863_v24 = vsel %vm241_vm0, %v1857_v22, 0.0 }
 0x473   :  { %1864 = vadd.xlane.f32.xlu2 %v1863_v24 }
 0x479   :  { %v1803_v42 = vpop.f32.mrf.mxu0 }
 0x47a   :  { %v1809_v18 = vmax.f32 %v1803_v42, 0.0 }
 0x47c   :  { %5341 = vmatmul.msk.f32.gmra.mxu1 %vm1810_vm1, %v1809_v18 }
 0x4bb   :  { %v1850_v47 = vpop.f32.mrf.mxu1 }
 0x4bc   :  { %v1858_v49 = vadd.f32 %v1850_v47, %v1763_v10  ;;  %v2020_v47 = vld [vmem:[#allocation10 + $0x40] sm:$0xff] }
 0x4bd   :  { %2049 = vmatpush.msrb.mxu2 %v2020_v47 }
 0x4be   :  { %v1866_v2 = vsel %vm241_vm0, %v1858_v49, 0.0 }
 0x4bf   :  { %1867 = vadd.xlane.f32.xlu2 %v1866_v2 }
 0x4d5   :  { %v1862_v38 = vpop.xlane.xlu2 %1861 }
 0x4d6   :  { %v1872_v7 = vmul.f32 %v1862_v38, %v7151_v31 }
 0x4d8   :  { %v1876_v55 = vsub.f32 %v1856_v36, %v1872_v7 }
 0x4da   :  { %v1880_v34 = vmul.f32 %v1876_v55, %v1876_v55 }
 0x4dc   :  { %v1884_v60 = vsel %vm241_vm0, %v1880_v34, 0.0 }
 0x4e6   :  { %v1865_v39 = vpop.xlane.xlu2 %1864 }
 0x4e7   :  { %v1873_v48 = vmul.f32 %v1865_v39, %v7151_v31 }
 0x4e9   :  { %v1877_v12 = vsub.f32 %v1857_v22, %v1873_v48 }
 0x4eb   :  { %v1881_v29 = vmul.f32 %v1877_v12, %v1877_v12 }
 0x4ed   :  { %v1887_v53 = vsel %vm241_vm0, %v1881_v29, 0.0 }
 0x4f9   :  { %v1853_v17 = vpop.f32.mrf.mxu1 }
 0x4fa   :  { %v1859_v23 = vadd.f32 %v1853_v17, %v1764_v1  ;;  %v5415_v1 = vld [vmem:[#allocation10 + $0x38] ss:$0 sm:$0xff] }
 0x4fc   :  { %v1869_v40 = vsel %vm241_vm0, %v1859_v23, 0.0 }
 0x4fd   :  { %1870 = vadd.xlane.f32.xlu2 %v1869_v40 }
 0x505   :  { %1885 = vadd.xlane.f32.xlu2 %v1884_v60 }
 0x50d   :  { %1888 = vadd.xlane.f32.xlu2 %v1887_v53 }
 0x532   :  { %v1868_v20 = vpop.xlane.xlu2 %1867 }
 0x533   :  { %v1874_v25 = vmul.f32 %v1868_v20, %v7151_v31  ;;  %v2022_v20 = vld [vmem:[#allocation10 + $0x50] sm:$0xff] }
 0x534   :  { %2113 = vmatpush.msra.mxu2 %v2022_v20 }
 0x535   :  { %v7196_v50 = vsub.f32 %v1858_v49, %v1874_v25 }
 0x537   :  { %v1882_v59 = vmul.f32 %v7196_v50, %v7196_v50 }
 0x539   :  { %v1890_v27 = vsel %vm241_vm0, %v1882_v59, 0.0 }
 0x53a   :  { %1891 = vadd.xlane.f32.xlu2 %v1890_v27 }
 0x570   :  { %v1871_v16 = vpop.xlane.xlu2 %1870 }
 0x571   :  { %v1875_v33 = vmul.f32 %v1871_v16, %v7151_v31 }
 0x573   :  { %v7202_v5 = vsub.f32 %v1859_v23, %v1875_v33 }
 0x575   :  { %v1883_v30 = vmul.f32 %v7202_v5, %v7202_v5 }
 0x577   :  { %v1893_v41 = vsel %vm241_vm0, %v1883_v30, 0.0 }
 0x578   :  { %1894 = vadd.xlane.f32.xlu2 %v1893_v41  ;;  %v1886_v28 = vpop.xlane.xlu2 %1885 }
 0x579   :  { %v1896_v35 = vmul.f32 %v1886_v28, %v7151_v31 }
 0x57b   :  { %v1900_v11 = vadd.f32 1e-05, %v1896_v35 }
 0x57d   :  { %5626 = vrsqrt.f32 %v1900_v11  ;;  %vm1910_vm10 = vweird.f32 %v1900_v11 }
 0x580   :  { %v1889_v57 = vpop.xlane.xlu2 %1888 }
 0x581   :  { %v1897_v3 = vmul.f32 %v1889_v57, %v7151_v31 }
 0x583   :  { %v5627_v14 = vpop.eup %5626  ;;  %v1901_v6 = vadd.f32 1e-05, %v1897_v3 }
 0x584   :  { %v1905_v4 = vmul.f32 %v5627_v14, %v1900_v11  ;;  %vm1911_vm2 = vweird.f32 %v5627_v14 }
 0x585   :  { %5628 = vrsqrt.f32 %v1901_v6  ;;  %vm1912_vm11 = vmor %vm1910_vm10, %vm1911_vm2  ;;  %vm1920_vm9 = vweird.f32 %v1901_v6 }
 0x586   :  { %v1906_v10 = vmul.f32 %v5627_v14, %v1905_v4 }
 0x588   :  { %v1907_v8 = vmul.f32 0.5, %v1906_v10 }
 0x58a   :  { %v1908_v54 = vsub.f32 1.5, %v1907_v8 }
 0x58b   :  { %v5629_v0 = vpop.eup %5628 }
 0x58c   :  { %v1909_v19 = vmul.f32 %v5627_v14, %v1908_v54  ;;  %v1915_v58 = vmul.f32 %v5629_v0, %v1901_v6  ;;  %vm1921_vm12 = vweird.f32 %v5629_v0 }
 0x58d   :  { %vm1922_vm14 = vmor %vm1920_vm9, %vm1921_vm12 }
 0x58e   :  { %v1913_v46 = vsel %vm1912_vm11, %v5627_v14, %v1909_v19  ;;  %v1916_v61 = vmul.f32 %v5629_v0, %v1915_v58 }
 0x58f   :  { %v1944_v9 = vmul.f32 %v1913_v46, %v1876_v55 }
 0x590   :  { %v1917_v37 = vmul.f32 0.5, %v1916_v61 }
 0x591   :  { %v1949_v32 = vmul.f32 %v5415_v1, %v1944_v9 }
 0x592   :  { %v1918_v43 = vsub.f32 1.5, %v1917_v37 }
 0x593   :  { %5344 = vmatmul.msk.f32.vlgmr.msrb.gmra.mxu3 %vm241_vm0, %v1949_v32 }
 0x594   :  { %v1919_v15 = vmul.f32 %v5629_v0, %v1918_v43 }
 0x596   :  { %v1923_v52 = vsel %vm1922_vm14, %v5629_v0, %v1919_v15 }
 0x597   :  { %v1945_v36 = vmul.f32 %v1923_v52, %v1877_v12 }
 0x599   :  { %v1950_v62 = vmul.f32 %v5415_v1, %v1945_v36 }
 0x59b   :  { %5345 = vmatmul.msk.f32.gmra.mxu3 %vm241_vm0, %v1950_v62 }
 0x5a1   :  { %1954 = vxpose.xlu2.b32.start.end [1/1] (short) (narrow) %v1953_v26, 8 }
 0x5ad   :  { %v1892_v63 = vpop.xlane.xlu2 %1891 }
 0x5ae   :  { %v1898_v44 = vmul.f32 %v1892_v63, %v7151_v31 }
 0x5b0   :  { %v1902_v13 = vadd.f32 1e-05, %v1898_v44 }
 0x5b2   :  { %5630 = vrsqrt.f32 %v1902_v13  ;;  %vm1930_vm2 = vweird.f32 %v1902_v13 }
 0x5b8   :  { %v5631_v51 = vpop.eup %5630 }
 0x5b9   :  { %v1925_v42 = vmul.f32 %v5631_v51, %v1902_v13  ;;  %vm1931_vm15 = vweird.f32 %v5631_v51 }
 0x5ba   :  { %vm1932_vm10 = vmor %vm1930_vm2, %vm1931_vm15  ;;  %vm8432_vm2 = vcmask 1047559  }
 0x5bb   :  { %v1926_v18 = vmul.f32 %v5631_v51, %v1925_v42 }
 0x5bd   :  { %v1927_v56 = vmul.f32 0.5, %v1926_v18 }
 0x5bf   :  { %v1928_v22 = vsub.f32 1.5, %v1927_v56 }
 0x5c1   :  { %v1929_v24 = vmul.f32 %v5631_v51, %v1928_v22 }
 0x5c3   :  { %v1933_v49 = vsel %vm1932_vm10, %v5631_v51, %v1929_v24  ;;  %vm8433_vm10 = vmmov %vm8432_vm2 }
 0x5c4   :  { %v1946_v2 = vmul.f32 %v1933_v49, %v7196_v50 }
 0x5c6   :  { %v1951_v17 = vmul.f32 %v5415_v1, %v1946_v2 }
 0x5c8   :  { %5346 = vmatmul.msk.f32.gmra.mxu3 %vm241_vm0, %v1951_v17 }
 0x5eb   :  { %v1895_v23 = vpop.xlane.xlu2 %1894 }
 0x5ec   :  { %v1899_v40 = vmul.f32 %v1895_v23, %v7151_v31 }
 0x5ee   :  { %v1903_v38 = vadd.f32 1e-05, %v1899_v40 }
 0x5f0   :  { %5632 = vrsqrt.f32 %v1903_v38  ;;  %vm1940_vm12 = vweird.f32 %v1903_v38 }
 0x5f6   :  { %v5633_v7 = vpop.eup %5632 }
 0x5f7   :  { %v1935_v55 = vmul.f32 %v5633_v7, %v1903_v38  ;;  %vm1941_vm11 = vweird.f32 %v5633_v7 }
 0x5f8   :  { %vm1942_vm9 = vmor %vm1940_vm12, %vm1941_vm11 }
 0x5f9   :  { %v1936_v34 = vmul.f32 %v5633_v7, %v1935_v55 }
 0x5fb   :  { %v1937_v60 = vmul.f32 0.5, %v1936_v34 }
 0x5fd   :  { %v1938_v39 = vsub.f32 1.5, %v1937_v60 }
 0x5ff   :  { %v1939_v48 = vmul.f32 %v5633_v7, %v1938_v39 }
 0x601   :  { %v1943_v12 = vsel %vm1942_vm9, %v5633_v7, %v1939_v48 }
 0x602   :  { %v1947_v29 = vmul.f32 %v1943_v12, %v7202_v5 }
 0x604   :  { %v1952_v53 = vmul.f32 %v5415_v1, %v1947_v29 }
 0x606   :  { %5347 = vmatmul.msk.f32.gmra.mxu3 %vm241_vm0, %v1952_v53 }
 0x616   :  { %v7229_v50 = vpop.f32.mrf.mxu3 }
 0x617   :  { %v2127_v5 = vsel %vm241_vm0, %v7229_v50, -inf  ;;  %v2136_v30 = vsel %vm241_vm0, %v7229_v50, inf }
 0x61e   :  { %v7231_v59 = vpop.f32.mrf.mxu3 }
 0x61f   :  { %v2128_v27 = vsel %vm241_vm0, %v7231_v59, -inf  ;;  %v2137_v16 = vsel %vm241_vm0, %v7231_v59, inf }
 0x620   :  { %v2129_v41 = vmax.f32 %v2127_v5, %v2128_v27  ;;  %v2138_v26 = vmin.f32 %v2136_v30, %v2137_v16 }
 0x622   :  { %v2130_v28 = vrot.slane %v2129_v41, 4  ;;  %v2139_v35 = vrot.slane %v2138_v26, 4 }
 0x624   :  { %v2131_v57 = vmax.f32 %v2129_v41, %v2130_v28  ;;  %v2140_v3 = vmin.f32 %v2138_v26, %v2139_v35 }
 0x626   :  { %v2132_v6 = vrot.slane %v2131_v57, 2  ;;  %v2141_v4 = vrot.slane %v2140_v3, 2 }
 0x628   :  { %v2133_v44 = vmax.f32 %v2131_v57, %v2132_v6  ;;  %v2142_v54 = vmin.f32 %v2140_v3, %v2141_v4 }
 0x62a   :  { %v2134_v58 = vrot.slane %v2133_v44, 1  ;;  %v2143_v46 = vrot.slane %v2142_v54, 1 }
 0x62c   :  { %v2135_v1 = vmax.f32 %v2133_v44, %v2134_v58  ;;  %v2144_v37 = vmin.f32 %v2142_v54, %v2143_v46 }
 0x63a   :  { %v7217_v25 = vpop.trf.xlu2 }
 0x63b   :  { %8422 = vst [vmem:[#allocation21_spill] sm:$0xff] %v7217_v25  ;;  %5342 = vmatmul.msk.f32.vlgmr.msrb.gmra.mxu2 %vm241_vm0, %v7217_v25 }
 0x643   :  { %5343 = vmatmul.msk.f32.gmra.mxu2 %vm241_vm0, %v7221_v21 }
 0x64b   :  { %5348 = vmatmul.msk.f32.vlgmr.msra.gmra.mxu2 %vm241_vm0, %v1949_v32  ;;  %v7237_v33 = vpop.f32.mrf.mxu3 }
 0x64c   :  { %8424 = vst [vmem:[#allocation17_spill] sm:$0xff] %v7237_v33  ;;  %v2437_v10 = vsel %vm241_vm0, %v7237_v33, -inf  ;;  %v2446_v0 = vsel %vm241_vm0, %v7237_v33, inf }
 0x653   :  { %5349 = vmatmul.msk.f32.gmra.mxu2 %vm241_vm0, %v1950_v62 }
 0x65b   :  { %5350 = vmatmul.msk.f32.gmra.mxu2 %vm241_vm0, %v1951_v17 }
 0x663   :  { %5351 = vmatmul.msk.f32.gmra.mxu2 %vm241_vm0, %v1952_v53 }
 0x689   :  { %v7243_v11 = vpop.f32.mrf.mxu3 }
 0x68a   :  { %v2438_v14 = vsel %vm241_vm0, %v7243_v11, -inf  ;;  %v2447_v63 = vsel %vm241_vm0, %v7243_v11, inf }
 0x68b   :  { %v2439_v8 = vmax.f32 %v2437_v10, %v2438_v14  ;;  %v2448_v19 = vmin.f32 %v2446_v0, %v2447_v63  ;;  %v2023_v10 = vld [vmem:[#allocation10 + $0x58] sm:$0xff] }
 0x68c   :  { %2796 = vmatpush.msra.mxu0 %v2023_v10 }
 0x68d   :  { %v2440_v13 = vrot.slane %v2439_v8, 4  ;;  %v2449_v9 = vrot.slane %v2448_v19, 4 }
 0x68f   :  { %v2441_v61 = vmax.f32 %v2439_v8, %v2440_v13  ;;  %v2450_v32 = vmin.f32 %v2448_v19, %v2449_v9 }
 0x691   :  { %v2442_v45 = vrot.slane %v2441_v61, 2  ;;  %v2451_v38 = vrot.slane %v2450_v32, 2 }
 0x693   :  { %v7255_v40 = vmax.f32 %v2441_v61, %v2442_v45  ;;  %v2452_v0 = vmin.f32 %v2450_v32, %v2451_v38 }
 0x695   :  { %v2444_v46 = vrot.slane %v7255_v40, 1 }
 0x6be   :  { %v2051_v43 = vpop.f32.mrf.mxu2 }
 0x6bf   :  { %vm2145_vm14 = vcmp.gt.f32.partialorder %v2051_v43, 0.0  ;;  %v2146_v51 = vmul.f32 %v2135_v1, %v2051_v43  ;;  %v2147_v15 = vmul.f32 %v2144_v37, %v2051_v43  ;;  %v2150_v42 = vrot.slane %v2051_v43, 1 }
 0x6c0   :  { %v2151_v18 = vrot.slane %v2051_v43, 2  ;;  %v2152_v52 = vrot.slane %v2051_v43, 3  ;;  %v2153_v36 = vrot.slane %v2051_v43, 4  ;;  %v2154_v56 = vrot.slane %v2051_v43, 5 }
 0x6c1   :  { %v2155_v62 = vrot.slane %v2051_v43, 6  ;;  %v2156_v22 = vrot.slane %v2051_v43, 7  ;;  %v2157_v24 = vperm.slane %v2051_v43, 0  ;;  %v7253_v47 = vsel %vm2145_vm14, %v2146_v51, %v2147_v15 }
 0x6c2   :  { %v2158_v49 = vperm.slane %v2150_v42, 0  ;;  %v2159_v2 = vperm.slane %v2151_v18, 0  ;;  %v2160_v17 = vperm.slane %v2152_v52, 0  ;;  %v2161_v23 = vperm.slane %v2153_v36, 0 }
 0x6c3   :  { %v2162_v7 = vperm.slane %v2154_v56, 0  ;;  %v7257_v55 = vperm.slane %v2155_v62, 0  ;;  %v7259_v34 = vperm.slane %v2156_v22, 0  ;;  %v2173_v60 = vmul.f32 %v2157_v24, %v7229_v50 }
 0x6c4   :  { %v2175_v39 = vmul.f32 %v2158_v49, %v7229_v50  ;;  %v2190_v48 = vrot.slane %v7253_v47, 1  ;;  %v2191_v29 = vrot.slane %v7253_v47, 2  ;;  %v2192_v53 = vrot.slane %v7253_v47, 3 }
 0x6c5   :  { %v2193_v20 = vrot.slane %v7253_v47, 4  ;;  %v2194_v27 = vrot.slane %v7253_v47, 5  ;;  %v2177_v16 = vmul.f32 %v2159_v2, %v7229_v50  ;;  %v2179_v5 = vmul.f32 %v2160_v17, %v7229_v50 }
 0x6c6   :  { %v7264_v12 = vpop.f32.mrf.mxu2  ;;  %v2181_v30 = vmul.f32 %v2161_v23, %v7229_v50  ;;  %v2195_v41 = vrot.slane %v7253_v47, 6  ;;  %v2183_v26 = vmul.f32 %v2162_v7, %v7229_v50  ;;  %v2197_v28 = vperm.slane %v7253_v47, 0 }
 0x6c7   :  { %8425 = vst [vmem:[#allocation18_spill] sm:$0xff] %v7264_v12  ;;  %v2198_v35 = vperm.slane %v2190_v48, 0  ;;  %v2199_v57 = vperm.slane %v2191_v29, 0  ;;  %v2185_v3 = vmul.f32 %v7257_v55, %v7229_v50  ;;  %v2200_v14 = vperm.slane %v2192_v53, 0 }
 0x6c8   :  { %v7278_v6 = vperm.slane %v2193_v20, 0  ;;  %v7280_v4 = vperm.slane %v2194_v27, 0  ;;  %v2196_v8 = vrot.slane %v7253_v47, 7  ;;  %v7283_v63 = vperm.slane %v2195_v41, 0 }
 0x6c9   :  { %v2213_v44 = vsub.f32 %v2173_v60, %v2197_v28  ;;  %v2215_v54 = vsub.f32 %v2175_v39, %v2198_v35  ;;  %v2217_v13 = vsub.f32 %v2177_v16, %v2199_v57  ;;  %v2219_v19 = vsub.f32 %v2179_v5, %v2200_v14 }
 0x6ca   :  { %v2221_v58 = vsub.f32 %v2181_v30, %v7278_v6  ;;  %v2223_v61 = vsub.f32 %v2183_v26, %v7280_v4  ;;  %v2225_v37 = vsub.f32 %v2185_v3, %v7283_v63  ;;  %v2174_v51 = vmul.f32 %v2157_v24, %v7231_v59 }
 0x6cb   :  { %v2229_v9 = vmul.f32 1.442695, %v2213_v44  ;;  %v2233_v1 = vmul.f32 1.442695, %v2215_v54  ;;  %v2237_v45 = vmul.f32 1.442695, %v2217_v13  ;;  %v2187_v15 = vmul.f32 %v7259_v34, %v7229_v50 }
 0x6cc   :  { %v2241_v43 = vmul.f32 1.442695, %v2219_v19  ;;  %v7292_v32 = vperm.slane %v2196_v8, 0  ;;  %v2245_v42 = vmul.f32 1.442695, %v2221_v58  ;;  %v2176_v18 = vmul.f32 %v2158_v49, %v7231_v59 }
 0x6cd   :  { %5634 = vpow2.f32 %v2229_v9  ;;  %v2178_v52 = vmul.f32 %v2159_v2, %v7231_v59  ;;  %v2180_v36 = vmul.f32 %v2160_v17, %v7231_v59  ;;  %v2453_v56 = vrot.slane %v2452_v0, 1 }
 0x6ce   :  { %5636 = vpow2.f32 %v2233_v1  ;;  %v7297_v62 = vpop.f32.mrf.mxu2  ;;  %v2249_v22 = vmul.f32 1.442695, %v2223_v61  ;;  %v2182_v24 = vmul.f32 %v2161_v23, %v7231_v59  ;;  %v2253_v50 = vmul.f32 1.442695, %v2225_v37 }
 0x6cf   :  { %5638 = vpow2.f32 %v2237_v45  ;;  %v2214_v47 = vsub.f32 %v2174_v51, %v2197_v28  ;;  %v2216_v38 = vsub.f32 %v2176_v18, %v2198_v35  ;;  %v2227_v60 = vsub.f32 %v2187_v15, %v7292_v32 }
 0x6d0   :  { %5640 = vpow2.f32 %v2241_v43  ;;  %v2184_v39 = vmul.f32 %v2162_v7, %v7231_v59  ;;  %v2218_v49 = vsub.f32 %v2178_v52, %v2199_v57  ;;  %v2220_v48 = vsub.f32 %v2180_v36, %v2200_v14 }
 0x6d1   :  { %v2445_v2 = vmax.f32 %v7255_v40, %v2444_v46  ;;  %5642 = vpow2.f32 %v2245_v42  ;;  %v2186_v17 = vmul.f32 %v7257_v55, %v7231_v59  ;;  %v2222_v29 = vsub.f32 %v2182_v24, %v7278_v6 }
 0x6d2   :  { %5644 = vpow2.f32 %v2249_v22  ;;  %v2231_v23 = vmul.f32 1.442695, %v2214_v47  ;;  %v2235_v20 = vmul.f32 1.442695, %v2216_v38  ;;  %v2239_v27 = vmul.f32 1.442695, %v2218_v49 }
 0x6d3   :  { %v5635_v53 = vpop.eup %5634  ;;  %v2454_v5 = vmin.f32 %v2452_v0, %v2453_v56  ;;  %vm2455_vm15 = vcmp.gt.f32.partialorder %v7264_v12, 0.0  ;;  %5646 = vpow2.f32 %v2253_v50  ;;  %v2243_v7 = vmul.f32 1.442695, %v2220_v48 }
 0x6d4   :  { %v5637_v16 = vpop.eup %5636  ;;  %v2257_v41 = vmul.f32 1.442695, %v2227_v60  ;;  %v2188_v40 = vmul.f32 %v7259_v34, %v7231_v59  ;;  %v2224_v55 = vsub.f32 %v2184_v39, %v7280_v4  ;;  %5648 = vpow2.f32 %v2231_v23 }
 0x6d5   :  { %v5639_v30 = vpop.eup %5638  ;;  %v2456_v28 = vmul.f32 %v2445_v2, %v7264_v12  ;;  %v2457_v35 = vmul.f32 %v2454_v5, %v7264_v12  ;;  %5650 = vpow2.f32 %v2235_v20  ;;  %v2247_v57 = vmul.f32 1.442695, %v2222_v29 }
 0x6d6   :  { %v7310_v26 = vpop.eup %5640  ;;  %v2261_v3 = vmul.f32 %v5635_v53, %v7297_v62  ;;  %v2263_v14 = vmul.f32 %v5637_v16, %v7297_v62  ;;  %v2226_v6 = vsub.f32 %v2186_v17, %v7283_v63  ;;  %5652 = vpow2.f32 %v2239_v27  ;;  %v7324_v8 = vpop.f32.mrf.mxu2 }
 0x6d7   :  { %v7317_v10 = vpop.eup %5642  ;;  %v2265_v59 = vmul.f32 %v5639_v30, %v7297_v62  ;;  %5654 = vpow2.f32 %v2243_v7  ;;  %v2267_v4 = vmul.f32 %v7310_v26, %v7297_v62  ;;  %v2228_v44 = vsub.f32 %v2188_v40, %v7292_v32 }
 0x6d8   :  { %v7320_v34 = vpop.eup %5644  ;;  %5656 = vpow2.f32 %v2257_v41  ;;  %v2251_v54 = vmul.f32 1.442695, %v2224_v55  ;;  %v7331_v63 = vsel %vm2455_vm15, %v2456_v28, %v2457_v35  ;;  %v2349_v13 = vsel %vm241_vm0, %v5635_v53, 0.0 }
 0x6d9   :  { %v7327_v0 = vpop.eup %5646  ;;  %8426 = vst [vmem:[#allocation19_spill] sm:$0xff] %v7331_v63  ;;  %v2358_v19 = vsel %vm241_vm0, %v5637_v16, 0.0  ;;  %5658 = vpow2.f32 %v2247_v57  ;;  %v2277_v46 = vsel %vm241_vm0, %v2261_v3, 0.0  ;;  %v2286_v61 = vsel %vm241_vm0, %v2263_v14, 0.0 }
 0x6da   :  { %v5649_v58 = vpop.eup %5648  ;;  %v7338_v9 = vsel %vm241_vm0, %v5639_v30, 0.0  ;;  %v2255_v1 = vmul.f32 1.442695, %v2226_v6  ;;  %v2269_v45 = vmul.f32 %v7317_v10, %v7297_v62  ;;  %v2271_v43 = vmul.f32 %v7320_v34, %v7297_v62 }
 0x6db   :  { %v5651_v37 = vpop.eup %5650  ;;  %v2295_v51 = vsel %vm241_vm0, %v2265_v59, 0.0  ;;  %v2262_v15 = vmul.f32 %v5649_v58, %v7324_v8  ;;  %v2304_v42 = vsel %vm241_vm0, %v2267_v4, 0.0  ;;  %5660 = vpow2.f32 %v2251_v54 }
 0x6dc   :  { %v5653_v32 = vpop.eup %5652  ;;  %v2259_v18 = vmul.f32 1.442695, %v2228_v44  ;;  %v2264_v52 = vmul.f32 %v5651_v37, %v7324_v8  ;;  %v2350_v24 = vsel %vm241_vm0, %v5649_v58, 0.0  ;;  %v2359_v50 = vsel %vm241_vm0, %v5651_v37, 0.0 }
 0x6dd   :  { %v7348_v36 = vpop.eup %5654  ;;  %v2266_v56 = vmul.f32 %v5653_v32, %v7324_v8  ;;  %v2278_v22 = vsel %vm241_vm0, %v2262_v15, 0.0  ;;  %5662 = vpow2.f32 %v2255_v1  ;;  %v7363_v48 = vmul.f32 %v7327_v0, %v7297_v62 }
 0x6de   :  { %v7354_v47 = vpop.eup %5656  ;;  %v2268_v38 = vmul.f32 %v7348_v36, %v7324_v8  ;;  %v2279_v60 = vadd.f32 %v2278_v22, %v2277_v46  ;;  %v2287_v39 = vsel %vm241_vm0, %v2264_v52, 0.0  ;;  %v2313_v2 = vsel %vm241_vm0, %v2269_v45, 0.0 }
 0x6df   :  { %v7359_v49 = vpop.eup %5658  ;;  %v2288_v17 = vadd.f32 %v2287_v39, %v2286_v61  ;;  %v2296_v29 = vsel %vm241_vm0, %v2266_v56, 0.0  ;;  %v7370_v20 = vadd.f32 %v2350_v24, %v2349_v13  ;;  %v7372_v27 = vadd.f32 %v2359_v50, %v2358_v19 }
 0x6e0   :  { %v2270_v53 = vmul.f32 %v7359_v49, %v7324_v8  ;;  %v2305_v23 = vsel %vm241_vm0, %v2268_v38, 0.0  ;;  %v7376_v16 = vmul.f32 %v7354_v47, %v7297_v62  ;;  %v7379_v5 = vsel %vm241_vm0, %v2271_v43, 0.0 }
 0x6e1   :  { %v2460_v7 = vrot.slane %v7264_v12, 1  ;;  %v2461_v30 = vrot.slane %v7264_v12, 2  ;;  %v7383_v41 = vpop.eup %5660  ;;  %5664 = vpow2.f32 %v2259_v18  ;;  %v2280_v40 = vrot.slane %v2279_v60, 4 }
 0x6e2   :  { %v2297_v55 = vadd.f32 %v2296_v29, %v2295_v51  ;;  %v2462_v28 = vrot.slane %v7264_v12, 3  ;;  %v2289_v35 = vrot.slane %v2288_v17, 4  ;;  %v2306_v57 = vadd.f32 %v2305_v23, %v2304_v42 }
 0x6e3   :  { %v7387_v3 = vsel %vm241_vm0, %v5653_v32, 0.0  ;;  %v2463_v62 = vrot.slane %v7264_v12, 4  ;;  %v7390_v14 = vpop.eup %5662  ;;  %v2314_v6 = vsel %vm241_vm0, %v2270_v53, 0.0  ;;  %v2464_v44 = vrot.slane %v7264_v12, 5 }
 0x6e4   :  { %v7398_v54 = vmul.f32 %v7383_v41, %v7324_v8  ;;  %v7402_v13 = vmul.f32 %v7390_v14, %v7324_v8  ;;  %v2467_v19 = vperm.slane %v7264_v12, 0  ;;  %v2468_v58 = vperm.slane %v2460_v7, 0 }
 0x6e5   :  { %v2281_v46 = vadd.f32 %v2280_v40, %v2279_v60  ;;  %v2298_v61 = vrot.slane %v2297_v55, 4  ;;  %v2469_v1 = vperm.slane %v2461_v30, 0  ;;  %v2470_v37 = vperm.slane %v2462_v28, 0 }
 0x6e6   :  { %v2290_v45 = vadd.f32 %v2289_v35, %v2288_v17  ;;  %v2307_v43 = vrot.slane %v2306_v57, 4  ;;  %v7405_v51 = vadd.f32 %v2314_v6, %v2313_v2  ;;  %v2471_v15 = vperm.slane %v2463_v62, 0 }
 0x6e7   :  { %v7407_v32 = vpop.eup %5664  ;;  %v2472_v42 = vperm.slane %v2464_v44, 0  ;;  %v2483_v18 = vmul.f32 %v2467_v19, %v7237_v33  ;;  %v2485_v52 = vmul.f32 %v2468_v58, %v7237_v33  ;;  %v2500_v56 = vrot.slane %v7331_v63, 1 }
 0x6e8   :  { %v2487_v22 = vmul.f32 %v2469_v1, %v7237_v33  ;;  %v2489_v24 = vmul.f32 %v2470_v37, %v7237_v33  ;;  %v2501_v50 = vrot.slane %v7331_v63, 2  ;;  %v2502_v38 = vrot.slane %v7331_v63, 3 }
 0x6e9   :  { %v2503_v60 = vrot.slane %v7331_v63, 4  ;;  %v2504_v39 = vrot.slane %v7331_v63, 5  ;;  %v2507_v2 = vperm.slane %v7331_v63, 0  ;;  %v2508_v17 = vperm.slane %v2500_v56, 0 }
 0x6ea   :  { %v2491_v29 = vmul.f32 %v2471_v15, %v7237_v33  ;;  %v2509_v53 = vperm.slane %v2501_v50, 0  ;;  %v2510_v23 = vperm.slane %v2502_v38, 0  ;;  %v2484_v7 = vmul.f32 %v2467_v19, %v7243_v11 }
 0x6eb   :  { %v2511_v30 = vperm.slane %v2503_v60, 0  ;;  %v2523_v40 = vsub.f32 %v2483_v18, %v2507_v2  ;;  %v2525_v28 = vsub.f32 %v2485_v52, %v2508_v17  ;;  %v2486_v35 = vmul.f32 %v2468_v58, %v7243_v11  ;;  %v7426_v52 = vpop.f32.mrf.mxu2 }
 0x6ec   :  { %v2527_v62 = vsub.f32 %v2487_v22, %v2509_v53  ;;  %v2529_v6 = vsub.f32 %v2489_v24, %v2510_v23  ;;  %v2488_v44 = vmul.f32 %v2469_v1, %v7243_v11  ;;  %v2490_v4 = vmul.f32 %v2470_v37, %v7243_v11 }
 0x6ed   :  { %v2282_v59 = vrot.slane %v2281_v46, 2  ;;  %v2493_v56 = vmul.f32 %v2472_v42, %v7237_v33  ;;  %v2512_v31 = vperm.slane %v2504_v39, 0  ;;  %v2539_v21 = vmul.f32 1.442695, %v2523_v40 }
 0x6ee   :  { %v2291_v50 = vrot.slane %v2290_v45, 2  ;;  %v2299_v38 = vadd.f32 %v2298_v61, %v2297_v55  ;;  %v2543_v25 = vmul.f32 1.442695, %v2525_v28  ;;  %v2492_v19 = vmul.f32 %v2471_v15, %v7243_v11 }
 0x6ef   :  { %v2308_v18 = vadd.f32 %v2307_v43, %v2306_v57  ;;  %v2531_v58 = vsub.f32 %v2491_v29, %v2511_v30  ;;  %v2547_v22 = vmul.f32 1.442695, %v2527_v62  ;;  %v2524_v24 = vsub.f32 %v2484_v7, %v2507_v2 }
 0x6f0   :  { %v2551_v60 = vmul.f32 1.442695, %v2529_v6  ;;  %v2526_v1 = vsub.f32 %v2486_v35, %v2508_v17  ;;  %v2528_v63 = vsub.f32 %v2488_v44, %v2509_v53  ;;  %v2530_v37 = vsub.f32 %v2490_v4, %v2510_v23 }
 0x6f1   :  { %v2533_v12 = vsub.f32 %v2493_v56, %v2512_v31  ;;  %5666 = vpow2.f32 %v2539_v21  ;;  %v2494_v39 = vmul.f32 %v2472_v42, %v7243_v11  ;;  %v2541_v40 = vmul.f32 1.442695, %v2524_v24 }
 0x6f2   :  { %v2283_v33 = vadd.f32 %v2282_v59, %v2281_v46  ;;  %5668 = vpow2.f32 %v2543_v25  ;;  %v2532_v55 = vsub.f32 %v2492_v19, %v2511_v30  ;;  %v2545_v61 = vmul.f32 1.442695, %v2526_v1 }
 0x6f3   :  { %v2300_v15 = vrot.slane %v2299_v38, 2  ;;  %v2316_v57 = vrot.slane %v7405_v51, 4  ;;  %5670 = vpow2.f32 %v2547_v22  ;;  %v2549_v43 = vmul.f32 1.442695, %v2528_v63 }
 0x6f4   :  { %v2292_v29 = vadd.f32 %v2291_v50, %v2290_v45  ;;  %v2323_v2 = vsel %vm241_vm0, %v7398_v54, 0.0  ;;  %5672 = vpow2.f32 %v2551_v60  ;;  %v2553_v4 = vmul.f32 1.442695, %v2530_v37 }
 0x6f5   :  { %v2555_v17 = vmul.f32 1.442695, %v2531_v58  ;;  %v2559_v21 = vmul.f32 1.442695, %v2533_v12  ;;  %v2534_v53 = vsub.f32 %v2494_v39, %v2512_v31  ;;  %5674 = vpow2.f32 %v2541_v40 }
 0x6f6   :  { %5676 = vpow2.f32 %v2545_v61  ;;  %v2557_v59 = vmul.f32 1.442695, %v2532_v55  ;;  %v2284_v25 = vrot.slane %v2283_v33, 1  ;;  %v2309_v46 = vrot.slane %v2308_v18, 2 }
 0x6f7   :  { %v5667_v42 = vpop.eup %5666  ;;  %5678 = vpow2.f32 %v2549_v43  ;;  %v2301_v23 = vadd.f32 %v2300_v15, %v2299_v38  ;;  %v2317_v7 = vadd.f32 %v2316_v57, %v7405_v51  ;;  %v2324_v63 = vadd.f32 %v2323_v2, %v7379_v5  ;;  %v7447_v5 = vpop.f32.mrf.mxu2 }
 0x6f8   :  { %v7434_v45 = vpop.eup %5668  ;;  %v2276_v54 = vmul.f32 %v7407_v32, %v7324_v8  ;;  %v2571_v12 = vmul.f32 %v5667_v42, %v7426_v52  ;;  %5680 = vpow2.f32 %v2553_v4  ;;  %v2293_v31 = vrot.slane %v2292_v29, 1 }
 0x6f9   :  { %v7439_v30 = vpop.eup %5670  ;;  %v7443_v28 = vadd.f32 %v7387_v3, %v7338_v9  ;;  %5682 = vpow2.f32 %v2555_v17  ;;  %v2573_v51 = vmul.f32 %v7434_v45, %v7426_v52  ;;  %v2561_v35 = vmul.f32 1.442695, %v2534_v53 }
 0x6fa   :  { %v7449_v62 = vpop.eup %5672  ;;  %5684 = vpow2.f32 %v2559_v21  ;;  %v7452_v8 = vsel %vm241_vm0, %v5667_v42, 0.0  ;;  %v7454_v6 = vadd.f32 %v2284_v25, %v2283_v33  ;;  %v2310_v44 = vadd.f32 %v2309_v46, %v2308_v18 }
 0x6fb   :  { %v7456_v56 = vpop.eup %5674  ;;  %5686 = vpow2.f32 %v2557_v59  ;;  %v2302_v9 = vrot.slane %v2301_v23, 1  ;;  %v2318_v3 = vrot.slane %v2317_v7, 2  ;;  %v2325_v50 = vrot.slane %v2324_v63, 4 }
 0x6fc   :  { %v7458_v38 = vpop.eup %5676  ;;  %v2575_v19 = vmul.f32 %v7439_v30, %v7426_v52  ;;  %v2587_v58 = vsel %vm241_vm0, %v2571_v12, 0.0  ;;  %v2572_v22 = vmul.f32 %v7456_v56, %v7447_v5  ;;  %v7465_v24 = vadd.f32 %v2293_v31, %v2292_v29 }
 0x6fd   :  { %v7467_v33 = vpop.eup %5678  ;;  %v2577_v18 = vmul.f32 %v7449_v62, %v7426_v52  ;;  %v2596_v60 = vsel %vm241_vm0, %v2573_v51, 0.0  ;;  %v2574_v1 = vmul.f32 %v7458_v38, %v7447_v5  ;;  %v2326_v37 = vadd.f32 %v2325_v50, %v2324_v63 }
 0x6fe   :  { %v7474_v39 = vpop.eup %5680  ;;  %v2576_v40 = vmul.f32 %v7467_v33, %v7447_v5  ;;  %v2588_v55 = vsel %vm241_vm0, %v2572_v22, 0.0  ;;  %v2311_v61 = vrot.slane %v2310_v44, 1  ;;  %v2319_v15 = vadd.f32 %v2318_v3, %v2317_v7 }
 0x6ff   :  { %v7479_v57 = vpop.eup %5682  ;;  %v2578_v43 = vmul.f32 %v7474_v39, %v7447_v5  ;;  %v2589_v29 = vadd.f32 %v2588_v55, %v2587_v58  ;;  %v2597_v2 = vsel %vm241_vm0, %v2574_v1, 0.0  ;;  %v7484_v4 = vadd.f32 %v2302_v9, %v2301_v23 }
 0x700   :  { %v7486_v17 = vpop.eup %5684  ;;  %v7490_v21 = vmul.f32 %v7479_v57, %v7426_v52  ;;  %v2598_v53 = vadd.f32 %v2597_v2, %v2596_v60  ;;  %v2606_v59 = vsel %vm241_vm0, %v2576_v40, 0.0  ;;  %v2332_v25 = vsel %vm241_vm0, %v7402_v13, 0.0 }
 0x701   :  { %v7495_v46 = vpop.eup %5686  ;;  %v2605_v42 = vsel %vm241_vm0, %v2575_v19, 0.0  ;;  %v7499_v7 = vsel %vm241_vm0, %v2577_v18, 0.0  ;;  %5688 = vpow2.f32 %v2561_v35  ;;  %v2327_v23 = vrot.slane %v2326_v37, 2 }
 0x702   :  { %v7503_v63 = vmul.f32 %v7495_v46, %v7447_v5  ;;  %v7505_v12 = vadd.f32 %v2311_v61, %v2310_v44  ;;  %v2320_v31 = vrot.slane %v2319_v15, 1  ;;  %v2331_v51 = vsel %vm241_vm0, %v7363_v48, 0.0 }
 0x703   :  { %v2590_v13 = vrot.slane %v2589_v29, 4  ;;  %v7509_v9 = vadd.f32 %v2606_v59, %v2605_v42  ;;  %v7512_v3 = vsel %vm241_vm0, %v2578_v43, 0.0  ;;  %v2333_v50 = vadd.f32 %v2332_v25, %v2331_v51 }
 0x704   :  { %v2599_v19 = vrot.slane %v2598_v53, 4  ;;  %v2340_v35 = vsel %vm241_vm0, %v7376_v16, 0.0  ;;  %v2341_v58 = vsel %vm241_vm0, %v2276_v54, 0.0  ;;  %v8427_v44 = vrot.slane %v7370_v20, 4 }
 0x705   :  { %v2328_v18 = vadd.f32 %v2327_v23, %v2326_v37  ;;  %v2334_v60 = vrot.slane %v2333_v50, 4  ;;  %v2342_v48 = vadd.f32 %v2341_v58, %v2340_v35  ;;  %v8428_v1 = vrot.slane %v7372_v27, 4 }
 0x706   :  { %v2353_v22 = vadd.f32 %v8427_v44, %v7370_v20  ;;  %v2370_v61 = vrot.slane %v7443_v28, 4  ;;  %v2376_v43 = vsel %vm241_vm0, %v7310_v26, 0.0  ;;  %v2377_v16 = vsel %vm241_vm0, %v7348_v36, 0.0 }
 0x707   :  { %v2362_v40 = vadd.f32 %v8428_v1, %v7372_v27  ;;  %v7528_v54 = vpop.eup %5688  ;;  %v7530_v2 = vadd.f32 %v2320_v31, %v2319_v15  ;;  %v2335_v20 = vadd.f32 %v2334_v60, %v2333_v50  ;;  %v2343_v37 = vrot.slane %v2342_v48, 4 }
 0x708   :  { %v2354_v55 = vrot.slane %v2353_v22, 2  ;;  %v2371_v42 = vadd.f32 %v2370_v61, %v7443_v28  ;;  %v2378_v27 = vadd.f32 %v2377_v16, %v2376_v43  ;;  %v2385_v23 = vsel %vm241_vm0, %v7317_v10, 0.0 }
 0x709   :  { %v2363_v59 = vrot.slane %v2362_v40, 2  ;;  %v2329_v51 = vrot.slane %v2328_v18, 1  ;;  %v2336_v35 = vrot.slane %v2335_v20, 2  ;;  %v2386_v36 = vsel %vm241_vm0, %v7359_v49, 0.0 }
 0x70a   :  { %v2355_v25 = vadd.f32 %v2354_v55, %v2353_v22  ;;  %v7537_v58 = vadd.f32 %v2590_v13, %v2589_v29  ;;  %v2372_v15 = vrot.slane %v2371_v42, 2  ;;  %v2379_v31 = vrot.slane %v2378_v27, 4 }
 0x70b   :  { %v2364_v26 = vadd.f32 %v2363_v59, %v2362_v40  ;;  %v2387_v50 = vadd.f32 %v2386_v36, %v2385_v23  ;;  %v2608_v44 = vrot.slane %v7509_v9, 4  ;;  %v2344_v22 = vadd.f32 %v2343_v37, %v2342_v48 }
 0x70c   :  { %v2356_v60 = vrot.slane %v2355_v25, 1  ;;  %v2394_v28 = vsel %vm241_vm0, %v7320_v34, 0.0  ;;  %v2373_v10 = vadd.f32 %v2372_v15, %v2371_v42  ;;  %v2380_v55 = vadd.f32 %v2379_v31, %v2378_v27 }
 0x70d   :  { %v2365_v1 = vrot.slane %v2364_v26, 1  ;;  %v2388_v61 = vrot.slane %v2387_v50, 4  ;;  %v7542_v40 = vadd.f32 %v2599_v19, %v2598_v53  ;;  %v7544_v43 = vadd.f32 %v2329_v51, %v2328_v18 }
 0x70e   :  { %v7546_v49 = vadd.f32 %v2336_v35, %v2335_v20  ;;  %v2395_v29 = vsel %vm241_vm0, %v7383_v41, 0.0  ;;  %v2374_v13 = vrot.slane %v2373_v10, 1  ;;  %v2381_v16 = vrot.slane %v2380_v55, 2 }
 0x70f   :  { %v2389_v48 = vadd.f32 %v2388_v61, %v2387_v50  ;;  %v2396_v37 = vadd.f32 %v2395_v29, %v2394_v28  ;;  %v2345_v59 = vrot.slane %v2344_v22, 2  ;;  %v2357_v23 = vadd.f32 %v2356_v60, %v2355_v25  ;;  %v8429_v50 = vld [vmem:[#allocation18_spill] sm:$0xff] }
 0x710   :  { %v2403_v34 = vsel %vm241_vm0, %v7327_v0, 0.0  ;;  %v2404_v53 = vsel %vm241_vm0, %v7390_v14, 0.0  ;;  %v2366_v19 = vadd.f32 %v2365_v1, %v2364_v26  ;;  %v2382_v18 = vadd.f32 %v2381_v16, %v2380_v55 }
 0x711   :  { %v2390_v42 = vrot.slane %v2389_v48, 2  ;;  %v2397_v20 = vrot.slane %v2396_v37, 4  ;;  %v2375_v27 = vadd.f32 %v2374_v13, %v2373_v10  ;;  %v2405_v51 = vadd.f32 %v2404_v53, %v2403_v34  ;;  %v8430_v53 = vld [vmem:[#allocation17_spill] sm:$0xff] }
 0x712   :  { %v2412_v41 = vsel %vm241_vm0, %v7354_v47, 0.0  ;;  %v2413_v35 = vsel %vm241_vm0, %v7407_v32, 0.0  ;;  %v2383_v36 = vrot.slane %v2382_v18, 1  ;;  %5690 = vrcp.f32 %v2357_v23 }
 0x713   :  { %v2391_v25 = vadd.f32 %v2390_v42, %v2389_v48  ;;  %v2398_v15 = vadd.f32 %v2397_v20, %v2396_v37  ;;  %v2414_v31 = vadd.f32 %v2413_v35, %v2412_v41  ;;  %v2406_v0 = vrot.slane %v2405_v51, 4 }
 0x714   :  { %v2465_v14 = vrot.slane %v8429_v50, 6  ;;  %v2466_v26 = vrot.slane %v8429_v50, 7  ;;  %v2384_v60 = vadd.f32 %v2383_v36, %v2382_v18  ;;  %5692 = vrcp.f32 %v2366_v19 }
 0x715   :  { %v2392_v28 = vrot.slane %v2391_v25, 1  ;;  %v2399_v1 = vrot.slane %v2398_v15, 2  ;;  %v2415_v10 = vrot.slane %v2414_v31, 4  ;;  %v2407_v55 = vadd.f32 %v2406_v0, %v2405_v51  ;;  %v8431_v51 = vld [vmem:[#allocation19_spill] sm:$0xff] }
 0x716   :  { %v2473_v47 = vperm.slane %v2465_v14, 0  ;;  %v2474_v61 = vperm.slane %v2466_v26, 0  ;;  %5694 = vrcp.f32 %v2375_v27  ;;  %v2338_v16 = vrot.slane %v7546_v49, 1 }
 0x717   :  { %v2393_v29 = vadd.f32 %v2392_v28, %v2391_v25  ;;  %v2400_v32 = vadd.f32 %v2399_v1, %v2398_v15  ;;  %v2416_v13 = vadd.f32 %v2415_v10, %v2414_v31  ;;  %v2346_v48 = vadd.f32 %v2345_v59, %v2344_v22 }
 0x718   :  { %v2408_v37 = vrot.slane %v2407_v55, 2  ;;  %5696 = vrcp.f32 %v2384_v60  ;;  %v2495_v18 = vmul.f32 %v2473_v47, %v8430_v53  ;;  %v5691_v42 = vpop.eup %5690  ;;  %v2496_v19 = vmul.f32 %v2473_v47, %v7243_v11 }
 0x719   :  { %v2401_v23 = vrot.slane %v2400_v32, 1  ;;  %v2417_v34 = vrot.slane %v2416_v13, 2  ;;  %5698 = vrcp.f32 %v2393_v29  ;;  %v2505_v41 = vrot.slane %v8431_v51, 6 }
 0x71a   :  { %v2409_v20 = vadd.f32 %v2408_v37, %v2407_v55  ;;  %v2506_v35 = vrot.slane %v8431_v51, 7  ;;  %v2429_v25 = vmul.f32 %v5691_v42, %v7454_v6  ;;  %v2497_v22 = vmul.f32 %v2474_v61, %v8430_v53  ;;  %v5693_v59 = vpop.eup %5692 }
 0x71b   :  { %v2402_v36 = vadd.f32 %v2401_v23, %v2400_v32  ;;  %v2418_v27 = vadd.f32 %v2417_v34, %v2416_v13  ;;  %v2498_v31 = vmul.f32 %v2474_v61, %v7243_v11  ;;  %v2513_v0 = vperm.slane %v2505_v41, 0 }
 0x71c   :  { %v2410_v15 = vrot.slane %v2409_v20, 1  ;;  %v2514_v50 = vperm.slane %v2506_v35, 0  ;;  %v5695_v14 = vpop.eup %5694  ;;  %v2347_v26 = vrot.slane %v2346_v48, 1  ;;  %v2430_v28 = vmul.f32 %v5693_v59, %v7465_v24 }
 0x71d   :  { %v2419_v60 = vrot.slane %v2418_v27, 1  ;;  %5700 = vrcp.f32 %v2402_v36  ;;  %v2431_v55 = vmul.f32 %v5695_v14, %v7484_v4  ;;  %v2535_v47 = vsub.f32 %v2495_v18, %v2513_v0 }
 0x71e   :  { %v5697_v1 = vpop.eup %5696  ;;  %v2411_v10 = vadd.f32 %v2410_v15, %v2409_v20  ;;  %v2536_v6 = vsub.f32 %v2496_v19, %v2513_v0  ;;  %v2755_v11 = vsel %vm1573_vm3, %v2430_v28, %v2429_v25  ;;  %v2537_v61 = vsub.f32 %v2497_v22, %v2514_v50 }
 0x71f   :  { %v5699_v29 = vpop.eup %5698  ;;  %v2420_v32 = vadd.f32 %v2419_v60, %v2418_v27  ;;  %v2432_v13 = vmul.f32 %v5697_v1, %v7505_v12  ;;  %v2756_v23 = vsel %vm1575_vm4, %v2431_v55, %v2755_v11  ;;  %v2538_v34 = vsub.f32 %v2498_v31, %v2514_v50 }
 0x720   :  { %5702 = vrcp.f32 %v2411_v10  ;;  %v2433_v37 = vmul.f32 %v5699_v29, %v7530_v2  ;;  %v2563_v53 = vmul.f32 1.442695, %v2535_v47  ;;  %v2565_v4 = vmul.f32 1.442695, %v2536_v6 }
 0x721   :  { %5704 = vrcp.f32 %v2420_v32  ;;  %v2757_v24 = vsel %vm1577_vm5, %v2432_v13, %v2756_v23  ;;  %v2581_v18 = vmul.f32 %v7486_v17, %v7426_v52  ;;  %v2582_v12 = vmul.f32 %v7528_v54, %v7447_v5 }
 0x722   :  { %v2616_v42 = vadd.f32 %v7512_v3, %v7499_v7  ;;  %v2592_v20 = vrot.slane %v7537_v58, 2  ;;  %v2339_v19 = vadd.f32 %v2338_v16, %v7546_v49  ;;  %v2758_v51 = vsel %vm1579_vm6, %v2433_v37, %v2757_v24 }
 0x723   :  { %v5701_v2 = vpop.eup %5700  ;;  %v2569_v41 = vmul.f32 1.442695, %v2538_v34  ;;  %v2601_v35 = vrot.slane %v7542_v40, 2  ;;  %v2624_v36 = vsel %vm241_vm0, %v7503_v63, 0.0  ;;  %v2348_v27 = vadd.f32 %v2347_v26, %v2346_v48 }
 0x724   :  { %v2434_v25 = vmul.f32 %v5701_v2, %v7544_v43  ;;  %5706 = vpow2.f32 %v2565_v4  ;;  %v2660_v7 = vsel %vm241_vm0, %v7456_v56, 0.0  ;;  %v2567_v3 = vmul.f32 1.442695, %v2537_v61 }
 0x725   :  { %5708 = vpow2.f32 %v2563_v53  ;;  %v2609_v49 = vadd.f32 %v2608_v44, %v7509_v9  ;;  %v2623_v22 = vsel %vm241_vm0, %v7490_v21, 0.0  ;;  %v2593_v63 = vadd.f32 %v2592_v20, %v7537_v58 }
 0x726   :  { %v5703_v16 = vpop.eup %5702  ;;  %v2759_v59 = vsel %vm1581_vm7, %v2434_v25, %v2758_v51  ;;  %v2617_v48 = vrot.slane %v2616_v42, 4  ;;  %5710 = vpow2.f32 %v2569_v41  ;;  %v2602_v56 = vadd.f32 %v2601_v35, %v7542_v40 }
 0x727   :  { %v5705_v43 = vpop.eup %5704  ;;  %v2435_v15 = vmul.f32 %v5703_v16, %v2339_v19  ;;  %v2625_v31 = vadd.f32 %v2624_v36, %v2623_v22  ;;  %v2632_v50 = vsel %vm241_vm0, %v2581_v18, 0.0  ;;  %v2633_v9 = vsel %vm241_vm0, %v2582_v12, 0.0 }
 0x728   :  { %v2436_v0 = vmul.f32 %v5705_v43, %v2348_v27  ;;  %v2661_v44 = vadd.f32 %v2660_v7, %v7452_v8  ;;  %5712 = vpow2.f32 %v2567_v3  ;;  %v2610_v14 = vrot.slane %v2609_v49, 2 }
 0x729   :  { %v2760_v21 = vsel %vm1583_vm8, %v2435_v15, %v2759_v59  ;;  %v2634_v26 = vadd.f32 %v2633_v9, %v2632_v50  ;;  %v2594_v28 = vrot.slane %v2593_v63, 1  ;;  %v2618_v1 = vadd.f32 %v2617_v48, %v2616_v42 }
 0x72a   :  { %v7602_v58 = vpop.eup %5706  ;;  %v2761_v60 = vsel %vm8432_vm2, %v2436_v0, %v2760_v21  ;;  %v2662_v40 = vrot.slane %v2661_v44, 4  ;;  %v2668_v55 = vsel %vm241_vm0, %v7434_v45, 0.0  ;;  %v2669_v47 = vsel %vm241_vm0, %v7458_v38, 0.0 }
 0x72b   :  { %v5709_v10 = vpop.eup %5708  ;;  %5352 = vmatmul.msk.f32.vlgmr.msra.gmra.mxu0 %vm241_vm0, %v2761_v60  ;;  %v2584_v8 = vmul.f32 %v7602_v58, %v7447_v5  ;;  %v2603_v6 = vrot.slane %v2602_v56, 1  ;;  %v2626_v32 = vrot.slane %v2625_v31, 4  ;;  %v2635_v13 = vrot.slane %v2634_v26, 4 }
 0x72c   :  { %v2583_v29 = vmul.f32 %v5709_v10, %v7426_v52  ;;  %v2663_v11 = vadd.f32 %v2662_v40, %v2661_v44  ;;  %v7613_v61 = vpop.eup %5710  ;;  %v7615_v37 = vadd.f32 %v2610_v14, %v2609_v49  ;;  %v7617_v23 = vadd.f32 %v2594_v28, %v2593_v63 }
 0x72d   :  { %v2619_v45 = vrot.slane %v2618_v1, 2  ;;  %v2642_v38 = vsel %vm241_vm0, %v2584_v8, 0.0  ;;  %v2586_v53 = vmul.f32 %v7613_v61, %v7447_v5  ;;  %v7622_v4 = vadd.f32 %v2603_v6, %v2602_v56 }
 0x72e   :  { %v2664_v34 = vrot.slane %v2663_v11, 2  ;;  %v5713_v24 = vpop.eup %5712  ;;  %v2670_v18 = vadd.f32 %v2669_v47, %v2668_v55  ;;  %v2677_v12 = vsel %vm241_vm0, %v7439_v30, 0.0  ;;  %v2627_v20 = vadd.f32 %v2626_v32, %v2625_v31 }
 0x72f   :  { %v2585_v42 = vmul.f32 %v5713_v24, %v7426_v52  ;;  %v2636_v2 = vadd.f32 %v2635_v13, %v2634_v26  ;;  %v2641_v19 = vsel %vm241_vm0, %v2583_v29, 0.0  ;;  %v2612_v51 = vrot.slane %v7615_v37, 1 }
 0x730   :  { %v2643_v41 = vadd.f32 %v2642_v38, %v2641_v19  ;;  %v2671_v35 = vrot.slane %v2670_v18, 4  ;;  %v2678_v36 = vsel %vm241_vm0, %v7467_v33, 0.0  ;;  %v7631_v5 = vadd.f32 %v2619_v45, %v2618_v1 }
 0x731   :  { %v2665_v27 = vadd.f32 %v2664_v34, %v2663_v11  ;;  %v2679_v25 = vadd.f32 %v2678_v36, %v2677_v12  ;;  %v2686_v30 = vsel %vm241_vm0, %v7449_v62, 0.0  ;;  %v2651_v52 = vsel %vm241_vm0, %v2586_v53, 0.0 }
 0x732   :  { %v2672_v7 = vadd.f32 %v2671_v35, %v2670_v18  ;;  %v2687_v3 = vsel %vm241_vm0, %v7474_v39, 0.0  ;;  %v2695_v49 = vsel %vm241_vm0, %v7479_v57, 0.0  ;;  %v2628_v16 = vrot.slane %v2627_v20, 2 }
 0x733   :  { %v2637_v22 = vrot.slane %v2636_v2, 2  ;;  %v2650_v33 = vsel %vm241_vm0, %v2585_v42, 0.0  ;;  %v2680_v59 = vrot.slane %v2679_v25, 4  ;;  %v2644_v63 = vrot.slane %v2643_v41, 4 }
 0x734   :  { %v2673_v48 = vrot.slane %v2672_v7, 2  ;;  %v2688_v43 = vadd.f32 %v2687_v3, %v2686_v30  ;;  %v2696_v62 = vsel %vm241_vm0, %v7495_v46, 0.0  ;;  %v2652_v15 = vadd.f32 %v2651_v52, %v2650_v33 }
 0x735   :  { %v2666_v56 = vrot.slane %v2665_v27, 1  ;;  %v2681_v31 = vadd.f32 %v2680_v59, %v2679_v25  ;;  %v2697_v0 = vadd.f32 %v2696_v62, %v2695_v49  ;;  %v2704_v57 = vsel %vm241_vm0, %v7486_v17, 0.0 }
 0x736   :  { %v2674_v50 = vadd.f32 %v2673_v48, %v2672_v7  ;;  %v2689_v39 = vrot.slane %v2688_v43, 4  ;;  %v2705_v9 = vsel %vm241_vm0, %v7528_v54, 0.0  ;;  %v2629_v44 = vadd.f32 %v2628_v16, %v2627_v20 }
 0x737   :  { %v7647_v21 = vadd.f32 %v2637_v22, %v2636_v2  ;;  %v2682_v14 = vrot.slane %v2681_v31, 2  ;;  %v2698_v26 = vrot.slane %v2697_v0, 4  ;;  %v2706_v46 = vadd.f32 %v2705_v9, %v2704_v57 }
 0x738   :  { %v2675_v60 = vrot.slane %v2674_v50, 1  ;;  %v2690_v28 = vadd.f32 %v2689_v39, %v2688_v43  ;;  %v2713_v1 = vsel %vm241_vm0, %v5709_v10, 0.0  ;;  %v2645_v40 = vadd.f32 %v2644_v63, %v2643_v41 }
 0x739   :  { %v2653_v55 = vrot.slane %v2652_v15, 4  ;;  %v2683_v47 = vadd.f32 %v2682_v14, %v2681_v31  ;;  %v2699_v8 = vadd.f32 %v2698_v26, %v2697_v0  ;;  %v2667_v6 = vadd.f32 %v2666_v56, %v2665_v27 }
 0x73a   :  { %v2691_v29 = vrot.slane %v2690_v28, 2  ;;  %v2707_v17 = vrot.slane %v2706_v46, 4  ;;  %v2714_v54 = vsel %vm241_vm0, %v7602_v58, 0.0  ;;  %v2676_v32 = vadd.f32 %v2675_v60, %v2674_v50 }
 0x73b   :  { %v2684_v13 = vrot.slane %v2683_v47, 1  ;;  %v2700_v11 = vrot.slane %v2699_v8, 2  ;;  %v2715_v45 = vadd.f32 %v2714_v54, %v2713_v1  ;;  %v2722_v53 = vsel %vm241_vm0, %v5713_v24, 0.0 }
 0x73c   :  { %v2692_v38 = vadd.f32 %v2691_v29, %v2690_v28  ;;  %v2708_v34 = vadd.f32 %v2707_v17, %v2706_v46  ;;  %v2723_v10 = vsel %vm241_vm0, %v7613_v61, 0.0  ;;  %v2654_v2 = vadd.f32 %v2653_v55, %v2652_v15 }
 0x73d   :  { %v2685_v18 = vadd.f32 %v2684_v13, %v2683_v47  ;;  %v2701_v12 = vadd.f32 %v2700_v11, %v2699_v8  ;;  %v2716_v42 = vrot.slane %v2715_v45, 4  ;;  %v2724_v20 = vadd.f32 %v2723_v10, %v2722_v53  ;;  %v8434_v10 = vld [vmem:[#allocation21_spill] sm:$0xff] }
 0x73e   :  { %v2693_v19 = vrot.slane %v2692_v38, 1  ;;  %v2709_v41 = vrot.slane %v2708_v34, 2  ;;  %5714 = vrcp.f32 %v2667_v6  ;;  %v2646_v27 = vrot.slane %v2645_v40, 2 }
 0x73f   :  { %v2702_v58 = vrot.slane %v2701_v12, 1  ;;  %v2717_v35 = vadd.f32 %v2716_v42, %v2715_v45  ;;  %v2725_v36 = vrot.slane %v2724_v20, 4  ;;  %5716 = vrcp.f32 %v2676_v32 }
 0x740   :  { %v2694_v25 = vadd.f32 %v2693_v19, %v2692_v38  ;;  %v2710_v30 = vadd.f32 %v2709_v41, %v2708_v34  ;;  %5718 = vrcp.f32 %v2685_v18  ;;  %v2621_v24 = vrot.slane %v7631_v5, 1 }
 0x741   :  { %v2703_v52 = vadd.f32 %v2702_v58, %v2701_v12  ;;  %v2718_v61 = vrot.slane %v2717_v35, 2  ;;  %v2726_v7 = vadd.f32 %v2725_v36, %v2724_v20  ;;  %v2630_v3 = vrot.slane %v2629_v44, 1  ;;  %v8435_v20 = vld [vmem:[#allocation16_spill] sm:$0xff] }
 0x742   :  { %v2655_v49 = vrot.slane %v2654_v2, 2  ;;  %v2711_v16 = vrot.slane %v2710_v30, 1  ;;  %5720 = vrcp.f32 %v2694_v25  ;;  %v2613_v22 = vadd.f32 %v2612_v51, %v7615_v37  ;;  %v8436_v58 = vld [vmem:[#allocation20_spill] sm:$0xff] }
 0x743   :  { %v2719_v33 = vadd.f32 %v2718_v61, %v2717_v35  ;;  %v2727_v59 = vrot.slane %v2726_v7, 2  ;;  %5722 = vrcp.f32 %v2703_v52  ;;  %v2639_v48 = vrot.slane %v7647_v21, 1 }
 0x744   :  { %v5715_v63 = vpop.eup %5714  ;;  %v2647_v43 = vadd.f32 %v2646_v27, %v2645_v40  ;;  %v2712_v62 = vadd.f32 %v2711_v16, %v2710_v30  ;;  %v2622_v56 = vadd.f32 %v2621_v24, %v7631_v5  ;;  %v2631_v57 = vadd.f32 %v2630_v3, %v2629_v44  ;;  %v2024_v3 = vld [vmem:[#allocation10 + $0x60] sm:$0xff] }
 0x745   :  { %v5717_v15 = vpop.eup %5716  ;;  %v2720_v31 = vrot.slane %v2719_v33, 1  ;;  %v2728_v0 = vadd.f32 %v2727_v59, %v2726_v7  ;;  %v2739_v50 = vmul.f32 %v5715_v63, %v7617_v23  ;;  %v2656_v9 = vadd.f32 %v2655_v49, %v2654_v2  ;;  %2874 = vmatpush.msra.mxu1 %v2024_v3 }
 0x746   :  { %v5719_v39 = vpop.eup %5718  ;;  %5724 = vrcp.f32 %v2712_v62  ;;  %v2740_v37 = vmul.f32 %v5717_v15, %v7622_v4  ;;  %v2640_v28 = vadd.f32 %v2639_v48, %v7647_v21  ;;  %v2648_v46 = vrot.slane %v2647_v43, 1  ;;  %v5416_v15 = vld [vmem:[#allocation10 + $0x70] ss:$0 sm:$0xff] }
 0x747   :  { %v2721_v51 = vadd.f32 %v2720_v31, %v2719_v33  ;;  %v2729_v14 = vrot.slane %v2728_v0, 1  ;;  %v2741_v26 = vmul.f32 %v5719_v39, %v2613_v22  ;;  %v2657_v44 = vrot.slane %v2656_v9, 1 }
 0x748   :  { %v5721_v60 = vpop.eup %5720  ;;  %v2770_v1 = vsel %vm1573_vm3, %v2740_v37, %v2739_v50  ;;  %v2649_v6 = vadd.f32 %v2648_v46, %v2647_v43  ;;  %v2025_v50 = vld [vmem:[#allocation10 + $0x68] sm:$0x1] }
 0x749   :  { %v5723_v5 = vpop.eup %5722  ;;  %v2730_v40 = vadd.f32 %v2729_v14, %v2728_v0  ;;  %5726 = vrcp.f32 %v2721_v51  ;;  %v2742_v55 = vmul.f32 %v5721_v60, %v2622_v56  ;;  %v2771_v23 = vsel %vm1575_vm4, %v2741_v26, %v2770_v1  ;;  %5356 = vmatpush.msk.msra.mxu3 %vm1823_vm13, %v2025_v50 }
 0x74a   :  { %v2743_v47 = vmul.f32 %v5723_v5, %v2631_v57  ;;  %v2658_v21 = vadd.f32 %v2657_v44, %v2656_v9 }
 0x74b   :  { %5728 = vrcp.f32 %v2730_v40  ;;  %v2772_v4 = vsel %vm1577_vm5, %v2742_v55, %v2771_v23 }
 0x74c   :  { %v5725_v8 = vpop.eup %5724  ;;  %v2773_v29 = vsel %vm1579_vm6, %v2743_v47, %v2772_v4 }
 0x74d   :  { %v2744_v17 = vmul.f32 %v5725_v8, %v2640_v28 }
 0x74f   :  { %v5727_v54 = vpop.eup %5726  ;;  %v2774_v32 = vsel %vm1581_vm7, %v2744_v17, %v2773_v29 }
 0x750   :  { %v2745_v13 = vmul.f32 %v5727_v54, %v2649_v6 }
 0x751   :  { %v5729_v11 = vpop.eup %5728 }
 0x752   :  { %v2746_v45 = vmul.f32 %v5729_v11, %v2658_v21  ;;  %v2775_v38 = vsel %vm1583_vm8, %v2745_v13, %v2774_v32 }
 0x754   :  { %v2776_v34 = vsel %vm8433_vm10, %v2746_v45, %v2775_v38 }
 0x755   :  { %5353 = vmatmul.msk.f32.gmra.mxu0 %vm241_vm0, %v2776_v34 }
 0x7a8   :  { %v2798_v53 = vpop.f32.mrf.mxu0 }
 0x7a9   :  { %v2804_v18 = vadd.f32 %v2798_v53, %v8434_v10 }
 0x7ab   :  { %v2806_v12 = vsel %vm241_vm0, %v2804_v18, 0.0 }
 0x7ac   :  { %2807 = vadd.xlane.f32.xlu0 %v2806_v12 }
 0x7d2   :  { %v2801_v42 = vpop.f32.mrf.mxu0 }
 0x7d3   :  { %v2805_v2 = vadd.f32 %v2801_v42, %v8435_v20 }
 0x7d5   :  { %v2809_v19 = vsel %vm241_vm0, %v2805_v2, 0.0 }
 0x7d6   :  { %2810 = vadd.xlane.f32.xlu0 %v2809_v19 }
 0x81f   :  { %v2808_v41 = vpop.xlane.xlu0 %2807 }
 0x820   :  { %v2812_v35 = vmul.f32 %v2808_v41, %v8436_v58 }
 0x822   :  { %v2814_v36 = vsub.f32 %v2804_v18, %v2812_v35 }
 0x824   :  { %v2816_v27 = vmul.f32 %v2814_v36, %v2814_v36 }
 0x826   :  { %v2818_v25 = vsel %vm241_vm0, %v2816_v27, 0.0  ;;  %v5417_v27 = vld [vmem:[#allocation10 + $0x78] ss:$0 sm:$0xff] }
 0x827   :  { %2819 = vadd.xlane.f32.xlu2 %v2818_v25 }
 0x849   :  { %v2811_v30 = vpop.xlane.xlu0 %2810 }
 0x84a   :  { %v2813_v24 = vmul.f32 %v2811_v30, %v8436_v58 }
 0x84c   :  { %v2815_v52 = vsub.f32 %v2805_v2, %v2813_v24 }
 0x84e   :  { %v2817_v61 = vmul.f32 %v2815_v52, %v2815_v52 }
 0x850   :  { %v2821_v7 = vsel %vm241_vm0, %v2817_v61, 0.0 }
 0x851   :  { %2822 = vadd.xlane.f32.xlu0 %v2821_v7 }
 0x89a   :  { %v2820_v49 = vpop.xlane.xlu2 %2819 }
 0x89b   :  { %v2824_v16 = vmul.f32 %v2820_v49, %v8436_v58 }
 0x89d   :  { %v2826_v22 = vadd.f32 1e-05, %v2824_v16 }
 0x89f   :  { %5730 = vrsqrt.f32 %v2826_v22  ;;  %vm2834_vm12 = vweird.f32 %v2826_v22 }
 0x8a5   :  { %v5731_v33 = vpop.eup %5730 }
 0x8a6   :  { %v2829_v59 = vmul.f32 %v5731_v33, %v2826_v22  ;;  %vm2835_vm11 = vweird.f32 %v5731_v33 }
 0x8a7   :  { %vm2836_vm9 = vmor %vm2834_vm12, %vm2835_vm11 }
 0x8a8   :  { %v2830_v63 = vmul.f32 %v5731_v33, %v2829_v59 }
 0x8aa   :  { %v2831_v48 = vmul.f32 0.5, %v2830_v63 }
 0x8ac   :  { %v2832_v43 = vsub.f32 1.5, %v2831_v48 }
 0x8ae   :  { %v2833_v62 = vmul.f32 %v5731_v33, %v2832_v43 }
 0x8b0   :  { %v2837_v56 = vsel %vm2836_vm9, %v5731_v33, %v2833_v62 }
 0x8b1   :  { %v2848_v31 = vmul.f32 %v2837_v56, %v2814_v36 }
 0x8b3   :  { %v2851_v0 = vmul.f32 %v5416_v15, %v2848_v31 }
 0x8b5   :  { %5354 = vmatmul.msk.f32.vlgmr.msra.gmra.mxu1 %vm241_vm0, %v2851_v0 }
 0x8c4   :  { %v2823_v39 = vpop.xlane.xlu0 %2822 }
 0x8c5   :  { %v2825_v57 = vmul.f32 %v2823_v39, %v8436_v58 }
 0x8c7   :  { %v2827_v9 = vadd.f32 1e-05, %v2825_v57 }
 0x8c9   :  { %5732 = vrsqrt.f32 %v2827_v9  ;;  %vm2844_vm15 = vweird.f32 %v2827_v9 }
 0x8cf   :  { %v5733_v37 = vpop.eup %5732 }
 0x8d0   :  { %v2839_v51 = vmul.f32 %v5733_v37, %v2827_v9  ;;  %vm2845_vm14 = vweird.f32 %v5733_v37 }
 0x8d1   :  { %vm2846_vm2 = vmor %vm2844_vm15, %vm2845_vm14 }
 0x8d2   :  { %v2840_v14 = vmul.f32 %v5733_v37, %v2839_v51 }
 0x8d4   :  { %v2841_v26 = vmul.f32 0.5, %v2840_v14 }
 0x8d6   :  { %v2842_v60 = vsub.f32 1.5, %v2841_v26 }
 0x8d8   :  { %v2843_v28 = vmul.f32 %v5733_v37, %v2842_v60 }
 0x8da   :  { %v2847_v46 = vsel %vm2846_vm2, %v5733_v37, %v2843_v28 }
 0x8db   :  { %v2849_v1 = vmul.f32 %v2847_v46, %v2815_v52  ;;  %v3052_v46 = vld [vmem:[#allocation10 + $0x88] sm:$0xff] }
 0x8dc   :  { %3109 = vmatpush.msrb.mxu1 %v3052_v46 }
 0x8dd   :  { %v2852_v5 = vmul.f32 %v5416_v15, %v2849_v1 }
 0x8df   :  { %5355 = vmatmul.msk.f32.gmra.mxu1 %vm241_vm0, %v2852_v5 }
 0x932   :  { %v2876_v40 = vpop.f32.mrf.mxu1 }
 0x933   :  { %v2882_v55 = vmax.f32 %v2876_v40, 0.0 }
 0x935   :  { %5357 = vmatmul.msk.f32.vlgmr.msra.gmra.mxu3 %vm1810_vm1, %v2882_v55  ;;  %v3051_v55 = vld [vmem:[#allocation10 + $0x80] sm:$0xff] }
 0x936   :  { %3080 = vmatpush.msrb.mxu0 %v3051_v55 }
 0x95c   :  { %v2879_v23 = vpop.f32.mrf.mxu1 }
 0x95d   :  { %v2883_v44 = vmax.f32 %v2879_v23, 0.0  ;;  %v3053_v23 = vld [vmem:[#allocation10 + $0x90] sm:$0xff] }
 0x95e   :  { %3132 = vmatpush.msrb.mxu2 %v3053_v23 }
 0x95f   :  { %5358 = vmatmul.msk.f32.gmra.mxu3 %vm1810_vm1, %v2883_v44  ;;  %v7699_v44 = vld [vmem:[#allocation8] sm:$0xff] }
 0x960   :  { %5359 = vmatmul.msk.f32.vlgmr.msrb.gmra.mxu0 %vm241_vm0, %v7699_v44 }
 0x9b8   :  { %v2910_v47 = vpop.f32.mrf.mxu3 }
 0x9b9   :  { %v2916_v4 = vadd.f32 %v2910_v47, %v2851_v0  ;;  %v7703_v47 = vld [vmem:[#allocation8 + $0x8] sm:$0xff] }
 0x9ba   :  { %5360 = vmatmul.msk.f32.gmra.mxu0 %vm241_vm0, %v7703_v47 }
 0x9bb   :  { %v2918_v8 = vsel %vm241_vm0, %v2916_v4, 0.0 }
 0x9bc   :  { %2919 = vadd.xlane.f32.xlu0 %v2918_v8 }
 0x9e2   :  { %v2913_v6 = vpop.f32.mrf.mxu3 }
 0x9e3   :  { %v2917_v29 = vadd.f32 %v2913_v6, %v2852_v5 }
 0x9e5   :  { %v2921_v17 = vsel %vm241_vm0, %v2917_v29, 0.0 }
 0x9e6   :  { %2922 = vadd.xlane.f32.xlu0 %v2921_v17 }
 0xa2f   :  { %v2920_v21 = vpop.xlane.xlu0 %2919 }
 0xa30   :  { %v2924_v54 = vmul.f32 %v2920_v21, %v8436_v58 }
 0xa32   :  { %v2926_v32 = vsub.f32 %v2916_v4, %v2924_v54 }
 0xa34   :  { %v2928_v13 = vmul.f32 %v2926_v32, %v2926_v32 }
 0xa36   :  { %v2930_v11 = vsel %vm241_vm0, %v2928_v13, 0.0 }
 0xa37   :  { %2931 = vadd.xlane.f32.xlu0 %v2930_v11  ;;  %v3082_v11 = vpop.f32.mrf.mxu0 }
 0xa38   :  { %vm3154_vm2 = vcmp.gt.f32.partialorder %v3082_v11, 0.0 }
 0xa59   :  { %v2923_v45 = vpop.xlane.xlu0 %2922 }
 0xa5a   :  { %v2925_v38 = vmul.f32 %v2923_v45, %v8436_v58 }
 0xa5c   :  { %v2927_v34 = vsub.f32 %v2917_v29, %v2925_v38 }
 0xa5e   :  { %v2929_v53 = vmul.f32 %v2927_v34, %v2927_v34 }
 0xa60   :  { %v2933_v10 = vsel %vm241_vm0, %v2929_v53, 0.0 }
 0xa61   :  { %2934 = vadd.xlane.f32.xlu1 %v2933_v10 }
 0xaaa   :  { %v2932_v18 = vpop.xlane.xlu0 %2931 }
 0xaab   :  { %v2936_v12 = vmul.f32 %v2932_v18, %v8436_v58  ;;  %v3160_v18 = vrot.slane %v3082_v11, 2 }
 0xaad   :  { %v2938_v42 = vadd.f32 1e-05, %v2936_v12  ;;  %v3161_v12 = vrot.slane %v3082_v11, 3 }
 0xaaf   :  { %5734 = vrsqrt.f32 %v2938_v42  ;;  %vm2946_vm11 = vweird.f32 %v2938_v42 }
 0xab5   :  { %v5735_v20 = vpop.eup %5734 }
 0xab6   :  { %v2941_v2 = vmul.f32 %v5735_v20, %v2938_v42  ;;  %vm2947_vm10 = vweird.f32 %v5735_v20 }
 0xab7   :  { %vm2948_vm12 = vmor %vm2946_vm11, %vm2947_vm10  ;;  %vm8437_vm11 = vcmask 1047559  }
 0xab8   :  { %v2942_v19 = vmul.f32 %v5735_v20, %v2941_v2  ;;  %v3162_v2 = vrot.slane %v3082_v11, 4 }
 0xaba   :  { %v2943_v41 = vmul.f32 0.5, %v2942_v19  ;;  %v3163_v19 = vrot.slane %v3082_v11, 5 }
 0xabc   :  { %v2944_v35 = vsub.f32 1.5, %v2943_v41  ;;  %v3164_v41 = vrot.slane %v3082_v11, 6 }
 0xabe   :  { %v2945_v36 = vmul.f32 %v5735_v20, %v2944_v35  ;;  %v3166_v35 = vperm.slane %v3082_v11, 0 }
 0xac0   :  { %v2949_v25 = vsel %vm2948_vm12, %v5735_v20, %v2945_v36  ;;  %vm8438_vm12 = vmmov %vm8437_vm11 }
 0xac1   :  { %v2960_v30 = vmul.f32 %v2949_v25, %v2926_v32 }
 0xac3   :  { %v2963_v24 = vmul.f32 %v5417_v27, %v2960_v30  ;;  %v3168_v30 = vperm.slane %v3160_v18, 0 }
 0xac5   :  { %v2965_v52 = vsel %vm241_vm0, %v2963_v24, -inf }
 0xac6   :  { %2966 = vmax.xlane.f32.xlu0 %v2965_v52 }
 0xad4   :  { %v2935_v61 = vpop.xlane.xlu1 %2934 }
 0xad5   :  { %v2937_v7 = vmul.f32 %v2935_v61, %v8436_v58 }
 0xad7   :  { %v2939_v3 = vadd.f32 1e-05, %v2937_v7  ;;  %v3170_v7 = vperm.slane %v3162_v2, 0 }
 0xad9   :  { %5736 = vrsqrt.f32 %v2939_v3  ;;  %vm2956_vm14 = vweird.f32 %v2939_v3 }
 0xadf   :  { %v5737_v49 = vpop.eup %5736 }
 0xae0   :  { %v2951_v16 = vmul.f32 %v5737_v49, %v2939_v3  ;;  %vm2957_vm9 = vweird.f32 %v5737_v49  ;;  %v3171_v3 = vperm.slane %v3163_v19, 0 }
 0xae1   :  { %vm2958_vm15 = vmor %vm2956_vm14, %vm2957_vm9 }
 0xae2   :  { %v2952_v22 = vmul.f32 %v5737_v49, %v2951_v16 }
 0xae4   :  { %v2953_v33 = vmul.f32 0.5, %v2952_v22 }
 0xae6   :  { %v2954_v59 = vsub.f32 1.5, %v2953_v33 }
 0xae8   :  { %v2955_v63 = vmul.f32 %v5737_v49, %v2954_v59 }
 0xaea   :  { %v2959_v48 = vsel %vm2958_vm15, %v5737_v49, %v2955_v63  ;;  %v3172_v49 = vperm.slane %v3164_v41, 0 }
 0xaeb   :  { %v2961_v43 = vmul.f32 %v2959_v48, %v2927_v34  ;;  %v3159_v34 = vrot.slane %v3082_v11, 1  ;;  %v3165_v48 = vrot.slane %v3082_v11, 7 }
 0xaed   :  { %v2964_v62 = vmul.f32 %v5417_v27, %v2961_v43  ;;  %v3167_v36 = vperm.slane %v3159_v34, 0 }
 0xaef   :  { %v2968_v15 = vsel %vm241_vm0, %v2964_v62, -inf }
 0xaf0   :  { %2969 = vmax.xlane.f32.xlu0 %v2968_v15 }
 0xb39   :  { %v2967_v56 = vpop.xlane.xlu0 %2966 }
 0xb3a   :  { %v2971_v31 = vsub.f32 %v2963_v24, %v2967_v56  ;;  %v3169_v24 = vperm.slane %v3161_v12, 0 }
 0xb3c   :  { %v2973_v0 = vmul.f32 1.442695, %v2971_v31 }
 0xb3e   :  { %5738 = vpow2.f32 %v2973_v0 }
 0xb44   :  { %v5739_v50 = vpop.eup %5738 }
 0xb45   :  { %v2977_v39 = vsel %vm241_vm0, %v5739_v50, 0.0 }
 0xb46   :  { %2978 = vadd.xlane.f32.xlu0 %v2977_v39 }
 0xb63   :  { %v2970_v57 = vpop.xlane.xlu0 %2969 }
 0xb64   :  { %v2972_v9 = vsub.f32 %v2964_v62, %v2970_v57 }
 0xb66   :  { %v2975_v37 = vmul.f32 1.442695, %v2972_v9 }
 0xb68   :  { %5740 = vpow2.f32 %v2975_v37 }
 0xb6e   :  { %v5741_v51 = vpop.eup %5740 }
 0xb6f   :  { %v2980_v14 = vsel %vm241_vm0, %v5741_v51, 0.0 }
 0xb70   :  { %2981 = vadd.xlane.f32.xlu0 %v2980_v14 }
 0xbb9   :  { %v2979_v26 = vpop.xlane.xlu0 %2978 }
 0xbba   :  { %5742 = vrcp.f32 %v2979_v26 }
 0xbc0   :  { %v5743_v60 = vpop.eup %5742 }
 0xbc1   :  { %v2985_v28 = vmul.f32 %v5743_v60, %v5739_v50 }
 0xbc3   :  { %2987 = vxpose.xlu0.b32.start.end [1/1] (short) (narrow) %v2985_v28, 8  ;;  %v3173_v28 = vperm.slane %v3165_v48, 0 }
 0xbe3   :  { %v2982_v1 = vpop.xlane.xlu0 %2981 }
 0xbe4   :  { %5744 = vrcp.f32 %v2982_v1 }
 0xbea   :  { %v5745_v5 = vpop.eup %5744 }
 0xbeb   :  { %v2986_v40 = vmul.f32 %v5745_v5, %v5741_v51 }
 0xbed   :  { %3019 = vxpose.xlu0.b32.start.end [1/1] (short) (narrow) %v2986_v40, 8 }
 0xc67   :  { %v3003_v4 = vpop.trf.xlu0 }
 0xc68   :  { %5361 = vmatmul.msk.f32.vlgmr.msrb.gmra.mxu1 %vm241_vm0, %v3003_v4  ;;  %5363 = vmatmul.msk.f32.vlgmr.msrb.gmra.mxu2 %vm241_vm0, %v3003_v4 }
 0xc91   :  { %v3035_v8 = vpop.trf.xlu0 }
 0xc92   :  { %5362 = vmatmul.msk.f32.gmra.mxu1 %vm241_vm0, %v3035_v8  ;;  %5364 = vmatmul.msk.f32.gmra.mxu2 %vm241_vm0, %v3035_v8 }
 0xce5   :  { %v7711_v6 = vpop.f32.mrf.mxu1 }
 0xce6   :  { %v3140_v29 = vsel %vm241_vm0, %v7711_v6, -inf  ;;  %v3147_v17 = vsel %vm241_vm0, %v7711_v6, inf  ;;  %v3182_v16 = vmul.f32 %v3166_v35, %v7711_v6  ;;  %v3183_v22 = vmul.f32 %v3167_v36, %v7711_v6 }
 0xce7   :  { %v3141_v21 = vrot.slane %v3140_v29, 4  ;;  %v3148_v54 = vrot.slane %v3147_v17, 4  ;;  %v3184_v59 = vmul.f32 %v3168_v30, %v7711_v6  ;;  %v3185_v63 = vmul.f32 %v3169_v24, %v7711_v6 }
 0xce8   :  { %v3186_v31 = vmul.f32 %v3170_v7, %v7711_v6  ;;  %v3187_v55 = vmul.f32 %v3171_v3, %v7711_v6  ;;  %v3188_v8 = vmul.f32 %v3172_v49, %v7711_v6 }
 0xce9   :  { %v3142_v32 = vmax.f32 %v3140_v29, %v3141_v21  ;;  %v3149_v13 = vmin.f32 %v3147_v17, %v3148_v54 }
 0xceb   :  { %v3143_v45 = vrot.slane %v3142_v32, 2  ;;  %v3150_v38 = vrot.slane %v3149_v13, 2 }
 0xced   :  { %v3144_v53 = vmax.f32 %v3142_v32, %v3143_v45  ;;  %v3151_v10 = vmin.f32 %v3149_v13, %v3150_v38  ;;  %v7724_v13 = vpop.f32.mrf.mxu0  ;;  %v3189_v45 = vmul.f32 %v3173_v28, %v7711_v6 }
 0xcee   :  { %v3394_v12 = vrot.slane %v7724_v13, 2  ;;  %v3395_v41 = vrot.slane %v7724_v13, 3  ;;  %v3396_v6 = vrot.slane %v7724_v13, 4  ;;  %vm3388_vm10 = vcmp.gt.f32.partialorder %v7724_v13, 0.0 }
 0xcef   :  { %v3145_v42 = vrot.slane %v3144_v53, 1  ;;  %v3152_v20 = vrot.slane %v3151_v10, 1 }
 0xcf0   :  { %v7742_v7 = vperm.slane %v3394_v12, 0 }
 0xcf1   :  { %v3146_v27 = vmax.f32 %v3144_v53, %v3145_v42  ;;  %v3153_v25 = vmin.f32 %v3151_v10, %v3152_v20  ;;  %v3393_v10 = vrot.slane %v7724_v13, 1  ;;  %v7729_v20 = vpop.f32.mrf.mxu2 }
 0xcf3   :  { %v3155_v52 = vmul.f32 %v3146_v27, %v3082_v11  ;;  %v3156_v61 = vmul.f32 %v3153_v25, %v3082_v11  ;;  %v3400_v25 = vperm.slane %v7724_v13, 0  ;;  %v7736_v30 = vperm.slane %v3393_v10, 0 }
 0xcf5   :  { %v3157_v33 = vsel %vm3154_vm2, %v3155_v52, %v3156_v61 }
 0xcf6   :  { %v3191_v43 = vrot.slane %v3157_v33, 1  ;;  %v3192_v62 = vrot.slane %v3157_v33, 2  ;;  %v3193_v15 = vrot.slane %v3157_v33, 3  ;;  %v3194_v56 = vrot.slane %v3157_v33, 4 }
 0xcf7   :  { %v3195_v0 = vrot.slane %v3157_v33, 5  ;;  %v3196_v50 = vrot.slane %v3157_v33, 6  ;;  %v3198_v39 = vperm.slane %v3157_v33, 0  ;;  %v3197_v4 = vrot.slane %v3157_v33, 7 }
 0xcf8   :  { %v3199_v57 = vperm.slane %v3191_v43, 0  ;;  %v3200_v9 = vperm.slane %v3192_v62, 0  ;;  %v3201_v37 = vperm.slane %v3193_v15, 0  ;;  %v3202_v51 = vperm.slane %v3194_v56, 0 }
 0xcf9   :  { %v3203_v14 = vperm.slane %v3195_v0, 0  ;;  %v3204_v26 = vperm.slane %v3196_v50, 0  ;;  %v3214_v60 = vsub.f32 %v3182_v16, %v3198_v39  ;;  %v3205_v38 = vperm.slane %v3197_v4, 0 }
 0xcfa   :  { %v3215_v46 = vsub.f32 %v3183_v22, %v3199_v57  ;;  %v3216_v1 = vsub.f32 %v3184_v59, %v3200_v9  ;;  %v3217_v5 = vsub.f32 %v3185_v63, %v3201_v37  ;;  %v3218_v40 = vsub.f32 %v3186_v31, %v3202_v51 }
 0xcfb   :  { %v3222_v23 = vmul.f32 1.442695, %v3214_v60  ;;  %v3219_v54 = vsub.f32 %v3187_v55, %v3203_v14  ;;  %v3220_v11 = vsub.f32 %v3188_v8, %v3204_v26  ;;  %v3221_v34 = vsub.f32 %v3189_v45, %v3205_v38 }
 0xcfc   :  { %v3224_v29 = vmul.f32 1.442695, %v3215_v46  ;;  %v3226_v17 = vmul.f32 1.442695, %v3216_v1  ;;  %v3228_v21 = vmul.f32 1.442695, %v3217_v5 }
 0xcfd   :  { %5746 = vpow2.f32 %v3222_v23  ;;  %v3230_v32 = vmul.f32 1.442695, %v3218_v40  ;;  %v3232_v53 = vmul.f32 1.442695, %v3219_v54  ;;  %v3234_v18 = vmul.f32 1.442695, %v3220_v11 }
 0xcfe   :  { %5748 = vpow2.f32 %v3224_v29  ;;  %v3236_v35 = vmul.f32 1.442695, %v3221_v34  ;;  %v3397_v33 = vrot.slane %v7724_v13, 5  ;;  %v7756_v56 = vperm.slane %v3395_v41, 0 }
 0xcff   :  { %5750 = vpow2.f32 %v3226_v17  ;;  %v3398_v31 = vrot.slane %v7724_v13, 6  ;;  %v7761_v57 = vperm.slane %v3396_v6, 0  ;;  %v3399_v14 = vrot.slane %v7724_v13, 7 }
 0xd00   :  { %5752 = vpow2.f32 %v3228_v21  ;;  %v7767_v26 = vperm.slane %v3397_v33, 0 }
 0xd01   :  { %5754 = vpow2.f32 %v3230_v32  ;;  %v7775_v4 = vperm.slane %v3398_v31, 0 }
 0xd02   :  { %5756 = vpow2.f32 %v3232_v53 }
 0xd03   :  { %v5747_v42 = vpop.eup %5746  ;;  %5758 = vpow2.f32 %v3234_v18  ;;  %v7784_v18 = vperm.slane %v3399_v14, 0 }
 0xd04   :  { %v5749_v2 = vpop.eup %5748  ;;  %v3238_v19 = vmul.f32 %v5747_v42, %v7729_v20  ;;  %5760 = vpow2.f32 %v3236_v35  ;;  %v3302_v50 = vsel %vm241_vm0, %v5747_v42, 0.0 }
 0xd05   :  { %v5751_v36 = vpop.eup %5750  ;;  %v3239_v27 = vmul.f32 %v5749_v2, %v7729_v20  ;;  %v3309_v39 = vsel %vm241_vm0, %v5749_v2, 0.0  ;;  %v3303_v40 = vrot.slane %v3302_v50, 4 }
 0xd06   :  { %v7738_v24 = vpop.eup %5752  ;;  %v3240_v52 = vmul.f32 %v5751_v36, %v7729_v20  ;;  %v3246_v61 = vsel %vm241_vm0, %v3238_v19, 0.0  ;;  %v3310_v55 = vrot.slane %v3309_v39, 4  ;;  %v3316_v21 = vsel %vm241_vm0, %v5751_v36, 0.0 }
 0xd07   :  { %v7744_v3 = vpop.eup %5754  ;;  %v3241_v49 = vmul.f32 %v7738_v24, %v7729_v20  ;;  %v3247_v16 = vrot.slane %v3246_v61, 4  ;;  %v3253_v22 = vsel %vm241_vm0, %v3239_v27, 0.0  ;;  %v3304_v12 = vadd.f32 %v3303_v40, %v3302_v50 }
 0xd08   :  { %v3242_v59 = vmul.f32 %v7744_v3, %v7729_v20  ;;  %v3254_v63 = vrot.slane %v3253_v22, 4  ;;  %v3260_v48 = vsel %vm241_vm0, %v3240_v52, 0.0  ;;  %v7763_v9 = vpop.eup %5756  ;;  %v3311_v42 = vadd.f32 %v3310_v55, %v3309_v39 }
 0xd09   :  { %v3248_v43 = vadd.f32 %v3247_v16, %v3246_v61  ;;  %v3267_v62 = vsel %vm241_vm0, %v3241_v49, 0.0  ;;  %v3261_v0 = vrot.slane %v3260_v48, 4  ;;  %v7769_v60 = vpop.eup %5758  ;;  %v3243_v32 = vmul.f32 %v7763_v9, %v7729_v20  ;;  %v3054_v61 = vld [vmem:[#allocation10 + $0x98] sm:$0xff] }
 0xd0a   :  { %v3255_v37 = vadd.f32 %v3254_v63, %v3253_v22  ;;  %v3274_v51 = vsel %vm241_vm0, %v3242_v59, 0.0  ;;  %v3268_v46 = vrot.slane %v3267_v62, 4  ;;  %v7777_v8 = vpop.eup %5760  ;;  %v3244_v11 = vmul.f32 %v7769_v60, %v7729_v20  ;;  %3657 = vmatpush.msrb.mxu3 %v3054_v61 }
 0xd0b   :  { %v3249_v28 = vrot.slane %v3248_v43, 2  ;;  %v3262_v29 = vadd.f32 %v3261_v0, %v3260_v48  ;;  %v3275_v17 = vrot.slane %v3274_v51, 4  ;;  %v3245_v19 = vmul.f32 %v7777_v8, %v7729_v20 }
 0xd0c   :  { %v3256_v45 = vrot.slane %v3255_v37, 2  ;;  %v3269_v53 = vadd.f32 %v3268_v46, %v3267_v62  ;;  %v3317_v35 = vrot.slane %v3316_v21, 4  ;;  %v3281_v49 = vsel %vm241_vm0, %v3243_v32, 0.0 }
 0xd0d   :  { %v3250_v34 = vadd.f32 %v3249_v28, %v3248_v43  ;;  %v3263_v41 = vrot.slane %v3262_v29, 2  ;;  %v3276_v6 = vadd.f32 %v3275_v17, %v3274_v51  ;;  %v3288_v16 = vsel %vm241_vm0, %v3244_v11, 0.0 }
 0xd0e   :  { %v3257_v27 = vadd.f32 %v3256_v45, %v3255_v37  ;;  %v3270_v33 = vrot.slane %v3269_v53, 2  ;;  %v3282_v48 = vrot.slane %v3281_v49, 4  ;;  %v3289_v43 = vrot.slane %v3288_v16, 4 }
 0xd0f   :  { %v7754_v15 = vpop.f32.mrf.mxu1  ;;  %v3251_v22 = vrot.slane %v3250_v34, 1  ;;  %v3295_v62 = vsel %vm241_vm0, %v3245_v19, 0.0  ;;  %v7795_v31 = vadd.f32 %v3263_v41, %v3262_v29  ;;  %v3277_v46 = vrot.slane %v3276_v6, 2 }
 0xd10   :  { %v3374_v1 = vsel %vm241_vm0, %v7754_v15, -inf  ;;  %v3381_v5 = vsel %vm241_vm0, %v7754_v15, inf  ;;  %v3416_v63 = vmul.f32 %v3400_v25, %v7754_v15  ;;  %v3417_v50 = vmul.f32 %v7736_v30, %v7754_v15 }
 0xd11   :  { %v3375_v23 = vrot.slane %v3374_v1, 4  ;;  %v3382_v54 = vrot.slane %v3381_v5, 4  ;;  %v3296_v39 = vrot.slane %v3295_v62, 4  ;;  %v3258_v37 = vrot.slane %v3257_v27, 1 }
 0xd12   :  { %v3418_v14 = vmul.f32 %v7742_v7, %v7754_v15  ;;  %v3283_v28 = vadd.f32 %v3282_v48, %v3281_v49  ;;  %v3419_v55 = vmul.f32 %v7756_v56, %v7754_v15  ;;  %v7808_v30 = vadd.f32 %v3270_v33, %v3269_v53 }
 0xd13   :  { %v3376_v38 = vmax.f32 %v3374_v1, %v3375_v23  ;;  %v3383_v10 = vmin.f32 %v3381_v5, %v3382_v54  ;;  %v3290_v1 = vadd.f32 %v3289_v43, %v3288_v16  ;;  %v3305_v5 = vrot.slane %v3304_v12, 2 }
 0xd14   :  { %v7806_v23 = vmul.f32 %v7761_v57, %v7754_v15  ;;  %v3297_v17 = vadd.f32 %v3296_v39, %v3295_v62  ;;  %v3312_v7 = vrot.slane %v3311_v42, 2  ;;  %v3318_v54 = vadd.f32 %v3317_v35, %v3316_v21 }
 0xd15   :  { %v3377_v2 = vrot.slane %v3376_v38, 2  ;;  %v3384_v36 = vrot.slane %v3383_v10, 2  ;;  %v7811_v32 = vadd.f32 %v3251_v22, %v3250_v34  ;;  %v7813_v11 = vadd.f32 %v3258_v37, %v3257_v27 }
 0xd16   :  { %v3265_v45 = vrot.slane %v7795_v31, 1  ;;  %v7820_v57 = vadd.f32 %v3277_v46, %v3276_v6  ;;  %v3291_v53 = vrot.slane %v3290_v1, 2  ;;  %v3272_v34 = vrot.slane %v7808_v30, 1 }
 0xd17   :  { %v3378_v52 = vmax.f32 %v3376_v38, %v3377_v2  ;;  %v3385_v59 = vmin.f32 %v3383_v10, %v3384_v36  ;;  %v3284_v38 = vrot.slane %v3283_v28, 2  ;;  %v3306_v10 = vadd.f32 %v3305_v5, %v3304_v12 }
 0xd18   :  { %v3298_v35 = vrot.slane %v3297_v17, 2  ;;  %v3313_v36 = vadd.f32 %v3312_v7, %v3311_v42  ;;  %v3319_v27 = vrot.slane %v3318_v54, 2  ;;  %v3279_v12 = vrot.slane %v7820_v57, 1 }
 0xd19   :  { %v3379_v20 = vrot.slane %v3378_v52, 1  ;;  %v3386_v0 = vrot.slane %v3385_v59, 1  ;;  %v7827_v6 = vadd.f32 %v3284_v38, %v3283_v28  ;;  %v7830_v16 = vadd.f32 %v3291_v53, %v3290_v1 }
 0xd1a   :  { %v3307_v22 = vrot.slane %v3306_v10, 1  ;;  %v3323_v48 = vsel %vm241_vm0, %v7738_v24, 0.0  ;;  %v7834_v42 = vadd.f32 %v3298_v35, %v3297_v17  ;;  %v3314_v62 = vrot.slane %v3313_v36, 1  ;;  %v7848_v35 = vpop.f32.mrf.mxu2 }
 0xd1b   :  { %v3380_v51 = vmax.f32 %v3378_v52, %v3379_v20  ;;  %v3387_v25 = vmin.f32 %v3385_v59, %v3386_v0  ;;  %v3320_v0 = vadd.f32 %v3319_v27, %v3318_v54  ;;  %v3330_v46 = vsel %vm241_vm0, %v7744_v3, 0.0 }
 0xd1c   :  { %v3308_v28 = vadd.f32 %v3307_v22, %v3306_v10  ;;  %v3337_v24 = vsel %vm241_vm0, %v7763_v9, 0.0  ;;  %v3344_v1 = vsel %vm241_vm0, %v7769_v60, 0.0  ;;  %v3315_v5 = vadd.f32 %v3314_v62, %v3313_v36 }
 0xd1d   :  { %v3389_v40 = vmul.f32 %v3380_v51, %v7724_v13  ;;  %v3390_v29 = vmul.f32 %v3387_v25, %v7724_v13  ;;  %v3286_v51 = vrot.slane %v7827_v6, 1  ;;  %v3321_v25 = vrot.slane %v3320_v0, 1 }
 0xd1e   :  { %v3345_v17 = vrot.slane %v3344_v1, 4  ;;  %v3351_v7 = vsel %vm241_vm0, %v7777_v8, 0.0  ;;  %v3293_v36 = vrot.slane %v7830_v16, 1  ;;  %v3280_v62 = vadd.f32 %v3279_v12, %v7820_v57 }
 0xd1f   :  { %v7818_v56 = vsel %vm3388_vm10, %v3389_v40, %v3390_v29  ;;  %v3338_v29 = vrot.slane %v3337_v24, 4  ;;  %v3322_v54 = vadd.f32 %v3321_v25, %v3320_v0  ;;  %v3352_v3 = vrot.slane %v3351_v7, 4 }
 0xd20   :  { %v3425_v2 = vrot.slane %v7818_v56, 1  ;;  %v3426_v19 = vrot.slane %v7818_v56, 2  ;;  %v3427_v21 = vrot.slane %v7818_v56, 3  ;;  %v3432_v41 = vperm.slane %v7818_v56, 0 }
 0xd21   :  { %v3428_v39 = vrot.slane %v7818_v56, 4  ;;  %v3339_v9 = vadd.f32 %v3338_v29, %v3337_v24  ;;  %v3300_v0 = vrot.slane %v7834_v42, 1  ;;  %v3421_v57 = vmul.f32 %v7767_v26, %v7754_v15 }
 0xd22   :  { %v3433_v13 = vperm.slane %v3425_v2, 0  ;;  %v3434_v52 = vperm.slane %v3426_v19, 0  ;;  %v3435_v61 = vperm.slane %v3427_v21, 0  ;;  %v3448_v49 = vsub.f32 %v3416_v63, %v3432_v41 }
 0xd23   :  { %v3436_v10 = vperm.slane %v3428_v39, 0  ;;  %v3346_v2 = vadd.f32 %v3345_v17, %v3344_v1  ;;  %v3353_v41 = vadd.f32 %v3352_v3, %v3351_v7  ;;  %v3340_v27 = vrot.slane %v3339_v9, 2 }
 0xd24   :  { %v3449_v33 = vsub.f32 %v3417_v50, %v3433_v13  ;;  %v3450_v59 = vsub.f32 %v3418_v14, %v3434_v52  ;;  %v3451_v20 = vsub.f32 %v3419_v55, %v3435_v61  ;;  %v3456_v43 = vmul.f32 1.442695, %v3448_v49 }
 0xd25   :  { %v3324_v50 = vrot.slane %v3323_v48, 4  ;;  %v3331_v55 = vrot.slane %v3330_v46, 4  ;;  %v3347_v8 = vrot.slane %v3346_v2, 2  ;;  %v3354_v39 = vrot.slane %v3353_v41, 2 }
 0xd26   :  { %v3458_v37 = vmul.f32 1.442695, %v3449_v33  ;;  %v3460_v63 = vmul.f32 1.442695, %v3450_v59  ;;  %5762 = vpow2.f32 %v3456_v43  ;;  %v3462_v14 = vmul.f32 1.442695, %v3451_v20 }
 0xd27   :  { %v3325_v40 = vadd.f32 %v3324_v50, %v3323_v48  ;;  %v3332_v53 = vadd.f32 %v3331_v55, %v3330_v46  ;;  %v3452_v33 = vsub.f32 %v7806_v23, %v3436_v10  ;;  %v3266_v59 = vadd.f32 %v3265_v45, %v7795_v31 }
 0xd28   :  { %5764 = vpow2.f32 %v3458_v37  ;;  %v3341_v20 = vadd.f32 %v3340_v27, %v3339_v9  ;;  %v3348_v48 = vadd.f32 %v3347_v8, %v3346_v2  ;;  %v3273_v43 = vadd.f32 %v3272_v34, %v7808_v30 }
 0xd29   :  { %5766 = vpow2.f32 %v3460_v63  ;;  %v3326_v38 = vrot.slane %v3325_v40, 2  ;;  %v3333_v21 = vrot.slane %v3332_v53, 2  ;;  %v3287_v63 = vadd.f32 %v3286_v51, %v7827_v6 }
 0xd2a   :  { %5768 = vpow2.f32 %v3462_v14  ;;  %v3294_v50 = vadd.f32 %v3293_v36, %v7830_v16  ;;  %v3342_v30 = vrot.slane %v3341_v20, 1  ;;  %v3464_v12 = vmul.f32 1.442695, %v3452_v33 }
 0xd2b   :  { %v3327_v60 = vadd.f32 %v3326_v38, %v3325_v40  ;;  %5770 = vrcp.f32 %v3308_v28  ;;  %v3334_v49 = vadd.f32 %v3333_v21, %v3332_v53  ;;  %v3349_v46 = vrot.slane %v3348_v48, 1 }
 0xd2c   :  { %v7846_v19 = vpop.eup %5762  ;;  %5772 = vrcp.f32 %v3315_v5  ;;  %v3422_v24 = vmul.f32 %v7775_v4, %v7754_v15  ;;  %v3343_v5 = vadd.f32 %v3342_v30, %v3341_v20  ;;  %v3355_v16 = vadd.f32 %v3354_v39, %v3353_v41 }
 0xd2d   :  { %v3472_v52 = vmul.f32 %v7846_v19, %v7848_v35  ;;  %v3328_v61 = vrot.slane %v3327_v60, 1  ;;  %5774 = vrcp.f32 %v3322_v54  ;;  %v3335_v31 = vrot.slane %v3334_v49, 1 }
 0xd2e   :  { %v7851_v13 = vpop.eup %5764  ;;  %v3350_v26 = vadd.f32 %v3349_v46, %v3348_v48  ;;  %v3356_v29 = vrot.slane %v3355_v16, 1  ;;  %v3429_v54 = vrot.slane %v7818_v56, 5  ;;  %v3430_v38 = vrot.slane %v7818_v56, 6 }
 0xd2f   :  { %v7855_v22 = vpop.eup %5766  ;;  %v3473_v23 = vmul.f32 %v7851_v13, %v7848_v35  ;;  %v3329_v28 = vadd.f32 %v3328_v61, %v3327_v60  ;;  %v3480_v25 = vsel %vm241_vm0, %v3472_v52, 0.0  ;;  %v3336_v14 = vadd.f32 %v3335_v31, %v3334_v49 }
 0xd30   :  { %v7866_v37 = vpop.eup %5768  ;;  %v3474_v6 = vmul.f32 %v7855_v22, %v7848_v35  ;;  %v3481_v40 = vrot.slane %v3480_v25, 4  ;;  %v3357_v53 = vadd.f32 %v3356_v29, %v3355_v16  ;;  %v3431_v10 = vrot.slane %v7818_v56, 7 }
 0xd31   :  { %v5771_v45 = vpop.eup %5770  ;;  %v3475_v51 = vmul.f32 %v7866_v37, %v7848_v35  ;;  %v3487_v55 = vsel %vm241_vm0, %v3473_v23, 0.0  ;;  %5776 = vrcp.f32 %v3329_v28  ;;  %v3437_v60 = vperm.slane %v3429_v54, 0 }
 0xd32   :  { %v5773_v34 = vpop.eup %5772  ;;  %5778 = vrcp.f32 %v3336_v14  ;;  %v3366_v17 = vmul.f32 %v5771_v45, %v7811_v32  ;;  %v3488_v9 = vrot.slane %v3487_v55, 4  ;;  %v3494_v2 = vsel %vm241_vm0, %v3474_v6, 0.0 }
 0xd33   :  { %v5775_v1 = vpop.eup %5774  ;;  %v3367_v4 = vmul.f32 %v5773_v34, %v7813_v11  ;;  %5780 = vrcp.f32 %v3343_v5  ;;  %v3438_v21 = vperm.slane %v3430_v38, 0  ;;  %v3501_v32 = vsel %vm241_vm0, %v3475_v51, 0.0 }
 0xd34   :  { %v3368_v7 = vmul.f32 %v5775_v1, %v3266_v59  ;;  %5782 = vrcp.f32 %v3350_v26  ;;  %v3423_v11 = vmul.f32 %v7784_v18, %v7754_v15  ;;  %v3439_v41 = vperm.slane %v3431_v10, 0 }
 0xd35   :  { %v3616_v3 = vsel %vm1573_vm3, %v3367_v4, %v3366_v17  ;;  %5784 = vrcp.f32 %v3357_v53  ;;  %v3453_v8 = vsub.f32 %v3421_v57, %v3437_v60  ;;  %v3454_v52 = vsub.f32 %v3422_v24, %v3438_v21 }
 0xd36   :  { %5786 = vpow2.f32 %v3464_v12  ;;  %v3617_v27 = vsel %vm1575_vm4, %v3368_v7, %v3616_v3  ;;  %v3482_v56 = vadd.f32 %v3481_v40, %v3480_v25  ;;  %v3495_v49 = vrot.slane %v3494_v2, 4 }
 0xd37   :  { %v5777_v36 = vpop.eup %5776  ;;  %v3455_v59 = vsub.f32 %v3423_v11, %v3439_v41  ;;  %v3502_v48 = vrot.slane %v3501_v32, 4  ;;  %v3466_v23 = vmul.f32 1.442695, %v3453_v8  ;;  %v3468_v28 = vmul.f32 1.442695, %v3454_v52 }
 0xd38   :  { %v5779_v61 = vpop.eup %5778  ;;  %v3369_v33 = vmul.f32 %v5777_v36, %v3273_v43  ;;  %v3489_v45 = vadd.f32 %v3488_v9, %v3487_v55  ;;  %v3301_v57 = vadd.f32 %v3300_v0, %v7834_v42  ;;  %v3496_v12 = vadd.f32 %v3495_v49, %v3494_v2 }
 0xd39   :  { %v5781_v20 = vpop.eup %5780  ;;  %v3370_v39 = vmul.f32 %v5779_v61, %v3280_v62  ;;  %v3470_v30 = vmul.f32 1.442695, %v3455_v59  ;;  %5788 = vpow2.f32 %v3466_v23  ;;  %v3503_v24 = vadd.f32 %v3502_v48, %v3501_v32 }
 0xd3a   :  { %v5783_v31 = vpop.eup %5782  ;;  %v3371_v15 = vmul.f32 %v5781_v20, %v3287_v63  ;;  %v3618_v18 = vsel %vm1577_vm5, %v3369_v33, %v3617_v27  ;;  %5790 = vpow2.f32 %v3468_v28  ;;  %v3483_v1 = vrot.slane %v3482_v56, 2 }
 0xd3b   :  { %v3372_v34 = vmul.f32 %v5783_v31, %v3294_v50  ;;  %v3619_v25 = vsel %vm1579_vm6, %v3370_v39, %v3618_v18  ;;  %v5785_v43 = vpop.eup %5784  ;;  %5792 = vpow2.f32 %v3470_v30  ;;  %v3490_v6 = vrot.slane %v3489_v45, 2 }
 0xd3c   :  { %v3620_v62 = vsel %vm1581_vm7, %v3371_v15, %v3619_v25  ;;  %v5787_v14 = vpop.eup %5786  ;;  %v3373_v46 = vmul.f32 %v5785_v43, %v3301_v57  ;;  %v3536_v42 = vsel %vm241_vm0, %v7846_v19, 0.0  ;;  %v3543_v0 = vsel %vm241_vm0, %v7851_v13, 0.0 }
 0xd3d   :  { %v3621_v63 = vsel %vm1583_vm8, %v3372_v34, %v3620_v62  ;;  %v3537_v51 = vrot.slane %v3536_v42, 4  ;;  %v3544_v5 = vrot.slane %v3543_v0, 4  ;;  %v3550_v16 = vsel %vm241_vm0, %v7855_v22, 0.0 }
 0xd3e   :  { %v3622_v50 = vsel %vm8437_vm11, %v3373_v46, %v3621_v63  ;;  %v3476_v40 = vmul.f32 %v5787_v14, %v7848_v35  ;;  %v3497_v55 = vrot.slane %v3496_v12, 2  ;;  %v3551_v26 = vrot.slane %v3550_v16, 4 }
 0xd3f   :  { %5365 = vmatmul.msk.f32.vlgmr.msrb.gmra.mxu3 %vm241_vm0, %v3622_v50  ;;  %v3557_v29 = vsel %vm241_vm0, %v7866_v37, 0.0  ;;  %v5789_v19 = vpop.eup %5788  ;;  %v3504_v17 = vrot.slane %v3503_v24, 2  ;;  %v3538_v4 = vadd.f32 %v3537_v51, %v3536_v42  ;;  %v3545_v13 = vadd.f32 %v3544_v5, %v3543_v0 }
 0xd40   :  { %v3558_v7 = vrot.slane %v3557_v29, 4  ;;  %v5791_v54 = vpop.eup %5790  ;;  %v3477_v38 = vmul.f32 %v5789_v19, %v7848_v35  ;;  %v7912_v53 = vadd.f32 %v3483_v1, %v3482_v56  ;;  %v3552_v22 = vadd.f32 %v3551_v26, %v3550_v16 }
 0xd41   :  { %v5793_v3 = vpop.eup %5792  ;;  %v3478_v10 = vmul.f32 %v5791_v54, %v7848_v35  ;;  %v7915_v9 = vadd.f32 %v3490_v6, %v3489_v45  ;;  %v3539_v2 = vrot.slane %v3538_v4, 2  ;;  %v3546_v60 = vrot.slane %v3545_v13, 2 }
 0xd42   :  { %v3479_v37 = vmul.f32 %v5793_v3, %v7848_v35  ;;  %v3508_v21 = vsel %vm241_vm0, %v3476_v40, 0.0  ;;  %v3553_v32 = vrot.slane %v3552_v22, 2  ;;  %v3559_v11 = vadd.f32 %v3558_v7, %v3557_v29 }
 0xd43   :  { %v7919_v41 = vadd.f32 %v3497_v55, %v3496_v12  ;;  %v7921_v36 = vadd.f32 %v3504_v17, %v3503_v24  ;;  %v3540_v27 = vadd.f32 %v3539_v2, %v3538_v4  ;;  %v3547_v8 = vadd.f32 %v3546_v60, %v3545_v13 }
 0xd44   :  { %v3515_v52 = vsel %vm241_vm0, %v3477_v38, 0.0  ;;  %v3554_v61 = vadd.f32 %v3553_v32, %v3552_v22  ;;  %v3485_v56 = vrot.slane %v7912_v53, 1  ;;  %v3509_v49 = vrot.slane %v3508_v21, 4 }
 0xd45   :  { %v3522_v33 = vsel %vm241_vm0, %v3478_v10, 0.0  ;;  %v3564_v35 = vsel %vm241_vm0, %v5787_v14, 0.0  ;;  %v3492_v59 = vrot.slane %v7915_v9, 1  ;;  %v3529_v20 = vsel %vm241_vm0, %v3479_v37, 0.0 }
 0xd46   :  { %v3541_v48 = vrot.slane %v3540_v27, 1  ;;  %v3560_v39 = vrot.slane %v3559_v11, 2  ;;  %v3499_v23 = vrot.slane %v7919_v41, 1  ;;  %v3506_v28 = vrot.slane %v7921_v36, 1 }
 0xd47   :  { %v3516_v31 = vrot.slane %v3515_v52, 4  ;;  %v3548_v45 = vrot.slane %v3547_v8, 1  ;;  %v3523_v15 = vrot.slane %v3522_v33, 4  ;;  %v3555_v18 = vrot.slane %v3554_v61, 1 }
 0xd48   :  { %v3561_v30 = vadd.f32 %v3560_v39, %v3559_v11  ;;  %v3565_v57 = vrot.slane %v3564_v35, 4  ;;  %v3510_v34 = vadd.f32 %v3509_v49, %v3508_v21  ;;  %v3530_v25 = vrot.slane %v3529_v20, 4 }
 0xd49   :  { %v3571_v43 = vsel %vm241_vm0, %v5789_v19, 0.0  ;;  %v3578_v12 = vsel %vm241_vm0, %v5791_v54, 0.0  ;;  %v3542_v62 = vadd.f32 %v3541_v48, %v3540_v27  ;;  %v3517_v24 = vadd.f32 %v3516_v31, %v3515_v52 }
 0xd4a   :  { %v3562_v14 = vrot.slane %v3561_v30, 1  ;;  %v3566_v46 = vadd.f32 %v3565_v57, %v3564_v35  ;;  %v3572_v63 = vrot.slane %v3571_v43, 4  ;;  %v3549_v1 = vadd.f32 %v3548_v45, %v3547_v8 }
 0xd4b   :  { %v3579_v6 = vrot.slane %v3578_v12, 4  ;;  %v3585_v42 = vsel %vm241_vm0, %v5793_v3, 0.0  ;;  %v3524_v0 = vadd.f32 %v3523_v15, %v3522_v33  ;;  %v3556_v50 = vadd.f32 %v3555_v18, %v3554_v61 }
 0xd4c   :  { %v3567_v51 = vrot.slane %v3566_v46, 2  ;;  %v3573_v5 = vadd.f32 %v3572_v63, %v3571_v43  ;;  %v3511_v16 = vrot.slane %v3510_v34, 2  ;;  %v3563_v40 = vadd.f32 %v3562_v14, %v3561_v30 }
 0xd4d   :  { %v3580_v55 = vadd.f32 %v3579_v6, %v3578_v12  ;;  %v3586_v26 = vrot.slane %v3585_v42, 4  ;;  %v3531_v29 = vadd.f32 %v3530_v25, %v3529_v20  ;;  %5794 = vrcp.f32 %v3542_v62 }
 0xd4e   :  { %v3568_v19 = vadd.f32 %v3567_v51, %v3566_v46  ;;  %v3574_v17 = vrot.slane %v3573_v5, 2  ;;  %v3518_v4 = vrot.slane %v3517_v24, 2  ;;  %5796 = vrcp.f32 %v3549_v1 }
 0xd4f   :  { %v3581_v13 = vrot.slane %v3580_v55, 2  ;;  %v3587_v7 = vadd.f32 %v3586_v26, %v3585_v42  ;;  %v3525_v54 = vrot.slane %v3524_v0, 2  ;;  %5798 = vrcp.f32 %v3556_v50 }
 0xd50   :  { %v3569_v38 = vrot.slane %v3568_v19, 1  ;;  %v3575_v22 = vadd.f32 %v3574_v17, %v3573_v5  ;;  %v3512_v3 = vadd.f32 %v3511_v16, %v3510_v34  ;;  %5800 = vrcp.f32 %v3563_v40 }
 0xd51   :  { %v3582_v10 = vadd.f32 %v3581_v13, %v3580_v55  ;;  %v3588_v2 = vrot.slane %v3587_v7, 2  ;;  %v3486_v60 = vadd.f32 %v3485_v56, %v7912_v53  ;;  %v3532_v37 = vrot.slane %v3531_v29, 2 }
 0xd52   :  { %v3570_v21 = vadd.f32 %v3569_v38, %v3568_v19  ;;  %v3576_v32 = vrot.slane %v3575_v22, 1  ;;  %v3493_v11 = vadd.f32 %v3492_v59, %v7915_v9  ;;  %v3519_v27 = vadd.f32 %v3518_v4, %v3517_v24 }
 0xd53   :  { %v3583_v8 = vrot.slane %v3582_v10, 1  ;;  %v3589_v52 = vadd.f32 %v3588_v2, %v3587_v7  ;;  %v5795_v61 = vpop.eup %5794  ;;  %v3500_v49 = vadd.f32 %v3499_v23, %v7919_v41  ;;  %v3526_v33 = vadd.f32 %v3525_v54, %v3524_v0 }
 0xd54   :  { %v3577_v35 = vadd.f32 %v3576_v32, %v3575_v22  ;;  %5802 = vrcp.f32 %v3570_v21  ;;  %v5797_v20 = vpop.eup %5796  ;;  %v3507_v48 = vadd.f32 %v3506_v28, %v7921_v36  ;;  %v3513_v39 = vrot.slane %v3512_v3, 1 }
 0xd55   :  { %v3584_v31 = vadd.f32 %v3583_v8, %v3582_v10  ;;  %v3590_v53 = vrot.slane %v3589_v52, 1  ;;  %v5799_v56 = vpop.eup %5798  ;;  %v3533_v45 = vadd.f32 %v3532_v37, %v3531_v29  ;;  %v3600_v15 = vmul.f32 %v5795_v61, %v3486_v60 }
 0xd56   :  { %5804 = vrcp.f32 %v3577_v35  ;;  %v3601_v9 = vmul.f32 %v5797_v20, %v3493_v11  ;;  %v5801_v59 = vpop.eup %5800  ;;  %v3520_v18 = vrot.slane %v3519_v27, 1  ;;  %v3602_v57 = vmul.f32 %v5799_v56, %v3500_v49  ;;  %v5418_v49 = vld [vmem:[#allocation10 + $0xb0] ss:$0 sm:$0xff]  ;;  %v3055_v20 = vld [vmem:[#allocation10 + $0xa0] sm:$0xff] }
 0xd57   :  { %v3591_v30 = vadd.f32 %v3590_v53, %v3589_v52  ;;  %5806 = vrcp.f32 %v3584_v31  ;;  %v3527_v41 = vrot.slane %v3526_v33, 1  ;;  %v3603_v23 = vmul.f32 %v5801_v59, %v3507_v48  ;;  %3735 = vmatpush.msra.mxu0 %v3055_v20 }
 0xd58   :  { %v3631_v34 = vsel %vm1573_vm3, %v3601_v9, %v3600_v15  ;;  %v3514_v25 = vadd.f32 %v3513_v39, %v3512_v3  ;;  %v3534_v43 = vrot.slane %v3533_v45, 1  ;;  %v3521_v62 = vadd.f32 %v3520_v18, %v3519_v27  ;;  %v3056_v39 = vld [vmem:[#allocation10 + $0xa8] sm:$0x1] }
 0xd59   :  { %5808 = vrcp.f32 %v3591_v30  ;;  %v3632_v36 = vsel %vm1575_vm4, %v3602_v57, %v3631_v34  ;;  %v3528_v63 = vadd.f32 %v3527_v41, %v3526_v33  ;;  %5369 = vmatpush.msk.msra.mxu1 %vm1823_vm13, %v3056_v39 }
 0xd5a   :  { %v5803_v28 = vpop.eup %5802  ;;  %v3633_v12 = vsel %vm1577_vm5, %v3603_v23, %v3632_v36  ;;  %v3535_v42 = vadd.f32 %v3534_v43, %v3533_v45 }
 0xd5b   :  { %v3604_v14 = vmul.f32 %v5803_v28, %v3514_v25 }
 0xd5c   :  { %v5805_v46 = vpop.eup %5804 }
 0xd5d   :  { %v5807_v24 = vpop.eup %5806  ;;  %v3605_v1 = vmul.f32 %v5805_v46, %v3521_v62  ;;  %v3634_v6 = vsel %vm1579_vm6, %v3604_v14, %v3633_v12 }
 0xd5e   :  { %v3606_v0 = vmul.f32 %v5807_v24, %v3528_v63 }
 0xd5f   :  { %v5809_v50 = vpop.eup %5808  ;;  %v3635_v51 = vsel %vm1581_vm7, %v3605_v1, %v3634_v6 }
 0xd60   :  { %v3607_v5 = vmul.f32 %v5809_v50, %v3535_v42  ;;  %v3636_v16 = vsel %vm1583_vm8, %v3606_v0, %v3635_v51 }
 0xd62   :  { %v3637_v40 = vsel %vm8438_vm12, %v3607_v5, %v3636_v16  ;;  %vm3832_vm12 = vcmask 1043456  }
 0xd63   :  { %5366 = vmatmul.msk.f32.gmra.mxu3 %vm241_vm0, %v3637_v40 }
 0xdc2   :  { %v3659_v55 = vpop.f32.mrf.mxu3 }
 0xdc3   :  { %v3665_v26 = vadd.f32 %v7699_v44, %v3659_v55 }
 0xdc5   :  { %v3667_v29 = vsel %vm241_vm0, %v3665_v26, 0.0 }
 0xdc6   :  { %3668 = vadd.xlane.f32.xlu2 %v3667_v29 }
 0xde6   :  { %v3662_v19 = vpop.f32.mrf.mxu3 }
 0xde7   :  { %v3666_v17 = vadd.f32 %v7703_v47, %v3662_v19 }
 0xde9   :  { %v3670_v4 = vsel %vm241_vm0, %v3666_v17, 0.0 }
 0xdea   :  { %3671 = vadd.xlane.f32.xlu0 %v3670_v4 }
 0xe39   :  { %v3669_v13 = vpop.xlane.xlu2 %3668 }
 0xe3a   :  { %v3673_v7 = vmul.f32 %v3669_v13, %v8436_v58  ;;  %v3828_v13 = vld [vmem:[#allocation2 + $0x4] sm:$0xf] }
 0xe3c   :  { %v3675_v54 = vsub.f32 %v3665_v26, %v3673_v7  ;;  %v3830_v7 = vrot.slane %v3828_v13, 4 }
 0xe3e   :  { %v3677_v38 = vmul.f32 %v3675_v54, %v3675_v54 }
 0xe40   :  { %v3679_v22 = vsel %vm241_vm0, %v3677_v38, 0.0  ;;  %v3834_v38 = vld [vmem:[#allocation10 + $0xc0] sm:$0xff] }
 0xe41   :  { %3680 = vadd.xlane.f32.xlu2 %v3679_v22  ;;  %v3826_v22 = vld [vmem:[#allocation2] sm:$0xf]  ;;  %3860 = vmatpush.msra.mxu2 %v3834_v38 }
 0xe5d   :  { %v3672_v3 = vpop.xlane.xlu0 %3671 }
 0xe5e   :  { %v3674_v44 = vmul.f32 %v3672_v3, %v8436_v58  ;;  %v7969_v3 = vsel %vm3832_vm12, %v3826_v22, %v3830_v7 }
 0xe5f   :  { %5372 = vmatmul.msk.f32.vlgmr.msra.gmra.mxu2 %vm241_vm0, %v7969_v3 }
 0xe60   :  { %v3676_v10 = vsub.f32 %v3666_v17, %v3674_v44 }
 0xe62   :  { %v3678_v2 = vmul.f32 %v3676_v10, %v3676_v10 }
 0xe64   :  { %v3682_v60 = vsel %vm241_vm0, %v3678_v2, 0.0  ;;  %v5419_v2 = vld [vmem:[#allocation10 + $0xb8] ss:$0 sm:$0xff] }
 0xe65   :  { %3683 = vadd.xlane.f32.xlu1 %v3682_v60 }
 0xeb4   :  { %v3681_v47 = vpop.xlane.xlu2 %3680 }
 0xeb5   :  { %v3685_v37 = vmul.f32 %v3681_v47, %v8436_v58 }
 0xeb7   :  { %v3687_v21 = vadd.f32 1e-05, %v3685_v37  ;;  %v3835_v37 = vld [vmem:[#allocation10 + $0xc8] sm:$0xff] }
 0xeb8   :  { %3886 = vmatpush.msra.mxu3 %v3835_v37 }
 0xeb9   :  { %5810 = vrsqrt.f32 %v3687_v21  ;;  %vm3695_vm14 = vweird.f32 %v3687_v21 }
 0xebf   :  { %v5811_v32 = vpop.eup %5810 }
 0xec0   :  { %v3690_v11 = vmul.f32 %v5811_v32, %v3687_v21  ;;  %vm3696_vm9 = vweird.f32 %v5811_v32  ;;  %v3836_v21 = vld [vmem:[#allocation10 + $0xd0] sm:$0xff] }
 0xec1   :  { %vm3697_vm15 = vmor %vm3695_vm14, %vm3696_vm9  ;;  %3909 = vmatpush.msrb.mxu2 %v3836_v21 }
 0xec2   :  { %v3691_v27 = vmul.f32 %v5811_v32, %v3690_v11 }
 0xec4   :  { %v3692_v8 = vmul.f32 0.5, %v3691_v27 }
 0xec6   :  { %v3693_v52 = vsub.f32 1.5, %v3692_v8 }
 0xec8   :  { %v3694_v61 = vmul.f32 %v5811_v32, %v3693_v52 }
 0xeca   :  { %v3698_v33 = vsel %vm3697_vm15, %v5811_v32, %v3694_v61 }
 0xecb   :  { %v3709_v35 = vmul.f32 %v3698_v33, %v3675_v54 }
 0xecd   :  { %v3712_v48 = vmul.f32 %v5418_v49, %v3709_v35 }
 0xecf   :  { %5367 = vmatmul.msk.f32.vlgmr.msra.gmra.mxu0 %vm241_vm0, %v3712_v48 }
 0xed8   :  { %v3684_v31 = vpop.xlane.xlu1 %3683 }
 0xed9   :  { %v3686_v53 = vmul.f32 %v3684_v31, %v8436_v58 }
 0xedb   :  { %v3688_v56 = vadd.f32 1e-05, %v3686_v53 }
 0xedd   :  { %5812 = vrsqrt.f32 %v3688_v56  ;;  %vm3705_vm10 = vweird.f32 %v3688_v56 }
 0xee2   :  { %v7978_v53 = vpop.f32.mrf.mxu2 }
 0xee3   :  { %v5813_v45 = vpop.eup %5812  ;;  %4060 = vst [vmem:[#allocation1] sm:$0xff] %v7978_v53 }
 0xee4   :  { %v3700_v15 = vmul.f32 %v5813_v45, %v3688_v56  ;;  %vm3706_vm2 = vweird.f32 %v5813_v45 }
 0xee5   :  { %vm3707_vm11 = vmor %vm3705_vm10, %vm3706_vm2 }
 0xee6   :  { %v3701_v9 = vmul.f32 %v5813_v45, %v3700_v15 }
 0xee8   :  { %v3702_v59 = vmul.f32 0.5, %v3701_v9 }
 0xeea   :  { %v3703_v18 = vsub.f32 1.5, %v3702_v59 }
 0xeec   :  { %v3704_v30 = vmul.f32 %v5813_v45, %v3703_v18 }
 0xeee   :  { %v3708_v57 = vsel %vm3707_vm11, %v5813_v45, %v3704_v30 }
 0xeef   :  { %v3710_v41 = vmul.f32 %v3708_v57, %v3676_v10 }
 0xef1   :  { %v3713_v23 = vmul.f32 %v5418_v49, %v3710_v41 }
 0xef3   :  { %5368 = vmatmul.msk.f32.gmra.mxu0 %vm241_vm0, %v3713_v23 }
 0xf4c   :  { %v3737_v34 = vpop.f32.mrf.mxu0 }
 0xf4d   :  { %v3743_v25 = vmax.f32 %v3737_v34, 0.0 }
 0xf4f   :  { %5370 = vmatmul.msk.f32.vlgmr.msra.gmra.mxu1 %vm1810_vm1, %v3743_v25 }
 0xf70   :  { %v3740_v36 = vpop.f32.mrf.mxu0 }
 0xf71   :  { %v3744_v28 = vmax.f32 %v3740_v36, 0.0 }
 0xf73   :  { %5371 = vmatmul.msk.f32.gmra.mxu1 %vm1810_vm1, %v3744_v28 }
 0xfcc   :  { %v3771_v43 = vpop.f32.mrf.mxu1 }
 0xfcd   :  { %v3777_v12 = vadd.f32 %v3771_v43, %v3712_v48 }
 0xfcf   :  { %v3779_v62 = vsel %vm241_vm0, %v3777_v12, 0.0 }
 0xfd0   :  { %3780 = vadd.xlane.f32.xlu2 %v3779_v62 }
 0xff0   :  { %v3774_v14 = vpop.f32.mrf.mxu1 }
 0xff1   :  { %v3778_v46 = vadd.f32 %v3774_v14, %v3713_v23 }
 0xff3   :  { %v3782_v63 = vsel %vm241_vm0, %v3778_v46, 0.0 }
 0xff4   :  { %3783 = vadd.xlane.f32.xlu1 %v3782_v63  ;;  %v3936_v63 = vrot.slane %v7978_v53, 1 }
0x1043   :  { %v3781_v24 = vpop.xlane.xlu2 %3780 }
0x1044   :  { %v3785_v1 = vmul.f32 %v3781_v24, %v8436_v58 }
0x1046   :  { %v3787_v6 = vsub.f32 %v3777_v12, %v3785_v1 }
0x1048   :  { %v3789_v42 = vmul.f32 %v3787_v6, %v3787_v6 }
0x104a   :  { %v3791_v0 = vsel %vm241_vm0, %v3789_v42, 0.0  ;;  %v3937_v42 = vrot.slane %v7978_v53, 2 }
0x104b   :  { %3792 = vadd.xlane.f32.xlu2 %v3791_v0  ;;  %v3938_v0 = vrot.slane %v7978_v53, 3 }
0x1067   :  { %v3784_v50 = vpop.xlane.xlu1 %3783 }
0x1068   :  { %v3786_v51 = vmul.f32 %v3784_v50, %v8436_v58  ;;  %v3940_v50 = vperm.slane %v3936_v63, 0 }
0x106a   :  { %v3788_v5 = vsub.f32 %v3778_v46, %v3786_v51  ;;  %v3939_v46 = vperm.slane %v7978_v53, 0 }
0x106c   :  { %v3790_v16 = vmul.f32 %v3788_v5, %v3788_v5 }
0x106e   :  { %v3794_v40 = vsel %vm241_vm0, %v3790_v16, 0.0 }
0x106f   :  { %3795 = vadd.xlane.f32.xlu1 %v3794_v40 }
0x10be   :  { %v3793_v55 = vpop.xlane.xlu2 %3792 }
0x10bf   :  { %v3797_v26 = vmul.f32 %v3793_v55, %v8436_v58  ;;  %v3941_v55 = vperm.slane %v3937_v42, 0 }
0x10c1   :  { %v3799_v29 = vadd.f32 1e-05, %v3797_v26  ;;  %v3942_v26 = vperm.slane %v3938_v0, 0 }
0x10c3   :  { %5814 = vrsqrt.f32 %v3799_v29  ;;  %vm3807_vm14 = vweird.f32 %v3799_v29 }
0x10c9   :  { %v5815_v19 = vpop.eup %5814 }
0x10ca   :  { %v3802_v17 = vmul.f32 %v5815_v19, %v3799_v29  ;;  %vm3808_vm9 = vweird.f32 %v5815_v19 }
0x10cb   :  { %vm3809_vm15 = vmor %vm3807_vm14, %vm3808_vm9  ;;  %vm3931_vm9 = vcmp.gt.f32.partialorder %v7978_v53, 0.0  ;;  %vm8439_vm14 = vcmask 1047559  }
0x10cc   :  { %v3803_v4 = vmul.f32 %v5815_v19, %v3802_v17 }
0x10ce   :  { %v3804_v54 = vmul.f32 0.5, %v3803_v4 }
0x10d0   :  { %v3805_v44 = vsub.f32 1.5, %v3804_v54 }
0x10d2   :  { %v3806_v10 = vmul.f32 %v5815_v19, %v3805_v44 }
0x10d4   :  { %v3810_v60 = vsel %vm3809_vm15, %v5815_v19, %v3806_v10 }
0x10d5   :  { %v3821_v47 = vmul.f32 %v3810_v60, %v3787_v6 }
0x10d7   :  { %v3824_v32 = vmul.f32 %v5419_v2, %v3821_v47 }
0x10d9   :  { %5373 = vmatmul.msk.f32.vlgmr.msra.gmra.mxu3 %vm241_vm0, %v3824_v32  ;;  %5375 = vmatmul.msk.f32.vlgmr.msrb.gmra.mxu2 %vm241_vm0, %v3824_v32 }
0x10e2   :  { %v3796_v11 = vpop.xlane.xlu1 %3795 }
0x10e3   :  { %v3798_v27 = vmul.f32 %v3796_v11, %v8436_v58 }
0x10e5   :  { %v3800_v8 = vadd.f32 1e-05, %v3798_v27 }
0x10e7   :  { %5816 = vrsqrt.f32 %v3800_v8  ;;  %vm3817_vm10 = vweird.f32 %v3800_v8 }
0x10ed   :  { %v5817_v52 = vpop.eup %5816 }
0x10ee   :  { %v3812_v61 = vmul.f32 %v5817_v52, %v3800_v8  ;;  %vm3818_vm2 = vweird.f32 %v5817_v52 }
0x10ef   :  { %vm3819_vm11 = vmor %vm3817_vm10, %vm3818_vm2 }
0x10f0   :  { %v3813_v49 = vmul.f32 %v5817_v52, %v3812_v61 }
0x10f2   :  { %v3814_v33 = vmul.f32 0.5, %v3813_v49 }
0x10f4   :  { %v3815_v35 = vsub.f32 1.5, %v3814_v33 }
0x10f6   :  { %v3816_v20 = vmul.f32 %v5817_v52, %v3815_v35 }
0x10f8   :  { %v3820_v48 = vsel %vm3819_vm11, %v5817_v52, %v3816_v20 }
0x10f9   :  { %v3822_v39 = vmul.f32 %v3820_v48, %v3788_v5 }
0x10fb   :  { %v3825_v31 = vmul.f32 %v5419_v2, %v3822_v39 }
0x10fd   :  { %5374 = vmatmul.msk.f32.gmra.mxu3 %vm241_vm0, %v3825_v31  ;;  %5376 = vmatmul.msk.f32.gmra.mxu2 %vm241_vm0, %v3825_v31 }
0x115c   :  { %v3888_v56 = vpop.f32.mrf.mxu3  ;;  %v3911_v31 = vpop.f32.mrf.mxu2 }
0x115d   :  { %v3917_v45 = vsel %vm241_vm0, %v3888_v56, -inf  ;;  %v3924_v15 = vsel %vm241_vm0, %v3888_v56, inf  ;;  %v3947_v1 = vmul.f32 %v3939_v46, %v3888_v56  ;;  %v3948_v29 = vmul.f32 %v3940_v50, %v3888_v56 }
0x115e   :  { %v3918_v9 = vrot.slane %v3917_v45, 4  ;;  %v3925_v59 = vrot.slane %v3924_v15, 4  ;;  %v3949_v54 = vmul.f32 %v3941_v55, %v3888_v56  ;;  %v3950_v38 = vmul.f32 %v3942_v26, %v3888_v56 }
0x1160   :  { %v3919_v18 = vmax.f32 %v3917_v45, %v3918_v9  ;;  %v3926_v30 = vmin.f32 %v3924_v15, %v3925_v59 }
0x1162   :  { %v3920_v57 = vrot.slane %v3919_v18, 2  ;;  %v3927_v41 = vrot.slane %v3926_v30, 2 }
0x1164   :  { %v3921_v23 = vmax.f32 %v3919_v18, %v3920_v57  ;;  %v3928_v34 = vmin.f32 %v3926_v30, %v3927_v41  ;;  %v4062_v41 = vld [vmem:[#allocation1 + $0x4] ss:$9 sm:$0xff] }
0x1166   :  { %v3922_v25 = vrot.slane %v3921_v23, 1  ;;  %v3929_v36 = vrot.slane %v3928_v34, 1 }
0x1168   :  { %v3923_v28 = vmax.f32 %v3921_v23, %v3922_v25  ;;  %v3930_v43 = vmin.f32 %v3928_v34, %v3929_v36 }
0x116a   :  { %v3932_v12 = vmul.f32 %v3923_v28, %v7978_v53  ;;  %v3933_v62 = vmul.f32 %v3930_v43, %v7978_v53  ;;  %v4064_v28 = vld [vmem:[#allocation1 + $0x5] ss:$9 sm:$0xff] }
0x116b   :  { %v4066_v43 = vld [vmem:[#allocation1 + $0x6] ss:$9 sm:$0xff]  ;;  %v4070_v50 = vperm.slane %v4064_v28, 0 }
0x116c   :  { %v3934_v14 = vsel %vm3931_vm9, %v3932_v12, %v3933_v62  ;;  %v4068_v12 = vld [vmem:[#allocation1 + $0x7] ss:$9 sm:$0xff] }
0x116d   :  { %v3955_v24 = vperm.slane %v3934_v14, 0  ;;  %v3952_v6 = vrot.slane %v3934_v14, 1  ;;  %v3953_v5 = vrot.slane %v3934_v14, 2  ;;  %v3954_v16 = vrot.slane %v3934_v14, 3 }
0x116f   :  { %v3963_v51 = vsub.f32 %v3947_v1, %v3955_v24  ;;  %v3956_v40 = vperm.slane %v3952_v6, 0  ;;  %v3957_v17 = vperm.slane %v3953_v5, 0  ;;  %v3958_v4 = vperm.slane %v3954_v16, 0 }
0x1170   :  { %v4069_v1 = vperm.slane %v4062_v41, 0  ;;  %v4072_v16 = vperm.slane %v4068_v12, 0 }
0x1171   :  { %v3967_v19 = vmul.f32 1.442695, %v3963_v51  ;;  %v3964_v13 = vsub.f32 %v3948_v29, %v3956_v40  ;;  %v3965_v22 = vsub.f32 %v3949_v54, %v3957_v17  ;;  %v3966_v2 = vsub.f32 %v3950_v38, %v3958_v4 }
0x1172   :  { %v4071_v51 = vperm.slane %v4066_v43, 0 }
0x1173   :  { %5818 = vpow2.f32 %v3967_v19  ;;  %v3969_v60 = vmul.f32 1.442695, %v3964_v13  ;;  %v3971_v11 = vmul.f32 1.442695, %v3965_v22  ;;  %v3973_v8 = vmul.f32 1.442695, %v3966_v2 }
0x1175   :  { %5820 = vpow2.f32 %v3969_v60 }
0x1176   :  { %5822 = vpow2.f32 %v3971_v11 }
0x1177   :  { %5824 = vpow2.f32 %v3973_v8 }
0x1179   :  { %v5819_v27 = vpop.eup %5818 }
0x117a   :  { %v4007_v35 = vsel %vm241_vm0, %v5819_v27, 0.0  ;;  %v3975_v9 = vmul.f32 %v5819_v27, %v3911_v31 }
0x117b   :  { %v5821_v39 = vpop.eup %5820  ;;  %v4008_v56 = vrot.slane %v4007_v35, 4 }
0x117c   :  { %v5823_v30 = vpop.eup %5822  ;;  %v4014_v57 = vsel %vm241_vm0, %v5821_v39, 0.0  ;;  %v3976_v34 = vmul.f32 %v5821_v39, %v3911_v31  ;;  %v3979_v62 = vsel %vm241_vm0, %v3975_v9, 0.0 }
0x117d   :  { %v5825_v23 = vpop.eup %5824  ;;  %v4009_v25 = vadd.f32 %v4008_v56, %v4007_v35  ;;  %v4015_v14 = vrot.slane %v4014_v57, 4  ;;  %v3977_v46 = vmul.f32 %v5823_v30, %v3911_v31  ;;  %v4021_v24 = vsel %vm241_vm0, %v5823_v30, 0.0 }
0x117e   :  { %v3978_v63 = vmul.f32 %v5825_v23, %v3911_v31  ;;  %v3980_v6 = vrot.slane %v3979_v62, 4  ;;  %v3986_v42 = vsel %vm241_vm0, %v3976_v34, 0.0  ;;  %v4022_v5 = vrot.slane %v4021_v24, 4 }
0x117f   :  { %v4010_v0 = vrot.slane %v4009_v25, 2  ;;  %v3987_v40 = vrot.slane %v3986_v42, 4  ;;  %v3993_v55 = vsel %vm241_vm0, %v3977_v46, 0.0  ;;  %v4028_v29 = vsel %vm241_vm0, %v5825_v23, 0.0 }
0x1180   :  { %v7992_v7 = vpop.f32.mrf.mxu3  ;;  %v4000_v26 = vsel %vm241_vm0, %v3978_v63, 0.0  ;;  %v3981_v19 = vadd.f32 %v3980_v6, %v3979_v62  ;;  %v4029_v27 = vrot.slane %v4028_v29, 4  ;;  %v3914_v46 = vpop.f32.mrf.mxu2 }
0x1181   :  { %v4043_v44 = vsel %vm241_vm0, %v7992_v7, -inf  ;;  %v4050_v10 = vsel %vm241_vm0, %v7992_v7, inf  ;;  %v4011_v17 = vadd.f32 %v4010_v0, %v4009_v25  ;;  %v4077_v4 = vmul.f32 %v4069_v1, %v7992_v7 }
0x1182   :  { %v4044_v47 = vrot.slane %v4043_v44, 4  ;;  %v4051_v37 = vrot.slane %v4050_v10, 4  ;;  %v4078_v13 = vmul.f32 %v4070_v50, %v7992_v7  ;;  %v4001_v35 = vrot.slane %v4000_v26, 4 }
0x1183   :  { %v3988_v39 = vadd.f32 %v3987_v40, %v3986_v42 }
0x1184   :  { %v4045_v21 = vmax.f32 %v4043_v44, %v4044_v47  ;;  %v4052_v32 = vmin.f32 %v4050_v10, %v4051_v37  ;;  %v4079_v44 = vmul.f32 %v4071_v51, %v7992_v7  ;;  %v8016_v41 = vadd.f32 %v4001_v35, %v4000_v26 }
0x1186   :  { %v4046_v52 = vrot.slane %v4045_v21, 2  ;;  %v4053_v61 = vrot.slane %v4052_v32, 2 }
0x1188   :  { %v4047_v49 = vmax.f32 %v4045_v21, %v4046_v52  ;;  %v4054_v33 = vmin.f32 %v4052_v32, %v4053_v61  ;;  %v4023_v21 = vadd.f32 %v4022_v5, %v4021_v24  ;;  %v4080_v32 = vmul.f32 %v4072_v16, %v7992_v7 }
0x1189   :  { %v3982_v7 = vrot.slane %v3981_v19, 2 }
0x118a   :  { %v4048_v20 = vrot.slane %v4047_v49, 1  ;;  %v4055_v48 = vrot.slane %v4054_v33, 1  ;;  %v4024_v9 = vrot.slane %v4023_v21, 2 }
0x118b   :  { %v8018_v28 = vadd.f32 %v3982_v7, %v3981_v19 }
0x118c   :  { %v4049_v45 = vmax.f32 %v4047_v49, %v4048_v20  ;;  %v4056_v15 = vmin.f32 %v4054_v33, %v4055_v48  ;;  %v3837_v49 = vld [vmem:[#allocation10 + $0xd8] sm:$0xff]  ;;  %v3994_v33 = vrot.slane %v3993_v55, 4  ;;  %v4012_v20 = vrot.slane %v4011_v17, 1 }
0x118d   :  { %4214 = vmatpush.msrb.mxu0 %v3837_v49  ;;  %v4025_v25 = vadd.f32 %v4024_v9, %v4023_v21 }
0x118e   :  { %v4057_v59 = vmul.f32 %v4049_v45, %v7978_v53  ;;  %v4058_v18 = vmul.f32 %v4056_v15, %v7978_v53  ;;  %v4016_v53 = vadd.f32 %v4015_v14, %v4014_v57  ;;  %v8014_v30 = vadd.f32 %v3994_v33, %v3993_v55 }
0x118f   :  { %v3989_v57 = vrot.slane %v3988_v39, 2  ;;  %v4013_v23 = vadd.f32 %v4012_v20, %v4011_v17  ;;  %v4003_v14 = vrot.slane %v8016_v41, 2  ;;  %v4026_v42 = vrot.slane %v4025_v25, 1 }
0x1190   :  { %v4059_v36 = vsel %vm3931_vm9, %v4057_v59, %v4058_v18  ;;  %v4017_v37 = vrot.slane %v4016_v53, 2  ;;  %v4030_v18 = vadd.f32 %v4029_v27, %v4028_v29  ;;  %v3996_v62 = vrot.slane %v8014_v30, 2 }
0x1191   :  { %4082 = vst [vmem:[#allocation1] sm:$0xff] %v4059_v36  ;;  %v8020_v12 = vadd.f32 %v3989_v57, %v3988_v39 }
0x1192   :  { %v4018_v15 = vadd.f32 %v4017_v37, %v4016_v53  ;;  %v4031_v36 = vrot.slane %v4030_v18, 2 }
0x1194   :  { %v4019_v34 = vrot.slane %v4018_v15, 1  ;;  %v4032_v5 = vadd.f32 %v4031_v36, %v4030_v18 }
0x1196   :  { %v4020_v24 = vadd.f32 %v4019_v34, %v4018_v15  ;;  %v3997_v34 = vadd.f32 %v3996_v62, %v8014_v30 }
0x1198   :  { %v4084_v54 = vld [vmem:[#allocation1 + $0x4] ss:$9 sm:$0xff]  ;;  %v4088_v22 = vld [vmem:[#allocation1 + $0x6] ss:$9 sm:$0xff]  ;;  %v3998_v30 = vrot.slane %v3997_v34, 1 }
0x1199   :  { %v4086_v38 = vld [vmem:[#allocation1 + $0x5] ss:$9 sm:$0xff]  ;;  %v4090_v10 = vld [vmem:[#allocation1 + $0x7] ss:$9 sm:$0xff]  ;;  %v4091_v2 = vperm.slane %v4084_v54, 0  ;;  %v4093_v47 = vperm.slane %v4088_v22, 0 }
0x119a   :  { %v4092_v60 = vperm.slane %v4086_v38, 0  ;;  %v4094_v11 = vperm.slane %v4090_v10, 0 }
0x119b   :  { %v4099_v8 = vsub.f32 %v4077_v4, %v4091_v2  ;;  %v4101_v61 = vsub.f32 %v4079_v44, %v4093_v47 }
0x119c   :  { %v4100_v52 = vsub.f32 %v4078_v13, %v4092_v60  ;;  %v4102_v48 = vsub.f32 %v4080_v32, %v4094_v11 }
0x119d   :  { %v4103_v31 = vmul.f32 1.442695, %v4099_v8  ;;  %v4107_v45 = vmul.f32 1.442695, %v4101_v61 }
0x119e   :  { %v4105_v56 = vmul.f32 1.442695, %v4100_v52  ;;  %v4109_v59 = vmul.f32 1.442695, %v4102_v48  ;;  %v4027_v48 = vadd.f32 %v4026_v42, %v4025_v25 }
0x119f   :  { %5826 = vpow2.f32 %v4103_v31 }
0x11a0   :  { %5828 = vpow2.f32 %v4105_v56 }
0x11a1   :  { %5830 = vpow2.f32 %v4107_v45 }
0x11a2   :  { %5832 = vpow2.f32 %v4109_v59 }
0x11a3   :  { %5834 = vrcp.f32 %v4013_v23  ;;  %v4033_v23 = vrot.slane %v4032_v5, 1 }
0x11a4   :  { %5836 = vrcp.f32 %v4020_v24 }
0x11a5   :  { %v5827_v43 = vpop.eup %5826  ;;  %5838 = vrcp.f32 %v4027_v48 }
0x11a6   :  { %v5829_v63 = vpop.eup %5828  ;;  %v4111_v1 = vmul.f32 %v5827_v43, %v3914_v46  ;;  %v4143_v6 = vsel %vm241_vm0, %v5827_v43, 0.0 }
0x11a7   :  { %v5831_v0 = vpop.eup %5830  ;;  %v4112_v50 = vmul.f32 %v5829_v63, %v3914_v46  ;;  %v4144_v51 = vrot.slane %v4143_v6, 4  ;;  %v4150_v53 = vsel %vm241_vm0, %v5829_v63, 0.0 }
0x11a8   :  { %v5833_v16 = vpop.eup %5832  ;;  %v4113_v40 = vmul.f32 %v5831_v0, %v3914_v46  ;;  %v4115_v55 = vsel %vm241_vm0, %v4111_v1, 0.0  ;;  %v4151_v26 = vrot.slane %v4150_v53, 4  ;;  %v4157_v29 = vsel %vm241_vm0, %v5831_v0, 0.0 }
0x11a9   :  { %v4114_v19 = vmul.f32 %v5833_v16, %v3914_v46  ;;  %v4116_v17 = vrot.slane %v4115_v55, 4  ;;  %v4122_v4 = vsel %vm241_vm0, %v4112_v50, 0.0  ;;  %v4145_v13 = vadd.f32 %v4144_v51, %v4143_v6  ;;  %v8030_v10 = vpop.eup %5834 }
0x11aa   :  { %v4123_v54 = vrot.slane %v4122_v4, 4  ;;  %v4129_v38 = vsel %vm241_vm0, %v4113_v40, 0.0  ;;  %v4152_v22 = vadd.f32 %v4151_v26, %v4150_v53  ;;  %v4158_v44 = vrot.slane %v4157_v29, 4  ;;  %v5837_v42 = vpop.eup %5836 }
0x11ab   :  { %v4117_v2 = vadd.f32 %v4116_v17, %v4115_v55  ;;  %v4130_v60 = vrot.slane %v4129_v38, 4  ;;  %v4136_v47 = vsel %vm241_vm0, %v4114_v19, 0.0  ;;  %v4146_v37 = vrot.slane %v4145_v13, 2  ;;  %v5839_v40 = vpop.eup %5838 }
0x11ac   :  { %v4124_v21 = vadd.f32 %v4123_v54, %v4122_v4  ;;  %v4137_v32 = vrot.slane %v4136_v47, 4  ;;  %v4153_v11 = vrot.slane %v4152_v22, 2  ;;  %v4159_v27 = vadd.f32 %v4158_v44, %v4157_v29 }
0x11ad   :  { %v4118_v8 = vrot.slane %v4117_v2, 2  ;;  %v4131_v52 = vadd.f32 %v4130_v60, %v4129_v38  ;;  %v4147_v61 = vadd.f32 %v4146_v37, %v4145_v13  ;;  %v4164_v49 = vsel %vm241_vm0, %v5833_v16, 0.0 }
0x11ae   :  { %v4125_v33 = vrot.slane %v4124_v21, 2  ;;  %v4154_v35 = vadd.f32 %v4153_v11, %v4152_v22  ;;  %v4160_v20 = vrot.slane %v4159_v27, 2  ;;  %v4165_v56 = vrot.slane %v4164_v49, 4 }
0x11af   :  { %v4132_v39 = vrot.slane %v4131_v52, 2  ;;  %v4148_v31 = vrot.slane %v4147_v61, 1  ;;  %v4119_v45 = vadd.f32 %v4118_v8, %v4117_v2  ;;  %v4138_v15 = vadd.f32 %v4137_v32, %v4136_v47 }
0x11b0   :  { %v4155_v9 = vrot.slane %v4154_v35, 1  ;;  %v4161_v59 = vadd.f32 %v4160_v20, %v4159_v27  ;;  %v4126_v18 = vadd.f32 %v4125_v33, %v4124_v21  ;;  %v4166_v57 = vadd.f32 %v4165_v56, %v4164_v49 }
0x11b1   :  { %v4149_v7 = vadd.f32 %v4148_v31, %v4147_v61  ;;  %v3991_v46 = vrot.slane %v8020_v12, 1  ;;  %v4133_v25 = vadd.f32 %v4132_v39, %v4131_v52  ;;  %v4120_v24 = vrot.slane %v4119_v45, 1 }
0x11b2   :  { %v4156_v36 = vadd.f32 %v4155_v9, %v4154_v35  ;;  %v4162_v43 = vrot.slane %v4161_v59, 1  ;;  %v4167_v63 = vrot.slane %v4166_v57, 2  ;;  %v4139_v1 = vrot.slane %v4138_v15, 2 }
0x11b3   :  { %5840 = vrcp.f32 %v4149_v7  ;;  %v4127_v0 = vrot.slane %v4126_v18, 1  ;;  %v4034_v50 = vadd.f32 %v4033_v23, %v4032_v5  ;;  %v3984_v53 = vrot.slane %v8018_v28, 1  ;;  %v3838_v7 = vld [vmem:[#allocation10 + $0xe0] sm:$0xff] }
0x11b4   :  { %5842 = vrcp.f32 %v4156_v36  ;;  %v4163_v6 = vadd.f32 %v4162_v43, %v4161_v59  ;;  %v4168_v51 = vadd.f32 %v4167_v63, %v4166_v57  ;;  %v4134_v62 = vrot.slane %v4133_v25, 1  ;;  %4262 = vmatpush.msrb.mxu1 %v3838_v7  ;;  %v3839_v57 = vld [vmem:[#allocation10 + $0xe8] sm:$0x1] }
0x11b5   :  { %v3992_v55 = vadd.f32 %v3991_v46, %v8020_v12  ;;  %v4004_v26 = vadd.f32 %v4003_v14, %v8016_v41  ;;  %v4121_v29 = vadd.f32 %v4120_v24, %v4119_v45  ;;  %v4140_v19 = vadd.f32 %v4139_v1, %v4138_v15  ;;  %5379 = vmatpush.msk.msrb.mxu3 %vm1823_vm13, %v3839_v57  ;;  %v5420_v1 = vld [vmem:[#allocation10 + $0xf0] ss:$0 sm:$0xff] }
0x11b6   :  { %5844 = vrcp.f32 %v4163_v6  ;;  %v4169_v16 = vrot.slane %v4168_v51, 1  ;;  %v4128_v4 = vadd.f32 %v4127_v0, %v4126_v18  ;;  %v3985_v54 = vadd.f32 %v3984_v53, %v8018_v28 }
0x11b7   :  { %5846 = vrcp.f32 %v4034_v50  ;;  %v4040_v38 = vmul.f32 %v5837_v42, %v3992_v55  ;;  %v3999_v44 = vadd.f32 %v3998_v30, %v3997_v34  ;;  %v4135_v2 = vadd.f32 %v4134_v62, %v4133_v25 }
0x11b8   :  { %v4170_v5 = vadd.f32 %v4169_v16, %v4168_v51  ;;  %v4005_v47 = vrot.slane %v4004_v26, 1  ;;  %v4039_v37 = vmul.f32 %v8030_v10, %v3985_v54  ;;  %v4141_v41 = vrot.slane %v4140_v19, 1 }
0x11b9   :  { %v5841_v17 = vpop.eup %5840  ;;  %v4041_v14 = vmul.f32 %v5839_v40, %v3999_v44 }
0x11ba   :  { %v5843_v13 = vpop.eup %5842  ;;  %v4175_v22 = vmul.f32 %v5841_v17, %v4121_v29  ;;  %5848 = vrcp.f32 %v4170_v5  ;;  %v4183_v32 = vsel %vm1573_vm3, %v4040_v38, %v4039_v37  ;;  %v4006_v8 = vadd.f32 %v4005_v47, %v4004_v26 }
0x11bb   :  { %v4176_v60 = vmul.f32 %v5843_v13, %v4128_v4  ;;  %v4142_v28 = vadd.f32 %v4141_v41, %v4140_v19  ;;  %v4184_v61 = vsel %vm1575_vm4, %v4041_v14, %v4183_v32  ;;  %v4387_v19 = vld [vmem:[#allocation10 + $0x108] sm:$0xf]  ;;  %v4386_v14 = vld [vmem:[#allocation10 + $0x100] sm:$0xf] }
0x11bc   :  { %v5845_v12 = vpop.eup %5844  ;;  %5384 = vmatpush.msk.msra.mxu1 %vm3832_vm12, %v4387_v19  ;;  %5381 = vmatpush.msk.msra.mxu0 %vm3832_vm12, %v4386_v14 }
0x11bd   :  { %v4177_v21 = vmul.f32 %v5845_v12, %v4135_v2  ;;  %v4191_v11 = vsel %vm1581_vm7, %v4176_v60, %v4175_v22  ;;  %v5847_v27 = vpop.eup %5846  ;;  %v5421_v60 = vld [vmem:[#allocation10 + $0xf8] ss:$0 sm:$0xff] }
0x11be   :  { %v4042_v33 = vmul.f32 %v5847_v27, %v4006_v8 }
0x11bf   :  { %v4192_v49 = vsel %vm1583_vm8, %v4177_v21, %v4191_v11 }
0x11c0   :  { %v5849_v52 = vpop.eup %5848  ;;  %v4185_v20 = vsel %vm1577_vm5, %v4042_v33, %v4184_v61 }
0x11c1   :  { %v4178_v35 = vmul.f32 %v5849_v52, %v4142_v28 }
0x11c3   :  { %v4193_v10 = vsel %vm8439_vm14, %v4178_v35, %v4192_v49 }
0x11c4   :  { %v4195_v48 = vsel %vm3832_vm12, %v4185_v20, %v4193_v10 }
0x11c5   :  { %5377 = vmatmul.msk.f32.vlgmr.msrb.gmra.mxu0 %vm241_vm0, %v4195_v48 }
0x1242   :  { %v4216_v39 = vpop.f32.mrf.mxu0 }
0x1243   :  { %v4219_v31 = vadd.f32 %v4216_v39, %v7969_v3 }
0x1245   :  { %v4220_v56 = vsel %vm241_vm0, %v4219_v31, 0.0 }
0x1246   :  { %4221 = vadd.xlane.f32.xlu2 %v4220_v56 }
0x12b9   :  { %v4222_v45 = vpop.xlane.xlu2 %4221 }
0x12ba   :  { %v4223_v15 = vmul.f32 %v4222_v45, %v8436_v58 }
0x12bc   :  { %v4224_v9 = vsub.f32 %v4219_v31, %v4223_v15 }
0x12be   :  { %v4225_v59 = vmul.f32 %v4224_v9, %v4224_v9 }
0x12c0   :  { %v4226_v18 = vsel %vm241_vm0, %v4225_v59, 0.0 }
0x12c1   :  { %4227 = vadd.xlane.f32.xlu1 %v4226_v18 }
0x1334   :  { %v4228_v23 = vpop.xlane.xlu1 %4227 }
0x1335   :  { %v4229_v34 = vmul.f32 %v4228_v23, %v8436_v58 }
0x1337   :  { %v4230_v3 = vadd.f32 1e-05, %v4229_v34 }
0x1339   :  { %5850 = vrsqrt.f32 %v4230_v3  ;;  %vm4237_vm2 = vweird.f32 %v4230_v3 }
0x133f   :  { %v5851_v36 = vpop.eup %5850 }
0x1340   :  { %v4232_v43 = vmul.f32 %v5851_v36, %v4230_v3  ;;  %vm4238_vm15 = vweird.f32 %v5851_v36 }
0x1341   :  { %vm4239_vm10 = vmor %vm4237_vm2, %vm4238_vm15  ;;  %vm4394_vm15 = vcmask 31744  }
0x1342   :  { %v4233_v46 = vmul.f32 %v5851_v36, %v4232_v43 }
0x1344   :  { %v4234_v25 = vmul.f32 0.5, %v4233_v46 }
0x1346   :  { %v4235_v63 = vsub.f32 1.5, %v4234_v25 }
0x1348   :  { %v4236_v24 = vmul.f32 %v5851_v36, %v4235_v63 }
0x134a   :  { %v4240_v6 = vsel %vm4239_vm10, %v5851_v36, %v4236_v24 }
0x134b   :  { %v4241_v42 = vmul.f32 %v4240_v6, %v4224_v9 }
0x134d   :  { %v4243_v0 = vmul.f32 %v5420_v1, %v4241_v42 }
0x134f   :  { %5378 = vmatmul.msk.f32.vlgmr.msrb.gmra.mxu1 %vm241_vm0, %v4243_v0 }
0x13cc   :  { %v4264_v50 = vpop.f32.mrf.mxu1 }
0x13cd   :  { %v4267_v51 = vmax.f32 %v4264_v50, 0.0 }
0x13cf   :  { %5380 = vmatmul.msk.f32.vlgmr.msrb.gmra.mxu3 %vm1810_vm1, %v4267_v51 }
0x1452   :  { %v4291_v53 = vpop.f32.mrf.mxu3 }
0x1453   :  { %v4294_v30 = vadd.f32 %v4291_v53, %v4243_v0 }
0x1455   :  { %v4295_v62 = vsel %vm241_vm0, %v4294_v30, 0.0 }
0x1456   :  { %4296 = vadd.xlane.f32.xlu2 %v4295_v62 }
0x14c9   :  { %v4297_v16 = vpop.xlane.xlu2 %4296 }
0x14ca   :  { %v4298_v40 = vmul.f32 %v4297_v16, %v8436_v58 }
0x14cc   :  { %v4299_v55 = vsub.f32 %v4294_v30, %v4298_v40 }
0x14ce   :  { %v4300_v26 = vmul.f32 %v4299_v55, %v4299_v55 }
0x14d0   :  { %v4301_v29 = vsel %vm241_vm0, %v4300_v26, 0.0 }
0x14d1   :  { %4302 = vadd.xlane.f32.xlu1 %v4301_v29 }
0x1544   :  { %v4303_v17 = vpop.xlane.xlu1 %4302 }
0x1545   :  { %v4304_v4 = vmul.f32 %v4303_v17, %v8436_v58  ;;  %v4388_v58 = vld [vmem:[#allocation10 + $0x110] sm:$0xf] }
0x1546   :  { %5387 = vmatpush.msk.msra.mxu2 %vm3832_vm12, %v4388_v58 }
0x1547   :  { %v4305_v5 = vadd.f32 1e-05, %v4304_v4 }
0x1549   :  { %5852 = vrsqrt.f32 %v4305_v5  ;;  %vm4312_vm9 = vweird.f32 %v4305_v5 }
0x154f   :  { %v5853_v13 = vpop.eup %5852 }
0x1550   :  { %v4307_v54 = vmul.f32 %v5853_v13, %v4305_v5  ;;  %vm4313_vm11 = vweird.f32 %v5853_v13 }
0x1551   :  { %vm4314_vm14 = vmor %vm4312_vm9, %vm4313_vm11  ;;  %vm8440_vm11 = vcmask 1047559  }
0x1552   :  { %v4308_v38 = vmul.f32 %v5853_v13, %v4307_v54 }
0x1554   :  { %v4309_v22 = vmul.f32 0.5, %v4308_v38 }
0x1556   :  { %v4310_v44 = vsub.f32 1.5, %v4309_v22 }
0x1558   :  { %v4311_v2 = vmul.f32 %v5853_v13, %v4310_v44 }
0x155a   :  { %v4315_v12 = vsel %vm4314_vm14, %v5853_v13, %v4311_v2 }
0x155b   :  { %v4316_v47 = vmul.f32 %v4315_v12, %v4299_v55 }
0x155d   :  { %v4318_v37 = vmul.f32 %v5421_v60, %v4316_v47 }
0x155f   :  { %4319 = vxpose.xlu2.b32.start.end [1/1] (short) (narrow) %v4318_v37, 8  ;;  %v4352_v41 = vrot.slane %v4318_v37, 4 }
0x1561   :  { %4354 = vxpose.xlu1.b32.start.end [1/1] (short) (narrow) %v4352_v41, 8 }
0x15f8   :  { %v8066_v21 = vpop.trf.xlu2 }
0x15f9   :  { %5385 = vmatmul.msk.f32.vlgmr.msra.gmra.mxu1 %vm4394_vm15, %v8066_v21  ;;  %5382 = vmatmul.msk.f32.vlgmr.msra.gmra.mxu0 %vm4394_vm15, %v8066_v21 }
0x15fa   :  { %5388 = vmatmul.msk.f32.vlgmr.msra.gmra.mxu2 %vm4394_vm15, %v8066_v21 }
0x1605   :  { %v8074_v32 = vpop.trf.xlu1 }
0x1606   :  { %5383 = vmatmul.msk.f32.gmra.mxu0 %vm4394_vm15, %v8074_v32  ;;  %5386 = vmatmul.msk.f32.gmra.mxu1 %vm4394_vm15, %v8074_v32 }
0x1607   :  { %5389 = vmatmul.msk.f32.gmra.mxu2 %vm4394_vm15, %v8074_v32 }
0x1676   :  { %v8082_v11 = vpop.f32.mrf.mxu1  ;;  %v8088_v61 = vpop.f32.mrf.mxu0 }
0x1677   :  { %v4479_v27 = vsel %vm4394_vm15, %v8082_v11, -inf  ;;  %v4486_v8 = vsel %vm4394_vm15, %v8082_v11, inf  ;;  %v4498_v35 = vrot.slane %v8088_v61, 1  ;;  %v4499_v48 = vrot.slane %v8088_v61, 2 }
0x1678   :  { %v4480_v28 = vrot.slane %v4479_v27, 4  ;;  %v4487_v52 = vrot.slane %v4486_v8, 4  ;;  %v4500_v39 = vrot.slane %v8088_v61, 3  ;;  %v4501_v31 = vrot.slane %v8088_v61, 4 }
0x1679   :  { %v4502_v15 = vrot.slane %v8088_v61, 5  ;;  %v4503_v9 = vrot.slane %v8088_v61, 6  ;;  %v4505_v59 = vperm.slane %v8088_v61, 0  ;;  %v4506_v18 = vperm.slane %v4498_v35, 0 }
0x167a   :  { %v4481_v49 = vmax.f32 %v4479_v27, %v4480_v28  ;;  %v4488_v33 = vmin.f32 %v4486_v8, %v4487_v52  ;;  %v4507_v23 = vperm.slane %v4499_v48, 0  ;;  %v4508_v34 = vperm.slane %v4500_v39, 0 }
0x167b   :  { %v4509_v3 = vperm.slane %v4501_v31, 0  ;;  %v4510_v46 = vperm.slane %v4502_v15, 0  ;;  %vm4493_vm2 = vcmp.gt.f32.partialorder %v8088_v61, 0.0  ;;  %v4511_v25 = vperm.slane %v4503_v9, 0 }
0x167c   :  { %v4482_v20 = vrot.slane %v4481_v49, 2  ;;  %v4489_v10 = vrot.slane %v4488_v33, 2  ;;  %v4521_v63 = vmul.f32 %v4505_v59, %v8082_v11  ;;  %v4522_v24 = vmul.f32 %v4506_v18, %v8082_v11 }
0x167d   :  { %v4523_v0 = vmul.f32 %v4507_v23, %v8082_v11  ;;  %v4524_v51 = vmul.f32 %v4508_v34, %v8082_v11  ;;  %v4525_v53 = vmul.f32 %v4509_v3, %v8082_v11  ;;  %v4526_v40 = vmul.f32 %v4510_v46, %v8082_v11 }
0x167e   :  { %v4483_v56 = vmax.f32 %v4481_v49, %v4482_v20  ;;  %v4490_v45 = vmin.f32 %v4488_v33, %v4489_v10  ;;  %v4504_v26 = vrot.slane %v8088_v61, 7  ;;  %v4527_v28 = vmul.f32 %v4511_v25, %v8082_v11 }
0x1680   :  { %v4484_v7 = vrot.slane %v4483_v56, 1  ;;  %v4491_v57 = vrot.slane %v4490_v45, 1 }
0x1682   :  { %v4485_v36 = vmax.f32 %v4483_v56, %v4484_v7  ;;  %v4492_v43 = vmin.f32 %v4490_v45, %v4491_v57  ;;  %v4512_v45 = vperm.slane %v4504_v26, 0 }
0x1683   :  { %v8100_v1 = vpop.f32.mrf.mxu1  ;;  %v8123_v20 = vpop.f32.mrf.mxu0 }
0x1684   :  { %v4494_v6 = vmul.f32 %v4485_v36, %v8088_v61  ;;  %v4495_v42 = vmul.f32 %v4492_v43, %v8088_v61  ;;  %v4713_v50 = vsel %vm4394_vm15, %v8100_v1, -inf  ;;  %v4720_v62 = vsel %vm4394_vm15, %v8100_v1, inf  ;;  %v8130_v43 = vpop.f32.mrf.mxu2 }
0x1685   :  { %v4714_v30 = vrot.slane %v4713_v50, 4  ;;  %v4721_v55 = vrot.slane %v4720_v62, 4  ;;  %v4732_v15 = vrot.slane %v8123_v20, 1  ;;  %v4733_v9 = vrot.slane %v8123_v20, 2 }
0x1686   :  { %v8111_v16 = vsel %vm4493_vm2, %v4494_v6, %v4495_v42  ;;  %v4734_v59 = vrot.slane %v8123_v20, 3  ;;  %v4735_v34 = vrot.slane %v8123_v20, 4  ;;  %v4528_v3 = vmul.f32 %v4512_v45, %v8082_v11 }
0x1687   :  { %v4530_v29 = vrot.slane %v8111_v16, 1  ;;  %v4531_v19 = vrot.slane %v8111_v16, 2  ;;  %v4532_v17 = vrot.slane %v8111_v16, 3  ;;  %v4533_v4 = vrot.slane %v8111_v16, 4 }
0x1688   :  { %v4534_v5 = vrot.slane %v8111_v16, 5  ;;  %v4535_v13 = vrot.slane %v8111_v16, 6  ;;  %v4537_v54 = vperm.slane %v8111_v16, 0  ;;  %v4715_v38 = vmax.f32 %v4713_v50, %v4714_v30 }
0x1689   :  { %v4538_v22 = vperm.slane %v4530_v29, 0  ;;  %v4539_v44 = vperm.slane %v4531_v19, 0  ;;  %v4540_v2 = vperm.slane %v4532_v17, 0  ;;  %v4541_v60 = vperm.slane %v4533_v4, 0 }
0x168a   :  { %v4542_v12 = vperm.slane %v4534_v5, 0  ;;  %v4543_v47 = vperm.slane %v4535_v13, 0  ;;  %v4553_v37 = vsub.f32 %v4521_v63, %v4537_v54  ;;  %v4716_v41 = vrot.slane %v4715_v38, 2 }
0x168b   :  { %v4554_v14 = vsub.f32 %v4522_v24, %v4538_v22  ;;  %v4555_v58 = vsub.f32 %v4523_v0, %v4539_v44  ;;  %v4556_v27 = vsub.f32 %v4524_v51, %v4540_v2  ;;  %v4557_v8 = vsub.f32 %v4525_v53, %v4541_v60 }
0x168c   :  { %v4558_v52 = vsub.f32 %v4526_v40, %v4542_v12  ;;  %v4561_v61 = vmul.f32 1.442695, %v4553_v37  ;;  %v4722_v10 = vmin.f32 %v4720_v62, %v4721_v55  ;;  %v4559_v48 = vsub.f32 %v4527_v28, %v4543_v47  ;;  %v4389_v62 = vld [vmem:[#allocation10 + $0x118] sm:$0xf] }
0x168d   :  { %v4563_v49 = vmul.f32 1.442695, %v4554_v14  ;;  %v4565_v33 = vmul.f32 1.442695, %v4555_v58  ;;  %v4567_v35 = vmul.f32 1.442695, %v4556_v27  ;;  %v4717_v31 = vmax.f32 %v4715_v38, %v4716_v41  ;;  %5390 = vmatpush.msk.msra.mxu3 %vm3832_vm12, %v4389_v62 }
0x168e   :  { %5854 = vpow2.f32 %v4561_v61  ;;  %v4569_v39 = vmul.f32 1.442695, %v4557_v8  ;;  %v4723_v56 = vrot.slane %v4722_v10, 2  ;;  %v4571_v18 = vmul.f32 1.442695, %v4558_v52 }
0x168f   :  { %5856 = vpow2.f32 %v4563_v49  ;;  %v4573_v57 = vmul.f32 1.442695, %v4559_v48  ;;  %v4718_v23 = vrot.slane %v4717_v31, 1  ;;  %v4739_v46 = vperm.slane %v8123_v20, 0 }
0x1690   :  { %5858 = vpow2.f32 %v4565_v33  ;;  %v4724_v7 = vmin.f32 %v4722_v10, %v4723_v56  ;;  %v4740_v25 = vperm.slane %v4732_v15, 0  ;;  %v4741_v63 = vperm.slane %v4733_v9, 0 }
0x1691   :  { %5860 = vpow2.f32 %v4567_v35  ;;  %v4742_v24 = vperm.slane %v4734_v59, 0  ;;  %v4536_v50 = vrot.slane %v8111_v16, 7  ;;  %vm4727_vm10 = vcmp.gt.f32.partialorder %v8123_v20, 0.0 }
0x1692   :  { %5862 = vpow2.f32 %v4569_v39  ;;  %v4725_v0 = vrot.slane %v4724_v7, 1  ;;  %v4719_v11 = vmax.f32 %v4717_v31, %v4718_v23  ;;  %v4743_v30 = vperm.slane %v4735_v34, 0 }
0x1693   :  { %5864 = vpow2.f32 %v4571_v18  ;;  %v4755_v13 = vmul.f32 %v4739_v46, %v8100_v1  ;;  %v4544_v44 = vperm.slane %v4536_v50, 0  ;;  %v4756_v14 = vmul.f32 %v4740_v25, %v8100_v1 }
0x1694   :  { %v5855_v36 = vpop.eup %5854  ;;  %5866 = vpow2.f32 %v4573_v57  ;;  %v4726_v22 = vmin.f32 %v4724_v7, %v4725_v0  ;;  %v4728_v41 = vmul.f32 %v4719_v11, %v8123_v20  ;;  %v4757_v58 = vmul.f32 %v4741_v63, %v8100_v1 }
0x1695   :  { %v5857_v6 = vpop.eup %5856  ;;  %v4577_v42 = vmul.f32 %v5855_v36, %v8130_v43  ;;  %v4641_v29 = vsel %vm4394_vm15, %v5855_v36, 0.0  ;;  %v4758_v27 = vmul.f32 %v4742_v24, %v8100_v1  ;;  %v4759_v49 = vmul.f32 %v4743_v30, %v8100_v1 }
0x1696   :  { %v5859_v51 = vpop.eup %5858  ;;  %v4578_v53 = vmul.f32 %v5857_v6, %v8130_v43  ;;  %v4648_v19 = vsel %vm4394_vm15, %v5857_v6, 0.0  ;;  %v4642_v12 = vrot.slane %v4641_v29, 4  ;;  %v4729_v10 = vmul.f32 %v4726_v22, %v8123_v20 }
0x1697   :  { %v8137_v40 = vpop.eup %5860  ;;  %v4579_v55 = vmul.f32 %v5859_v51, %v8130_v43  ;;  %v4585_v26 = vsel %vm4394_vm15, %v4577_v42, 0.0  ;;  %v4649_v47 = vrot.slane %v4648_v19, 4  ;;  %v8165_v35 = vsel %vm4394_vm15, %v5859_v51, 0.0 }
0x1698   :  { %v8144_v16 = vpop.eup %5862  ;;  %v4580_v17 = vmul.f32 %v8137_v40, %v8130_v43  ;;  %v4586_v4 = vrot.slane %v4585_v26, 4  ;;  %v4592_v5 = vsel %vm4394_vm15, %v4578_v53, 0.0  ;;  %v4560_v48 = vsub.f32 %v4528_v3, %v4544_v44 }
0x1699   :  { %v4581_v54 = vmul.f32 %v8144_v16, %v8130_v43  ;;  %v4599_v38 = vsel %vm4394_vm15, %v4579_v55, 0.0  ;;  %v4593_v2 = vrot.slane %v4592_v5, 4  ;;  %v8154_v37 = vpop.eup %5864  ;;  %v4643_v56 = vadd.f32 %v4642_v12, %v4641_v29 }
0x169a   :  { %v4606_v60 = vsel %vm4394_vm15, %v4580_v17, 0.0  ;;  %v8160_v8 = vpop.eup %5866  ;;  %v4587_v28 = vadd.f32 %v4586_v4, %v4585_v26  ;;  %v4600_v52 = vrot.slane %v4599_v38, 4  ;;  %v4582_v39 = vmul.f32 %v8154_v37, %v8130_v43 }
0x169b   :  { %v4613_v61 = vsel %vm4394_vm15, %v4581_v54, 0.0  ;;  %v4607_v33 = vrot.slane %v4606_v60, 4  ;;  %v4594_v31 = vadd.f32 %v4593_v2, %v4592_v5  ;;  %v8170_v45 = vadd.f32 %v4649_v47, %v4648_v19 }
0x169c   :  { %v4583_v15 = vmul.f32 %v8160_v8, %v8130_v43  ;;  %v4614_v9 = vrot.slane %v4613_v61, 4  ;;  %v8176_v59 = vsel %vm4727_vm10, %v4728_v41, %v4729_v10  ;;  %v4575_v18 = vmul.f32 1.442695, %v4560_v48 }
0x169d   :  { %v4588_v7 = vrot.slane %v4587_v28, 2  ;;  %v4601_v57 = vadd.f32 %v4600_v52, %v4599_v38  ;;  %v4764_v23 = vrot.slane %v8176_v59, 1  ;;  %v4765_v34 = vrot.slane %v8176_v59, 2 }
0x169e   :  { %v4608_v3 = vadd.f32 %v4607_v33, %v4606_v60  ;;  %v4766_v36 = vrot.slane %v8176_v59, 3  ;;  %v4767_v46 = vrot.slane %v8176_v59, 4  ;;  %v4771_v25 = vperm.slane %v8176_v59, 0 }
0x169f   :  { %v4595_v63 = vrot.slane %v4594_v31, 2  ;;  %v4772_v24 = vperm.slane %v4764_v23, 0  ;;  %v4773_v6 = vperm.slane %v4765_v34, 0  ;;  %5868 = vpow2.f32 %v4575_v18 }
0x16a0   :  { %v4615_v42 = vadd.f32 %v4614_v9, %v4613_v61  ;;  %v4774_v0 = vperm.slane %v4766_v36, 0  ;;  %v4775_v50 = vperm.slane %v4767_v46, 0  ;;  %v4787_v51 = vsub.f32 %v4755_v13, %v4771_v25  ;;  %v8194_v9 = vpop.f32.mrf.mxu2 }
0x16a1   :  { %v4602_v53 = vrot.slane %v4601_v57, 2  ;;  %v4788_v11 = vsub.f32 %v4756_v14, %v4772_v24  ;;  %v4789_v30 = vsub.f32 %v4757_v58, %v4773_v6  ;;  %v4620_v62 = vsel %vm4394_vm15, %v4582_v39, 0.0 }
0x16a2   :  { %v4609_v55 = vrot.slane %v4608_v3, 2  ;;  %v4790_v26 = vsub.f32 %v4758_v27, %v4774_v0  ;;  %v4791_v29 = vsub.f32 %v4759_v49, %v4775_v50  ;;  %v4795_v19 = vmul.f32 1.442695, %v4787_v51 }
0x16a3   :  { %v4589_v17 = vadd.f32 %v4588_v7, %v4587_v28  ;;  %v4656_v4 = vrot.slane %v8165_v35, 4  ;;  %v4797_v5 = vmul.f32 1.442695, %v4788_v11  ;;  %v4799_v54 = vmul.f32 1.442695, %v4789_v30 }
0x16a4   :  { %v4596_v38 = vadd.f32 %v4595_v63, %v4594_v31  ;;  %5870 = vpow2.f32 %v4795_v19  ;;  %v4801_v22 = vmul.f32 1.442695, %v4790_v26  ;;  %v4616_v44 = vrot.slane %v4615_v42, 2 }
0x16a5   :  { %v8185_v2 = vpop.eup %5868  ;;  %v4603_v13 = vadd.f32 %v4602_v53, %v4601_v57  ;;  %5872 = vpow2.f32 %v4797_v5  ;;  %v4621_v60 = vrot.slane %v4620_v62, 4  ;;  %v4627_v12 = vsel %vm4394_vm15, %v4583_v15, 0.0 }
0x16a6   :  { %v4803_v47 = vmul.f32 1.442695, %v4791_v29  ;;  %v4584_v41 = vmul.f32 %v8185_v2, %v8130_v43  ;;  %v4610_v14 = vadd.f32 %v4609_v55, %v4608_v3  ;;  %v4628_v58 = vrot.slane %v4627_v12, 4 }
0x16a7   :  { %5874 = vpow2.f32 %v4799_v54  ;;  %v4622_v27 = vadd.f32 %v4621_v60, %v4620_v62  ;;  %v4644_v28 = vrot.slane %v4643_v56, 2  ;;  %v4651_v52 = vrot.slane %v8170_v45, 2 }
0x16a8   :  { %5876 = vpow2.f32 %v4801_v22  ;;  %v4617_v61 = vadd.f32 %v4616_v44, %v4615_v42  ;;  %v4629_v49 = vadd.f32 %v4628_v58, %v4627_v12  ;;  %v4634_v33 = vsel %vm4394_vm15, %v4584_v41, 0.0 }
0x16a9   :  { %v4590_v10 = vrot.slane %v4589_v17, 1  ;;  %v4623_v48 = vrot.slane %v4622_v27, 2  ;;  %v4635_v39 = vrot.slane %v4634_v33, 4  ;;  %v4597_v15 = vrot.slane %v4596_v38, 1 }
0x16aa   :  { %v8192_v31 = vpop.eup %5870  ;;  %v4645_v43 = vadd.f32 %v4644_v28, %v4643_v56  ;;  %v4657_v18 = vadd.f32 %v4656_v4, %v8165_v35  ;;  %v4604_v23 = vrot.slane %v4603_v13, 1  ;;  %v4630_v34 = vrot.slane %v4629_v49, 2 }
0x16ab   :  { %v8197_v7 = vpop.eup %5872  ;;  %v4811_v57 = vmul.f32 %v8192_v31, %v8194_v9  ;;  %v4652_v3 = vadd.f32 %v4651_v52, %v8170_v45  ;;  %5878 = vpow2.f32 %v4803_v47  ;;  %v4611_v36 = vrot.slane %v4610_v14, 1 }
0x16ac   :  { %v4618_v46 = vrot.slane %v4617_v61, 1  ;;  %v4736_v25 = vrot.slane %v8123_v20, 5  ;;  %v8205_v24 = vadd.f32 %v4590_v10, %v4589_v17  ;;  %v8207_v56 = vadd.f32 %v4623_v48, %v4622_v27 }
0x16ad   :  { %v8203_v63 = vpop.eup %5874  ;;  %v4636_v35 = vadd.f32 %v4635_v39, %v4634_v33  ;;  %v4737_v6 = vrot.slane %v8123_v20, 6  ;;  %v4812_v0 = vmul.f32 %v8197_v7, %v8194_v9  ;;  %v8214_v45 = vadd.f32 %v4597_v15, %v4596_v38 }
0x16ae   :  { %v8210_v42 = vpop.eup %5876  ;;  %v4646_v50 = vrot.slane %v4645_v43, 1  ;;  %v4658_v51 = vrot.slane %v4657_v18, 2  ;;  %v8217_v53 = vsel %vm4394_vm15, %v4811_v57, 0.0  ;;  %v8219_v11 = vadd.f32 %v4604_v23, %v4603_v13 }
0x16af   :  { %v8221_v30 = vadd.f32 %v4630_v34, %v4629_v49  ;;  %v4653_v62 = vrot.slane %v4652_v3, 1  ;;  %v8223_v55 = vadd.f32 %v4611_v36, %v4610_v14  ;;  %v8225_v26 = vadd.f32 %v4618_v46, %v4617_v61 }
0x16b0   :  { %v4662_v29 = vsel %vm4394_vm15, %v8137_v40, 0.0  ;;  %v4669_v19 = vsel %vm4394_vm15, %v8144_v16, 0.0  ;;  %v4813_v17 = vmul.f32 %v8203_v63, %v8194_v9  ;;  %v4814_v4 = vmul.f32 %v8210_v42, %v8194_v9 }
0x16b1   :  { %v4625_v5 = vrot.slane %v8207_v56, 1  ;;  %v4637_v54 = vrot.slane %v4636_v35, 2  ;;  %v8236_v38 = vpop.eup %5878  ;;  %v4820_v22 = vrot.slane %v8217_v53, 4  ;;  %v8240_v44 = vsel %vm4394_vm15, %v4812_v0, 0.0 }
0x16b2   :  { %v4647_v40 = vadd.f32 %v4646_v50, %v4645_v43  ;;  %v4659_v13 = vadd.f32 %v4658_v51, %v4657_v18  ;;  %v4632_v16 = vrot.slane %v8221_v30, 1  ;;  %v4654_v60 = vadd.f32 %v4653_v62, %v4652_v3 }
0x16b3   :  { %v4663_v12 = vrot.slane %v4662_v29, 4  ;;  %v4670_v47 = vrot.slane %v4669_v19, 4  ;;  %v4676_v14 = vsel %vm4394_vm15, %v8154_v37, 0.0  ;;  %v4683_v58 = vsel %vm4394_vm15, %v8160_v8, 0.0 }
0x16b4   :  { %v4660_v41 = vrot.slane %v4659_v13, 1  ;;  %v4690_v27 = vsel %vm4394_vm15, %v8185_v2, 0.0  ;;  %v8251_v28 = vmul.f32 %v8236_v38, %v8194_v9  ;;  %v4677_v49 = vrot.slane %v4676_v14, 4 }
0x16b5   :  { %v4664_v52 = vadd.f32 %v4663_v12, %v4662_v29  ;;  %v4671_v61 = vadd.f32 %v4670_v47, %v4669_v19  ;;  %v4684_v10 = vrot.slane %v4683_v58, 4  ;;  %v4691_v48 = vrot.slane %v4690_v27, 4 }
0x16b6   :  { %v4661_v33 = vadd.f32 %v4660_v41, %v4659_v13  ;;  %5880 = vrcp.f32 %v4647_v40  ;;  %v4678_v37 = vadd.f32 %v4677_v49, %v4676_v14  ;;  %v4827_v8 = vrot.slane %v8240_v44, 4 }
0x16b7   :  { %v4665_v39 = vrot.slane %v4664_v52, 2  ;;  %v4672_v15 = vrot.slane %v4671_v61, 2  ;;  %5882 = vrcp.f32 %v4654_v60  ;;  %v4685_v43 = vadd.f32 %v4684_v10, %v4683_v58 }
0x16b8   :  { %v4692_v18 = vadd.f32 %v4691_v48, %v4690_v27  ;;  %5884 = vrcp.f32 %v4661_v33  ;;  %v4679_v23 = vrot.slane %v4678_v37, 2  ;;  %v4738_v34 = vrot.slane %v8123_v20, 7 }
0x16b9   :  { %v4666_v2 = vadd.f32 %v4665_v39, %v4664_v52  ;;  %v4673_v57 = vadd.f32 %v4672_v15, %v4671_v61  ;;  %v8256_v3 = vsel %vm4394_vm15, %v4813_v17, 0.0  ;;  %v8259_v36 = vsel %vm4394_vm15, %v4814_v4, 0.0 }
0x16ba   :  { %v4686_v46 = vrot.slane %v4685_v43, 2  ;;  %v4693_v0 = vrot.slane %v4692_v18, 2  ;;  %v4680_v62 = vadd.f32 %v4679_v23, %v4678_v37  ;;  %v4744_v29 = vperm.slane %v4736_v25, 0 }
0x16bb   :  { %v4667_v50 = vrot.slane %v4666_v2, 1  ;;  %v4674_v51 = vrot.slane %v4673_v57, 1  ;;  %v4638_v40 = vadd.f32 %v4637_v54, %v4636_v35  ;;  %v4745_v12 = vperm.slane %v4737_v6, 0 }
0x16bc   :  { %v5881_v19 = vpop.eup %5880  ;;  %v4687_v13 = vadd.f32 %v4686_v46, %v4685_v43  ;;  %v4694_v60 = vadd.f32 %v4693_v0, %v4692_v18  ;;  %v4681_v4 = vrot.slane %v4680_v62, 1  ;;  %v4746_v14 = vperm.slane %v4738_v34, 0 }
0x16bd   :  { %v5883_v17 = vpop.eup %5882  ;;  %v4668_v47 = vadd.f32 %v4667_v50, %v4666_v2  ;;  %v4675_v41 = vadd.f32 %v4674_v51, %v4673_v57  ;;  %v4768_v49 = vrot.slane %v8176_v59, 5  ;;  %v4760_v35 = vmul.f32 %v4744_v29, %v8100_v1 }
0x16be   :  { %v5885_v58 = vpop.eup %5884  ;;  %v4688_v27 = vrot.slane %v4687_v13, 1  ;;  %v4695_v52 = vrot.slane %v4694_v60, 1  ;;  %v4706_v61 = vmul.f32 %v5883_v17, %v8214_v45  ;;  %v4682_v25 = vadd.f32 %v4681_v4, %v4680_v62 }
0x16bf   :  { %5886 = vrcp.f32 %v4668_v47  ;;  %v4769_v54 = vrot.slane %v8176_v59, 6  ;;  %v4705_v33 = vmul.f32 %v5881_v19, %v8205_v24  ;;  %v4707_v10 = vmul.f32 %v5885_v58, %v8219_v11 }
0x16c0   :  { %v4689_v20 = vadd.f32 %v4688_v27, %v4687_v13  ;;  %v4696_v6 = vadd.f32 %v4695_v52, %v4694_v60  ;;  %5888 = vrcp.f32 %v4675_v41  ;;  %v4770_v48 = vrot.slane %v8176_v59, 7 }
0x16c1   :  { %5890 = vrcp.f32 %v4682_v25  ;;  %v4776_v39 = vperm.slane %v4768_v49, 0  ;;  %v4955_v45 = vsel %vm1573_vm3, %v4706_v61, %v4705_v33  ;;  %v4761_v15 = vmul.f32 %v4745_v12, %v8100_v1 }
0x16c2   :  { %5892 = vrcp.f32 %v4689_v20  ;;  %v4777_v37 = vperm.slane %v4769_v54, 0  ;;  %v4762_v43 = vmul.f32 %v4746_v14, %v8100_v1  ;;  %v4778_v18 = vperm.slane %v4770_v48, 0 }
0x16c3   :  { %5894 = vrcp.f32 %v4696_v6  ;;  %v4792_v2 = vsub.f32 %v4760_v35, %v4776_v39  ;;  %v4821_v24 = vadd.f32 %v4820_v22, %v8217_v53  ;;  %v4626_v59 = vadd.f32 %v4625_v5, %v8207_v56 }
0x16c4   :  { %v4639_v11 = vrot.slane %v4638_v40, 1  ;;  %v4793_v57 = vsub.f32 %v4761_v15, %v4777_v37  ;;  %v4834_v34 = vrot.slane %v8256_v3, 4  ;;  %v4956_v46 = vsel %vm1575_vm4, %v4707_v10, %v4955_v45 }
0x16c5   :  { %v5887_v23 = vpop.eup %5886  ;;  %v4794_v0 = vsub.f32 %v4762_v43, %v4778_v18  ;;  %v4805_v50 = vmul.f32 1.442695, %v4792_v2  ;;  %v4841_v51 = vrot.slane %v8259_v36, 4  ;;  %v4633_v53 = vadd.f32 %v4632_v16, %v8221_v30 }
0x16c6   :  { %v5889_v1 = vpop.eup %5888  ;;  %v4708_v22 = vmul.f32 %v5887_v23, %v8223_v55  ;;  %v4807_v62 = vmul.f32 1.442695, %v4793_v57  ;;  %v4828_v5 = vadd.f32 %v4827_v8, %v8240_v44  ;;  %v4640_v60 = vadd.f32 %v4639_v11, %v4638_v40 }
0x16c7   :  { %v5891_v56 = vpop.eup %5890  ;;  %v4709_v29 = vmul.f32 %v5889_v1, %v8225_v26  ;;  %5896 = vpow2.f32 %v4805_v50  ;;  %v4809_v19 = vmul.f32 1.442695, %v4794_v0  ;;  %v4835_v30 = vadd.f32 %v4834_v34, %v8256_v3 }
0x16c8   :  { %v5893_v13 = vpop.eup %5892  ;;  %v4710_v12 = vmul.f32 %v5891_v56, %v4626_v59  ;;  %v4957_v17 = vsel %vm1577_vm5, %v4708_v22, %v4956_v46  ;;  %5898 = vpow2.f32 %v4807_v62  ;;  %v4822_v41 = vrot.slane %v4821_v24, 2 }
0x16c9   :  { %v5895_v47 = vpop.eup %5894  ;;  %v4711_v55 = vmul.f32 %v5893_v13, %v4633_v53  ;;  %v4958_v16 = vsel %vm1579_vm6, %v4709_v29, %v4957_v17  ;;  %5900 = vpow2.f32 %v4809_v19  ;;  %v4842_v26 = vadd.f32 %v4841_v51, %v8259_v36 }
0x16ca   :  { %v4712_v4 = vmul.f32 %v5895_v47, %v4640_v60  ;;  %v4959_v44 = vsel %vm1581_vm7, %v4710_v12, %v4958_v16  ;;  %v4875_v40 = vsel %vm4394_vm15, %v8192_v31, 0.0  ;;  %v4882_v14 = vsel %vm4394_vm15, %v8197_v7, 0.0 }
0x16cb   :  { %v4960_v8 = vsel %vm1583_vm8, %v4711_v55, %v4959_v44  ;;  %v4889_v3 = vsel %vm4394_vm15, %v8203_v63, 0.0  ;;  %v4829_v58 = vrot.slane %v4828_v5, 2  ;;  %v4847_v52 = vsel %vm4394_vm15, %v8251_v28, 0.0 }
0x16cc   :  { %v4961_v27 = vsel %vm8440_vm11, %v4712_v4, %v4960_v8  ;;  %v4876_v61 = vrot.slane %v4875_v40, 4  ;;  %v4836_v36 = vrot.slane %v4835_v30, 2  ;;  %v4883_v25 = vrot.slane %v4882_v14, 4 }
0x16cd   :  { %v5897_v49 = vpop.eup %5896  ;;  %5391 = vmatmul.msk.f32.vlgmr.msra.gmra.mxu3 %vm4394_vm15, %v4961_v27  ;;  %v4890_v35 = vrot.slane %v4889_v3, 4  ;;  %v4896_v31 = vsel %vm4394_vm15, %v8210_v42, 0.0  ;;  %v4843_v63 = vrot.slane %v4842_v26, 2  ;;  %v8311_v33 = vadd.f32 %v4822_v41, %v4821_v24 }
0x16ce   :  { %v5899_v7 = vpop.eup %5898  ;;  %v4816_v54 = vmul.f32 %v5897_v49, %v8194_v9  ;;  %v4877_v20 = vadd.f32 %v4876_v61, %v4875_v40  ;;  %v4848_v10 = vrot.slane %v4847_v52, 4  ;;  %v4884_v28 = vadd.f32 %v4883_v25, %v4882_v14 }
0x16cf   :  { %v5901_v6 = vpop.eup %5900  ;;  %v4891_v48 = vadd.f32 %v4890_v35, %v4889_v3  ;;  %v4817_v39 = vmul.f32 %v5899_v7, %v8194_v9  ;;  %v8314_v45 = vadd.f32 %v4829_v58, %v4828_v5  ;;  %v4897_v37 = vrot.slane %v4896_v31, 4 }
0x16d0   :  { %v4878_v15 = vrot.slane %v4877_v20, 2  ;;  %v8316_v43 = vadd.f32 %v4836_v36, %v4835_v30  ;;  %v4854_v42 = vsel %vm4394_vm15, %v4816_v54, 0.0  ;;  %v4885_v18 = vrot.slane %v4884_v28, 2 }
0x16d1   :  { %v4892_v2 = vrot.slane %v4891_v48, 2  ;;  %v4818_v59 = vmul.f32 %v5901_v6, %v8194_v9  ;;  %v8320_v11 = vadd.f32 %v4843_v63, %v4842_v26  ;;  %v4849_v57 = vadd.f32 %v4848_v10, %v4847_v52 }
0x16d2   :  { %v4879_v24 = vadd.f32 %v4878_v15, %v4877_v20  ;;  %v4886_v23 = vadd.f32 %v4885_v18, %v4884_v28  ;;  %v4903_v46 = vsel %vm4394_vm15, %v8236_v38, 0.0  ;;  %v4855_v0 = vrot.slane %v4854_v42, 4 }
0x16d3   :  { %v4893_v34 = vadd.f32 %v4892_v2, %v4891_v48  ;;  %v4861_v50 = vsel %vm4394_vm15, %v4817_v39, 0.0  ;;  %v4898_v1 = vadd.f32 %v4897_v37, %v4896_v31  ;;  %v4824_v51 = vrot.slane %v8311_v33, 1 }
0x16d4   :  { %v4831_v53 = vrot.slane %v8314_v45, 1  ;;  %v4838_v22 = vrot.slane %v8316_v43, 1  ;;  %v4880_v9 = vrot.slane %v4879_v24, 1  ;;  %v4868_v62 = vsel %vm4394_vm15, %v4818_v59, 0.0 }
0x16d5   :  { %v4887_v56 = vrot.slane %v4886_v23, 1  ;;  %v4899_v5 = vrot.slane %v4898_v1, 2  ;;  %v4904_v29 = vrot.slane %v4903_v46, 4  ;;  %v4845_v19 = vrot.slane %v8320_v11, 1 }
0x16d6   :  { %v4850_v13 = vrot.slane %v4849_v57, 2  ;;  %v4862_v38 = vrot.slane %v4861_v50, 4  ;;  %v4894_v60 = vrot.slane %v4893_v34, 1  ;;  %v4856_v12 = vadd.f32 %v4855_v0, %v4854_v42 }
0x16d7   :  { %v4900_v17 = vadd.f32 %v4899_v5, %v4898_v1  ;;  %v4905_v47 = vadd.f32 %v4904_v29, %v4903_v46  ;;  %v4910_v30 = vsel %vm4394_vm15, %v5897_v49, 0.0  ;;  %v4869_v55 = vrot.slane %v4868_v62, 4 }
0x16d8   :  { %v4881_v16 = vadd.f32 %v4880_v9, %v4879_v24  ;;  %v4911_v41 = vrot.slane %v4910_v30, 4  ;;  %v4917_v4 = vsel %vm4394_vm15, %v5899_v7, 0.0  ;;  %v4888_v44 = vadd.f32 %v4887_v56, %v4886_v23 }
0x16d9   :  { %v4901_v26 = vrot.slane %v4900_v17, 1  ;;  %v4906_v8 = vrot.slane %v4905_v47, 2  ;;  %v4918_v40 = vrot.slane %v4917_v4, 4  ;;  %v4863_v14 = vadd.f32 %v4862_v38, %v4861_v50 }
0x16da   :  { %v4895_v3 = vadd.f32 %v4894_v60, %v4893_v34  ;;  %v4912_v58 = vadd.f32 %v4911_v41, %v4910_v30  ;;  %v4924_v27 = vsel %vm4394_vm15, %v5901_v6, 0.0  ;;  %v4851_v52 = vadd.f32 %v4850_v13, %v4849_v57 }
0x16db   :  { %v4902_v61 = vadd.f32 %v4901_v26, %v4900_v17  ;;  %v4907_v36 = vadd.f32 %v4906_v8, %v4905_v47  ;;  %v4919_v25 = vadd.f32 %v4918_v40, %v4917_v4  ;;  %v4857_v35 = vrot.slane %v4856_v12, 2 }
0x16dc   :  { %v4913_v49 = vrot.slane %v4912_v58, 2  ;;  %v4925_v31 = vrot.slane %v4924_v27, 4  ;;  %5902 = vrcp.f32 %v4881_v16  ;;  %v4870_v54 = vadd.f32 %v4869_v55, %v4868_v62 }
0x16dd   :  { %v4908_v63 = vrot.slane %v4907_v36, 1  ;;  %v4920_v7 = vrot.slane %v4919_v25, 2  ;;  %5904 = vrcp.f32 %v4888_v44  ;;  %v4864_v20 = vrot.slane %v4863_v14, 2 }
0x16de   :  { %v4914_v10 = vadd.f32 %v4913_v49, %v4912_v58  ;;  %v4926_v28 = vadd.f32 %v4925_v31, %v4924_v27  ;;  %5906 = vrcp.f32 %v4895_v3  ;;  %v4852_v48 = vrot.slane %v4851_v52, 1 }
0x16df   :  { %v4909_v39 = vadd.f32 %v4908_v63, %v4907_v36  ;;  %v4921_v15 = vadd.f32 %v4920_v7, %v4919_v25  ;;  %5908 = vrcp.f32 %v4902_v61  ;;  %v4825_v6 = vadd.f32 %v4824_v51, %v8311_v33 }
0x16e0   :  { %v4915_v37 = vrot.slane %v4914_v10, 1  ;;  %v4927_v42 = vrot.slane %v4926_v28, 2  ;;  %v4858_v18 = vadd.f32 %v4857_v35, %v4856_v12  ;;  %v4871_v2 = vrot.slane %v4870_v54, 2 }
0x16e1   :  { %v4922_v59 = vrot.slane %v4921_v15, 1  ;;  %5910 = vrcp.f32 %v4909_v39  ;;  %v4832_v57 = vadd.f32 %v4831_v53, %v8314_v45  ;;  %v4865_v23 = vadd.f32 %v4864_v20, %v4863_v14 }
0x16e2   :  { %v5903_v24 = vpop.eup %5902  ;;  %v4916_v34 = vadd.f32 %v4915_v37, %v4914_v10  ;;  %v4928_v46 = vadd.f32 %v4927_v42, %v4926_v28  ;;  %v4839_v50 = vadd.f32 %v4838_v22, %v8316_v43  ;;  %v4846_v1 = vadd.f32 %v4845_v19, %v8320_v11 }
0x16e3   :  { %v5905_v0 = vpop.eup %5904  ;;  %v4853_v9 = vadd.f32 %v4852_v48, %v4851_v52  ;;  %v4923_v62 = vadd.f32 %v4922_v59, %v4921_v15  ;;  %v4939_v56 = vmul.f32 %v5903_v24, %v4825_v6  ;;  %v4859_v13 = vrot.slane %v4858_v18, 1 }
0x16e4   :  { %v5907_v33 = vpop.eup %5906  ;;  %v4929_v51 = vrot.slane %v4928_v46, 1  ;;  %5912 = vrcp.f32 %v4916_v34  ;;  %v4940_v5 = vmul.f32 %v5905_v0, %v4832_v57  ;;  %v4872_v38 = vadd.f32 %v4871_v2, %v4870_v54 }
0x16e5   :  { %v5909_v29 = vpop.eup %5908  ;;  %5914 = vrcp.f32 %v4923_v62  ;;  %v4941_v45 = vmul.f32 %v5907_v33, %v4839_v50  ;;  %v4866_v53 = vrot.slane %v4865_v23, 1  ;;  %v4860_v47 = vadd.f32 %v4859_v13, %v4858_v18 }
0x16e6   :  { %v4930_v60 = vadd.f32 %v4929_v51, %v4928_v46  ;;  %v4942_v12 = vmul.f32 %v5909_v29, %v4846_v1  ;;  %v4970_v17 = vsel %vm1573_vm3, %v4940_v5, %v4939_v56  ;;  %v4873_v30 = vrot.slane %v4872_v38, 1  ;;  %vm8441_vm3 = vmmov %vm8440_vm11  ;;  %v4390_v51 = vld [vmem:[#allocation10 + $0x120] sm:$0xf]  ;;  %v4391_v5 = vld [vmem:[#allocation10 + $0x128] sm:$0x1] }
0x16e7   :  { %v5911_v43 = vpop.eup %5910  ;;  %v4971_v11 = vsel %vm1575_vm4, %v4941_v45, %v4970_v17  ;;  %v4867_v16 = vadd.f32 %v4866_v53, %v4865_v23  ;;  %v6092_v31 = vmov 4.0   ;;  %5393 = vmatpush.msk.msrb.mxu0 %vm3832_vm12, %v4390_v51  ;;  %5396 = vmatpush.msk.msrb.mxu1 %vm1823_vm13, %v4391_v5 }
0x16e8   :  { %5916 = vrcp.f32 %v4930_v60  ;;  %v4943_v22 = vmul.f32 %v5911_v43, %v4853_v9  ;;  %v4972_v19 = vsel %vm1577_vm5, %v4942_v12, %v4971_v11  ;;  %v4874_v8 = vadd.f32 %v4873_v30, %v4872_v38  ;;  %v5422_v9 = vld [vmem:[#allocation10 + $0x130] ss:$0 sm:$0xff] }
0x16e9   :  { %5918 = vrcp.f32 %v6092_v31 }
0x16ea   :  { %v5913_v55 = vpop.eup %5912  ;;  %v4973_v41 = vsel %vm1579_vm6, %v4943_v22, %v4972_v19 }
0x16eb   :  { %v5915_v4 = vpop.eup %5914  ;;  %v4944_v44 = vmul.f32 %v5913_v55, %v4860_v47 }
0x16ec   :  { %v4945_v26 = vmul.f32 %v5915_v4, %v4867_v16 }
0x16ed   :  { %v4974_v40 = vsel %vm1581_vm7, %v4944_v44, %v4973_v41 }
0x16ee   :  { %v5917_v14 = vpop.eup %5916  ;;  %v4975_v3 = vsel %vm1583_vm8, %v4945_v26, %v4974_v40 }
0x16ef   :  { %v4946_v58 = vmul.f32 %v5917_v14, %v4874_v8  ;;  %v5919_v54 = vpop.eup %5918 }
0x16f0   :  { %v5016_v63 = vmul.f32 4.0, %v5919_v54  ;;  %vm5020_vm4 = vweird.f32 %v5919_v54 }
0x16f1   :  { %v4976_v27 = vsel %vm8441_vm3, %v4946_v58, %v4975_v3  ;;  %vm5273_vm3 = vcmask 130048  }
0x16f2   :  { %5392 = vmatmul.msk.f32.gmra.mxu3 %vm4394_vm15, %v4976_v27  ;;  %v5017_v7 = vsub.f32 1.0, %v5016_v63 }
0x16f4   :  { %v5018_v20 = vmul.f32 %v5919_v54, %v5017_v7  ;;  %v5246_v7 = vld [vmem:[#allocation10 + $0x140] sm:$0xff] }
0x16f5   :  { %5265 = vmatpush.msrb.mxu2 %v5246_v7 }
0x16f6   :  { %v5019_v10 = vadd.f32 %v5919_v54, %v5018_v20 }
0x16f8   :  { %v8349_v28 = vsel %vm5020_vm4, %v5919_v54, %v5019_v10 }
0x1750   :  { %v5001_v52 = vpop.f32.mrf.mxu3 }
0x1751   :  { %v5007_v61 = vadd.f32 %v5001_v52, %v8066_v21 }
0x1753   :  { %v5009_v36 = vsel %vm4394_vm15, %v5007_v61, 0.0 }
0x1754   :  { %5010 = vadd.xlane.f32.xlu2 %v5009_v36 }
0x1775   :  { %v5004_v25 = vpop.f32.mrf.mxu3 }
0x1776   :  { %v5008_v35 = vadd.f32 %v5004_v25, %v8074_v32 }
0x1778   :  { %v5012_v49 = vsel %vm4394_vm15, %v5008_v35, 0.0 }
0x1779   :  { %5013 = vadd.xlane.f32.xlu1 %v5012_v49 }
0x17c7   :  { %v5011_v21 = vpop.xlane.xlu2 %5010 }
0x17c8   :  { %v5022_v48 = vmul.f32 %v8349_v28, %v5011_v21 }
0x17ca   :  { %v5024_v39 = vsub.f32 %v5007_v61, %v5022_v48 }
0x17cc   :  { %v5026_v15 = vmul.f32 %v5024_v39, %v5024_v39 }
0x17ce   :  { %v5028_v32 = vsel %vm4394_vm15, %v5026_v15, 0.0 }
0x17cf   :  { %5029 = vadd.xlane.f32.xlu0 %v5028_v32 }
0x17ec   :  { %v5014_v6 = vpop.xlane.xlu1 %5013 }
0x17ed   :  { %v5023_v37 = vmul.f32 %v8349_v28, %v5014_v6 }
0x17ef   :  { %v5025_v42 = vsub.f32 %v5008_v35, %v5023_v37 }
0x17f1   :  { %v5027_v18 = vmul.f32 %v5025_v42, %v5025_v42 }
0x17f3   :  { %v5031_v2 = vsel %vm4394_vm15, %v5027_v18, 0.0 }
0x17f4   :  { %5032 = vadd.xlane.f32.xlu0 %v5031_v2  ;;  %v5423_v2 = vld [vmem:[#allocation10 + $0x138] ss:$0 sm:$0xff] }
0x1842   :  { %v5030_v59 = vpop.xlane.xlu0 %5029 }
0x1843   :  { %v5034_v24 = vmul.f32 %v5030_v59, %v8349_v28 }
0x1845   :  { %v5036_v57 = vadd.f32 1e-05, %v5034_v24 }
0x1847   :  { %5920 = vrsqrt.f32 %v5036_v57  ;;  %vm5044_vm6 = vweird.f32 %v5036_v57 }
0x184d   :  { %v5921_v23 = vpop.eup %5920 }
0x184e   :  { %v5039_v34 = vmul.f32 %v5921_v23, %v5036_v57  ;;  %vm5045_vm5 = vweird.f32 %v5921_v23 }
0x184f   :  { %vm5046_vm7 = vmor %vm5044_vm6, %vm5045_vm5 }
0x1850   :  { %v5040_v46 = vmul.f32 %v5921_v23, %v5039_v34 }
0x1852   :  { %v5041_v0 = vmul.f32 0.5, %v5040_v46 }
0x1854   :  { %v5042_v50 = vsub.f32 1.5, %v5041_v0 }
0x1856   :  { %v5043_v1 = vmul.f32 %v5921_v23, %v5042_v50 }
0x1858   :  { %v5047_v62 = vsel %vm5046_vm7, %v5921_v23, %v5043_v1 }
0x1859   :  { %v5058_v33 = vmul.f32 %v5047_v62, %v5024_v39  ;;  %v5271_v62 = vld [vmem:[#allocation10 + $0x148] sm:$0xff] }
0x185b   :  { %v5061_v56 = vmul.f32 %v5422_v9, %v5058_v33 }
0x185d   :  { %5394 = vmatmul.msk.f32.vlgmr.msrb.gmra.mxu0 %vm4394_vm15, %v5061_v56 }
0x1867   :  { %v5033_v29 = vpop.xlane.xlu0 %5032 }
0x1868   :  { %v5035_v13 = vmul.f32 %v5033_v29, %v8349_v28 }
0x186a   :  { %v5037_v38 = vadd.f32 1e-05, %v5035_v13 }
0x186c   :  { %5922 = vrsqrt.f32 %v5037_v38  ;;  %vm5054_vm9 = vweird.f32 %v5037_v38 }
0x1872   :  { %v5923_v45 = vpop.eup %5922 }
0x1873   :  { %v5049_v53 = vmul.f32 %v5923_v45, %v5037_v38  ;;  %vm5055_vm8 = vweird.f32 %v5923_v45 }
0x1874   :  { %vm5056_vm14 = vmor %vm5054_vm9, %vm5055_vm8 }
0x1875   :  { %v5050_v60 = vmul.f32 %v5923_v45, %v5049_v53 }
0x1877   :  { %v5051_v12 = vmul.f32 0.5, %v5050_v60 }
0x1879   :  { %v5052_v17 = vsub.f32 1.5, %v5051_v12 }
0x187b   :  { %v5053_v43 = vmul.f32 %v5923_v45, %v5052_v17 }
0x187d   :  { %v5057_v11 = vsel %vm5056_vm14, %v5923_v45, %v5053_v43 }
0x187e   :  { %v5059_v22 = vmul.f32 %v5057_v11, %v5025_v42 }
0x1880   :  { %v5062_v19 = vmul.f32 %v5422_v9, %v5059_v22  ;;  %v5272_v9 = vld [vmem:[#allocation10 + $0x150] sm:$0xff] }
0x1881   :  { %5291 = vmatpush.msrb.mxu3 %v5272_v9 }
0x1882   :  { %5395 = vmatmul.msk.f32.gmra.mxu0 %vm4394_vm15, %v5062_v19 }
0x1883   :  { %5292 = vmatpush.msrb.mxu3 %v5271_v62 }
0x18da   :  { %v5089_v47 = vpop.f32.mrf.mxu0 }
0x18db   :  { %v5095_v30 = vmax.f32 %v5089_v47, 0.0 }
0x18dd   :  { %5397 = vmatmul.msk.f32.vlgmr.msrb.gmra.mxu1 %vm1810_vm1, %v5095_v30 }
0x18ff   :  { %v5092_v55 = vpop.f32.mrf.mxu0 }
0x1900   :  { %v5096_v16 = vmax.f32 %v5092_v55, 0.0 }
0x1902   :  { %5398 = vmatmul.msk.f32.gmra.mxu1 %vm1810_vm1, %v5096_v16 }
0x195a   :  { %v5123_v41 = vpop.f32.mrf.mxu1 }
0x195b   :  { %v5129_v8 = vadd.f32 %v5123_v41, %v5061_v56 }
0x195d   :  { %v5131_v40 = vsel %vm4394_vm15, %v5129_v8, 0.0 }
0x197f   :  { %v5126_v4 = vpop.f32.mrf.mxu1 }
0x1980   :  { %v5130_v44 = vadd.f32 %v5126_v4, %v5062_v19 }
0x1982   :  { %v5134_v26 = vsel %vm4394_vm15, %v5130_v44, 0.0 }
0x1983   :  { %5135 = vadd.xlane.f32.xlu0 %v5134_v26 }
0x198b   :  { %5132 = vadd.xlane.f32.xlu0 %v5131_v40 }
0x19f6   :  { %v5136_v14 = vpop.xlane.xlu0 %5135 }
0x19f7   :  { %v5138_v3 = vmul.f32 %v5136_v14, %v8349_v28 }
0x19f9   :  { %v5140_v58 = vsub.f32 %v5130_v44, %v5138_v3 }
0x19fb   :  { %v5142_v27 = vmul.f32 %v5140_v58, %v5140_v58 }
0x19fd   :  { %v5146_v52 = vsel %vm4394_vm15, %v5142_v27, 0.0 }
0x19fe   :  { %5147 = vadd.xlane.f32.xlu0 %v5146_v52  ;;  %v5133_v61 = vpop.xlane.xlu0 %5132 }
0x19ff   :  { %v5137_v36 = vmul.f32 %v5133_v61, %v8349_v28 }
0x1a01   :  { %v5139_v25 = vsub.f32 %v5129_v8, %v5137_v36 }
0x1a03   :  { %v5141_v35 = vmul.f32 %v5139_v25, %v5139_v25 }
0x1a05   :  { %v5143_v49 = vsel %vm4394_vm15, %v5141_v35, 0.0 }
0x1a06   :  { %5144 = vadd.xlane.f32.xlu0 %v5143_v49 }
0x1a71   :  { %v5148_v31 = vpop.xlane.xlu0 %5147 }
0x1a72   :  { %v5150_v54 = vmul.f32 %v5148_v31, %v8349_v28 }
0x1a74   :  { %v5152_v63 = vadd.f32 1e-05, %v5150_v54 }
0x1a76   :  { %5924 = vrsqrt.f32 %v5152_v63  ;;  %vm5169_vm1 = vweird.f32 %v5152_v63 }
0x1a79   :  { %v5145_v20 = vpop.xlane.xlu0 %5144 }
0x1a7a   :  { %v5149_v10 = vmul.f32 %v5145_v20, %v8349_v28 }
0x1a7c   :  { %v5925_v21 = vpop.eup %5924  ;;  %v5151_v48 = vadd.f32 1e-05, %v5149_v10 }
0x1a7d   :  { %v5164_v39 = vmul.f32 %v5925_v21, %v5152_v63  ;;  %vm5170_vm13 = vweird.f32 %v5925_v21 }
0x1a7e   :  { %5926 = vrsqrt.f32 %v5151_v48  ;;  %vm5171_vm15 = vmor %vm5169_vm1, %vm5170_vm13  ;;  %vm5159_vm10 = vweird.f32 %v5151_v48 }
0x1a7f   :  { %v5165_v15 = vmul.f32 %v5925_v21, %v5164_v39 }
0x1a81   :  { %v5166_v32 = vmul.f32 0.5, %v5165_v15 }
0x1a83   :  { %v5167_v6 = vsub.f32 1.5, %v5166_v32 }
0x1a84   :  { %v5927_v37 = vpop.eup %5926 }
0x1a85   :  { %v5168_v42 = vmul.f32 %v5925_v21, %v5167_v6  ;;  %v5154_v18 = vmul.f32 %v5927_v37, %v5151_v48  ;;  %vm5160_vm2 = vweird.f32 %v5927_v37 }
0x1a86   :  { %vm5161_vm11 = vmor %vm5159_vm10, %vm5160_vm2 }
0x1a87   :  { %v5155_v59 = vmul.f32 %v5927_v37, %v5154_v18  ;;  %v5172_v24 = vsel %vm5171_vm15, %v5925_v21, %v5168_v42 }
0x1a88   :  { %v5174_v57 = vmul.f32 %v5172_v24, %v5140_v58 }
0x1a89   :  { %v5156_v23 = vmul.f32 0.5, %v5155_v59 }
0x1a8a   :  { %v5177_v34 = vmul.f32 %v5423_v2, %v5174_v57 }
0x1a8b   :  { %v5157_v28 = vsub.f32 1.5, %v5156_v23 }
0x1a8c   :  { %5210 = vxpose.xlu0.b32.start.end [1/1] (short) (narrow) %v5177_v34, 8 }
0x1a8d   :  { %v5158_v46 = vmul.f32 %v5927_v37, %v5157_v28 }
0x1a8f   :  { %v5162_v0 = vsel %vm5161_vm11, %v5927_v37, %v5158_v46 }
0x1a90   :  { %v5173_v50 = vmul.f32 %v5162_v0, %v5139_v25 }
0x1a92   :  { %v5176_v1 = vmul.f32 %v5423_v2, %v5173_v50 }
0x1a94   :  { %5178 = vxpose.xlu2.b32.start.end [1/1] (short) (narrow) %v5176_v1, 8 }
0x1b2d   :  { %v5194_v51 = vpop.trf.xlu2 }
0x1b30   :  { %v5226_v33 = vpop.trf.xlu0 }
0x1b31   :  { %v5243_v56 = vrot.slane %v5226_v33, 4 }
0x1b33   :  { %v5245_v5 = vsel %vm3832_vm12, %v5194_v51, %v5243_v56 }
0x1b34   :  { %5399 = vmatmul.msk.f32.vlgmr.msrb.gmra.mxu2 %vm241_vm0, %v5245_v5 }
0x1bb7   :  { %v5267_v29 = vpop.f32.mrf.mxu2 }
0x1bb8   :  { %v5270_v13 = vmax.f32 %v5267_v29, 0.0 }
0x1bba   :  { %5400 = vmatmul.msk.f32.vlgmr.msrb.gmra.mxu3 %vm5273_vm3, %v5270_v13 }
0x1c3d   :  { %v5294_v38 = vpop.f32.mrf.mxu3 }
0x1c3e   :  { %5297 = vst.msk [vmem:[#allocation11] sm:$0xff] %vm241_vm0, %v5294_v38 }
0x1c3f   :  { %5308 = dma.vmem_to_hbm [thread:$0]  %s5304_s4, 128, %s5306_s21, [#allocation4]  }
0x1c40   :  { %6080 = dma.done.wait [#allocation4], 128  }
0x1c41   :  { %6081 = vsyncadd [#allocation4], 4294967168 }
0x1c42   :  { %5313 = vsyncpa [#allocation3], 1 }
0x1c43   :  { %5314 = vsyncpa [#allocation6], 1 }
0x1c44   :  { %5315 = vsyncpa [#allocation9], 1 }
0x1c45   :  { %5316 = vsyncpa [#allocation4], 1 }

</bundles_post_ra>
